<compile_context>
chip_gen: v7x
topology: tpu7x:2x2x1
jax: 0.10.0
libtpu: 0.0.40
codegen_flags: <defaults>
</compile_context>

<pallas_src>
import functools

import jax
import jax.numpy as jnp
from jax.experimental import pallas as pl
from jax.experimental.pallas import tpu as pltpu


# ----------------------------------------------------------------------------
# small helpers
# ----------------------------------------------------------------------------
def _round_up(x, m):
    return -(-x // m) * m


def _pad_axis(a, axis, new_size, value=0.0):
    if a.shape[axis] == new_size:
        return a
    pad = [(0, 0)] * a.ndim
    pad[axis] = (0, new_size - a.shape[axis])
    return jnp.pad(a, pad, constant_values=value)


def _fold_bn(gamma, beta, mean, var, eps=1e-5):
    scale = gamma / jnp.sqrt(var + eps)
    shift = beta - mean * scale
    return scale, shift


# ----------------------------------------------------------------------------
# Pallas kernels
# ----------------------------------------------------------------------------
def _mm_bn_kernel(x_ref, w_ref, s_ref, b_ref, o_ref, acc_ref, *, relu):
    """Tiled  o = maybe_relu((x @ w) * scale + shift);  K is grid axis 2."""
    k = pl.program_id(2)

    @pl.when(k == 0)
    def _init():
        acc_ref[...] = jnp.zeros_like(acc_ref)

    acc_ref[...] += jnp.dot(x_ref[...], w_ref[...],
                            preferred_element_type=jnp.float32)

    @pl.when(k == pl.num_programs(2) - 1)
    def _finalize():
        y = acc_ref[...] * s_ref[...] + b_ref[...]
        if relu:
            y = jnp.maximum(y, 0.0)
        o_ref[...] = y.astype(o_ref.dtype)


def _mm_bn_res_kernel(x_ref, w_ref, s_ref, b_ref, r_ref, o_ref, acc_ref, *, relu):
    """Tiled  o = maybe_relu((x @ w) * scale + shift + residual)."""
    k = pl.program_id(2)

    @pl.when(k == 0)
    def _init():
        acc_ref[...] = jnp.zeros_like(acc_ref)

    acc_ref[...] += jnp.dot(x_ref[...], w_ref[...],
                            preferred_element_type=jnp.float32)

    @pl.when(k == pl.num_programs(2) - 1)
    def _finalize():
        y = acc_ref[...] * s_ref[...] + b_ref[...] + r_ref[...]
        if relu:
            y = jnp.maximum(y, 0.0)
        o_ref[...] = y.astype(o_ref.dtype)


def _conv3x3_bn_kernel(x_ref, w_ref, s_ref, b_ref, o_ref, acc_ref, *,
                       stride, Ho, Wo):
    """3x3 conv (padding=1, given stride) + BN + ReLU for one batch image and
    one output-channel tile.  The 9 taps are gathered in VMEM (no HBM im2col).

    x_ref : (1, Hq, stride, Wq, stride, Cin)  -- stride-parity reshaped, padded
    w_ref : (3, 3, Cin, tn)
    o_ref : (1, Ho*Wo, tn)
    """
    cin = x_ref.shape[-1]
    acc_ref[...] = jnp.zeros_like(acc_ref)
    for kh in range(3):
        for kw in range(3):
            # padded pixel (stride*ho + kh, stride*wo + kw) ==
            #   parity plane (kh % stride, kw % stride), offset (kh//s, kw//s)
            xt = x_ref[0,
                       pl.ds(kh // stride, Ho), kh % stride,
                       pl.ds(kw // stride, Wo), kw % stride, :]
            # NOTE: Ho/Wo are multiples of 8 here so this reshape is a pure
            # sublane re-tile (no relayout copy).
            xt = xt.reshape(Ho * Wo, cin)
            acc_ref[...] += jnp.dot(xt, w_ref[kh, kw],
                                    preferred_element_type=jnp.float32)
    y = acc_ref[...] * s_ref[...] + b_ref[...]
    o_ref[0] = jnp.maximum(y, 0.0).astype(o_ref.dtype)


# ----------------------------------------------------------------------------
# Pallas wrappers
# ----------------------------------------------------------------------------
def fused_matmul_bn(x, w, scale, shift, *, relu, residual=None,
                    out_dtype=jnp.float32):
    """x: (M, K), w: (K, N) with K, N multiples of 128.  Returns (M, N)."""
    M, K = x.shape
    Kw, Nn = w.shape
    assert K == Kw and K % 128 == 0 and Nn % 128 == 0

    tm = min(256, _round_up(M, 8))
    Mp = _round_up(M, tm)
    tn = 256 if Nn % 256 == 0 else 128
    tk = 256 if K % 256 == 0 else 128

    xb = _pad_axis(x, 0, Mp).astype(jnp.bfloat16)
    wb = w.astype(jnp.bfloat16)
    sb = scale.reshape(1, Nn).astype(jnp.float32)
    bb = shift.reshape(1, Nn).astype(jnp.float32)

    in_specs = [
        pl.BlockSpec((tm, tk), lambda i, j, k: (i, k)),
        pl.BlockSpec((tk, tn), lambda i, j, k: (k, j)),
        pl.BlockSpec((1, tn), lambda i, j, k: (0, j)),
        pl.BlockSpec((1, tn), lambda i, j, k: (0, j)),
    ]
    args = [xb, wb, sb, bb]
    bytes_accessed = xb.size * 2 + wb.size * 2 + Mp * Nn * jnp.dtype(out_dtype).itemsize
    if residual is None:
        kernel = functools.partial(_mm_bn_kernel, relu=relu)
    else:
        rb = _pad_axis(residual, 0, Mp).astype(jnp.float32)
        in_specs.append(pl.BlockSpec((tm, tn), lambda i, j, k: (i, j)))
        args.append(rb)
        bytes_accessed += rb.size * 4
        kernel = functools.partial(_mm_bn_res_kernel, relu=relu)

    out = pl.pallas_call(
        kernel,
        out_shape=jax.ShapeDtypeStruct((Mp, Nn), out_dtype),
        grid=(Mp // tm, Nn // tn, K // tk),
        in_specs=in_specs,
        out_specs=pl.BlockSpec((tm, tn), lambda i, j, k: (i, j)),
        scratch_shapes=[pltpu.VMEM((tm, tn), jnp.float32)],
        compiler_params=pltpu.CompilerParams(
            dimension_semantics=("parallel", "parallel", "arbitrary"),
            vmem_limit_bytes=32 * 1024 * 1024),
        cost_estimate=pl.CostEstimate(flops=2 * Mp * Nn * K, transcendentals=0,
                                      bytes_accessed=bytes_accessed),
    )(*args)
    return out[:M] if Mp != M else out


def conv3x3_bn_relu(y_nhwc, w2, scale, shift, stride):
    """y_nhwc: (N, H, W, Cin) channel-padded bf16; w2: (3, 3, Cin, Cout).
    Returns ((N, Ho*Wo, Cout) bf16, Ho, Wo)."""
    N, H, W, Cin = y_nhwc.shape
    Cout = w2.shape[3]
    assert Cin % 128 == 0 and Cout % 128 == 0
    Ho = (H + 2 - 3) // stride + 1
    Wo = (W + 2 - 3) // stride + 1
    Hp, Wp = H + 2, W + 2
    Hps, Wps = _round_up(Hp, stride), _round_up(Wp, stride)

    # spatial zero pad (conv padding=1, plus stride alignment on the far side)
    yp = jnp.pad(y_nhwc, ((0, 0), (1, 1 + Hps - Hp), (1, 1 + Wps - Wp), (0, 0)))
    Hq, Wq = Hps // stride, Wps // stride
    # row-major reshape -> free; exposes stride parity as its own axes
    ypr = yp.reshape(N, Hq, stride, Wq, stride, Cin)

    tn = 256 if Cout % 256 == 0 else 128
    kernel = functools.partial(_conv3x3_bn_kernel, stride=stride, Ho=Ho, Wo=Wo)
    out = pl.pallas_call(
        kernel,
        out_shape=jax.ShapeDtypeStruct((N, Ho * Wo, Cout), jnp.bfloat16),
        grid=(N, Cout // tn),
        in_specs=[
            pl.BlockSpec((1, Hq, stride, Wq, stride, Cin),
                         lambda n, j: (n, 0, 0, 0, 0, 0)),
            pl.BlockSpec((3, 3, Cin, tn), lambda n, j: (0, 0, 0, j)),
            pl.BlockSpec((1, tn), lambda n, j: (0, j)),
            pl.BlockSpec((1, tn), lambda n, j: (0, j)),
        ],
        out_specs=pl.BlockSpec((1, Ho * Wo, tn), lambda n, j: (n, 0, j)),
        scratch_shapes=[pltpu.VMEM((Ho * Wo, tn), jnp.float32)],
        compiler_params=pltpu.CompilerParams(
            dimension_semantics=("parallel", "parallel"),
            vmem_limit_bytes=32 * 1024 * 1024),
        cost_estimate=pl.CostEstimate(
            flops=2 * N * Ho * Wo * 9 * Cin * Cout, transcendentals=0,
            bytes_accessed=ypr.size * 2 + w2.size * 2 + N * Ho * Wo * Cout * 2),
    )(ypr, w2.astype(jnp.bfloat16),
      scale.reshape(1, Cout).astype(jnp.float32),
      shift.reshape(1, Cout).astype(jnp.float32))
    return out, Ho, Wo


# ----------------------------------------------------------------------------
# BottleNeck forward
# ----------------------------------------------------------------------------
def bottleneck_forward(x_nchw, params, stride, has_shortcut):
    """Pallas implementation of BottleNeck.forward.  x is NCHW, result is NCHW."""
    N, Cin, H, W = x_nchw.shape
    width = params["w1"].shape[1]
    cexp = params["w3"].shape[1]

    # lane-dense channel padding targets
    Kp0 = _round_up(Cin, 128)
    Cp1 = _round_up(width, 128)
    Cp3 = _round_up(cexp, 128)

    # TODO(synk): the NCHW<->NHWC transposes at the boundary could be dropped
    # if the surrounding model kept activations NHWC end to end.
    x = jnp.transpose(x_nchw, (0, 2, 3, 1))                      # NHWC
    x_flat = _pad_axis(x.reshape(N * H * W, Cin), 1, Kp0)

    def fold_pad(bn, cpad):
        s, b = _fold_bn(*bn)
        return _pad_axis(s, 0, cpad, 1.0), _pad_axis(b, 0, cpad, 0.0)

    s1, b1 = fold_pad(params["bn1"], Cp1)
    s2, b2 = fold_pad(params["bn2"], Cp1)
    s3, b3 = fold_pad(params["bn3"], Cp3)
    w1p = _pad_axis(_pad_axis(params["w1"], 0, Kp0), 1, Cp1)     # (Kp0, Cp1)
    w2p = _pad_axis(_pad_axis(params["w2"], 2, Cp1), 3, Cp1)     # (3,3,Cp1,Cp1)
    w3p = _pad_axis(_pad_axis(params["w3"], 0, Cp1), 1, Cp3)     # (Cp1, Cp3)

    # --- conv1 (1x1) + BN + ReLU --------------------------------------------
    y1 = fused_matmul_bn(x_flat, w1p, s1, b1, relu=True,
                         out_dtype=jnp.bfloat16)                 # (N*H*W, Cp1)
    y1 = y1.reshape(N, H, W, Cp1)

    # --- conv2 (3x3, stride, pad=1) + BN + ReLU ------------------------------
    y2, Ho, Wo = conv3x3_bn_relu(y1, w2p, s2, b2, stride)        # (N, Ho*Wo, Cp1)
    M2 = N * Ho * Wo

    # --- shortcut -------------------------------------------------------------
    if has_shortcut:
        ws = _pad_axis(_pad_axis(params["ws"], 0, Kp0), 1, Cp3)
        ss, bs = fold_pad(params["bns"], Cp3)
        xs = x[:, ::stride, ::stride, :].reshape(M2, Cin)
        sc = fused_matmul_bn(_pad_axis(xs, 1, Kp0), ws, ss, bs, relu=False,
                             out_dtype=jnp.float32)              # (M2, Cp3)
    else:
        sc = _pad_axis(x.reshape(M2, Cin), 1, Cp3)               # identity

    # --- conv3 (1x1) + BN + residual add + ReLU (fused epilogue) -------------
    out = fused_matmul_bn(y2.reshape(M2, Cp1), w3p, s3, b3, relu=True,
                          residual=sc, out_dtype=jnp.float32)    # (M2, Cp3)

    out = out[:, :cexp].reshape(N, Ho, Wo, cexp)
    return jnp.transpose(out, (0, 3, 1, 2))                      # back to NCHW


# ----------------------------------------------------------------------------
# Pure-JAX reference (for correctness check)
# ----------------------------------------------------------------------------
def _ref_forward(x_nchw, params, stride, has_shortcut):
    def conv(x, w_oihw, stride=1, pad=0):
        return jax.lax.conv_general_dilated(
            x, w_oihw, (stride, stride), [(pad, pad), (pad, pad)],
            dimension_numbers=("NCHW", "OIHW", "NCHW"))

    def bn(x, p):
        gamma, beta, mean, var = p
        s = gamma / jnp.sqrt(var + 1e-5)
        return x * s[None, :, None, None] + (beta - mean * s)[None, :, None, None]

    w1 = params["w1"].T[:, :, None, None]
    w2 = jnp.transpose(params["w2"], (3, 2, 0, 1))
    w3 = params["w3"].T[:, :, None, None]

    y = jax.nn.relu(bn(conv(x_nchw, w1), params["bn1"]))
    y = jax.nn.relu(bn(conv(y, w2, stride=stride, pad=1), params["bn2"]))
    res = bn(conv(y, w3), params["bn3"])
    if has_shortcut:
        ws = params["ws"].T[:, :, None, None]
        sc = bn(conv(x_nchw, ws, stride=stride), params["bns"])
    else:
        sc = x_nchw
    return jax.nn.relu(res + sc)


# ----------------------------------------------------------------------------
# Parameter init + driver
# ----------------------------------------------------------------------------
def init_params(key, in_channels, out_channels, base_width=64):
    width = int(out_channels * (base_width / 64.0))
    cexp = out_channels * 4

    def bn_params(k, c):
        k1, k2, k3, k4 = jax.random.split(k, 4)
        gamma = jax.random.uniform(k1, (c,), minval=0.5, maxval=1.5)
        beta = 0.1 * jax.random.normal(k2, (c,))
        mean = 0.1 * jax.random.normal(k3, (c,))
        var = jax.random.uniform(k4, (c,), minval=0.5, maxval=1.5)
        return (gamma, beta, mean, var)

    ks = jax.random.split(key, 8)
    params = {
        "w1": 0.1 * jax.random.normal(ks[0], (in_channels, width)),
        "bn1": bn_params(ks[1], width),
        "w2": 0.1 * jax.random.normal(ks[2], (3, 3, width, width)),
        "bn2": bn_params(ks[3], width),
        "w3": 0.1 * jax.random.normal(ks[4], (width, cexp)),
        "bn3": bn_params(ks[5], cexp),
        "ws": 0.1 * jax.random.normal(ks[6], (in_channels, cexp)),
        "bns": bn_params(ks[7], cexp),
    }
    return jax.tree.map(lambda a: a.astype(jnp.float32), params)


if __name__ == "__main__":
    key = jax.random.PRNGKey(0)
    fwd = jax.jit(bottleneck_forward, static_argnums=(2, 3))

    # (N, Cin, H, W, out_channels, stride)
    configs = [
        (2, 16, 16, 16, 8, 2),   # stride-2 block -> projection shortcut
        (2, 32, 16, 16, 8, 1),   # stride-1, Cin == 4*out_channels -> identity shortcut
    ]
    for idx, (N, Cin, H, W, oc, stride) in enumerate(configs):
        kx, kp = jax.random.split(jax.random.fold_in(key, idx))
        has_shortcut = (stride != 1) or (Cin != oc * 4)

        x = jax.random.normal(kx, (N, Cin, H, W), dtype=jnp.float32)
        params = init_params(kp, Cin, oc)

        out = jax.block_until_ready(fwd(x, params, stride, has_shortcut))
        ref = jax.block_until_ready(_ref_forward(x, params, stride, has_shortcut))

        Ho = (H + 2 - 3) // stride + 1
        Wo = (W + 2 - 3) // stride + 1
        assert out.shape == (N, oc * 4, Ho, Wo), out.shape
        err = float(jnp.max(jnp.abs(out - ref)))
        assert err < 5e-2, f"config {idx}: max abs err {err}"   # bf16 MXU inputs

    print("KERNEL_OK")
</pallas_src>

<mosaic_0001>
module attributes {stable_mosaic.version = 11 : i64} {
  func.func @_mm_bn_kernel(%arg0: i32, %arg1: i32, %arg2: i32, %arg3: memref<128x128xbf16, #tpu.memory_space<vmem>>, %arg4: memref<128x128xbf16, #tpu.memory_space<vmem>>, %arg5: memref<1x128xf32, #tpu.memory_space<vmem>>, %arg6: memref<1x128xf32, #tpu.memory_space<vmem>>, %arg7: memref<128x128xf32, #tpu.memory_space<vmem>>, %arg8: memref<128x128xf32, #tpu.memory_space<vmem>>) attributes {dimension_semantics = [#tpu.dimension_semantics<parallel>, #tpu.dimension_semantics<parallel>, #tpu.dimension_semantics<arbitrary>], iteration_bounds = array<i64: 1, 1, 1>, scalar_prefetch = 0 : i64, scratch_operands = 1 : i64, tpu.core_type = #tpu.core_type<tc>, window_params = [{transform_indices = @transform_0, window_bounds = array<i64: 128, 128>}, {transform_indices = @transform_1, window_bounds = array<i64: 128, 128>}, {transform_indices = @transform_2, window_bounds = array<i64: 1, 128>}, {transform_indices = @transform_3, window_bounds = array<i64: 1, 128>}, {transform_indices = @transform_4, window_bounds = array<i64: 128, 128>}]} {
    %c0_i32 = arith.constant 0 : i32
    %0 = arith.cmpi eq, %arg2, %c0_i32 : i32
    %1 = arith.extui %0 : i1 to i32
    %c0_i32_0 = arith.constant 0 : i32
    %2 = arith.cmpi ne, %1, %c0_i32_0 : i32
    scf.if %2 {
      %cst_10 = arith.constant 0.000000e+00 : f32
      %12 = vector.broadcast %cst_10 : f32 to vector<128x128xf32>
      %c0_11 = arith.constant 0 : index
      %c0_12 = arith.constant 0 : index
      %13 = vector.load %arg8[%c0_11, %c0_12] : memref<128x128xf32, #tpu.memory_space<vmem>>, vector<128x128xf32>
      tpu.vector_store %arg8[%c0_11, %c0_12], %12 {strides = array<i32>} : memref<128x128xf32, #tpu.memory_space<vmem>>, vector<128x128xf32>,
    } else {
    }
    %c0 = arith.constant 0 : index
    %c0_1 = arith.constant 0 : index
    %3 = vector.load %arg8[%c0, %c0_1] : memref<128x128xf32, #tpu.memory_space<vmem>>, vector<128x128xf32>
    %c0_2 = arith.constant 0 : index
    %c0_3 = arith.constant 0 : index
    %4 = vector.load %arg3[%c0_2, %c0_3] : memref<128x128xbf16, #tpu.memory_space<vmem>>, vector<128x128xbf16>
    %c0_4 = arith.constant 0 : index
    %c0_5 = arith.constant 0 : index
    %5 = vector.load %arg4[%c0_4, %c0_5] : memref<128x128xbf16, #tpu.memory_space<vmem>>, vector<128x128xbf16>
    %cst = arith.constant dense<0.000000e+00> : vector<128x128xf32>
    %6 = tpu.matmul %4, %5, %cst {dimension_numbers = #tpu.dot_dimension_numbers<[1], [0], [0], [1], [0, 0, 1, 1], [], []>} : vector<128x128xbf16>, vector<128x128xbf16>, vector<128x128xf32> -> vector<128x128xf32>
    %7 = arith.addf %3, %6 : vector<128x128xf32>
    %c0_6 = arith.constant 0 : index
    %c0_7 = arith.constant 0 : index
    %8 = vector.load %arg8[%c0_6, %c0_7] : memref<128x128xf32, #tpu.memory_space<vmem>>, vector<128x128xf32>
    tpu.vector_store %arg8[%c0_6, %c0_7], %7 {strides = array<i32>} : memref<128x128xf32, #tpu.memory_space<vmem>>, vector<128x128xf32>,
    %c0_i32_8 = arith.constant 0 : i32
    %9 = arith.cmpi eq, %arg2, %c0_i32_8 : i32
    %10 = arith.extui %9 : i1 to i32
    %c0_i32_9 = arith.constant 0 : i32
    %11 = arith.cmpi ne, %10, %c0_i32_9 : i32
    scf.if %11 {
      %c0_10 = arith.constant 0 : index
      %c0_11 = arith.constant 0 : index
      %12 = vector.load %arg8[%c0_10, %c0_11] : memref<128x128xf32, #tpu.memory_space<vmem>>, vector<128x128xf32>
      %c0_12 = arith.constant 0 : index
      %c0_13 = arith.constant 0 : index
      %13 = vector.load %arg5[%c0_12, %c0_13] : memref<1x128xf32, #tpu.memory_space<vmem>>, vector<1x128xf32>
      %14 = vector.broadcast %13 : vector<1x128xf32> to vector<128x128xf32>
      %15 = arith.mulf %12, %14 : vector<128x128xf32>
      %c0_14 = arith.constant 0 : index
      %c0_15 = arith.constant 0 : index
      %16 = vector.load %arg6[%c0_14, %c0_15] : memref<1x128xf32, #tpu.memory_space<vmem>>, vector<1x128xf32>
      %17 = vector.broadcast %16 : vector<1x128xf32> to vector<128x128xf32>
      %18 = arith.addf %15, %17 : vector<128x128xf32>
      %c0_16 = arith.constant 0 : index
      %c0_17 = arith.constant 0 : index
      %19 = vector.load %arg7[%c0_16, %c0_17] : memref<128x128xf32, #tpu.memory_space<vmem>>, vector<128x128xf32>
      tpu.vector_store %arg7[%c0_16, %c0_17], %18 {strides = array<i32>} : memref<128x128xf32, #tpu.memory_space<vmem>>, vector<128x128xf32>,
    } else {
    }
    return
  }
  func.func @transform_0(%arg0: i32, %arg1: i32, %arg2: i32) -> (i32, i32) {
    %c0_i32 = arith.constant 0 : i32
    return %arg0, %arg2 : i32, i32
  }
  func.func @transform_1(%arg0: i32, %arg1: i32, %arg2: i32) -> (i32, i32) {
    %c0_i32 = arith.constant 0 : i32
    return %arg2, %arg1 : i32, i32
  }
  func.func @transform_2(%arg0: i32, %arg1: i32, %arg2: i32) -> (i32, i32) {
    %c0_i32 = arith.constant 0 : i32
    %c0_i32_0 = arith.constant 0 : i32
    return %c0_i32, %arg1 : i32, i32
  }
  func.func @transform_3(%arg0: i32, %arg1: i32, %arg2: i32) -> (i32, i32) {
    %c0_i32 = arith.constant 0 : i32
    %c0_i32_0 = arith.constant 0 : i32
    return %c0_i32, %arg1 : i32, i32
  }
  func.func @transform_4(%arg0: i32, %arg1: i32, %arg2: i32) -> (i32, i32) {
    %c0_i32 = arith.constant 0 : i32
    return %arg0, %arg1 : i32, i32
  }
}

module attributes {stable_mosaic.version = 11 : i64} {
  func.func @_mm_bn_kernel(%arg0: i32, %arg1: i32, %arg2: i32, %arg3: memref<256x128xbf16, #tpu.memory_space<vmem>>, %arg4: memref<128x128xbf16, #tpu.memory_space<vmem>>, %arg5: memref<1x128xf32, #tpu.memory_space<vmem>>, %arg6: memref<1x128xf32, #tpu.memory_space<vmem>>, %arg7: memref<256x128xbf16, #tpu.memory_space<vmem>>, %arg8: memref<256x128xf32, #tpu.memory_space<vmem>>) attributes {dimension_semantics = [#tpu.dimension_semantics<parallel>, #tpu.dimension_semantics<parallel>, #tpu.dimension_semantics<arbitrary>], iteration_bounds = array<i64: 2, 1, 1>, scalar_prefetch = 0 : i64, scratch_operands = 1 : i64, tpu.core_type = #tpu.core_type<tc>, window_params = [{transform_indices = @transform_0, window_bounds = array<i64: 256, 128>}, {transform_indices = @transform_1, window_bounds = array<i64: 128, 128>}, {transform_indices = @transform_2, window_bounds = array<i64: 1, 128>}, {transform_indices = @transform_3, window_bounds = array<i64: 1, 128>}, {transform_indices = @transform_4, window_bounds = array<i64: 256, 128>}]} {
    %c0_i32 = arith.constant 0 : i32
    %0 = arith.cmpi eq, %arg2, %c0_i32 : i32
    %1 = arith.extui %0 : i1 to i32
    %c0_i32_0 = arith.constant 0 : i32
    %2 = arith.cmpi ne, %1, %c0_i32_0 : i32
    scf.if %2 {
      %cst_10 = arith.constant 0.000000e+00 : f32
      %12 = vector.broadcast %cst_10 : f32 to vector<256x128xf32>
      %c0_11 = arith.constant 0 : index
      %c0_12 = arith.constant 0 : index
      %13 = vector.load %arg8[%c0_11, %c0_12] : memref<256x128xf32, #tpu.memory_space<vmem>>, vector<256x128xf32>
      tpu.vector_store %arg8[%c0_11, %c0_12], %12 {strides = array<i32>} : memref<256x128xf32, #tpu.memory_space<vmem>>, vector<256x128xf32>,
    } else {
    }
    %c0 = arith.constant 0 : index
    %c0_1 = arith.constant 0 : index
    %3 = vector.load %arg8[%c0, %c0_1] : memref<256x128xf32, #tpu.memory_space<vmem>>, vector<256x128xf32>
    %c0_2 = arith.constant 0 : index
    %c0_3 = arith.constant 0 : index
    %4 = vector.load %arg3[%c0_2, %c0_3] : memref<256x128xbf16, #tpu.memory_space<vmem>>, vector<256x128xbf16>
    %c0_4 = arith.constant 0 : index
    %c0_5 = arith.constant 0 : index
    %5 = vector.load %arg4[%c0_4, %c0_5] : memref<128x128xbf16, #tpu.memory_space<vmem>>, vector<128x128xbf16>
    %cst = arith.constant dense<0.000000e+00> : vector<256x128xf32>
    %6 = tpu.matmul %4, %5, %cst {dimension_numbers = #tpu.dot_dimension_numbers<[1], [0], [0], [1], [0, 0, 1, 1], [], []>} : vector<256x128xbf16>, vector<128x128xbf16>, vector<256x128xf32> -> vector<256x128xf32>
    %7 = arith.addf %3, %6 : vector<256x128xf32>
    %c0_6 = arith.constant 0 : index
    %c0_7 = arith.constant 0 : index
    %8 = vector.load %arg8[%c0_6, %c0_7] : memref<256x128xf32, #tpu.memory_space<vmem>>, vector<256x128xf32>
    tpu.vector_store %arg8[%c0_6, %c0_7], %7 {strides = array<i32>} : memref<256x128xf32, #tpu.memory_space<vmem>>, vector<256x128xf32>,
    %c0_i32_8 = arith.constant 0 : i32
    %9 = arith.cmpi eq, %arg2, %c0_i32_8 : i32
    %10 = arith.extui %9 : i1 to i32
    %c0_i32_9 = arith.constant 0 : i32
    %11 = arith.cmpi ne, %10, %c0_i32_9 : i32
    scf.if %11 {
      %c0_10 = arith.constant 0 : index
      %c0_11 = arith.constant 0 : index
      %12 = vector.load %arg8[%c0_10, %c0_11] : memref<256x128xf32, #tpu.memory_space<vmem>>, vector<256x128xf32>
      %c0_12 = arith.constant 0 : index
      %c0_13 = arith.constant 0 : index
      %13 = vector.load %arg5[%c0_12, %c0_13] : memref<1x128xf32, #tpu.memory_space<vmem>>, vector<1x128xf32>
      %14 = vector.broadcast %13 : vector<1x128xf32> to vector<256x128xf32>
      %15 = arith.mulf %12, %14 : vector<256x128xf32>
      %c0_14 = arith.constant 0 : index
      %c0_15 = arith.constant 0 : index
      %16 = vector.load %arg6[%c0_14, %c0_15] : memref<1x128xf32, #tpu.memory_space<vmem>>, vector<1x128xf32>
      %17 = vector.broadcast %16 : vector<1x128xf32> to vector<256x128xf32>
      %18 = arith.addf %15, %17 : vector<256x128xf32>
      %cst_16 = arith.constant 0.000000e+00 : f32
      %19 = vector.broadcast %cst_16 : f32 to vector<256x128xf32>
      %20 = arith.maximumf %18, %19 : vector<256x128xf32>
      %21 = arith.truncf %20 : vector<256x128xf32> to vector<256x128xbf16>
      %c0_17 = arith.constant 0 : index
      %c0_18 = arith.constant 0 : index
      %22 = vector.load %arg7[%c0_17, %c0_18] : memref<256x128xbf16, #tpu.memory_space<vmem>>, vector<256x128xbf16>
      tpu.vector_store %arg7[%c0_17, %c0_18], %21 {strides = array<i32>} : memref<256x128xbf16, #tpu.memory_space<vmem>>, vector<256x128xbf16>,
    } else {
    }
    return
  }
  func.func @transform_0(%arg0: i32, %arg1: i32, %arg2: i32) -> (i32, i32) {
    %c0_i32 = arith.constant 0 : i32
    return %arg0, %arg2 : i32, i32
  }
  func.func @transform_1(%arg0: i32, %arg1: i32, %arg2: i32) -> (i32, i32) {
    %c0_i32 = arith.constant 0 : i32
    return %arg2, %arg1 : i32, i32
  }
  func.func @transform_2(%arg0: i32, %arg1: i32, %arg2: i32) -> (i32, i32) {
    %c0_i32 = arith.constant 0 : i32
    %c0_i32_0 = arith.constant 0 : i32
    return %c0_i32, %arg1 : i32, i32
  }
  func.func @transform_3(%arg0: i32, %arg1: i32, %arg2: i32) -> (i32, i32) {
    %c0_i32 = arith.constant 0 : i32
    %c0_i32_0 = arith.constant 0 : i32
    return %c0_i32, %arg1 : i32, i32
  }
  func.func @transform_4(%arg0: i32, %arg1: i32, %arg2: i32) -> (i32, i32) {
    %c0_i32 = arith.constant 0 : i32
    return %arg0, %arg1 : i32, i32
  }
}

module attributes {stable_mosaic.version = 11 : i64} {
  func.func @_mm_bn_res_kernel(%arg0: i32, %arg1: i32, %arg2: i32, %arg3: memref<128x128xbf16, #tpu.memory_space<vmem>>, %arg4: memref<128x128xbf16, #tpu.memory_space<vmem>>, %arg5: memref<1x128xf32, #tpu.memory_space<vmem>>, %arg6: memref<1x128xf32, #tpu.memory_space<vmem>>, %arg7: memref<128x128xf32, #tpu.memory_space<vmem>>, %arg8: memref<128x128xf32, #tpu.memory_space<vmem>>, %arg9: memref<128x128xf32, #tpu.memory_space<vmem>>) attributes {dimension_semantics = [#tpu.dimension_semantics<parallel>, #tpu.dimension_semantics<parallel>, #tpu.dimension_semantics<arbitrary>], iteration_bounds = array<i64: 1, 1, 1>, scalar_prefetch = 0 : i64, scratch_operands = 1 : i64, tpu.core_type = #tpu.core_type<tc>, window_params = [{transform_indices = @transform_0, window_bounds = array<i64: 128, 128>}, {transform_indices = @transform_1, window_bounds = array<i64: 128, 128>}, {transform_indices = @transform_2, window_bounds = array<i64: 1, 128>}, {transform_indices = @transform_3, window_bounds = array<i64: 1, 128>}, {transform_indices = @transform_4, window_bounds = array<i64: 128, 128>}, {transform_indices = @transform_5, window_bounds = array<i64: 128, 128>}]} {
    %c0_i32 = arith.constant 0 : i32
    %0 = arith.cmpi eq, %arg2, %c0_i32 : i32
    %1 = arith.extui %0 : i1 to i32
    %c0_i32_0 = arith.constant 0 : i32
    %2 = arith.cmpi ne, %1, %c0_i32_0 : i32
    scf.if %2 {
      %cst_10 = arith.constant 0.000000e+00 : f32
      %12 = vector.broadcast %cst_10 : f32 to vector<128x128xf32>
      %c0_11 = arith.constant 0 : index
      %c0_12 = arith.constant 0 : index
      %13 = vector.load %arg9[%c0_11, %c0_12] : memref<128x128xf32, #tpu.memory_space<vmem>>, vector<128x128xf32>
      tpu.vector_store %arg9[%c0_11, %c0_12], %12 {strides = array<i32>} : memref<128x128xf32, #tpu.memory_space<vmem>>, vector<128x128xf32>,
    } else {
    }
    %c0 = arith.constant 0 : index
    %c0_1 = arith.constant 0 : index
    %3 = vector.load %arg9[%c0, %c0_1] : memref<128x128xf32, #tpu.memory_space<vmem>>, vector<128x128xf32>
    %c0_2 = arith.constant 0 : index
    %c0_3 = arith.constant 0 : index
    %4 = vector.load %arg3[%c0_2, %c0_3] : memref<128x128xbf16, #tpu.memory_space<vmem>>, vector<128x128xbf16>
    %c0_4 = arith.constant 0 : index
    %c0_5 = arith.constant 0 : index
    %5 = vector.load %arg4[%c0_4, %c0_5] : memref<128x128xbf16, #tpu.memory_space<vmem>>, vector<128x128xbf16>
    %cst = arith.constant dense<0.000000e+00> : vector<128x128xf32>
    %6 = tpu.matmul %4, %5, %cst {dimension_numbers = #tpu.dot_dimension_numbers<[1], [0], [0], [1], [0, 0, 1, 1], [], []>} : vector<128x128xbf16>, vector<128x128xbf16>, vector<128x128xf32> -> vector<128x128xf32>
    %7 = arith.addf %3, %6 : vector<128x128xf32>
    %c0_6 = arith.constant 0 : index
    %c0_7 = arith.constant 0 : index
    %8 = vector.load %arg9[%c0_6, %c0_7] : memref<128x128xf32, #tpu.memory_space<vmem>>, vector<128x128xf32>
    tpu.vector_store %arg9[%c0_6, %c0_7], %7 {strides = array<i32>} : memref<128x128xf32, #tpu.memory_space<vmem>>, vector<128x128xf32>,
    %c0_i32_8 = arith.constant 0 : i32
    %9 = arith.cmpi eq, %arg2, %c0_i32_8 : i32
    %10 = arith.extui %9 : i1 to i32
    %c0_i32_9 = arith.constant 0 : i32
    %11 = arith.cmpi ne, %10, %c0_i32_9 : i32
    scf.if %11 {
      %c0_10 = arith.constant 0 : index
      %c0_11 = arith.constant 0 : index
      %12 = vector.load %arg9[%c0_10, %c0_11] : memref<128x128xf32, #tpu.memory_space<vmem>>, vector<128x128xf32>
      %c0_12 = arith.constant 0 : index
      %c0_13 = arith.constant 0 : index
      %13 = vector.load %arg5[%c0_12, %c0_13] : memref<1x128xf32, #tpu.memory_space<vmem>>, vector<1x128xf32>
      %14 = vector.broadcast %13 : vector<1x128xf32> to vector<128x128xf32>
      %15 = arith.mulf %12, %14 : vector<128x128xf32>
      %c0_14 = arith.constant 0 : index
      %c0_15 = arith.constant 0 : index
      %16 = vector.load %arg6[%c0_14, %c0_15] : memref<1x128xf32, #tpu.memory_space<vmem>>, vector<1x128xf32>
      %17 = vector.broadcast %16 : vector<1x128xf32> to vector<128x128xf32>
      %18 = arith.addf %15, %17 : vector<128x128xf32>
      %c0_16 = arith.constant 0 : index
      %c0_17 = arith.constant 0 : index
      %19 = vector.load %arg7[%c0_16, %c0_17] : memref<128x128xf32, #tpu.memory_space<vmem>>, vector<128x128xf32>
      %20 = arith.addf %18, %19 : vector<128x128xf32>
      %cst_18 = arith.constant 0.000000e+00 : f32
      %21 = vector.broadcast %cst_18 : f32 to vector<128x128xf32>
      %22 = arith.maximumf %20, %21 : vector<128x128xf32>
      %c0_19 = arith.constant 0 : index
      %c0_20 = arith.constant 0 : index
      %23 = vector.load %arg8[%c0_19, %c0_20] : memref<128x128xf32, #tpu.memory_space<vmem>>, vector<128x128xf32>
      tpu.vector_store %arg8[%c0_19, %c0_20], %22 {strides = array<i32>} : memref<128x128xf32, #tpu.memory_space<vmem>>, vector<128x128xf32>,
    } else {
    }
    return
  }
  func.func @transform_0(%arg0: i32, %arg1: i32, %arg2: i32) -> (i32, i32) {
    %c0_i32 = arith.constant 0 : i32
    return %arg0, %arg2 : i32, i32
  }
  func.func @transform_1(%arg0: i32, %arg1: i32, %arg2: i32) -> (i32, i32) {
    %c0_i32 = arith.constant 0 : i32
    return %arg2, %arg1 : i32, i32
  }
  func.func @transform_2(%arg0: i32, %arg1: i32, %arg2: i32) -> (i32, i32) {
    %c0_i32 = arith.constant 0 : i32
    %c0_i32_0 = arith.constant 0 : i32
    return %c0_i32, %arg1 : i32, i32
  }
  func.func @transform_3(%arg0: i32, %arg1: i32, %arg2: i32) -> (i32, i32) {
    %c0_i32 = arith.constant 0 : i32
    %c0_i32_0 = arith.constant 0 : i32
    return %c0_i32, %arg1 : i32, i32
  }
  func.func @transform_4(%arg0: i32, %arg1: i32, %arg2: i32) -> (i32, i32) {
    %c0_i32 = arith.constant 0 : i32
    return %arg0, %arg1 : i32, i32
  }
  func.func @transform_5(%arg0: i32, %arg1: i32, %arg2: i32) -> (i32, i32) {
    %c0_i32 = arith.constant 0 : i32
    return %arg0, %arg1 : i32, i32
  }
}

module attributes {stable_mosaic.version = 11 : i64} {
  func.func @_conv3x3_bn_kernel(%arg0: i32, %arg1: i32, %arg2: memref<1x9x2x9x2x128xbf16, #tpu.memory_space<vmem>>, %arg3: memref<3x3x128x128xbf16, #tpu.memory_space<vmem>>, %arg4: memref<1x128xf32, #tpu.memory_space<vmem>>, %arg5: memref<1x128xf32, #tpu.memory_space<vmem>>, %arg6: memref<1x64x128xbf16, #tpu.memory_space<vmem>>, %arg7: memref<64x128xf32, #tpu.memory_space<vmem>>) attributes {dimension_semantics = [#tpu.dimension_semantics<parallel>, #tpu.dimension_semantics<parallel>], iteration_bounds = array<i64: 2, 1>, scalar_prefetch = 0 : i64, scratch_operands = 1 : i64, tpu.core_type = #tpu.core_type<tc>, window_params = [{transform_indices = @transform_0, window_bounds = array<i64: 1, 9, 2, 9, 2, 128>}, {transform_indices = @transform_1, window_bounds = array<i64: 3, 3, 128, 128>}, {transform_indices = @transform_2, window_bounds = array<i64: 1, 128>}, {transform_indices = @transform_3, window_bounds = array<i64: 1, 128>}, {transform_indices = @transform_4, window_bounds = array<i64: 1, 64, 128>}]} {
    %cst = arith.constant 0.000000e+00 : f32
    %0 = vector.broadcast %cst : f32 to vector<64x128xf32>
    %c0 = arith.constant 0 : index
    %c0_0 = arith.constant 0 : index
    %1 = vector.load %arg7[%c0, %c0_0] : memref<64x128xf32, #tpu.memory_space<vmem>>, vector<64x128xf32>
    tpu.vector_store %arg7[%c0, %c0_0], %0 {strides = array<i32>} : memref<64x128xf32, #tpu.memory_space<vmem>>, vector<64x128xf32>,
    %c0_1 = arith.constant 0 : index
    %c0_2 = arith.constant 0 : index
    %c0_3 = arith.constant 0 : index
    %c0_4 = arith.constant 0 : index
    %c0_5 = arith.constant 0 : index
    %c0_6 = arith.constant 0 : index
    %2 = vector.load %arg2[%c0_1, %c0_2, %c0_3, %c0_4, %c0_5, %c0_6] : memref<1x9x2x9x2x128xbf16, #tpu.memory_space<vmem>>, vector<1x8x1x8x1x128xbf16>
    %3 = vector.shape_cast %2 : vector<1x8x1x8x1x128xbf16> to vector<8x8x128xbf16>
    %4 = vector.shape_cast %3 : vector<8x8x128xbf16> to vector<64x128xbf16>
    %c0_7 = arith.constant 0 : index
    %c0_8 = arith.constant 0 : index
    %5 = vector.load %arg7[%c0_7, %c0_8] : memref<64x128xf32, #tpu.memory_space<vmem>>, vector<64x128xf32>
    %c0_9 = arith.constant 0 : index
    %c0_10 = arith.constant 0 : index
    %c0_11 = arith.constant 0 : index
    %c0_12 = arith.constant 0 : index
    %6 = vector.load %arg3[%c0_9, %c0_10, %c0_11, %c0_12] : memref<3x3x128x128xbf16, #tpu.memory_space<vmem>>, vector<1x1x128x128xbf16>
    %7 = vector.shape_cast %6 : vector<1x1x128x128xbf16> to vector<128x128xbf16>
    %cst_13 = arith.constant dense<0.000000e+00> : vector<64x128xf32>
    %8 = tpu.matmul %4, %7, %cst_13 {dimension_numbers = #tpu.dot_dimension_numbers<[1], [0], [0], [1], [0, 0, 1, 1], [], []>} : vector<64x128xbf16>, vector<128x128xbf16>, vector<64x128xf32> -> vector<64x128xf32>
    %9 = arith.addf %5, %8 : vector<64x128xf32>
    %c0_14 = arith.constant 0 : index
    %c0_15 = arith.constant 0 : index
    %10 = vector.load %arg7[%c0_14, %c0_15] : memref<64x128xf32, #tpu.memory_space<vmem>>, vector<64x128xf32>
    tpu.vector_store %arg7[%c0_14, %c0_15], %9 {strides = array<i32>} : memref<64x128xf32, #tpu.memory_space<vmem>>, vector<64x128xf32>,
    %c0_16 = arith.constant 0 : index
    %c0_17 = arith.constant 0 : index
    %c0_18 = arith.constant 0 : index
    %c0_19 = arith.constant 0 : index
    %c1 = arith.constant 1 : index
    %c0_20 = arith.constant 0 : index
    %11 = vector.load %arg2[%c0_16, %c0_17, %c0_18, %c0_19, %c1, %c0_20] : memref<1x9x2x9x2x128xbf16, #tpu.memory_space<vmem>>, vector<1x8x1x8x1x128xbf16>
    %12 = vector.shape_cast %11 : vector<1x8x1x8x1x128xbf16> to vector<8x8x128xbf16>
    %13 = vector.shape_cast %12 : vector<8x8x128xbf16> to vector<64x128xbf16>
    %c0_21 = arith.constant 0 : index
    %c0_22 = arith.constant 0 : index
    %14 = vector.load %arg7[%c0_21, %c0_22] : memref<64x128xf32, #tpu.memory_space<vmem>>, vector<64x128xf32>
    %c0_23 = arith.constant 0 : index
    %c1_24 = arith.constant 1 : index
    %c0_25 = arith.constant 0 : index
    %c0_26 = arith.constant 0 : index
    %15 = vector.load %arg3[%c0_23, %c1_24, %c0_25, %c0_26] : memref<3x3x128x128xbf16, #tpu.memory_space<vmem>>, vector<1x1x128x128xbf16>
    %16 = vector.shape_cast %15 : vector<1x1x128x128xbf16> to vector<128x128xbf16>
    %cst_27 = arith.constant dense<0.000000e+00> : vector<64x128xf32>
    %17 = tpu.matmul %13, %16, %cst_27 {dimension_numbers = #tpu.dot_dimension_numbers<[1], [0], [0], [1], [0, 0, 1, 1], [], []>} : vector<64x128xbf16>, vector<128x128xbf16>, vector<64x128xf32> -> vector<64x128xf32>
    %18 = arith.addf %14, %17 : vector<64x128xf32>
    %c0_28 = arith.constant 0 : index
    %c0_29 = arith.constant 0 : index
    %19 = vector.load %arg7[%c0_28, %c0_29] : memref<64x128xf32, #tpu.memory_space<vmem>>, vector<64x128xf32>
    tpu.vector_store %arg7[%c0_28, %c0_29], %18 {strides = array<i32>} : memref<64x128xf32, #tpu.memory_space<vmem>>, vector<64x128xf32>,
    %c0_30 = arith.constant 0 : index
    %c0_31 = arith.constant 0 : index
    %c0_32 = arith.constant 0 : index
    %c1_33 = arith.constant 1 : index
    %c0_34 = arith.constant 0 : index
    %c0_35 = arith.constant 0 : index
    %20 = vector.load %arg2[%c0_30, %c0_31, %c0_32, %c1_33, %c0_34, %c0_35] : memref<1x9x2x9x2x128xbf16, #tpu.memory_space<vmem>>, vector<1x8x1x8x1x128xbf16>
    %21 = vector.shape_cast %20 : vector<1x8x1x8x1x128xbf16> to vector<8x8x128xbf16>
    %22 = vector.shape_cast %21 : vector<8x8x128xbf16> to vector<64x128xbf16>
    %c0_36 = arith.constant 0 : index
    %c0_37 = arith.constant 0 : index
    %23 = vector.load %arg7[%c0_36, %c0_37] : memref<64x128xf32, #tpu.memory_space<vmem>>, vector<64x128xf32>
    %c0_38 = arith.constant 0 : index
    %c2 = arith.constant 2 : index
    %c0_39 = arith.constant 0 : index
    %c0_40 = arith.constant 0 : index
    %24 = vector.load %arg3[%c0_38, %c2, %c0_39, %c0_40] : memref<3x3x128x128xbf16, #tpu.memory_space<vmem>>, vector<1x1x128x128xbf16>
    %25 = vector.shape_cast %24 : vector<1x1x128x128xbf16> to vector<128x128xbf16>
    %cst_41 = arith.constant dense<0.000000e+00> : vector<64x128xf32>
    %26 = tpu.matmul %22, %25, %cst_41 {dimension_numbers = #tpu.dot_dimension_numbers<[1], [0], [0], [1], [0, 0, 1, 1], [], []>} : vector<64x128xbf16>, vector<128x128xbf16>, vector<64x128xf32> -> vector<64x128xf32>
    %27 = arith.addf %23, %26 : vector<64x128xf32>
    %c0_42 = arith.constant 0 : index
    %c0_43 = arith.constant 0 : index
    %28 = vector.load %arg7[%c0_42, %c0_43] : memref<64x128xf32, #tpu.memory_space<vmem>>, vector<64x128xf32>
    tpu.vector_store %arg7[%c0_42, %c0_43], %27 {strides = array<i32>} : memref<64x128xf32, #tpu.memory_space<vmem>>, vector<64x128xf32>,
    %c0_44 = arith.constant 0 : index
    %c0_45 = arith.constant 0 : index
    %c1_46 = arith.constant 1 : index
    %c0_47 = arith.constant 0 : index
    %c0_48 = arith.constant 0 : index
    %c0_49 = arith.constant 0 : index
    %29 = vector.load %arg2[%c0_44, %c0_45, %c1_46, %c0_47, %c0_48, %c0_49] : memref<1x9x2x9x2x128xbf16, #tpu.memory_space<vmem>>, vector<1x8x1x8x1x128xbf16>
    %30 = vector.shape_cast %29 : vector<1x8x1x8x1x128xbf16> to vector<8x8x128xbf16>
    %31 = vector.shape_cast %30 : vector<8x8x128xbf16> to vector<64x128xbf16>
    %c0_50 = arith.constant 0 : index
    %c0_51 = arith.constant 0 : index
    %32 = vector.load %arg7[%c0_50, %c0_51] : memref<64x128xf32, #tpu.memory_space<vmem>>, vector<64x128xf32>
    %c1_52 = arith.constant 1 : index
    %c0_53 = arith.constant 0 : index
    %c0_54 = arith.constant 0 : index
    %c0_55 = arith.constant 0 : index
    %33 = vector.load %arg3[%c1_52, %c0_53, %c0_54, %c0_55] : memref<3x3x128x128xbf16, #tpu.memory_space<vmem>>, vector<1x1x128x128xbf16>
    %34 = vector.shape_cast %33 : vector<1x1x128x128xbf16> to vector<128x128xbf16>
    %cst_56 = arith.constant dense<0.000000e+00> : vector<64x128xf32>
    %35 = tpu.matmul %31, %34, %cst_56 {dimension_numbers = #tpu.dot_dimension_numbers<[1], [0], [0], [1], [0, 0, 1, 1], [], []>} : vector<64x128xbf16>, vector<128x128xbf16>, vector<64x128xf32> -> vector<64x128xf32>
    %36 = arith.addf %32, %35 : vector<64x128xf32>
    %c0_57 = arith.constant 0 : index
    %c0_58 = arith.constant 0 : index
    %37 = vector.load %arg7[%c0_57, %c0_58] : memref<64x128xf32, #tpu.memory_space<vmem>>, vector<64x128xf32>
    tpu.vector_store %arg7[%c0_57, %c0_58], %36 {strides = array<i32>} : memref<64x128xf32, #tpu.memory_space<vmem>>, vector<64x128xf32>,
    %c0_59 = arith.constant 0 : index
    %c0_60 = arith.constant 0 : index
    %c1_61 = arith.constant 1 : index
    %c0_62 = arith.constant 0 : index
    %c1_63 = arith.constant 1 : index
    %c0_64 = arith.constant 0 : index
    %38 = vector.load %arg2[%c0_59, %c0_60, %c1_61, %c0_62, %c1_63, %c0_64] : memref<1x9x2x9x2x128xbf16, #tpu.memory_space<vmem>>, vector<1x8x1x8x1x128xbf16>
    %39 = vector.shape_cast %38 : vector<1x8x1x8x1x128xbf16> to vector<8x8x128xbf16>
    %40 = vector.shape_cast %39 : vector<8x8x128xbf16> to vector<64x128xbf16>
    %c0_65 = arith.constant 0 : index
    %c0_66 = arith.constant 0 : index
    %41 = vector.load %arg7[%c0_65, %c0_66] : memref<64x128xf32, #tpu.memory_space<vmem>>, vector<64x128xf32>
    %c1_67 = arith.constant 1 : index
    %c1_68 = arith.constant 1 : index
    %c0_69 = arith.constant 0 : index
    %c0_70 = arith.constant 0 : index
    %42 = vector.load %arg3[%c1_67, %c1_68, %c0_69, %c0_70] : memref<3x3x128x128xbf16, #tpu.memory_space<vmem>>, vector<1x1x128x128xbf16>
    %43 = vector.shape_cast %42 : vector<1x1x128x128xbf16> to vector<128x128xbf16>
    %cst_71 = arith.constant dense<0.000000e+00> : vector<64x128xf32>
    %44 = tpu.matmul %40, %43, %cst_71 {dimension_numbers = #tpu.dot_dimension_numbers<[1], [0], [0], [1], [0, 0, 1, 1], [], []>} : vector<64x128xbf16>, vector<128x128xbf16>, vector<64x128xf32> -> vector<64x128xf32>
    %45 = arith.addf %41, %44 : vector<64x128xf32>
    %c0_72 = arith.constant 0 : index
    %c0_73 = arith.constant 0 : index
    %46 = vector.load %arg7[%c0_72, %c0_73] : memref<64x128xf32, #tpu.memory_space<vmem>>, vector<64x128xf32>
    tpu.vector_store %arg7[%c0_72, %c0_73], %45 {strides = array<i32>} : memref<64x128xf32, #tpu.memory_space<vmem>>, vector<64x128xf32>,
    %c0_74 = arith.constant 0 : index
    %c0_75 = arith.constant 0 : index
    %c1_76 = arith.constant 1 : index
    %c1_77 = arith.constant 1 : index
    %c0_78 = arith.constant 0 : index
    %c0_79 = arith.constant 0 : index
    %47 = vector.load %arg2[%c0_74, %c0_75, %c1_76, %c1_77, %c0_78, %c0_79] : memref<1x9x2x9x2x128xbf16, #tpu.memory_space<vmem>>, vector<1x8x1x8x1x128xbf16>
    %48 = vector.shape_cast %47 : vector<1x8x1x8x1x128xbf16> to vector<8x8x128xbf16>
    %49 = vector.shape_cast %48 : vector<8x8x128xbf16> to vector<64x128xbf16>
    %c0_80 = arith.constant 0 : index
    %c0_81 = arith.constant 0 : index
    %50 = vector.load %arg7[%c0_80, %c0_81] : memref<64x128xf32, #tpu.memory_space<vmem>>, vector<64x128xf32>
    %c1_82 = arith.constant 1 : index
    %c2_83 = arith.constant 2 : index
    %c0_84 = arith.constant 0 : index
    %c0_85 = arith.constant 0 : index
    %51 = vector.load %arg3[%c1_82, %c2_83, %c0_84, %c0_85] : memref<3x3x128x128xbf16, #tpu.memory_space<vmem>>, vector<1x1x128x128xbf16>
    %52 = vector.shape_cast %51 : vector<1x1x128x128xbf16> to vector<128x128xbf16>
    %cst_86 = arith.constant dense<0.000000e+00> : vector<64x128xf32>
    %53 = tpu.matmul %49, %52, %cst_86 {dimension_numbers = #tpu.dot_dimension_numbers<[1], [0], [0], [1], [0, 0, 1, 1], [], []>} : vector<64x128xbf16>, vector<128x128xbf16>, vector<64x128xf32> -> vector<64x128xf32>
    %54 = arith.addf %50, %53 : vector<64x128xf32>
    %c0_87 = arith.constant 0 : index
    %c0_88 = arith.constant 0 : index
    %55 = vector.load %arg7[%c0_87, %c0_88] : memref<64x128xf32, #tpu.memory_space<vmem>>, vector<64x128xf32>
    tpu.vector_store %arg7[%c0_87, %c0_88], %54 {strides = array<i32>} : memref<64x128xf32, #tpu.memory_space<vmem>>, vector<64x128xf32>,
    %c0_89 = arith.constant 0 : index
    %c1_90 = arith.constant 1 : index
    %c0_91 = arith.constant 0 : index
    %c0_92 = arith.constant 0 : index
    %c0_93 = arith.constant 0 : index
    %c0_94 = arith.constant 0 : index
    %56 = vector.load %arg2[%c0_89, %c1_90, %c0_91, %c0_92, %c0_93, %c0_94] : memref<1x9x2x9x2x128xbf16, #tpu.memory_space<vmem>>, vector<1x8x1x8x1x128xbf16>
    %57 = vector.shape_cast %56 : vector<1x8x1x8x1x128xbf16> to vector<8x8x128xbf16>
    %58 = vector.shape_cast %57 : vector<8x8x128xbf16> to vector<64x128xbf16>
    %c0_95 = arith.constant 0 : index
    %c0_96 = arith.constant 0 : index
    %59 = vector.load %arg7[%c0_95, %c0_96] : memref<64x128xf32, #tpu.memory_space<vmem>>, vector<64x128xf32>
    %c2_97 = arith.constant 2 : index
    %c0_98 = arith.constant 0 : index
    %c0_99 = arith.constant 0 : index
    %c0_100 = arith.constant 0 : index
    %60 = vector.load %arg3[%c2_97, %c0_98, %c0_99, %c0_100] : memref<3x3x128x128xbf16, #tpu.memory_space<vmem>>, vector<1x1x128x128xbf16>
    %61 = vector.shape_cast %60 : vector<1x1x128x128xbf16> to vector<128x128xbf16>
    %cst_101 = arith.constant dense<0.000000e+00> : vector<64x128xf32>
    %62 = tpu.matmul %58, %61, %cst_101 {dimension_numbers = #tpu.dot_dimension_numbers<[1], [0], [0], [1], [0, 0, 1, 1], [], []>} : vector<64x128xbf16>, vector<128x128xbf16>, vector<64x128xf32> -> vector<64x128xf32>
    %63 = arith.addf %59, %62 : vector<64x128xf32>
    %c0_102 = arith.constant 0 : index
    %c0_103 = arith.constant 0 : index
    %64 = vector.load %arg7[%c0_102, %c0_103] : memref<64x128xf32, #tpu.memory_space<vmem>>, vector<64x128xf32>
    tpu.vector_store %arg7[%c0_102, %c0_103], %63 {strides = array<i32>} : memref<64x128xf32, #tpu.memory_space<vmem>>, vector<64x128xf32>,
    %c0_104 = arith.constant 0 : index
    %c1_105 = arith.constant 1 : index
    %c0_106 = arith.constant 0 : index
    %c0_107 = arith.constant 0 : index
    %c1_108 = arith.constant 1 : index
    %c0_109 = arith.constant 0 : index
    %65 = vector.load %arg2[%c0_104, %c1_105, %c0_106, %c0_107, %c1_108, %c0_109] : memref<1x9x2x9x2x128xbf16, #tpu.memory_space<vmem>>, vector<1x8x1x8x1x128xbf16>
    %66 = vector.shape_cast %65 : vector<1x8x1x8x1x128xbf16> to vector<8x8x128xbf16>
    %67 = vector.shape_cast %66 : vector<8x8x128xbf16> to vector<64x128xbf16>
    %c0_110 = arith.constant 0 : index
    %c0_111 = arith.constant 0 : index
    %68 = vector.load %arg7[%c0_110, %c0_111] : memref<64x128xf32, #tpu.memory_space<vmem>>, vector<64x128xf32>
    %c2_112 = arith.constant 2 : index
    %c1_113 = arith.constant 1 : index
    %c0_114 = arith.constant 0 : index
    %c0_115 = arith.constant 0 : index
    %69 = vector.load %arg3[%c2_112, %c1_113, %c0_114, %c0_115] : memref<3x3x128x128xbf16, #tpu.memory_space<vmem>>, vector<1x1x128x128xbf16>
    %70 = vector.shape_cast %69 : vector<1x1x128x128xbf16> to vector<128x128xbf16>
    %cst_116 = arith.constant dense<0.000000e+00> : vector<64x128xf32>
    %71 = tpu.matmul %67, %70, %cst_116 {dimension_numbers = #tpu.dot_dimension_numbers<[1], [0], [0], [1], [0, 0, 1, 1], [], []>} : vector<64x128xbf16>, vector<128x128xbf16>, vector<64x128xf32> -> vector<64x128xf32>
    %72 = arith.addf %68, %71 : vector<64x128xf32>
    %c0_117 = arith.constant 0 : index
    %c0_118 = arith.constant 0 : index
    %73 = vector.load %arg7[%c0_117, %c0_118] : memref<64x128xf32, #tpu.memory_space<vmem>>, vector<64x128xf32>
    tpu.vector_store %arg7[%c0_117, %c0_118], %72 {strides = array<i32>} : memref<64x128xf32, #tpu.memory_space<vmem>>, vector<64x128xf32>,
    %c0_119 = arith.constant 0 : index
    %c1_120 = arith.constant 1 : index
    %c0_121 = arith.constant 0 : index
    %c1_122 = arith.constant 1 : index
    %c0_123 = arith.constant 0 : index
    %c0_124 = arith.constant 0 : index
    %74 = vector.load %arg2[%c0_119, %c1_120, %c0_121, %c1_122, %c0_123, %c0_124] : memref<1x9x2x9x2x128xbf16, #tpu.memory_space<vmem>>, vector<1x8x1x8x1x128xbf16>
    %75 = vector.shape_cast %74 : vector<1x8x1x8x1x128xbf16> to vector<8x8x128xbf16>
    %76 = vector.shape_cast %75 : vector<8x8x128xbf16> to vector<64x128xbf16>
    %c0_125 = arith.constant 0 : index
    %c0_126 = arith.constant 0 : index
    %77 = vector.load %arg7[%c0_125, %c0_126] : memref<64x128xf32, #tpu.memory_space<vmem>>, vector<64x128xf32>
    %c2_127 = arith.constant 2 : index
    %c2_128 = arith.constant 2 : index
    %c0_129 = arith.constant 0 : index
    %c0_130 = arith.constant 0 : index
    %78 = vector.load %arg3[%c2_127, %c2_128, %c0_129, %c0_130] : memref<3x3x128x128xbf16, #tpu.memory_space<vmem>>, vector<1x1x128x128xbf16>
    %79 = vector.shape_cast %78 : vector<1x1x128x128xbf16> to vector<128x128xbf16>
    %cst_131 = arith.constant dense<0.000000e+00> : vector<64x128xf32>
    %80 = tpu.matmul %76, %79, %cst_131 {dimension_numbers = #tpu.dot_dimension_numbers<[1], [0], [0], [1], [0, 0, 1, 1], [], []>} : vector<64x128xbf16>, vector<128x128xbf16>, vector<64x128xf32> -> vector<64x128xf32>
    %81 = arith.addf %77, %80 : vector<64x128xf32>
    %c0_132 = arith.constant 0 : index
    %c0_133 = arith.constant 0 : index
    %82 = vector.load %arg7[%c0_132, %c0_133] : memref<64x128xf32, #tpu.memory_space<vmem>>, vector<64x128xf32>
    tpu.vector_store %arg7[%c0_132, %c0_133], %81 {strides = array<i32>} : memref<64x128xf32, #tpu.memory_space<vmem>>, vector<64x128xf32>,
    %c0_134 = arith.constant 0 : index
    %c0_135 = arith.constant 0 : index
    %83 = vector.load %arg7[%c0_134, %c0_135] : memref<64x128xf32, #tpu.memory_space<vmem>>, vector<64x128xf32>
    %c0_136 = arith.constant 0 : index
    %c0_137 = arith.constant 0 : index
    %84 = vector.load %arg4[%c0_136, %c0_137] : memref<1x128xf32, #tpu.memory_space<vmem>>, vector<1x128xf32>
    %85 = vector.broadcast %84 : vector<1x128xf32> to vector<64x128xf32>
    %86 = arith.mulf %83, %85 : vector<64x128xf32>
    %c0_138 = arith.constant 0 : index
    %c0_139 = arith.constant 0 : index
    %87 = vector.load %arg5[%c0_138, %c0_139] : memref<1x128xf32, #tpu.memory_space<vmem>>, vector<1x128xf32>
    %88 = vector.broadcast %87 : vector<1x128xf32> to vector<64x128xf32>
    %89 = arith.addf %86, %88 : vector<64x128xf32>
    %cst_140 = arith.constant 0.000000e+00 : f32
    %90 = vector.broadcast %cst_140 : f32 to vector<64x128xf32>
    %91 = arith.maximumf %89, %90 : vector<64x128xf32>
    %92 = arith.truncf %91 : vector<64x128xf32> to vector<64x128xbf16>
    %c0_141 = arith.constant 0 : index
    %c0_142 = arith.constant 0 : index
    %c0_143 = arith.constant 0 : index
    %93 = vector.load %arg6[%c0_141, %c0_142, %c0_143] : memref<1x64x128xbf16, #tpu.memory_space<vmem>>, vector<1x64x128xbf16>
    %94 = vector.shape_cast %93 : vector<1x64x128xbf16> to vector<64x128xbf16>
    %95 = vector.shape_cast %92 : vector<64x128xbf16> to vector<1x64x128xbf16>
    tpu.vector_store %arg6[%c0_141, %c0_142, %c0_143], %95 {strides = array<i32>} : memref<1x64x128xbf16, #tpu.memory_space<vmem>>, vector<1x64x128xbf16>,
    return
  }
  func.func @transform_0(%arg0: i32, %arg1: i32) -> (i32, i32, i32, i32, i32, i32) {
    %c0_i32 = arith.constant 0 : i32
    %c0_i32_0 = arith.constant 0 : i32
    %c0_i32_1 = arith.constant 0 : i32
    %c0_i32_2 = arith.constant 0 : i32
    %c0_i32_3 = arith.constant 0 : i32
    %c0_i32_4 = arith.constant 0 : i32
    return %arg0, %c0_i32, %c0_i32_0, %c0_i32_1, %c0_i32_2, %c0_i32_3 : i32, i32, i32, i32, i32, i32
  }
  func.func @transform_1(%arg0: i32, %arg1: i32) -> (i32, i32, i32, i32) {
    %c0_i32 = arith.constant 0 : i32
    %c0_i32_0 = arith.constant 0 : i32
    %c0_i32_1 = arith.constant 0 : i32
    %c0_i32_2 = arith.constant 0 : i32
    return %c0_i32, %c0_i32_0, %c0_i32_1, %arg1 : i32, i32, i32, i32
  }
  func.func @transform_2(%arg0: i32, %arg1: i32) -> (i32, i32) {
    %c0_i32 = arith.constant 0 : i32
    %c0_i32_0 = arith.constant 0 : i32
    return %c0_i32, %arg1 : i32, i32
  }
  func.func @transform_3(%arg0: i32, %arg1: i32) -> (i32, i32) {
    %c0_i32 = arith.constant 0 : i32
    %c0_i32_0 = arith.constant 0 : i32
    return %c0_i32, %arg1 : i32, i32
  }
  func.func @transform_4(%arg0: i32, %arg1: i32) -> (i32, i32, i32) {
    %c0_i32 = arith.constant 0 : i32
    %c0_i32_0 = arith.constant 0 : i32
    return %arg0, %c0_i32, %arg1 : i32, i32, i32
  }
}

</mosaic_0001>

<bundles_post_ra>
// kernel: bottleneck_forward.6
= control target key start
LH: loop header
LB: loop body
LE: loop exit
PB: predicated region body
PF: predicated region fallthrough
CT: control target
= control target key end

     0   :  { %s621_s1 = inlined_call_operand.vmem [shape: bf16[128,128], index: 1, kind: input, shape index: {}]   ;;  %s622_s0 = inlined_call_operand.vmem [shape: bf16[128,128], index: 0, kind: input, shape index: {}]   ;;  %s623_s2 = inlined_call_operand.vmem [shape: f32[1,128], index: 2, kind: input, shape index: {}]   ;;  %s624_s3 = inlined_call_operand.vmem [shape: f32[1,128], index: 3, kind: input, shape index: {}]   ;;  %s625_s4 = inlined_call_operand.vmem [shape: f32[128,128], index: 4, kind: output, shape index: {}]  }
   0x1   :  { %v478_v0 = vld [vmem:[%s621_s1] sm:$0xff]   ;;  %v479_v1 = vld [vmem:[%s621_s1 + $0x8] sm:$0xff]   ;;  %v480_v2 = vld [vmem:[%s621_s1 + $0x10] sm:$0xff]  }
   0x2   :  { %430 = vmatprep.subr.bf16.mxu0 %v478_v0  ;;  %462 = vmatprep.subr.bf16.mxu1 %v478_v0  ;;  %v481_v3 = vld [vmem:[%s621_s1 + $0x18] sm:$0xff]   ;;  %v486_v4 = vld [vmem:[%s622_s0] sm:$0xff]   ;;  %v483_v7 = vld [vmem:[%s621_s1 + $0x28] sm:$0xff]  }
   0x3   :  { %431 = vmatpush3.bf16.msra.mxu0 %v478_v0  ;;  %470 = vmatpush3.bf16.msra.mxu1 %v478_v0  ;;  %v487_v5 = vld [vmem:[%s622_s0 + $0x20] sm:$0xff]   ;;  %v484_v8 = vld [vmem:[%s621_s1 + $0x30] sm:$0xff]   ;;  %v485_v9 = vld [vmem:[%s621_s1 + $0x38] sm:$0xff]  }
   0x4   :  { %432 = vmatprep.subr.bf16.mxu0 %v479_v1  ;;  %463 = vmatprep.subr.bf16.mxu1 %v479_v1  ;;  %v482_v6 = vld [vmem:[%s621_s1 + $0x20] sm:$0xff]   ;;  %v488_v10 = vld [vmem:[%s622_s0 + $0x8] sm:$0xff]   ;;  %v490_v12 = vld [vmem:[%s622_s0 + $0x10] sm:$0xff]  }
   0x5   :  { %446 = vmatprep.mubr.bf16.mxu0 %v486_v4  ;;  %454 = vmatprep.mubr.bf16.mxu1 %v487_v5  ;;  %v489_v11 = vld [vmem:[%s622_s0 + $0x28] sm:$0xff]   ;;  %v491_v13 = vld [vmem:[%s622_s0 + $0x30] sm:$0xff]   ;;  %v492_v14 = vld [vmem:[%s622_s0 + $0x18] sm:$0xff]  }
   0x6   :  { %v493_v15 = vld [vmem:[%s622_s0 + $0x38] sm:$0xff]   ;;  %v412_v16 = vld [vmem:[%s623_s2] ss:$0 sm:$0xff] }
   0x7   :  { %433 = vmatpush3.bf16.msra.mxu0 %v479_v1  ;;  %471 = vmatpush3.bf16.msra.mxu1 %v479_v1  ;;  %v413_v18 = vld [vmem:[%s624_s3] ss:$0 sm:$0xff] }
   0x8   :  { %434 = vmatprep.subr.bf16.mxu0 %v480_v2  ;;  %464 = vmatprep.subr.bf16.mxu1 %v480_v2 }
   0xb   :  { %435 = vmatpush3.bf16.msra.mxu0 %v480_v2  ;;  %472 = vmatpush3.bf16.msra.mxu1 %v480_v2 }
   0xc   :  { %436 = vmatprep.subr.bf16.mxu0 %v481_v3  ;;  %465 = vmatprep.subr.bf16.mxu1 %v481_v3 }
   0xf   :  { %437 = vmatpush3.bf16.msra.mxu0 %v481_v3  ;;  %473 = vmatpush3.bf16.msra.mxu1 %v481_v3 }
  0x10   :  { %438 = vmatprep.subr.bf16.mxu0 %v482_v6  ;;  %466 = vmatprep.subr.bf16.mxu1 %v482_v6 }
  0x13   :  { %439 = vmatpush3.bf16.msra.mxu0 %v482_v6  ;;  %474 = vmatpush3.bf16.msra.mxu1 %v482_v6 }
  0x14   :  { %440 = vmatprep.subr.bf16.mxu0 %v483_v7  ;;  %467 = vmatprep.subr.bf16.mxu1 %v483_v7 }
  0x17   :  { %441 = vmatpush3.bf16.msra.mxu0 %v483_v7  ;;  %475 = vmatpush3.bf16.msra.mxu1 %v483_v7 }
  0x18   :  { %442 = vmatprep.subr.bf16.mxu0 %v484_v8  ;;  %468 = vmatprep.subr.bf16.mxu1 %v484_v8 }
  0x1b   :  { %443 = vmatpush3.bf16.msra.mxu0 %v484_v8  ;;  %476 = vmatpush3.bf16.msra.mxu1 %v484_v8 }
  0x1c   :  { %444 = vmatprep.subr.bf16.mxu0 %v485_v9  ;;  %469 = vmatprep.subr.bf16.mxu1 %v485_v9 }
  0x1f   :  { %445 = vmatpush3.bf16.msra.mxu0 %v485_v9  ;;  %477 = vmatpush3.bf16.msra.mxu1 %v485_v9 }
  0x22   :  { %447 = vmatmul.mubr.bf16.vlgmr.msra.gmra.mrb[0].mxu0 %v488_v10  ;;  %455 = vmatmul.mubr.bf16.vlgmr.msra.gmra.mrb[0].mxu1 %v489_v11 }
  0x23   :  { %450 = vmatprep.mubr.bf16.mxu0 %v490_v12  ;;  %458 = vmatprep.mubr.bf16.mxu1 %v491_v13 }
  0x2a   :  { %451 = vmatmul.mubr.bf16.gmra.mrb[4].mxu0 %v492_v14  ;;  %459 = vmatmul.mubr.bf16.gmra.mrb[4].mxu1 %v493_v15 }
  0xf5   :  { %v448_v17 = vpop.f32.mrb[0].mxu0  ;;  %v456_v19 = vpop.f32.mrb[0].mxu1 }
  0xf6   :  { %v339_v20 = vmul.f32 %v448_v17, %v412_v16  ;;  %v347_v21 = vmul.f32 %v456_v19, %v412_v16  ;;  %v216_v22 = vpop.f32.mrb[1].mxu0  ;;  %v248_v23 = vpop.f32.mrb[1].mxu1 }
  0xf7   :  { %v337_v24 = vmul.f32 %v412_v16, %v216_v22  ;;  %v345_v25 = vmul.f32 %v412_v16, %v248_v23  ;;  %v449_v26 = vpop.f32.mrb[2].mxu0  ;;  %v457_v27 = vpop.f32.mrb[2].mxu1 }
  0xf8   :  { %v362_v28 = vadd.f32 %v413_v18, %v339_v20  ;;  %v370_v29 = vadd.f32 %v413_v18, %v347_v21  ;;  %v340_v30 = vmul.f32 %v449_v26, %v412_v16  ;;  %v348_v31 = vmul.f32 %v457_v27, %v412_v16  ;;  %v219_v32 = vpop.f32.mrb[3].mxu0  ;;  %v251_v33 = vpop.f32.mrb[3].mxu1 }
  0xf9   :  { %v360_v34 = vadd.f32 %v413_v18, %v337_v24  ;;  %v368_v35 = vadd.f32 %v413_v18, %v345_v25  ;;  %v338_v36 = vmul.f32 %v412_v16, %v219_v32  ;;  %v346_v37 = vmul.f32 %v412_v16, %v251_v33 }
  0xfa   :  { %378 = vst [vmem:[%s625_s4 + $0x10] sm:$0xff] %v362_v28  ;;  %386 = vst [vmem:[%s625_s4 + $0x50] sm:$0xff] %v370_v29  ;;  %v363_v38 = vadd.f32 %v413_v18, %v340_v30  ;;  %v371_v39 = vadd.f32 %v413_v18, %v348_v31 }
  0xfb   :  { %376 = vst [vmem:[%s625_s4] sm:$0xff] %v360_v34  ;;  %384 = vst [vmem:[%s625_s4 + $0x40] sm:$0xff] %v368_v35  ;;  %v361_v40 = vadd.f32 %v413_v18, %v338_v36  ;;  %v369_v41 = vadd.f32 %v413_v18, %v346_v37 }
  0xfc   :  { %379 = vst [vmem:[%s625_s4 + $0x18] sm:$0xff] %v363_v38  ;;  %387 = vst [vmem:[%s625_s4 + $0x58] sm:$0xff] %v371_v39 }
  0xfd   :  { %377 = vst [vmem:[%s625_s4 + $0x8] sm:$0xff] %v361_v40  ;;  %385 = vst [vmem:[%s625_s4 + $0x48] sm:$0xff] %v369_v41  ;;  %v452_v42 = vpop.f32.mrb[4].mxu0  ;;  %v460_v43 = vpop.f32.mrb[4].mxu1 }
  0xfe   :  { %v343_v44 = vmul.f32 %v452_v42, %v412_v16  ;;  %v351_v45 = vmul.f32 %v460_v43, %v412_v16  ;;  %v232_v46 = vpop.f32.mrb[5].mxu0  ;;  %v264_v47 = vpop.f32.mrb[5].mxu1 }
  0xff   :  { %v341_v48 = vmul.f32 %v412_v16, %v232_v46  ;;  %v349_v49 = vmul.f32 %v412_v16, %v264_v47  ;;  %v453_v50 = vpop.f32.mrb[6].mxu0  ;;  %v461_v51 = vpop.f32.mrb[6].mxu1 }
 0x100   :  { %v366_v52 = vadd.f32 %v413_v18, %v343_v44  ;;  %v374_v53 = vadd.f32 %v413_v18, %v351_v45  ;;  %v344_v54 = vmul.f32 %v453_v50, %v412_v16  ;;  %v352_v55 = vmul.f32 %v461_v51, %v412_v16  ;;  %v235_v56 = vpop.f32.mrb[7].mxu0  ;;  %v267_v57 = vpop.f32.mrb[7].mxu1 }
 0x101   :  { %v364_v58 = vadd.f32 %v413_v18, %v341_v48  ;;  %v372_v59 = vadd.f32 %v413_v18, %v349_v49  ;;  %v342_v60 = vmul.f32 %v412_v16, %v235_v56  ;;  %v350_v61 = vmul.f32 %v412_v16, %v267_v57 }
 0x102   :  { %382 = vst [vmem:[%s625_s4 + $0x30] sm:$0xff] %v366_v52  ;;  %390 = vst [vmem:[%s625_s4 + $0x70] sm:$0xff] %v374_v53  ;;  %v367_v62 = vadd.f32 %v413_v18, %v344_v54  ;;  %v375_v63 = vadd.f32 %v413_v18, %v352_v55 }
 0x103   :  { %380 = vst [vmem:[%s625_s4 + $0x20] sm:$0xff] %v364_v58  ;;  %388 = vst [vmem:[%s625_s4 + $0x60] sm:$0xff] %v372_v59  ;;  %v365_v0 = vadd.f32 %v413_v18, %v342_v60  ;;  %v373_v1 = vadd.f32 %v413_v18, %v350_v61 }
 0x104   :  { %383 = vst [vmem:[%s625_s4 + $0x38] sm:$0xff] %v367_v62  ;;  %391 = vst [vmem:[%s625_s4 + $0x78] sm:$0xff] %v375_v63 }
 0x105   :  { %381 = vst [vmem:[%s625_s4 + $0x28] sm:$0xff] %v365_v0  ;;  %389 = vst [vmem:[%s625_s4 + $0x68] sm:$0xff] %v373_v1 }

// kernel: bottleneck_forward.4
= control target key start
LH: loop header
LB: loop body
LE: loop exit
PB: predicated region body
PF: predicated region fallthrough
CT: control target
= control target key end

     0   :  { %s1598_s15 = smov 0   ;;  %s1600_s16 = smov 0   ;;  %s1772_s0 = inlined_call_operand.vmem [shape: bf16[512,128], index: 0, kind: input, shape index: {}]   ;;  %s1773_s1 = inlined_call_operand.vmem [shape: bf16[128,128], index: 1, kind: input, shape index: {}]   ;;  %s1774_s2 = inlined_call_operand.vmem [shape: f32[1,128], index: 2, kind: input, shape index: {}]   ;;  %s1775_s3 = inlined_call_operand.vmem [shape: f32[1,128], index: 3, kind: input, shape index: {}]   ;;  %s1776_s4 = inlined_call_operand.vmem [shape: bf16[512,128], index: 4, kind: output, shape index: {}]  }
   0x1   :  { %s1602_s17 = smov 0  }
   0x2 LB: > { %s33_s18 = sadd.s32 1, %s1567_s16  ;;  %p1221_p0 = scmp.ge.s32.totalorder %s1571_s17, 1  ;;  %s1571_s17 = sphi %s1602_s17, %s14_s17   ;;  %s1567_s16 = sphi %s1600_s16, %s1778_s16   ;;  %s1563_s15 = sphi %s1598_s15, %s1777_s15  }
   0x3   : > { %p35_p1 = scmp.ge.s32.totalorder %s33_s18, 2  ;;  %p221_p2 = scmp.lt.s32.totalorder %s1571_s17, 3 }
   0x5   : > { %s1780_s18 = smov (%p35_p1, %s33_s18), 0  ;;  %p222_p3 = pnand %p1221_p0, %p221_p2 }
   0x6   : > { %v1525_v0 = vld [vmem:[%s1773_s1] sm:$0xff] (!%p222_p3)   ;;  %s1222_s21 = sshll.u32 (!%p222_p3), %s1563_s15, 5  ;;  %v1526_v1 = vld [vmem:[%s1773_s1 + $0x8] sm:$0xff] (!%p222_p3)   ;;  %v1527_v2 = vld [vmem:[%s1773_s1 + $0x10] sm:$0xff] (!%p222_p3)  }
   0x7   : > { %225 = sbr.rel (%p222_p3) target bundleno = 288 (0x120), region = 36  ;;  %p268_p4 = scmp.lt.s32.totalorder (!%p222_p3), %s1222_s21, 63  ;;  %1437 = vmatprep.subr.bf16.mxu0 (!%p222_p3), %v1525_v0  ;;  %1485 = vmatprep.subr.bf16.mxu1 (!%p222_p3), %v1525_v0  ;;  %v1528_v3 = vld [vmem:[%s1773_s1 + $0x18] sm:$0xff] (!%p222_p3)   ;;  %v1529_v6 = vld [vmem:[%s1773_s1 + $0x20] sm:$0xff] (!%p222_p3)   ;;  %v1530_v7 = vld [vmem:[%s1773_s1 + $0x28] sm:$0xff] (!%p222_p3)  }
   0x8   : > { %1438 = vmatpush3.bf16.msra.mxu0 (!%p222_p3), %v1525_v0  ;;  %1493 = vmatpush3.bf16.msra.mxu1 (!%p222_p3), %v1525_v0  ;;  %v1531_v8 = vld [vmem:[%s1773_s1 + $0x30] sm:$0xff] (!%p222_p3)   ;;  %v1532_v9 = vld [vmem:[%s1773_s1 + $0x38] sm:$0xff] (!%p222_p3)   ;;  %v1669_v24 = vld [vmem:[%s1774_s2] ss:$0 sm:$0xff] (!%p222_p3) }
   0x9   : > { %1439 = vmatprep.subr.bf16.mxu0 (!%p222_p3), %v1526_v1  ;;  %1486 = vmatprep.subr.bf16.mxu1 (!%p222_p3), %v1526_v1  ;;  %v1674_v26 = vld [vmem:[%s1775_s3] ss:$0 sm:$0xff] (!%p222_p3) }
   0xc   : > { %1440 = vmatpush3.bf16.msra.mxu0 (!%p222_p3), %v1526_v1  ;;  %1494 = vmatpush3.bf16.msra.mxu1 (!%p222_p3), %v1526_v1 }
   0xd   : > { %1441 = vmatprep.subr.bf16.mxu0 (!%p222_p3), %v1527_v2  ;;  %1487 = vmatprep.subr.bf16.mxu1 (!%p222_p3), %v1527_v2 }
   0xe   : > { %s1782_s21 = smov (!%p268_p4, %s1222_s21), 63 }
   0xf   : > { %s1223_s26 = sshll.u32 %s1782_s21, 2 }
  0x10   : > { %s1633_s29 = scalar_lea.vmem %s1772_s0, %s1223_s26  ;;  %1442 = vmatpush3.bf16.msra.mxu0 %v1527_v2  ;;  %1495 = vmatpush3.bf16.msra.mxu1 %v1527_v2  ;;  %s1697_s24 = scalar_lea.vmem %s1776_s4, %s1223_s26 }
  0x11   : > { %v1533_v4 = vld [vmem:[%s1633_s29] sm:$0xff]   ;;  %1443 = vmatprep.subr.bf16.mxu0 %v1528_v3  ;;  %1488 = vmatprep.subr.bf16.mxu1 %v1528_v3  ;;  %v1535_v10 = vld [vmem:[%s1633_s29 + $0x8] sm:$0xff]   ;;  %v1537_v12 = vld [vmem:[%s1633_s29 + $0x10] sm:$0xff]  }
  0x12   : > { %v1534_v5 = vld [vmem:[%s1633_s29 + $0x40] sm:$0xff]   ;;  %1453 = vmatprep.mubr.bf16.mxu0 %v1533_v4  ;;  %v1536_v11 = vld [vmem:[%s1633_s29 + $0x48] sm:$0xff]   ;;  %v1538_v13 = vld [vmem:[%s1633_s29 + $0x50] sm:$0xff]  }
  0x13   : > { %1469 = vmatprep.mubr.bf16.mxu1 %v1534_v5  ;;  %v1539_v14 = vld [vmem:[%s1633_s29 + $0x18] sm:$0xff]   ;;  %v1541_v16 = vld [vmem:[%s1633_s29 + $0x20] sm:$0xff]   ;;  %v1543_v18 = vld [vmem:[%s1633_s29 + $0x28] sm:$0xff]  }
  0x14   : > { %1444 = vmatpush3.bf16.msra.mxu0 %v1528_v3  ;;  %1496 = vmatpush3.bf16.msra.mxu1 %v1528_v3  ;;  %v1540_v15 = vld [vmem:[%s1633_s29 + $0x58] sm:$0xff]   ;;  %v1542_v17 = vld [vmem:[%s1633_s29 + $0x60] sm:$0xff]   ;;  %v1544_v19 = vld [vmem:[%s1633_s29 + $0x68] sm:$0xff]  }
  0x15   : > { %1445 = vmatprep.subr.bf16.mxu0 %v1529_v6  ;;  %1489 = vmatprep.subr.bf16.mxu1 %v1529_v6  ;;  %v1545_v20 = vld [vmem:[%s1633_s29 + $0x30] sm:$0xff]   ;;  %v1547_v22 = vld [vmem:[%s1633_s29 + $0x38] sm:$0xff]  }
  0x16   : > { %v1546_v21 = vld [vmem:[%s1633_s29 + $0x70] sm:$0xff]   ;;  %v1548_v23 = vld [vmem:[%s1633_s29 + $0x78] sm:$0xff]  }
  0x18   : > { %1446 = vmatpush3.bf16.msra.mxu0 %v1529_v6  ;;  %1497 = vmatpush3.bf16.msra.mxu1 %v1529_v6 }
  0x19   : > { %1447 = vmatprep.subr.bf16.mxu0 %v1530_v7  ;;  %1490 = vmatprep.subr.bf16.mxu1 %v1530_v7 }
  0x1c   : > { %1448 = vmatpush3.bf16.msra.mxu0 %v1530_v7  ;;  %1498 = vmatpush3.bf16.msra.mxu1 %v1530_v7 }
  0x1d   : > { %1449 = vmatprep.subr.bf16.mxu0 %v1531_v8  ;;  %1491 = vmatprep.subr.bf16.mxu1 %v1531_v8 }
  0x20   : > { %1450 = vmatpush3.bf16.msra.mxu0 %v1531_v8  ;;  %1499 = vmatpush3.bf16.msra.mxu1 %v1531_v8 }
  0x21   : > { %1451 = vmatprep.subr.bf16.mxu0 %v1532_v9  ;;  %1492 = vmatprep.subr.bf16.mxu1 %v1532_v9 }
  0x24   : > { %1452 = vmatpush3.bf16.msra.mxu0 %v1532_v9  ;;  %1500 = vmatpush3.bf16.msra.mxu1 %v1532_v9 }
  0x27   : > { %1454 = vmatmul.mubr.bf16.vlgmr.msra.gmra.mrb[0].mxu0 %v1535_v10  ;;  %1470 = vmatmul.mubr.bf16.vlgmr.msra.gmra.mrb[0].mxu1 %v1536_v11 }
  0x28   : > { %1457 = vmatprep.mubr.bf16.mxu0 %v1537_v12  ;;  %1473 = vmatprep.mubr.bf16.mxu1 %v1538_v13 }
  0x2f   : > { %1458 = vmatmul.mubr.bf16.gmra.mrb[4].mxu0 %v1539_v14  ;;  %1474 = vmatmul.mubr.bf16.gmra.mrb[4].mxu1 %v1540_v15 }
  0x30   : > { %1461 = vmatprep.mubr.bf16.mxu0 %v1541_v16  ;;  %1477 = vmatprep.mubr.bf16.mxu1 %v1542_v17 }
  0x37   : > { %1462 = vmatmul.mubr.bf16.gmra.mrb[8].mxu0 %v1543_v18  ;;  %1478 = vmatmul.mubr.bf16.gmra.mrb[8].mxu1 %v1544_v19 }
  0x38   : > { %1465 = vmatprep.mubr.bf16.mxu0 %v1545_v20  ;;  %1481 = vmatprep.mubr.bf16.mxu1 %v1546_v21 }
  0x3f   : > { %1466 = vmatmul.mubr.bf16.gmra.mrb[12].mxu0 %v1547_v22  ;;  %1482 = vmatmul.mubr.bf16.gmra.mrb[12].mxu1 %v1548_v23 }
  0xfa   : > { %v1455_v25 = vpop.f32.mrb[0].mxu0  ;;  %v1471_v27 = vpop.f32.mrb[0].mxu1 }
  0xfb   : > { %v830_v28 = vmul.f32 %v1455_v25, %v1669_v24  ;;  %v846_v29 = vmul.f32 %v1471_v27, %v1669_v24  ;;  %v595_v30 = vpop.f32.mrb[1].mxu0  ;;  %v659_v31 = vpop.f32.mrb[1].mxu1 }
  0xfc   : > { %v828_v32 = vmul.f32 %v1669_v24, %v595_v30  ;;  %v844_v33 = vmul.f32 %v1669_v24, %v659_v31  ;;  %v1456_v34 = vpop.f32.mrb[2].mxu0  ;;  %v1472_v35 = vpop.f32.mrb[2].mxu1 }
  0xfd   : > { %v869_v36 = vadd.f32 %v1674_v26, %v830_v28  ;;  %v885_v37 = vadd.f32 %v1674_v26, %v846_v29  ;;  %v831_v38 = vmul.f32 %v1456_v34, %v1669_v24  ;;  %v847_v39 = vmul.f32 %v1472_v35, %v1669_v24  ;;  %v598_v40 = vpop.f32.mrb[3].mxu0  ;;  %v662_v41 = vpop.f32.mrb[3].mxu1 }
  0xfe   : > { %v867_v42 = vadd.f32 %v1674_v26, %v828_v32  ;;  %v883_v43 = vadd.f32 %v1674_v26, %v844_v33  ;;  %v829_v44 = vmul.f32 %v1669_v24, %v598_v40  ;;  %v845_v45 = vmul.f32 %v1669_v24, %v662_v41 }
  0xff   : > { %v870_v46 = vadd.f32 %v1674_v26, %v831_v38  ;;  %v886_v47 = vadd.f32 %v1674_v26, %v847_v39  ;;  %v901_v50 = vmax.f32 %v869_v36, 0.0  ;;  %v917_v51 = vmax.f32 %v885_v37, 0.0 }
 0x100   : > { %v868_v48 = vadd.f32 %v1674_v26, %v829_v44  ;;  %v884_v49 = vadd.f32 %v1674_v26, %v845_v45  ;;  %v899_v54 = vmax.f32 %v867_v42, 0.0  ;;  %v915_v55 = vmax.f32 %v883_v43, 0.0 }
 0x101   : > { %v902_v52 = vmax.f32 %v870_v46, 0.0  ;;  %v918_v53 = vmax.f32 %v886_v47, 0.0 }
 0x102   : > { %v900_v56 = vmax.f32 %v868_v48, 0.0  ;;  %v916_v57 = vmax.f32 %v884_v49, 0.0  ;;  %v1459_v58 = vpop.f32.mrb[4].mxu0  ;;  %v1475_v59 = vpop.f32.mrb[4].mxu1 }
 0x103   : > { %v1326_v60 = vpack.c.bf16 %v902_v52, %v901_v50  ;;  %v1366_v61 = vpack.c.bf16 %v918_v53, %v917_v51  ;;  %v834_v62 = vmul.f32 %v1459_v58, %v1669_v24  ;;  %v850_v63 = vmul.f32 %v1475_v59, %v1669_v24  ;;  %v611_v0 = vpop.f32.mrb[5].mxu0  ;;  %v675_v1 = vpop.f32.mrb[5].mxu1 }
 0x104   : > { %v1321_v2 = vpack.c.bf16 %v900_v56, %v899_v54  ;;  %v1361_v3 = vpack.c.bf16 %v916_v57, %v915_v55  ;;  %v832_v4 = vmul.f32 %v1669_v24, %v611_v0  ;;  %v848_v5 = vmul.f32 %v1669_v24, %v675_v1  ;;  %v1460_v6 = vpop.f32.mrb[6].mxu0  ;;  %v1476_v7 = vpop.f32.mrb[6].mxu1 }
 0x105   : > { %1398 = vst [vmem:[%s1697_s24 + $0x8] sm:$0xff] %v1326_v60   ;;  %1406 = vst [vmem:[%s1697_s24 + $0x48] sm:$0xff] %v1366_v61   ;;  %v873_v8 = vadd.f32 %v1674_v26, %v834_v62  ;;  %v889_v9 = vadd.f32 %v1674_v26, %v850_v63  ;;  %v835_v10 = vmul.f32 %v1460_v6, %v1669_v24  ;;  %v614_v12 = vpop.f32.mrb[7].mxu0  ;;  %v678_v13 = vpop.f32.mrb[7].mxu1 }
 0x106   : > { %v851_v11 = vmul.f32 %v1476_v7, %v1669_v24  ;;  %1322 = vst [vmem:[%s1697_s24] sm:$0xff] %v1321_v2   ;;  %1405 = vst [vmem:[%s1697_s24 + $0x40] sm:$0xff] %v1361_v3   ;;  %v871_v14 = vadd.f32 %v1674_v26, %v832_v4  ;;  %v887_v15 = vadd.f32 %v1674_v26, %v848_v5 }
 0x107   : > { %v833_v16 = vmul.f32 %v1669_v24, %v614_v12  ;;  %v849_v17 = vmul.f32 %v1669_v24, %v678_v13  ;;  %v874_v18 = vadd.f32 %v1674_v26, %v835_v10  ;;  %v905_v22 = vmax.f32 %v873_v8, 0.0 }
 0x108   : > { %v890_v19 = vadd.f32 %v1674_v26, %v851_v11  ;;  %v921_v23 = vmax.f32 %v889_v9, 0.0  ;;  %v903_v28 = vmax.f32 %v871_v14, 0.0  ;;  %v919_v29 = vmax.f32 %v887_v15, 0.0 }
 0x109   : > { %v872_v20 = vadd.f32 %v1674_v26, %v833_v16  ;;  %v888_v21 = vadd.f32 %v1674_v26, %v849_v17  ;;  %v906_v25 = vmax.f32 %v874_v18, 0.0 }
 0x10a   : > { %v922_v27 = vmax.f32 %v890_v19, 0.0  ;;  %v1463_v32 = vpop.f32.mrb[8].mxu0  ;;  %v1479_v33 = vpop.f32.mrb[8].mxu1 }
 0x10b   : > { %v904_v30 = vmax.f32 %v872_v20, 0.0  ;;  %v920_v31 = vmax.f32 %v888_v21, 0.0  ;;  %v1336_v34 = vpack.c.bf16 %v906_v25, %v905_v22  ;;  %v838_v36 = vmul.f32 %v1463_v32, %v1669_v24  ;;  %v627_v38 = vpop.f32.mrb[9].mxu0  ;;  %v691_v39 = vpop.f32.mrb[9].mxu1 }
 0x10c   : > { %v1376_v35 = vpack.c.bf16 %v922_v27, %v921_v23  ;;  %v854_v37 = vmul.f32 %v1479_v33, %v1669_v24  ;;  %v836_v42 = vmul.f32 %v1669_v24, %v627_v38  ;;  %v852_v43 = vmul.f32 %v1669_v24, %v691_v39  ;;  %v1464_v44 = vpop.f32.mrb[10].mxu0  ;;  %v1480_v45 = vpop.f32.mrb[10].mxu1 }
 0x10d   : > { %v1331_v40 = vpack.c.bf16 %v904_v30, %v903_v28  ;;  %v1371_v41 = vpack.c.bf16 %v920_v31, %v919_v29  ;;  %1400 = vst [vmem:[%s1697_s24 + $0x18] sm:$0xff] %v1336_v34   ;;  %v877_v46 = vadd.f32 %v1674_v26, %v838_v36  ;;  %v839_v48 = vmul.f32 %v1464_v44, %v1669_v24  ;;  %v630_v50 = vpop.f32.mrb[11].mxu0  ;;  %v694_v51 = vpop.f32.mrb[11].mxu1 }
 0x10e   : > { %1408 = vst [vmem:[%s1697_s24 + $0x58] sm:$0xff] %v1376_v35   ;;  %v893_v47 = vadd.f32 %v1674_v26, %v854_v37  ;;  %v855_v49 = vmul.f32 %v1480_v45, %v1669_v24  ;;  %v875_v52 = vadd.f32 %v1674_v26, %v836_v42  ;;  %v891_v53 = vadd.f32 %v1674_v26, %v852_v43 }
 0x10f   : > { %1399 = vst [vmem:[%s1697_s24 + $0x10] sm:$0xff] %v1331_v40   ;;  %1407 = vst [vmem:[%s1697_s24 + $0x50] sm:$0xff] %v1371_v41   ;;  %v837_v54 = vmul.f32 %v1669_v24, %v630_v50  ;;  %v853_v55 = vmul.f32 %v1669_v24, %v694_v51  ;;  %v878_v56 = vadd.f32 %v1674_v26, %v839_v48  ;;  %v909_v60 = vmax.f32 %v877_v46, 0.0 }
 0x110   : > { %v894_v57 = vadd.f32 %v1674_v26, %v855_v49  ;;  %v925_v61 = vmax.f32 %v893_v47, 0.0  ;;  %v907_v0 = vmax.f32 %v875_v52, 0.0  ;;  %v923_v1 = vmax.f32 %v891_v53, 0.0 }
 0x111   : > { %v876_v58 = vadd.f32 %v1674_v26, %v837_v54  ;;  %v892_v59 = vadd.f32 %v1674_v26, %v853_v55  ;;  %v910_v62 = vmax.f32 %v878_v56, 0.0 }
 0x112   : > { %v926_v63 = vmax.f32 %v894_v57, 0.0  ;;  %v1467_v4 = vpop.f32.mrb[12].mxu0  ;;  %v1483_v5 = vpop.f32.mrb[12].mxu1 }
 0x113   : > { %v908_v2 = vmax.f32 %v876_v58, 0.0  ;;  %v924_v3 = vmax.f32 %v892_v59, 0.0  ;;  %v1346_v6 = vpack.c.bf16 %v910_v62, %v909_v60  ;;  %v842_v8 = vmul.f32 %v1467_v4, %v1669_v24  ;;  %v643_v10 = vpop.f32.mrb[13].mxu0  ;;  %v707_v11 = vpop.f32.mrb[13].mxu1 }
 0x114   : > { %v1386_v7 = vpack.c.bf16 %v926_v63, %v925_v61  ;;  %v858_v9 = vmul.f32 %v1483_v5, %v1669_v24  ;;  %v840_v14 = vmul.f32 %v1669_v24, %v643_v10  ;;  %v856_v15 = vmul.f32 %v1669_v24, %v707_v11  ;;  %v1468_v16 = vpop.f32.mrb[14].mxu0  ;;  %v1484_v17 = vpop.f32.mrb[14].mxu1 }
 0x115   : > { %v1341_v12 = vpack.c.bf16 %v908_v2, %v907_v0  ;;  %v1381_v13 = vpack.c.bf16 %v924_v3, %v923_v1  ;;  %1402 = vst [vmem:[%s1697_s24 + $0x28] sm:$0xff] %v1346_v6   ;;  %v881_v18 = vadd.f32 %v1674_v26, %v842_v8  ;;  %v843_v20 = vmul.f32 %v1468_v16, %v1669_v24  ;;  %v646_v22 = vpop.f32.mrb[15].mxu0  ;;  %v710_v23 = vpop.f32.mrb[15].mxu1 }
 0x116   : > { %1410 = vst [vmem:[%s1697_s24 + $0x68] sm:$0xff] %v1386_v7   ;;  %v897_v19 = vadd.f32 %v1674_v26, %v858_v9  ;;  %v859_v21 = vmul.f32 %v1484_v17, %v1669_v24  ;;  %v879_v25 = vadd.f32 %v1674_v26, %v840_v14  ;;  %v895_v27 = vadd.f32 %v1674_v26, %v856_v15 }
 0x117   : > { %1401 = vst [vmem:[%s1697_s24 + $0x20] sm:$0xff] %v1341_v12   ;;  %1409 = vst [vmem:[%s1697_s24 + $0x60] sm:$0xff] %v1381_v13   ;;  %v841_v28 = vmul.f32 %v1669_v24, %v646_v22  ;;  %v857_v29 = vmul.f32 %v1669_v24, %v710_v23  ;;  %v882_v30 = vadd.f32 %v1674_v26, %v843_v20  ;;  %v913_v34 = vmax.f32 %v881_v18, 0.0 }
 0x118   : > { %v898_v31 = vadd.f32 %v1674_v26, %v859_v21  ;;  %v929_v35 = vmax.f32 %v897_v19, 0.0  ;;  %v911_v38 = vmax.f32 %v879_v25, 0.0  ;;  %v927_v39 = vmax.f32 %v895_v27, 0.0 }
 0x119   : > { %v880_v32 = vadd.f32 %v1674_v26, %v841_v28  ;;  %v896_v33 = vadd.f32 %v1674_v26, %v857_v29  ;;  %v914_v36 = vmax.f32 %v882_v30, 0.0 }
 0x11a   : > { %v930_v37 = vmax.f32 %v898_v31, 0.0 }
 0x11b   : > { %v912_v40 = vmax.f32 %v880_v32, 0.0  ;;  %v928_v24 = vmax.f32 %v896_v33, 0.0  ;;  %v1356_v41 = vpack.c.bf16 %v914_v36, %v913_v34 }
 0x11c   : > { %v1396_v42 = vpack.c.bf16 %v930_v37, %v929_v35 }
 0x11d   : > { %v1351_v43 = vpack.c.bf16 %v912_v40, %v911_v38  ;;  %v1391_v44 = vpack.c.bf16 %v928_v24, %v927_v39  ;;  %1404 = vst [vmem:[%s1697_s24 + $0x38] sm:$0xff] %v1356_v41  }
 0x11e   : > { %1412 = vst [vmem:[%s1697_s24 + $0x78] sm:$0xff] %v1396_v42  }
 0x11f   : > { %1403 = vst [vmem:[%s1697_s24 + $0x30] sm:$0xff] %v1351_v43   ;;  %1411 = vst [vmem:[%s1697_s24 + $0x70] sm:$0xff] %v1391_v44  }
 0x120 PF: > { %s14_s17 = sadd.s32 1, %s1571_s17   ;;  %s1777_s15 = smov %s1567_s16 }
 0x121   : > { %p11_p5 = scmp.ge.s32.totalorder %s14_s17, 4   ;;  %s1778_s16 = smov %s1780_s18 }
 0x123   :  { %13 = sbr.rel (!%p11_p5) target bundleno = 2 (0x2), region = 83 }

// kernel: bottleneck_forward.7
= control target key start
LH: loop header
LB: loop body
LE: loop exit
PB: predicated region body
PF: predicated region fallthrough
CT: control target
= control target key end

     0   :  { %s768_s0 = inlined_call_operand.vmem [shape: bf16[128,128], index: 0, kind: input, shape index: {}]   ;;  %s769_s1 = inlined_call_operand.vmem [shape: bf16[128,128], index: 1, kind: input, shape index: {}]   ;;  %s770_s2 = inlined_call_operand.vmem [shape: f32[1,128], index: 2, kind: input, shape index: {}]   ;;  %s771_s3 = inlined_call_operand.vmem [shape: f32[1,128], index: 3, kind: input, shape index: {}]   ;;  %s772_s4 = inlined_call_operand.vmem [shape: f32[128,128], index: 4, kind: input, shape index: {}]   ;;  %s773_s5 = inlined_call_operand.hbm [shape: f32[128,128], index: 5, kind: output, shape index: {}]  }
   0x1   :  { %v545_v0 = vld [vmem:[%s769_s1] sm:$0xff]   ;;  %v546_v1 = vld [vmem:[%s769_s1 + $0x8] sm:$0xff]   ;;  %v547_v2 = vld [vmem:[%s769_s1 + $0x10] sm:$0xff]  }
   0x2   :  { %494 = vmatprep.subr.bf16.mxu0 %v545_v0  ;;  %526 = vmatprep.subr.bf16.mxu1 %v545_v0  ;;  %v548_v3 = vld [vmem:[%s769_s1 + $0x18] sm:$0xff]   ;;  %v553_v4 = vld [vmem:[%s768_s0] sm:$0xff]   ;;  %v550_v7 = vld [vmem:[%s769_s1 + $0x28] sm:$0xff]  }
   0x3   :  { %495 = vmatpush3.bf16.msra.mxu0 %v545_v0  ;;  %534 = vmatpush3.bf16.msra.mxu1 %v545_v0  ;;  %v554_v5 = vld [vmem:[%s768_s0 + $0x20] sm:$0xff]  }
   0x4   :  { %496 = vmatprep.subr.bf16.mxu0 %v546_v1  ;;  %527 = vmatprep.subr.bf16.mxu1 %v546_v1  ;;  %v549_v6 = vld [vmem:[%s769_s1 + $0x20] sm:$0xff]  }
   0x5   :  { %510 = vmatprep.mubr.bf16.mxu0 %v553_v4  ;;  %518 = vmatprep.mubr.bf16.mxu1 %v554_v5 }
   0x7   :  { %497 = vmatpush3.bf16.msra.mxu0 %v546_v1  ;;  %535 = vmatpush3.bf16.msra.mxu1 %v546_v1 }
   0x8   :  { %498 = vmatprep.subr.bf16.mxu0 %v547_v2  ;;  %528 = vmatprep.subr.bf16.mxu1 %v547_v2 }
   0xb   :  { %499 = vmatpush3.bf16.msra.mxu0 %v547_v2  ;;  %536 = vmatpush3.bf16.msra.mxu1 %v547_v2 }
   0xc   :  { %500 = vmatprep.subr.bf16.mxu0 %v548_v3  ;;  %529 = vmatprep.subr.bf16.mxu1 %v548_v3 }
   0xf   :  { %501 = vmatpush3.bf16.msra.mxu0 %v548_v3  ;;  %537 = vmatpush3.bf16.msra.mxu1 %v548_v3 }
  0x10   :  { %502 = vmatprep.subr.bf16.mxu0 %v549_v6  ;;  %530 = vmatprep.subr.bf16.mxu1 %v549_v6 }
  0x11   :  { %10 = vsyncpa [#allocation4], 0  ;;  %v551_v8 = vld [vmem:[%s769_s1 + $0x30] sm:$0xff]   ;;  %v552_v9 = vld [vmem:[%s769_s1 + $0x38] sm:$0xff]  }
  0x12   :  { %v555_v10 = vld [vmem:[%s768_s0 + $0x8] sm:$0xff]   ;;  %v557_v12 = vld [vmem:[%s768_s0 + $0x10] sm:$0xff]   ;;  %v559_v14 = vld [vmem:[%s768_s0 + $0x18] sm:$0xff]  }
  0x13   :  { %503 = vmatpush3.bf16.msra.mxu0 %v549_v6  ;;  %538 = vmatpush3.bf16.msra.mxu1 %v549_v6  ;;  %v556_v11 = vld [vmem:[%s768_s0 + $0x28] sm:$0xff]   ;;  %v558_v13 = vld [vmem:[%s768_s0 + $0x30] sm:$0xff]   ;;  %v560_v15 = vld [vmem:[%s768_s0 + $0x38] sm:$0xff]  }
  0x14   :  { %504 = vmatprep.subr.bf16.mxu0 %v550_v7  ;;  %531 = vmatprep.subr.bf16.mxu1 %v550_v7  ;;  %v669_v16 = vld [vmem:[%s770_s2] ss:$0 sm:$0xff]  ;;  %v382_v24 = vld [vmem:[%s772_s4 + $0x10] sm:$0xff]  ;;  %v383_v40 = vld [vmem:[%s772_s4 + $0x18] sm:$0xff]  ;;  %s585_s2 = smov [#allocation3]  }
  0x15   :  { %v674_v18 = vld [vmem:[%s771_s3] ss:$0 sm:$0xff]  ;;  %v390_v25 = vld [vmem:[%s772_s4 + $0x50] sm:$0xff]  ;;  %v391_v41 = vld [vmem:[%s772_s4 + $0x58] sm:$0xff]  ;;  %s449_s3 = sshll.u32 %s585_s2, 4  ;;  %s450_s3 = int_to_ptr.vmem [resolvable:$true] %s449_s3 }
  0x16   :  { %v380_v32 = vld [vmem:[%s772_s4] sm:$0xff]  ;;  %v381_v48 = vld [vmem:[%s772_s4 + $0x8] sm:$0xff]  ;;  %p566_p1 = scmp.lt.s32.totalorder %s450_s3, %s450_s3 }
  0x17   :  { %505 = vmatpush3.bf16.msra.mxu0 %v550_v7  ;;  %539 = vmatpush3.bf16.msra.mxu1 %v550_v7  ;;  %v388_v33 = vld [vmem:[%s772_s4 + $0x40] sm:$0xff]  ;;  %v389_v49 = vld [vmem:[%s772_s4 + $0x48] sm:$0xff] }
  0x18   :  { %506 = vmatprep.subr.bf16.mxu0 %v551_v8  ;;  %532 = vmatprep.subr.bf16.mxu1 %v551_v8 }
  0x1b   :  { %507 = vmatpush3.bf16.msra.mxu0 %v551_v8  ;;  %540 = vmatpush3.bf16.msra.mxu1 %v551_v8  ;;  %v386_v8 = vld [vmem:[%s772_s4 + $0x30] sm:$0xff] }
  0x1c   :  { %508 = vmatprep.subr.bf16.mxu0 %v552_v9  ;;  %533 = vmatprep.subr.bf16.mxu1 %v552_v9 }
  0x1f   :  { %509 = vmatpush3.bf16.msra.mxu0 %v552_v9  ;;  %541 = vmatpush3.bf16.msra.mxu1 %v552_v9  ;;  %v394_v9 = vld [vmem:[%s772_s4 + $0x70] sm:$0xff] }
  0x22   :  { %511 = vmatmul.mubr.bf16.vlgmr.msra.gmra.mrb[0].mxu0 %v555_v10  ;;  %519 = vmatmul.mubr.bf16.vlgmr.msra.gmra.mrb[0].mxu1 %v556_v11 }
  0x23   :  { %514 = vmatprep.mubr.bf16.mxu0 %v557_v12  ;;  %522 = vmatprep.mubr.bf16.mxu1 %v558_v13 }
  0x2a   :  { %515 = vmatmul.mubr.bf16.gmra.mrb[4].mxu0 %v559_v14  ;;  %523 = vmatmul.mubr.bf16.gmra.mrb[4].mxu1 %v560_v15 }
  0xf5   :  { %v512_v17 = vpop.f32.mrb[0].mxu0  ;;  %v520_v19 = vpop.f32.mrb[0].mxu1 }
  0xf6   :  { %v343_v20 = vmul.f32 %v512_v17, %v669_v16  ;;  %v351_v21 = vmul.f32 %v520_v19, %v669_v16  ;;  %v220_v22 = vpop.f32.mrb[1].mxu0  ;;  %v252_v23 = vpop.f32.mrb[1].mxu1  ;;  %v384_v17 = vld [vmem:[%s772_s4 + $0x20] sm:$0xff] }
  0xf7   :  { %v341_v26 = vmul.f32 %v669_v16, %v220_v22  ;;  %v349_v27 = vmul.f32 %v669_v16, %v252_v23  ;;  %v513_v28 = vpop.f32.mrb[2].mxu0  ;;  %v521_v29 = vpop.f32.mrb[2].mxu1  ;;  %v392_v19 = vld [vmem:[%s772_s4 + $0x60] sm:$0xff] }
  0xf8   :  { %v366_v30 = vadd.f32 %v674_v18, %v343_v20  ;;  %v374_v31 = vadd.f32 %v674_v18, %v351_v21  ;;  %v344_v34 = vmul.f32 %v513_v28, %v669_v16  ;;  %v352_v35 = vmul.f32 %v521_v29, %v669_v16  ;;  %v223_v36 = vpop.f32.mrb[3].mxu0  ;;  %v255_v37 = vpop.f32.mrb[3].mxu1 }
  0xf9   :  { %v364_v38 = vadd.f32 %v674_v18, %v341_v26  ;;  %v372_v39 = vadd.f32 %v674_v18, %v349_v27  ;;  %v342_v42 = vmul.f32 %v669_v16, %v223_v36  ;;  %v350_v43 = vmul.f32 %v669_v16, %v255_v37  ;;  %v387_v26 = vld [vmem:[%s772_s4 + $0x38] sm:$0xff] }
  0xfa   :  { %v398_v44 = vadd.f32 %v382_v24, %v366_v30  ;;  %v406_v45 = vadd.f32 %v390_v25, %v374_v31  ;;  %v367_v46 = vadd.f32 %v674_v18, %v344_v34  ;;  %v375_v47 = vadd.f32 %v674_v18, %v352_v35  ;;  %v395_v27 = vld [vmem:[%s772_s4 + $0x78] sm:$0xff]  ;;  %v385_v34 = vld [vmem:[%s772_s4 + $0x28] sm:$0xff] }
  0xfb   :  { %v396_v50 = vadd.f32 %v380_v32, %v364_v38  ;;  %v404_v51 = vadd.f32 %v388_v33, %v372_v39  ;;  %v365_v52 = vadd.f32 %v674_v18, %v342_v42  ;;  %v373_v53 = vadd.f32 %v674_v18, %v350_v43  ;;  %v393_v35 = vld [vmem:[%s772_s4 + $0x68] sm:$0xff]  ;;  %s561_s4 = scalar_lea.vmem %s450_s3, 2048 }
  0xfc   :  { %v414_v54 = vmax.f32 %v398_v44, 0.0  ;;  %v422_v55 = vmax.f32 %v406_v45, 0.0  ;;  %v399_v56 = vadd.f32 %v383_v40, %v367_v46  ;;  %v407_v57 = vadd.f32 %v391_v41, %v375_v47  ;;  %p562_p0 = scmp.ne.s32.totalorder %s450_s3, %s561_s4  ;;  %p567_p2 = scmp.lt.s32.totalorder %s561_s4, %s561_s4 }
  0xfd   :  { %v412_v58 = vmax.f32 %v396_v50, 0.0  ;;  %v420_v59 = vmax.f32 %v404_v51, 0.0  ;;  %v397_v60 = vadd.f32 %v381_v48, %v365_v52  ;;  %v405_v61 = vadd.f32 %v389_v49, %v373_v53  ;;  %v516_v62 = vpop.f32.mrb[4].mxu0  ;;  %v524_v63 = vpop.f32.mrb[4].mxu1 }
  0xfe   :  { %430 = vst [vmem:[#allocation3 + $0x10] sm:$0xff] %v414_v54  ;;  %438 = vst [vmem:[#allocation3 + $0x50] sm:$0xff] %v422_v55  ;;  %v415_v0 = vmax.f32 %v399_v56, 0.0  ;;  %v423_v1 = vmax.f32 %v407_v57, 0.0  ;;  %v347_v2 = vmul.f32 %v516_v62, %v669_v16  ;;  %v355_v3 = vmul.f32 %v524_v63, %v669_v16  ;;  %v236_v4 = vpop.f32.mrb[5].mxu0  ;;  %v268_v5 = vpop.f32.mrb[5].mxu1  ;;  %p568_p3 = por %p567_p2, %p566_p1 }
  0xff   :  { %428 = vst [vmem:[#allocation3] sm:$0xff] %v412_v58  ;;  %436 = vst [vmem:[#allocation3 + $0x40] sm:$0xff] %v420_v59  ;;  %v413_v6 = vmax.f32 %v397_v60, 0.0  ;;  %v421_v7 = vmax.f32 %v405_v61, 0.0  ;;  %v345_v10 = vmul.f32 %v669_v16, %v236_v4  ;;  %v353_v11 = vmul.f32 %v669_v16, %v268_v5  ;;  %v517_v12 = vpop.f32.mrb[6].mxu0  ;;  %v525_v13 = vpop.f32.mrb[6].mxu1 }
 0x100   :  { %431 = vst [vmem:[#allocation3 + $0x18] sm:$0xff] %v415_v0  ;;  %439 = vst [vmem:[#allocation3 + $0x58] sm:$0xff] %v423_v1  ;;  %v370_v14 = vadd.f32 %v674_v18, %v347_v2  ;;  %v378_v15 = vadd.f32 %v674_v18, %v355_v3  ;;  %v348_v20 = vmul.f32 %v517_v12, %v669_v16  ;;  %v239_v22 = vpop.f32.mrb[7].mxu0  ;;  %v271_v23 = vpop.f32.mrb[7].mxu1  ;;  %p569_p4 = pnand %p568_p3, %p562_p0 }
 0x101   :  { %v356_v21 = vmul.f32 %v525_v13, %v669_v16  ;;  %429 = vst [vmem:[#allocation3 + $0x8] sm:$0xff] %v413_v6  ;;  %437 = vst [vmem:[#allocation3 + $0x48] sm:$0xff] %v421_v7  ;;  %v368_v24 = vadd.f32 %v674_v18, %v345_v10  ;;  %v376_v25 = vadd.f32 %v674_v18, %v353_v11 }
 0x102   :  { %v346_v28 = vmul.f32 %v669_v16, %v239_v22  ;;  %v354_v29 = vmul.f32 %v669_v16, %v271_v23  ;;  %v402_v30 = vadd.f32 %v386_v8, %v370_v14  ;;  %v410_v31 = vadd.f32 %v394_v9, %v378_v15 }
 0x103   :  { %v371_v32 = vadd.f32 %v674_v18, %v348_v20  ;;  %v379_v33 = vadd.f32 %v674_v18, %v356_v21  ;;  %v400_v36 = vadd.f32 %v384_v17, %v368_v24  ;;  %v408_v37 = vadd.f32 %v392_v19, %v376_v25 }
 0x104   :  { %v369_v38 = vadd.f32 %v674_v18, %v346_v28  ;;  %v377_v16 = vadd.f32 %v674_v18, %v354_v29  ;;  %v418_v39 = vmax.f32 %v402_v30, 0.0  ;;  %v426_v40 = vmax.f32 %v410_v31, 0.0 }
 0x105   :  { %v403_v41 = vadd.f32 %v387_v26, %v371_v32  ;;  %v411_v42 = vadd.f32 %v395_v27, %v379_v33  ;;  %v416_v43 = vmax.f32 %v400_v36, 0.0  ;;  %v424_v44 = vmax.f32 %v408_v37, 0.0 }
 0x106   :  { %v401_v45 = vadd.f32 %v385_v34, %v369_v38  ;;  %v409_v46 = vadd.f32 %v393_v35, %v377_v16  ;;  %434 = vst [vmem:[#allocation3 + $0x30] sm:$0xff] %v418_v39  ;;  %442 = vst [vmem:[#allocation3 + $0x70] sm:$0xff] %v426_v40 }
 0x107   :  { %v419_v47 = vmax.f32 %v403_v41, 0.0  ;;  %v427_v48 = vmax.f32 %v411_v42, 0.0  ;;  %432 = vst [vmem:[#allocation3 + $0x20] sm:$0xff] %v416_v43  ;;  %440 = vst [vmem:[#allocation3 + $0x60] sm:$0xff] %v424_v44 }
 0x108   :  { %v417_v49 = vmax.f32 %v401_v45, 0.0  ;;  %v425_v50 = vmax.f32 %v409_v46, 0.0 }
 0x109   :  { %435 = vst [vmem:[#allocation3 + $0x38] sm:$0xff] %v419_v47  ;;  %443 = vst [vmem:[#allocation3 + $0x78] sm:$0xff] %v427_v48 }
 0x10a   :  { %433 = vst [vmem:[#allocation3 + $0x28] sm:$0xff] %v417_v49  ;;  %441 = vst [vmem:[#allocation3 + $0x68] sm:$0xff] %v425_v50 }
 0x10b   :  { %572 = shalt.err (!%p569_p4)
}
 0x10c   :  { %s573_s7 = scalar_lea.hbm %s773_s5, 2048 }
 0x10d   :  { %p574_p5 = scmp.ne.s32.totalorder %s773_s5, %s573_s7  ;;  %p577_p6 = scmp.lt.u32.totalorder %s573_s7, %s773_s5 }
 0x10f   :  { %p579_p7 = pnand %p577_p6, %p574_p5 }
 0x111   :  { %582 = shalt.err (!%p579_p7)
}
 0x112   :  { %s586_s12 = smov 128   ;;  %s587_s13 = smov 8  }
 0x113   :  { %455 = dma.vmem_to_hbm [thread:$0]  %s450_s3, 2048, %s773_s5, [#allocation4], %s586_s12, %s586_s12, %s587_s13  }
 0x114   :  { %583 = dma.done.wait [#allocation4], 2048  }
 0x115   :  { %584 = vsyncadd [#allocation4], 4294965248 }
 0x116   :  { %459 = vsyncpa [#allocation4], 1 }

// kernel: bottleneck_forward.5
= control target key start
LH: loop header
LB: loop body
LE: loop exit
PB: predicated region body
PF: predicated region fallthrough
CT: control target
= control target key end

     0   :  { %s14574_s15 = smov 0   ;;  %s14576_s16 = smov 0   ;;  %s16747_s0 = inlined_call_operand.vmem [shape: bf16[2,9,2,9,2,128], index: 0, kind: input, shape index: {}]   ;;  %s16748_s1 = inlined_call_operand.vmem [shape: bf16[3,3,128,128], index: 1, kind: input, shape index: {}]   ;;  %s16749_s2 = inlined_call_operand.vmem [shape: f32[1,128], index: 2, kind: input, shape index: {}]   ;;  %s16750_s3 = inlined_call_operand.vmem [shape: f32[1,128], index: 3, kind: input, shape index: {}]   ;;  %s16751_s4 = inlined_call_operand.vmem [shape: bf16[2,64,128], index: 4, kind: output, shape index: {}]  }
   0x1   :  { %s14578_s17 = smov 0  }
   0x2 LB: > { %s26_s18 = sadd.s32 1, %s14542_s16  ;;  %p12748_p0 = scmp.ge.s32.totalorder %s14546_s17, 1  ;;  %s14546_s17 = sphi %s14578_s17, %s14_s17   ;;  %s14542_s16 = sphi %s14576_s16, %s16753_s16   ;;  %s14538_s15 = sphi %s14574_s15, %s16752_s15  }
   0x3   : > { %p28_p1 = scmp.ge.s32.totalorder %s26_s18, 2  ;;  %p200_p2 = scmp.lt.s32.totalorder %s14546_s17, 3 }
   0x5   : > { %s16755_s18 = smov (%p28_p1, %s26_s18), 0  ;;  %p201_p3 = pnand %p12748_p0, %p200_p2 }
   0x6   : > { %v14449_v0 = vld [vmem:[%s16748_s1] sm:$0xff] (!%p201_p3)   ;;  %v14451_v2 = vld [vmem:[%s16748_s1 + $0x8] sm:$0xff] (!%p201_p3)   ;;  %p238_p4 = scmp.lt.s32.totalorder (!%p201_p3), %s14538_s15, 1  ;;  %v14453_v4 = vld [vmem:[%s16748_s1 + $0x10] sm:$0xff] (!%p201_p3)   ;;  %v431_v10 = vlaneseq (!%p201_p3)  ;;  %v14548_v13 = vmov (!%p201_p3), 1966171168  }
   0x7   : > { %204 = sbr.rel (%p201_p3) target bundleno = 769 (0x301), region = 36  ;;  %v14450_v1 = vld [vmem:[%s16748_s1 + $0x100] sm:$0xff] (!%p201_p3)   ;;  %14127 = vmatprep.subr.bf16.mxu1 (!%p201_p3), %v14449_v0  ;;  %v14452_v3 = vld [vmem:[%s16748_s1 + $0x108] sm:$0xff] (!%p201_p3)   ;;  %v14454_v5 = vld [vmem:[%s16748_s1 + $0x110] sm:$0xff] (!%p201_p3)   ;;  %v429_v14 = vunpack.c.l.s4 (!%p201_p3), %v14548_v13  ;;  %vm1382_vm0 = vcmask (!%p201_p3), 1041409   ;;  %vm1385_vm1 = vcmask (!%p201_p3), 1042434  }
   0x8   : > { %14223 = vmatprep.subr.bf16.mxu0 (!%p201_p3), %v14450_v1  ;;  %14128 = vmatpush3.bf16.msra.mxu1 (!%p201_p3), %v14449_v0  ;;  %v14455_v6 = vld [vmem:[%s16748_s1 + $0x18] sm:$0xff] (!%p201_p3)   ;;  %v14457_v8 = vld [vmem:[%s16748_s1 + $0x20] sm:$0xff] (!%p201_p3)   ;;  %v14459_v11 = vld [vmem:[%s16748_s1 + $0x28] sm:$0xff] (!%p201_p3)   ;;  %v432_v15 = vshrl.u32 (!%p201_p3), %v431_v10, 7  ;;  %vm1388_vm2 = vcmask (!%p201_p3), 1043459   ;;  %vm1391_vm3 = vcmask (!%p201_p3), 1044484  }
   0x9   : > { %14224 = vmatpush3.bf16.msra.mxu0 (!%p201_p3), %v14450_v1  ;;  %14129 = vmatprep.subr.bf16.mxu1 (!%p201_p3), %v14451_v2  ;;  %v14456_v7 = vld [vmem:[%s16748_s1 + $0x118] sm:$0xff] (!%p201_p3)   ;;  %v14458_v9 = vld [vmem:[%s16748_s1 + $0x120] sm:$0xff] (!%p201_p3)   ;;  %v14460_v12 = vld [vmem:[%s16748_s1 + $0x128] sm:$0xff] (!%p201_p3)   ;;  %v430_v22 = vunpack.c.0.s8 (!%p201_p3), %v429_v14  ;;  %vm1394_vm4 = vcmask (!%p201_p3), 1045509   ;;  %vm1397_vm5 = vcmask (!%p201_p3), 1046534   ;;  %vm1400_vm6 = vcmask (!%p201_p3), 1047559  }
   0xa   : > { %14225 = vmatprep.subr.bf16.mxu0 (!%p201_p3), %v14452_v3  ;;  %v14461_v19 = vld [vmem:[%s16748_s1 + $0x30] sm:$0xff] (!%p201_p3)   ;;  %v14463_v32 = vld [vmem:[%s16748_s1 + $0x38] sm:$0xff] (!%p201_p3)   ;;  %v14674_v48 = vld [vmem:[%s16748_s1 + $0x40] sm:$0xff] (!%p201_p3)  }
   0xb   : > { %v14462_v20 = vld [vmem:[%s16748_s1 + $0x130] sm:$0xff] (!%p201_p3)   ;;  %v14648_v25 = vsub.s32 (!%p201_p3), %v430_v22, %v432_v15  ;;  %v14464_v33 = vld [vmem:[%s16748_s1 + $0x138] sm:$0xff] (!%p201_p3)   ;;  %v14683_v59 = vld [vmem:[%s16748_s1 + $0x140] sm:$0xff] (!%p201_p3)  }
   0xc   : > { %14130 = vmatpush3.bf16.msra.mxu1 (!%p201_p3), %v14451_v2 }
   0xd   : > { %14226 = vmatpush3.bf16.msra.mxu0 (!%p201_p3), %v14452_v3  ;;  %14131 = vmatprep.subr.bf16.mxu1 (!%p201_p3), %v14453_v4 }
   0xe   : > { %s16757_s15 = smov (!%p238_p4, %s14538_s15), 1  ;;  %14227 = vmatprep.subr.bf16.mxu0 %v14454_v5 }
   0xf   : > { %s14423_s9 = smul.u32 162, %s16757_s15  ;;  %s13987_s28 = sshll.u32 %s16757_s15, 5 }
  0x10   : > { %14132 = vmatpush3.bf16.msra.mxu1 %v14453_v4  ;;  %s259_s5 = scalar_lea.vmem %s16751_s4, %s13987_s28 }
  0x11   : > { %14228 = vmatpush3.bf16.msra.mxu0 %v14454_v5  ;;  %14133 = vmatprep.subr.bf16.mxu1 %v14455_v6  ;;  %s14628_s20 = scalar_lea.vmem %s16747_s0, %s14423_s9 }
  0x12   : > { %14229 = vmatprep.subr.bf16.mxu0 %v14456_v7  ;;  %v12751_v16 = vld.sshfl [vmem:[%s14628_s20] sm:$0x1 pattern:$0x75316420] }
  0x13   : > { %v12752_v17 = vld.sshfl [vmem:[%s14628_s20 + $0x1] sm:$0x1 pattern:$0x75316420]  ;;  %v434_v28 = vrot.slane %v12751_v16, %v14648_v25 }
  0x14   : > { %14134 = vmatpush3.bf16.msra.mxu1 %v14455_v6  ;;  %v12753_v18 = vld.sshfl [vmem:[%s14628_s20 + $0x2] sm:$0x1 pattern:$0x75316420]  ;;  %v448_v29 = vrot.slane %v12752_v17, %v14648_v25 }
  0x15   : > { %14230 = vmatpush3.bf16.msra.mxu0 %v14456_v7  ;;  %14135 = vmatprep.subr.bf16.mxu1 %v14457_v8  ;;  %v12754_v21 = vld.sshfl [vmem:[%s14628_s20 + $0x3] sm:$0x1 pattern:$0x75316420]  ;;  %v462_v30 = vrot.slane %v12753_v18, %v14648_v25  ;;  %v1317_v41 = vunpack.c.l.b16 %v434_v28 }
  0x16   : > { %14231 = vmatprep.subr.bf16.mxu0 %v14458_v9  ;;  %v12755_v23 = vld.sshfl [vmem:[%s14628_s20 + $0x4] sm:$0x1 pattern:$0x75316420]  ;;  %v476_v31 = vrot.slane %v12754_v21, %v14648_v25  ;;  %v1318_v42 = vunpack.c.l.b16 %v448_v29 }
  0x17   : > { %v12756_v24 = vld.sshfl [vmem:[%s14628_s20 + $0x5] sm:$0x1 pattern:$0x75316420]  ;;  %v490_v35 = vrot.slane %v12755_v23, %v14648_v25  ;;  %v1319_v45 = vunpack.c.l.b16 %v462_v30 }
  0x18   : > { %14136 = vmatpush3.bf16.msra.mxu1 %v14457_v8  ;;  %v12757_v26 = vld.sshfl [vmem:[%s14628_s20 + $0x6] sm:$0x1 pattern:$0x75316420]  ;;  %v504_v36 = vrot.slane %v12756_v24, %v14648_v25  ;;  %v1320_v46 = vunpack.c.l.b16 %v476_v31  ;;  %v1381_v58 = vrot.slane %v1318_v42, 7 }
  0x19   : > { %14232 = vmatpush3.bf16.msra.mxu0 %v14458_v9  ;;  %14137 = vmatprep.subr.bf16.mxu1 %v14459_v11  ;;  %v12758_v27 = vld.sshfl [vmem:[%s14628_s20 + $0x7] sm:$0x1 pattern:$0x75316420]  ;;  %v518_v37 = vrot.slane %v12757_v26, %v14648_v25  ;;  %v1321_v47 = vunpack.c.l.b16 %v490_v35  ;;  %v1384_v63 = vrot.slane %v1319_v45, 6 }
  0x1a   : > { %14233 = vmatprep.subr.bf16.mxu0 %v14460_v12  ;;  %v12759_v34 = vld.sshfl [vmem:[%s14628_s20 + $0x12] sm:$0x1 pattern:$0x75316420]  ;;  %v532_v39 = vrot.slane %v12758_v27, %v14648_v25  ;;  %v1322_v51 = vunpack.c.l.b16 %v504_v36  ;;  %v1387_v0 = vrot.slane %v1320_v46, 5  ;;  %v1383_v4 = vsel %vm1382_vm0, %v1381_v58, %v1317_v41 }
  0x1b   : > { %v12760_v38 = vld.sshfl [vmem:[%s14628_s20 + $0x13] sm:$0x1 pattern:$0x75316420]  ;;  %v546_v40 = vrot.slane %v12759_v34, %v14648_v25  ;;  %v1323_v52 = vunpack.c.l.b16 %v518_v37  ;;  %v1390_v5 = vrot.slane %v1321_v47, 4  ;;  %v1386_v9 = vsel %vm1385_vm1, %v1384_v63, %v1383_v4 }
  0x1c   : > { %14138 = vmatpush3.bf16.msra.mxu1 %v14459_v11  ;;  %v12761_v43 = vld.sshfl [vmem:[%s14628_s20 + $0x14] sm:$0x1 pattern:$0x75316420]  ;;  %v560_v44 = vrot.slane %v12760_v38, %v14648_v25  ;;  %v1324_v53 = vunpack.c.l.b16 %v532_v39  ;;  %v1393_v10 = vrot.slane %v1322_v51, 3  ;;  %v1389_v13 = vsel %vm1388_vm2, %v1387_v0, %v1386_v9 }
  0x1d   : > { %14234 = vmatpush3.bf16.msra.mxu0 %v14460_v12  ;;  %14139 = vmatprep.subr.bf16.mxu1 %v14461_v19  ;;  %v12762_v49 = vld.sshfl [vmem:[%s14628_s20 + $0x15] sm:$0x1 pattern:$0x75316420]  ;;  %v574_v50 = vrot.slane %v12761_v43, %v14648_v25  ;;  %v1325_v56 = vunpack.c.l.b16 %v546_v40  ;;  %v1396_v14 = vrot.slane %v1323_v52, 2  ;;  %v1392_v17 = vsel %vm1391_vm3, %v1390_v5, %v1389_v13 }
  0x1e   : > { %14235 = vmatprep.subr.bf16.mxu0 %v14462_v20  ;;  %v12763_v54 = vld.sshfl [vmem:[%s14628_s20 + $0x16] sm:$0x1 pattern:$0x75316420]  ;;  %v588_v55 = vrot.slane %v12762_v49, %v14648_v25  ;;  %v1326_v57 = vunpack.c.l.b16 %v560_v44  ;;  %v1399_v18 = vrot.slane %v1324_v53, 1  ;;  %v1395_v22 = vsel %vm1394_vm4, %v1393_v10, %v1392_v17 }
  0x1f   : > { %v12764_v60 = vld.sshfl [vmem:[%s14628_s20 + $0x17] sm:$0x1 pattern:$0x75316420]  ;;  %v602_v61 = vrot.slane %v12763_v54, %v14648_v25  ;;  %v1327_v62 = vunpack.c.l.b16 %v574_v50  ;;  %v1398_v27 = vsel %vm1397_vm5, %v1396_v14, %v1395_v22 }
  0x20   : > { %14140 = vmatpush3.bf16.msra.mxu1 %v14461_v19  ;;  %v12765_v1 = vld.sshfl [vmem:[%s14628_s20 + $0x18] sm:$0x1 pattern:$0x75316420]  ;;  %v616_v2 = vrot.slane %v12764_v60, %v14648_v25  ;;  %v1328_v3 = vunpack.c.l.b16 %v588_v55  ;;  %v1402_v19 = vrot.slane %v1326_v57, 7 }
  0x21   : > { %14236 = vmatpush3.bf16.msra.mxu0 %v14462_v20  ;;  %14141 = vmatprep.subr.bf16.mxu1 %v14463_v32  ;;  %v12766_v6 = vld.sshfl [vmem:[%s14628_s20 + $0x19] sm:$0x1 pattern:$0x75316420]  ;;  %v630_v7 = vrot.slane %v12765_v1, %v14648_v25  ;;  %v1329_v8 = vunpack.c.l.b16 %v602_v61  ;;  %v1404_v23 = vrot.slane %v1327_v62, 6 }
  0x22   : > { %14237 = vmatprep.subr.bf16.mxu0 %v14464_v33  ;;  %v644_v11 = vrot.slane %v12766_v6, %v14648_v25  ;;  %v1330_v12 = vunpack.c.l.b16 %v616_v2  ;;  %v13295_v15 = vld.sshfl [vmem:[%s14628_s20 + $0x9] sm:$0x1 pattern:$0x75316420]  ;;  %v1406_v24 = vrot.slane %v1328_v3, 5  ;;  %v1403_v28 = vsel %vm1382_vm0, %v1402_v19, %v1325_v56 }
  0x23   : > { %v1331_v16 = vunpack.c.l.b16 %v630_v7  ;;  %v13296_v20 = vld.sshfl [vmem:[%s14628_s20 + $0xa] sm:$0x1 pattern:$0x75316420]  ;;  %v1408_v29 = vrot.slane %v1329_v8, 4  ;;  %v5891_v39 = vrot.slane %v13295_v15, %v14648_v25 }
  0x24   : > { %14142 = vmatpush3.bf16.msra.mxu1 %v14463_v32  ;;  %v1332_v21 = vunpack.c.l.b16 %v644_v11  ;;  %v13297_v26 = vld.sshfl [vmem:[%s14628_s20 + $0xb] sm:$0x1 pattern:$0x75316420]  ;;  %v1410_v30 = vrot.slane %v1330_v12, 3  ;;  %v1401_v32 = vsel %vm1400_vm6, %v1399_v18, %v1398_v27  ;;  %v5905_v40 = vrot.slane %v13296_v20, %v14648_v25 }
  0x25   : > { %14238 = vmatpush3.bf16.msra.mxu0 %v14464_v33  ;;  %14151 = vmatprep.subr.bf16.mxu1 %v14674_v48  ;;  %v13298_v31 = vld.sshfl [vmem:[%s14628_s20 + $0xc] sm:$0x1 pattern:$0x75316420]  ;;  %v1405_v33 = vsel %vm1385_vm1, %v1404_v23, %v1403_v28  ;;  %v1412_v34 = vrot.slane %v1331_v16, 2  ;;  %v5919_v41 = vrot.slane %v13297_v26, %v14648_v25  ;;  %v6774_v51 = vunpack.c.l.b16 %v5891_v39 }
  0x26   : > { %14247 = vmatprep.subr.bf16.mxu0 %v14683_v59  ;;  %v1414_v35 = vrot.slane %v1332_v21, 1  ;;  %v13299_v36 = vld.sshfl [vmem:[%s14628_s20 + $0xd] sm:$0x1 pattern:$0x75316420]  ;;  %v1407_v37 = vsel %vm1388_vm2, %v1406_v24, %v1405_v33  ;;  %v5933_v44 = vrot.slane %v13298_v31, %v14648_v25  ;;  %v6775_v52 = vunpack.c.l.b16 %v5905_v40 }
  0x27   : > { %v13300_v38 = vld.sshfl [vmem:[%s14628_s20 + $0xe] sm:$0x1 pattern:$0x75316420]  ;;  %v1409_v42 = vsel %vm1391_vm3, %v1408_v29, %v1407_v37  ;;  %v5947_v45 = vrot.slane %v13299_v36, %v14648_v25  ;;  %v6776_v56 = vunpack.c.l.b16 %v5919_v41  ;;  %v6838_v8 = vrot.slane %v6774_v51, 1 }
  0x28   : > { %v13301_v43 = vld.sshfl [vmem:[%s14628_s20 + $0xf] sm:$0x1 pattern:$0x75316420]  ;;  %v5961_v46 = vrot.slane %v13300_v38, %v14648_v25  ;;  %v1411_v47 = vsel %vm1394_vm4, %v1410_v30, %v1409_v42  ;;  %v6777_v57 = vunpack.c.l.b16 %v5933_v44 }
  0x29   : > { %v13302_v49 = vld.sshfl [vmem:[%s14628_s20 + $0x10] sm:$0x1 pattern:$0x75316420]  ;;  %v5975_v50 = vrot.slane %v13301_v43, %v14648_v25  ;;  %v1413_v53 = vsel %vm1397_vm5, %v1412_v34, %v1411_v47  ;;  %v6778_v62 = vunpack.c.l.b16 %v5947_v45  ;;  %v6840_v9 = vrot.slane %v6776_v56, 7 }
  0x2a   : > { %v13303_v54 = vld.sshfl [vmem:[%s14628_s20 + $0x1b] sm:$0x1 pattern:$0x75316420]  ;;  %v5989_v55 = vrot.slane %v13302_v49, %v14648_v25  ;;  %v1415_v58 = vsel %vm1400_vm6, %v1414_v35, %v1413_v53  ;;  %v6779_v63 = vunpack.c.l.b16 %v5961_v46  ;;  %v6842_v13 = vrot.slane %v6777_v57, 6 }
  0x2b   : > { %v13304_v60 = vld.sshfl [vmem:[%s14628_s20 + $0x1c] sm:$0x1 pattern:$0x75316420]  ;;  %v6003_v61 = vrot.slane %v13303_v54, %v14648_v25  ;;  %v1500_v0 = vpack.c.b16 %v1415_v58, %v1401_v32  ;;  %v6780_v3 = vunpack.c.l.b16 %v5975_v50  ;;  %v6844_v14 = vrot.slane %v6778_v62, 5 }
  0x2c   : > { %v13305_v1 = vld.sshfl [vmem:[%s14628_s20 + $0x1d] sm:$0x1 pattern:$0x75316420]  ;;  %v6017_v2 = vrot.slane %v13304_v60, %v14648_v25  ;;  %v6781_v4 = vunpack.c.l.b16 %v5989_v55  ;;  %v6839_v18 = vsel %vm1382_vm0, %v6775_v52, %v6838_v8  ;;  %v6846_v19 = vrot.slane %v6779_v63, 4 }
  0x2d   : > { %v13306_v5 = vld.sshfl [vmem:[%s14628_s20 + $0x1e] sm:$0x1 pattern:$0x75316420]  ;;  %v6031_v6 = vrot.slane %v13305_v1, %v14648_v25  ;;  %v6782_v7 = vunpack.c.l.b16 %v6003_v61  ;;  %14143 = vmatprep.mubr.bf16.mxu1 %v1500_v0  ;;  %v6841_v23 = vsel %vm1385_vm1, %v6840_v9, %v6839_v18  ;;  %v6848_v24 = vrot.slane %v6780_v3, 3 }
  0x2e   : > { %v13307_v10 = vld.sshfl [vmem:[%s14628_s20 + $0x1f] sm:$0x1 pattern:$0x75316420]  ;;  %v6045_v11 = vrot.slane %v13306_v5, %v14648_v25  ;;  %v6783_v12 = vunpack.c.l.b16 %v6017_v2  ;;  %v6843_v29 = vsel %vm1388_vm2, %v6842_v13, %v6841_v23  ;;  %v6850_v30 = vrot.slane %v6781_v4, 2 }
  0x2f   : > { %v13308_v15 = vld.sshfl [vmem:[%s14628_s20 + $0x20] sm:$0x1 pattern:$0x75316420]  ;;  %v6059_v16 = vrot.slane %v13307_v10, %v14648_v25  ;;  %v6784_v17 = vunpack.c.l.b16 %v6031_v6  ;;  %v6845_v33 = vsel %vm1391_vm3, %v6844_v14, %v6843_v29  ;;  %v6852_v34 = vrot.slane %v6782_v7, 1 }
  0x30   : > { %v13309_v20 = vld.sshfl [vmem:[%s14628_s20 + $0x21] sm:$0x1 pattern:$0x75316420]  ;;  %v6073_v21 = vrot.slane %v13308_v15, %v14648_v25  ;;  %v6785_v22 = vunpack.c.l.b16 %v6045_v11  ;;  %v6847_v37 = vsel %vm1394_vm4, %v6846_v19, %v6845_v33 }
  0x31   : > { %v13310_v26 = vld.sshfl [vmem:[%s14628_s20 + $0x22] sm:$0x1 pattern:$0x75316420]  ;;  %v6087_v27 = vrot.slane %v13309_v20, %v14648_v25  ;;  %v6786_v28 = vunpack.c.l.b16 %v6059_v16  ;;  %v6854_v38 = vrot.slane %v6784_v17, 7  ;;  %v6849_v42 = vsel %vm1397_vm5, %v6848_v24, %v6847_v37 }
  0x32   : > { %v6101_v31 = vrot.slane %v13310_v26, %v14648_v25  ;;  %v6787_v32 = vunpack.c.l.b16 %v6073_v21  ;;  %v12767_v35 = vld.sshfl [vmem:[%s14628_s20 + $0x24] sm:$0x1 pattern:$0x75316420]  ;;  %v6856_v39 = vrot.slane %v6785_v22, 6  ;;  %v6853_v43 = vsel %vm1382_vm0, %v6783_v12, %v6852_v34 }
  0x33   : > { %v6788_v36 = vunpack.c.l.b16 %v6087_v27  ;;  %v12768_v40 = vld.sshfl [vmem:[%s14628_s20 + $0x25] sm:$0x1 pattern:$0x75316420]  ;;  %v6858_v44 = vrot.slane %v6786_v28, 5  ;;  %v6851_v46 = vsel %vm1400_vm6, %v6850_v30, %v6849_v42  ;;  %v6855_v47 = vsel %vm1385_vm1, %v6854_v38, %v6853_v43 }
  0x34   : > { %v6789_v41 = vunpack.c.l.b16 %v6101_v31  ;;  %v12769_v45 = vld.sshfl [vmem:[%s14628_s20 + $0x26] sm:$0x1 pattern:$0x75316420]  ;;  %v6860_v49 = vrot.slane %v6787_v32, 4  ;;  %v6857_v52 = vsel %vm1388_vm2, %v6856_v39, %v6855_v47  ;;  %v658_v55 = vrot.slane %v12767_v35, %v14648_v25 }
  0x35   : > { %v6862_v50 = vrot.slane %v6788_v36, 3  ;;  %v12770_v51 = vld.sshfl [vmem:[%s14628_s20 + $0x27] sm:$0x1 pattern:$0x75316420]  ;;  %v672_v56 = vrot.slane %v12768_v40, %v14648_v25  ;;  %v6859_v57 = vsel %vm1391_vm3, %v6858_v44, %v6857_v52  ;;  %v686_v60 = vrot.slane %v12769_v45, %v14648_v25 }
  0x36   : > { %v6864_v53 = vrot.slane %v6789_v41, 2  ;;  %v12771_v54 = vld.sshfl [vmem:[%s14628_s20 + $0x28] sm:$0x1 pattern:$0x75316420]  ;;  %v700_v61 = vrot.slane %v12770_v51, %v14648_v25  ;;  %v6861_v63 = vsel %vm1394_vm4, %v6860_v49, %v6859_v57  ;;  %v1333_v2 = vunpack.c.l.b16 %v658_v55 }
  0x37   : > { %v12772_v58 = vld.sshfl [vmem:[%s14628_s20 + $0x29] sm:$0x1 pattern:$0x75316420]  ;;  %v714_v62 = vrot.slane %v12771_v54, %v14648_v25  ;;  %v1334_v3 = vunpack.c.l.b16 %v672_v56  ;;  %v6863_v4 = vsel %vm1397_vm5, %v6862_v50, %v6861_v63  ;;  %v1335_v7 = vunpack.c.l.b16 %v686_v60 }
  0x38   : > { %v12773_v0 = vld.sshfl [vmem:[%s14628_s20 + $0x2a] sm:$0x1 pattern:$0x75316420]  ;;  %v728_v1 = vrot.slane %v12772_v58, %v14648_v25  ;;  %v1336_v8 = vunpack.c.l.b16 %v700_v61  ;;  %v6865_v9 = vsel %vm1400_vm6, %v6864_v53, %v6863_v4 }
  0x39   : > { %v12774_v5 = vld.sshfl [vmem:[%s14628_s20 + $0x2b] sm:$0x1 pattern:$0x75316420]  ;;  %v742_v6 = vrot.slane %v12773_v0, %v14648_v25  ;;  %v1337_v12 = vunpack.c.l.b16 %v714_v62  ;;  %v6950_v14 = vpack.c.b16 %v6865_v9, %v6851_v46  ;;  %v1416_v18 = vrot.slane %v1334_v3, 7 }
  0x3a   : > { %v12775_v10 = vld.sshfl [vmem:[%s14628_s20 + $0x36] sm:$0x1 pattern:$0x75316420]  ;;  %v756_v11 = vrot.slane %v12774_v5, %v14648_v25  ;;  %v1338_v13 = vunpack.c.l.b16 %v728_v1  ;;  %v1418_v22 = vrot.slane %v1335_v7, 6  ;;  %v1420_v23 = vrot.slane %v1336_v8, 5 }
  0x3b   : > { %v12776_v15 = vld.sshfl [vmem:[%s14628_s20 + $0x37] sm:$0x1 pattern:$0x75316420]  ;;  %v770_v16 = vrot.slane %v12775_v10, %v14648_v25  ;;  %v1339_v17 = vunpack.c.l.b16 %v742_v6  ;;  %14239 = vmatprep.mubr.bf16.mxu0 %v6950_v14  ;;  %v1417_v28 = vsel %vm1382_vm0, %v1416_v18, %v1333_v2  ;;  %v1422_v29 = vrot.slane %v1337_v12, 4 }
  0x3c   : > { %v12777_v19 = vld.sshfl [vmem:[%s14628_s20 + $0x38] sm:$0x1 pattern:$0x75316420]  ;;  %v784_v20 = vrot.slane %v12776_v15, %v14648_v25  ;;  %v1340_v21 = vunpack.c.l.b16 %v756_v11  ;;  %v1419_v33 = vsel %vm1385_vm1, %v1418_v22, %v1417_v28  ;;  %v1424_v34 = vrot.slane %v1338_v13, 3 }
  0x3d   : > { %v12778_v24 = vld.sshfl [vmem:[%s14628_s20 + $0x39] sm:$0x1 pattern:$0x75316420]  ;;  %v798_v26 = vrot.slane %v12777_v19, %v14648_v25  ;;  %v1341_v27 = vunpack.c.l.b16 %v770_v16  ;;  %v1421_v38 = vsel %vm1388_vm2, %v1420_v23, %v1419_v33  ;;  %v1426_v39 = vrot.slane %v1339_v17, 2 }
  0x3e   : > { %v12779_v30 = vld.sshfl [vmem:[%s14628_s20 + $0x3a] sm:$0x1 pattern:$0x75316420]  ;;  %v812_v31 = vrot.slane %v12778_v24, %v14648_v25  ;;  %v1342_v32 = vunpack.c.l.b16 %v784_v20  ;;  %v1423_v43 = vsel %vm1391_vm3, %v1422_v29, %v1421_v38  ;;  %v1428_v44 = vrot.slane %v1340_v21, 1 }
  0x3f   : > { %v12780_v35 = vld.sshfl [vmem:[%s14628_s20 + $0x3b] sm:$0x1 pattern:$0x75316420]  ;;  %v826_v36 = vrot.slane %v12779_v30, %v14648_v25  ;;  %v1343_v37 = vunpack.c.l.b16 %v798_v26  ;;  %v1425_v49 = vsel %vm1394_vm4, %v1424_v34, %v1423_v43  ;;  %v14467_v34 = vld [vmem:[%s16748_s1 + $0x48] sm:$0xff]  }
  0x40   : > { %v12781_v40 = vld.sshfl [vmem:[%s14628_s20 + $0x3c] sm:$0x1 pattern:$0x75316420]  ;;  %v840_v41 = vrot.slane %v12780_v35, %v14648_v25  ;;  %v1344_v42 = vunpack.c.l.b16 %v812_v31  ;;  %v1430_v50 = vrot.slane %v1342_v32, 7  ;;  %v1427_v53 = vsel %vm1397_vm5, %v1426_v39, %v1425_v49 }
  0x41   : > { %v12782_v45 = vld.sshfl [vmem:[%s14628_s20 + $0x3d] sm:$0x1 pattern:$0x75316420]  ;;  %v854_v46 = vrot.slane %v12781_v40, %v14648_v25  ;;  %v1345_v47 = vunpack.c.l.b16 %v826_v36  ;;  %v1432_v54 = vrot.slane %v1343_v37, 6  ;;  %v1429_v57 = vsel %vm1400_vm6, %v1428_v44, %v1427_v53 }
  0x42   : > { %v868_v51 = vrot.slane %v12782_v45, %v14648_v25  ;;  %v1346_v52 = vunpack.c.l.b16 %v840_v41  ;;  %v13311_v55 = vld.sshfl [vmem:[%s14628_s20 + $0x2d] sm:$0x1 pattern:$0x75316420]  ;;  %v1431_v58 = vsel %vm1382_vm0, %v1430_v50, %v1341_v27  ;;  %v1434_v60 = vrot.slane %v1344_v42, 5 }
  0x43   : > { %v1347_v56 = vunpack.c.l.b16 %v854_v46  ;;  %v13312_v61 = vld.sshfl [vmem:[%s14628_s20 + $0x2e] sm:$0x1 pattern:$0x75316420]  ;;  %v1433_v63 = vsel %vm1385_vm1, %v1432_v54, %v1431_v58  ;;  %v1436_v0 = vrot.slane %v1345_v47, 4  ;;  %v6115_v6 = vrot.slane %v13311_v55, %v14648_v25 }
  0x44   : > { %v1348_v62 = vunpack.c.l.b16 %v868_v51  ;;  %v1438_v1 = vrot.slane %v1346_v52, 3  ;;  %v13313_v2 = vld.sshfl [vmem:[%s14628_s20 + $0x2f] sm:$0x1 pattern:$0x75316420]  ;;  %v1435_v3 = vsel %vm1388_vm2, %v1434_v60, %v1433_v63  ;;  %v6129_v7 = vrot.slane %v13312_v61, %v14648_v25 }
  0x45   : > { %v1440_v4 = vrot.slane %v1347_v56, 2  ;;  %v13314_v5 = vld.sshfl [vmem:[%s14628_s20 + $0x30] sm:$0x1 pattern:$0x75316420]  ;;  %v1437_v8 = vsel %vm1391_vm3, %v1436_v0, %v1435_v3  ;;  %v6143_v11 = vrot.slane %v13313_v2, %v14648_v25  ;;  %v6790_v16 = vunpack.c.l.b16 %v6115_v6 }
  0x46   : > { %v1442_v9 = vrot.slane %v1348_v62, 1  ;;  %v13315_v10 = vld.sshfl [vmem:[%s14628_s20 + $0x31] sm:$0x1 pattern:$0x75316420]  ;;  %v6157_v12 = vrot.slane %v13314_v5, %v14648_v25  ;;  %v1439_v13 = vsel %vm1394_vm4, %v1438_v1, %v1437_v8  ;;  %v6791_v17 = vunpack.c.l.b16 %v6129_v7 }
  0x47   : > { %v13316_v14 = vld.sshfl [vmem:[%s14628_s20 + $0x32] sm:$0x1 pattern:$0x75316420]  ;;  %v6171_v15 = vrot.slane %v13315_v10, %v14648_v25  ;;  %v1441_v18 = vsel %vm1397_vm5, %v1440_v4, %v1439_v13  ;;  %v6792_v21 = vunpack.c.l.b16 %v6143_v11  ;;  %v6866_v28 = vrot.slane %v6790_v16, 1  ;;  %v14471_v10 = vld [vmem:[%s16748_s1 + $0x58] sm:$0xff]  }
  0x48   : > { %v13317_v19 = vld.sshfl [vmem:[%s14628_s20 + $0x33] sm:$0x1 pattern:$0x75316420]  ;;  %v6185_v20 = vrot.slane %v13316_v14, %v14648_v25  ;;  %v6793_v22 = vunpack.c.l.b16 %v6157_v12  ;;  %v1443_v23 = vsel %vm1400_vm6, %v1442_v9, %v1441_v18 }
  0x49   : > { %v13318_v24 = vld.sshfl [vmem:[%s14628_s20 + $0x34] sm:$0x1 pattern:$0x75316420]  ;;  %v6199_v26 = vrot.slane %v13317_v19, %v14648_v25  ;;  %v6794_v27 = vunpack.c.l.b16 %v6171_v15  ;;  %v1501_v29 = vpack.c.b16 %v1443_v23, %v1429_v57  ;;  %v6868_v33 = vrot.slane %v6792_v21, 7 }
  0x4a   : > { %v13319_v30 = vld.sshfl [vmem:[%s14628_s20 + $0x3f] sm:$0x1 pattern:$0x75316420]  ;;  %v6213_v31 = vrot.slane %v13318_v24, %v14648_v25  ;;  %v6795_v32 = vunpack.c.l.b16 %v6185_v20  ;;  %v6867_v38 = vsel %vm1382_vm0, %v6791_v17, %v6866_v28  ;;  %v6870_v39 = vrot.slane %v6793_v22, 6 }
  0x4b   : > { %v13320_v35 = vld.sshfl [vmem:[%s14628_s20 + $0x40] sm:$0x1 pattern:$0x75316420]  ;;  %v6227_v36 = vrot.slane %v13319_v30, %v14648_v25  ;;  %v6796_v37 = vunpack.c.l.b16 %v6199_v26  ;;  %14144 = vmatmul.mubr.bf16.vlgmr.msra.gmra.mrb[0].mxu1 %v1501_v29  ;;  %v6869_v43 = vsel %vm1385_vm1, %v6868_v33, %v6867_v38  ;;  %v6872_v44 = vrot.slane %v6794_v27, 5 }
  0x4c   : > { %v13321_v40 = vld.sshfl [vmem:[%s14628_s20 + $0x41] sm:$0x1 pattern:$0x75316420]  ;;  %v6241_v41 = vrot.slane %v13320_v35, %v14648_v25  ;;  %v6797_v42 = vunpack.c.l.b16 %v6213_v31  ;;  %14152 = vmatpush3.bf16.msra.mxu1 %v14674_v48  ;;  %v6871_v49 = vsel %vm1388_vm2, %v6870_v39, %v6869_v43  ;;  %v6874_v50 = vrot.slane %v6795_v32, 4  ;;  %v14469_v48 = vld [vmem:[%s16748_s1 + $0x50] sm:$0xff]  }
  0x4d   : > { %v13322_v45 = vld.sshfl [vmem:[%s14628_s20 + $0x42] sm:$0x1 pattern:$0x75316420]  ;;  %v6255_v46 = vrot.slane %v13321_v40, %v14648_v25  ;;  %v6798_v47 = vunpack.c.l.b16 %v6227_v36  ;;  %v6873_v54 = vsel %vm1391_vm3, %v6872_v44, %v6871_v49  ;;  %14153 = vmatprep.subr.bf16.mxu1 %v14467_v34  ;;  %v6876_v58 = vrot.slane %v6796_v37, 3  ;;  %v14468_v31 = vld [vmem:[%s16748_s1 + $0x148] sm:$0xff]  }
  0x4e   : > { %v13323_v51 = vld.sshfl [vmem:[%s14628_s20 + $0x43] sm:$0x1 pattern:$0x75316420]  ;;  %v6269_v52 = vrot.slane %v13322_v45, %v14648_v25  ;;  %v6799_v53 = vunpack.c.l.b16 %v6241_v41  ;;  %v6875_v63 = vsel %vm1394_vm4, %v6874_v50, %v6873_v54  ;;  %v6878_v4 = vrot.slane %v6797_v42, 2  ;;  %v14475_v43 = vld [vmem:[%s16748_s1 + $0x68] sm:$0xff]  }
  0x4f   : > { %v13324_v55 = vld.sshfl [vmem:[%s14628_s20 + $0x44] sm:$0x1 pattern:$0x75316420]  ;;  %v6283_v56 = vrot.slane %v13323_v51, %v14648_v25  ;;  %v6800_v57 = vunpack.c.l.b16 %v6255_v46  ;;  %v6880_v0 = vrot.slane %v6798_v47, 1  ;;  %v6877_v12 = vsel %vm1397_vm5, %v6876_v58, %v6875_v63 }
  0x50   : > { %v13325_v60 = vld.sshfl [vmem:[%s14628_s20 + $0x45] sm:$0x1 pattern:$0x75316420]  ;;  %v6297_v61 = vrot.slane %v13324_v55, %v14648_v25  ;;  %v6801_v62 = vunpack.c.l.b16 %v6269_v52  ;;  %14154 = vmatpush3.bf16.msra.mxu1 %v14467_v34  ;;  %v6879_v23 = vsel %vm1400_vm6, %v6878_v4, %v6877_v12  ;;  %v14477_v4 = vld [vmem:[%s16748_s1 + $0x70] sm:$0xff]  }
  0x51   : > { %v13326_v1 = vld.sshfl [vmem:[%s14628_s20 + $0x46] sm:$0x1 pattern:$0x75316420]  ;;  %v6311_v2 = vrot.slane %v13325_v60, %v14648_v25  ;;  %v6802_v3 = vunpack.c.l.b16 %v6283_v56  ;;  %v6882_v5 = vrot.slane %v6800_v57, 7  ;;  %v6881_v8 = vsel %vm1382_vm0, %v6799_v53, %v6880_v0  ;;  %14155 = vmatprep.subr.bf16.mxu1 %v14469_v48  ;;  %v14470_v57 = vld [vmem:[%s16748_s1 + $0x150] sm:$0xff]  }
  0x52   : > { %v6325_v6 = vrot.slane %v13326_v1, %v14648_v25  ;;  %v6803_v7 = vunpack.c.l.b16 %v6297_v61  ;;  %v6884_v9 = vrot.slane %v6801_v62, 6  ;;  %v12783_v18 = vld.sshfl [vmem:[%s14628_s20 + $0x48] sm:$0x1 pattern:$0x75316420]  ;;  %v14473_v27 = vld [vmem:[%s16748_s1 + $0x60] sm:$0xff]  }
  0x53   : > { %v6804_v11 = vunpack.c.l.b16 %v6311_v2  ;;  %v6883_v13 = vsel %vm1385_vm1, %v6882_v5, %v6881_v8  ;;  %v6886_v14 = vrot.slane %v6802_v3, 5  ;;  %v12784_v21 = vld.sshfl [vmem:[%s14628_s20 + $0x49] sm:$0x1 pattern:$0x75316420]  ;;  %v882_v22 = vrot.slane %v12783_v18, %v14648_v25 }
  0x54   : > { %v6805_v15 = vunpack.c.l.b16 %v6325_v6  ;;  %v6885_v16 = vsel %vm1388_vm2, %v6884_v9, %v6883_v13  ;;  %v6888_v17 = vrot.slane %v6803_v7, 4  ;;  %14156 = vmatpush3.bf16.msra.mxu1 %v14469_v48  ;;  %v12785_v28 = vld.sshfl [vmem:[%s14628_s20 + $0x4a] sm:$0x1 pattern:$0x75316420]  ;;  %v896_v29 = vrot.slane %v12784_v21, %v14648_v25 }
  0x55   : > { %v6887_v19 = vsel %vm1391_vm3, %v6886_v14, %v6885_v16  ;;  %v6890_v20 = vrot.slane %v6804_v11, 3  ;;  %14157 = vmatprep.subr.bf16.mxu1 %v14471_v10  ;;  %v12786_v32 = vld.sshfl [vmem:[%s14628_s20 + $0x4b] sm:$0x1 pattern:$0x75316420]  ;;  %v910_v33 = vrot.slane %v12785_v28, %v14648_v25  ;;  %v1349_v37 = vunpack.c.l.b16 %v882_v22 }
  0x56   : > { %v6889_v24 = vsel %vm1394_vm4, %v6888_v17, %v6887_v19  ;;  %v6892_v26 = vrot.slane %v6805_v15, 2  ;;  %v12787_v35 = vld.sshfl [vmem:[%s14628_s20 + $0x4c] sm:$0x1 pattern:$0x75316420]  ;;  %v924_v36 = vrot.slane %v12786_v32, %v14648_v25  ;;  %v1350_v38 = vunpack.c.l.b16 %v896_v29 }
  0x57   : > { %v6891_v30 = vsel %vm1397_vm5, %v6890_v20, %v6889_v24  ;;  %v12788_v40 = vld.sshfl [vmem:[%s14628_s20 + $0x4d] sm:$0x1 pattern:$0x75316420]  ;;  %v938_v41 = vrot.slane %v12787_v35, %v14648_v25  ;;  %v1351_v42 = vunpack.c.l.b16 %v910_v33  ;;  %v14479_v24 = vld [vmem:[%s16748_s1 + $0x78] sm:$0xff]  }
  0x58   : > { %v6893_v34 = vsel %vm1400_vm6, %v6892_v26, %v6891_v30  ;;  %14158 = vmatpush3.bf16.msra.mxu1 %v14471_v10  ;;  %v12789_v44 = vld.sshfl [vmem:[%s14628_s20 + $0x4e] sm:$0x1 pattern:$0x75316420]  ;;  %v952_v45 = vrot.slane %v12788_v40, %v14648_v25  ;;  %v1352_v46 = vunpack.c.l.b16 %v924_v36  ;;  %v1444_v47 = vrot.slane %v1350_v38, 7  ;;  %v14472_v10 = vld [vmem:[%s16748_s1 + $0x158] sm:$0xff]  }
  0x59   : > { %v6951_v39 = vpack.c.b16 %v6893_v34, %v6879_v23  ;;  %14159 = vmatprep.subr.bf16.mxu1 %v14473_v27  ;;  %v12790_v49 = vld.sshfl [vmem:[%s14628_s20 + $0x4f] sm:$0x1 pattern:$0x75316420]  ;;  %v966_v50 = vrot.slane %v12789_v44, %v14648_v25  ;;  %v1353_v51 = vunpack.c.l.b16 %v938_v41  ;;  %v1446_v52 = vrot.slane %v1351_v42, 6  ;;  %v14474_v36 = vld [vmem:[%s16748_s1 + $0x160] sm:$0xff]  }
  0x5a   : > { %v12791_v53 = vld.sshfl [vmem:[%s14628_s20 + $0x5a] sm:$0x1 pattern:$0x75316420]  ;;  %v980_v54 = vrot.slane %v12790_v49, %v14648_v25  ;;  %v1354_v48 = vunpack.c.l.b16 %v952_v45  ;;  %v1445_v55 = vsel %vm1382_vm0, %v1444_v47, %v1349_v37  ;;  %v1448_v56 = vrot.slane %v1352_v46, 5  ;;  %v14481_v47 = vld [vmem:[%s16748_s1 + $0x80] sm:$0xff]  }
  0x5b   : > { %14240 = vmatmul.mubr.bf16.vlgmr.msra.gmra.mrb[0].mxu0 %v6951_v39  ;;  %v12792_v58 = vld.sshfl [vmem:[%s14628_s20 + $0x5b] sm:$0x1 pattern:$0x75316420]  ;;  %v994_v60 = vrot.slane %v12791_v53, %v14648_v25  ;;  %v1355_v61 = vunpack.c.l.b16 %v966_v50  ;;  %v1450_v62 = vrot.slane %v1353_v51, 4 }
  0x5c   : > { %14248 = vmatpush3.bf16.msra.mxu0 %v14683_v59  ;;  %14160 = vmatpush3.bf16.msra.mxu1 %v14473_v27  ;;  %v1447_v59 = vsel %vm1385_vm1, %v1446_v52, %v1445_v55  ;;  %v12793_v63 = vld.sshfl [vmem:[%s14628_s20 + $0x5c] sm:$0x1 pattern:$0x75316420]  ;;  %v1008_v0 = vrot.slane %v12792_v58, %v14648_v25  ;;  %v1356_v1 = vunpack.c.l.b16 %v980_v54  ;;  %v1452_v3 = vrot.slane %v1354_v48, 3  ;;  %v14476_v58 = vld [vmem:[%s16748_s1 + $0x168] sm:$0xff]  }
  0x5d   : > { %14249 = vmatprep.subr.bf16.mxu0 %v14468_v31  ;;  %14161 = vmatprep.subr.bf16.mxu1 %v14475_v43  ;;  %v1449_v2 = vsel %vm1388_vm2, %v1448_v56, %v1447_v59  ;;  %v12794_v5 = vld.sshfl [vmem:[%s14628_s20 + $0x5d] sm:$0x1 pattern:$0x75316420]  ;;  %v1022_v6 = vrot.slane %v12793_v63, %v14648_v25  ;;  %v1357_v7 = vunpack.c.l.b16 %v994_v60  ;;  %v1454_v9 = vrot.slane %v1355_v61, 2 }
  0x5e   : > { %v1451_v8 = vsel %vm1391_vm3, %v1450_v62, %v1449_v2  ;;  %v12795_v11 = vld.sshfl [vmem:[%s14628_s20 + $0x5e] sm:$0x1 pattern:$0x75316420]  ;;  %v1036_v12 = vrot.slane %v12794_v5, %v14648_v25  ;;  %v1358_v13 = vunpack.c.l.b16 %v1008_v0  ;;  %v1456_v15 = vrot.slane %v1356_v1, 1 }
  0x5f   : > { %v1453_v14 = vsel %vm1394_vm4, %v1452_v3, %v1451_v8  ;;  %v12796_v16 = vld.sshfl [vmem:[%s14628_s20 + $0x5f] sm:$0x1 pattern:$0x75316420]  ;;  %v1050_v17 = vrot.slane %v12795_v11, %v14648_v25  ;;  %v1359_v18 = vunpack.c.l.b16 %v1022_v6 }
  0x60   : > { %14250 = vmatpush3.bf16.msra.mxu0 %v14468_v31  ;;  %14162 = vmatpush3.bf16.msra.mxu1 %v14475_v43  ;;  %v1455_v19 = vsel %vm1397_vm5, %v1454_v9, %v1453_v14  ;;  %v12797_v20 = vld.sshfl [vmem:[%s14628_s20 + $0x60] sm:$0x1 pattern:$0x75316420]  ;;  %v1064_v21 = vrot.slane %v12796_v16, %v14648_v25  ;;  %v1360_v22 = vunpack.c.l.b16 %v1036_v12  ;;  %v1458_v23 = vrot.slane %v1358_v13, 7 }
  0x61   : > { %14251 = vmatprep.subr.bf16.mxu0 %v14470_v57  ;;  %14163 = vmatprep.subr.bf16.mxu1 %v14477_v4  ;;  %v12798_v26 = vld.sshfl [vmem:[%s14628_s20 + $0x61] sm:$0x1 pattern:$0x75316420]  ;;  %v1078_v27 = vrot.slane %v12797_v20, %v14648_v25  ;;  %v1361_v28 = vunpack.c.l.b16 %v1050_v17  ;;  %v1457_v29 = vsel %vm1400_vm6, %v1456_v15, %v1455_v19  ;;  %v1460_v30 = vrot.slane %v1359_v18, 6  ;;  %v14478_v18 = vld [vmem:[%s16748_s1 + $0x170] sm:$0xff]  }
  0x62   : > { %v1092_v31 = vrot.slane %v12798_v26, %v14648_v25  ;;  %v1362_v32 = vunpack.c.l.b16 %v1064_v21  ;;  %v1459_v33 = vsel %vm1382_vm0, %v1458_v23, %v1357_v7  ;;  %v1462_v34 = vrot.slane %v1360_v22, 5  ;;  %v13327_v35 = vld.sshfl [vmem:[%s14628_s20 + $0x51] sm:$0x1 pattern:$0x75316420] }
  0x63   : > { %v1363_v37 = vunpack.c.l.b16 %v1078_v27  ;;  %v1461_v38 = vsel %vm1385_vm1, %v1460_v30, %v1459_v33  ;;  %v1464_v39 = vrot.slane %v1361_v28, 4  ;;  %v13328_v40 = vld.sshfl [vmem:[%s14628_s20 + $0x52] sm:$0x1 pattern:$0x75316420]  ;;  %v6339_v41 = vrot.slane %v13327_v35, %v14648_v25 }
  0x64   : > { %14252 = vmatpush3.bf16.msra.mxu0 %v14470_v57  ;;  %14164 = vmatpush3.bf16.msra.mxu1 %v14477_v4  ;;  %v1364_v42 = vunpack.c.l.b16 %v1092_v31  ;;  %v1463_v43 = vsel %vm1388_vm2, %v1462_v34, %v1461_v38  ;;  %v1466_v44 = vrot.slane %v1362_v32, 3  ;;  %v13329_v45 = vld.sshfl [vmem:[%s14628_s20 + $0x53] sm:$0x1 pattern:$0x75316420]  ;;  %v6353_v46 = vrot.slane %v13328_v40, %v14648_v25  ;;  %v14480_v34 = vld [vmem:[%s16748_s1 + $0x178] sm:$0xff]  }
  0x65   : > { %14253 = vmatprep.subr.bf16.mxu0 %v14472_v10  ;;  %14165 = vmatprep.subr.bf16.mxu1 %v14479_v24  ;;  %v1465_v49 = vsel %vm1391_vm3, %v1464_v39, %v1463_v43  ;;  %v1468_v50 = vrot.slane %v1363_v37, 2  ;;  %v13330_v51 = vld.sshfl [vmem:[%s14628_s20 + $0x54] sm:$0x1 pattern:$0x75316420]  ;;  %v6367_v52 = vrot.slane %v13329_v45, %v14648_v25  ;;  %v6806_v53 = vunpack.c.l.b16 %v6339_v41 }
  0x66   : > { %v1467_v54 = vsel %vm1394_vm4, %v1466_v44, %v1465_v49  ;;  %v1470_v48 = vrot.slane %v1364_v42, 1  ;;  %v13331_v55 = vld.sshfl [vmem:[%s14628_s20 + $0x55] sm:$0x1 pattern:$0x75316420]  ;;  %v6381_v56 = vrot.slane %v13330_v51, %v14648_v25  ;;  %v6807_v57 = vunpack.c.l.b16 %v6353_v46 }
  0x67   : > { %v1469_v60 = vsel %vm1397_vm5, %v1468_v50, %v1467_v54  ;;  %v13332_v61 = vld.sshfl [vmem:[%s14628_s20 + $0x56] sm:$0x1 pattern:$0x75316420]  ;;  %v6395_v59 = vrot.slane %v13331_v55, %v14648_v25  ;;  %v6808_v62 = vunpack.c.l.b16 %v6367_v52  ;;  %v6894_v63 = vrot.slane %v6806_v53, 1 }
  0x68   : > { %14254 = vmatpush3.bf16.msra.mxu0 %v14472_v10  ;;  %14166 = vmatpush3.bf16.msra.mxu1 %v14479_v24  ;;  %v1471_v0 = vsel %vm1400_vm6, %v1470_v48, %v1469_v60  ;;  %v13333_v1 = vld.sshfl [vmem:[%s14628_s20 + $0x57] sm:$0x1 pattern:$0x75316420]  ;;  %v6409_v2 = vrot.slane %v13332_v61, %v14648_v25  ;;  %v6809_v3 = vunpack.c.l.b16 %v6381_v56 }
  0x69   : > { %14255 = vmatprep.subr.bf16.mxu0 %v14474_v36  ;;  %14175 = vmatprep.subr.bf16.mxu1 %v14481_v47  ;;  %v1502_v4 = vpack.c.b16 %v1471_v0, %v1457_v29  ;;  %v13334_v5 = vld.sshfl [vmem:[%s14628_s20 + $0x58] sm:$0x1 pattern:$0x75316420]  ;;  %v6423_v6 = vrot.slane %v13333_v1, %v14648_v25  ;;  %v6810_v7 = vunpack.c.l.b16 %v6395_v59  ;;  %v6895_v8 = vsel %vm1382_vm0, %v6807_v57, %v6894_v63 }
  0x6a   : > { %v13335_v9 = vld.sshfl [vmem:[%s14628_s20 + $0x63] sm:$0x1 pattern:$0x75316420]  ;;  %v6437_v10 = vrot.slane %v13334_v5, %v14648_v25  ;;  %v6811_v11 = vunpack.c.l.b16 %v6409_v2  ;;  %v6896_v12 = vrot.slane %v6808_v62, 7  ;;  %v6898_v13 = vrot.slane %v6809_v3, 6 }
  0x6b   : > { %14147 = vmatprep.mubr.bf16.mxu1 %v1502_v4  ;;  %v13336_v14 = vld.sshfl [vmem:[%s14628_s20 + $0x64] sm:$0x1 pattern:$0x75316420]  ;;  %v6451_v15 = vrot.slane %v13335_v9, %v14648_v25  ;;  %v6812_v16 = vunpack.c.l.b16 %v6423_v6  ;;  %v6900_v17 = vrot.slane %v6810_v7, 5 }
  0x6c   : > { %14256 = vmatpush3.bf16.msra.mxu0 %v14474_v36  ;;  %v13337_v19 = vld.sshfl [vmem:[%s14628_s20 + $0x65] sm:$0x1 pattern:$0x75316420]  ;;  %v6465_v20 = vrot.slane %v13336_v14, %v14648_v25  ;;  %v6813_v21 = vunpack.c.l.b16 %v6437_v10  ;;  %v6897_v22 = vsel %vm1385_vm1, %v6896_v12, %v6895_v8  ;;  %v6902_v23 = vrot.slane %v6811_v11, 4 }
  0x6d   : > { %14257 = vmatprep.subr.bf16.mxu0 %v14476_v58  ;;  %v13338_v24 = vld.sshfl [vmem:[%s14628_s20 + $0x66] sm:$0x1 pattern:$0x75316420]  ;;  %v6479_v26 = vrot.slane %v13337_v19, %v14648_v25  ;;  %v6814_v27 = vunpack.c.l.b16 %v6451_v15  ;;  %v6899_v28 = vsel %vm1388_vm2, %v6898_v13, %v6897_v22  ;;  %v6904_v33 = vrot.slane %v6812_v16, 3 }
  0x6e   : > { %v13339_v29 = vld.sshfl [vmem:[%s14628_s20 + $0x67] sm:$0x1 pattern:$0x75316420]  ;;  %v6493_v30 = vrot.slane %v13338_v24, %v14648_v25  ;;  %v6815_v31 = vunpack.c.l.b16 %v6465_v20  ;;  %v6901_v32 = vsel %vm1391_vm3, %v6900_v17, %v6899_v28  ;;  %v6906_v38 = vrot.slane %v6813_v21, 2 }
  0x6f   : > { %v13340_v35 = vld.sshfl [vmem:[%s14628_s20 + $0x68] sm:$0x1 pattern:$0x75316420]  ;;  %v6507_v36 = vrot.slane %v13339_v29, %v14648_v25  ;;  %v6816_v37 = vunpack.c.l.b16 %v6479_v26  ;;  %v6908_v39 = vrot.slane %v6814_v27, 1  ;;  %v6903_v43 = vsel %vm1394_vm4, %v6902_v23, %v6901_v32 }
  0x70   : > { %14258 = vmatpush3.bf16.msra.mxu0 %v14476_v58  ;;  %v13341_v40 = vld.sshfl [vmem:[%s14628_s20 + $0x69] sm:$0x1 pattern:$0x75316420]  ;;  %v6521_v41 = vrot.slane %v13340_v35, %v14648_v25  ;;  %v6817_v42 = vunpack.c.l.b16 %v6493_v30  ;;  %v6905_v48 = vsel %vm1397_vm5, %v6904_v33, %v6903_v43  ;;  %v14482_v58 = vld [vmem:[%s16748_s1 + $0x180] sm:$0xff]  }
  0x71   : > { %14259 = vmatprep.subr.bf16.mxu0 %v14478_v18  ;;  %v13342_v44 = vld.sshfl [vmem:[%s14628_s20 + $0x6a] sm:$0x1 pattern:$0x75316420]  ;;  %v6535_v45 = vrot.slane %v13341_v40, %v14648_v25  ;;  %v6818_v46 = vunpack.c.l.b16 %v6507_v36  ;;  %v6909_v47 = vsel %vm1382_vm0, %v6815_v31, %v6908_v39  ;;  %v6910_v51 = vrot.slane %v6816_v37, 7 }
  0x72   : > { %v6549_v49 = vrot.slane %v13342_v44, %v14648_v25  ;;  %v6819_v50 = vunpack.c.l.b16 %v6521_v41  ;;  %v6912_v52 = vrot.slane %v6817_v42, 6  ;;  %v12799_v53 = vld.sshfl [vmem:[%s14628_s20 + $0x6c] sm:$0x1 pattern:$0x75316420]  ;;  %v6907_v10 = vsel %vm1400_vm6, %v6906_v38, %v6905_v48 }
  0x73   : > { %v6820_v54 = vunpack.c.l.b16 %v6535_v45  ;;  %v6914_v55 = vrot.slane %v6818_v46, 5  ;;  %v12800_v56 = vld.sshfl [vmem:[%s14628_s20 + $0x6d] sm:$0x1 pattern:$0x75316420]  ;;  %v1106_v57 = vrot.slane %v12799_v53, %v14648_v25  ;;  %v6911_v61 = vsel %vm1385_vm1, %v6910_v51, %v6909_v47 }
  0x74   : > { %14260 = vmatpush3.bf16.msra.mxu0 %v14478_v18  ;;  %v6821_v60 = vunpack.c.l.b16 %v6549_v49  ;;  %v6916_v59 = vrot.slane %v6819_v50, 4  ;;  %v12801_v62 = vld.sshfl [vmem:[%s14628_s20 + $0x6e] sm:$0x1 pattern:$0x75316420]  ;;  %v1120_v63 = vrot.slane %v12800_v56, %v14648_v25  ;;  %v6913_v0 = vsel %vm1388_vm2, %v6912_v52, %v6911_v61 }
  0x75   : > { %14261 = vmatprep.subr.bf16.mxu0 %v14480_v34  ;;  %v6918_v1 = vrot.slane %v6820_v54, 3  ;;  %v12802_v2 = vld.sshfl [vmem:[%s14628_s20 + $0x6f] sm:$0x1 pattern:$0x75316420]  ;;  %v1134_v3 = vrot.slane %v12801_v62, %v14648_v25  ;;  %v1365_v4 = vunpack.c.l.b16 %v1106_v57  ;;  %v6915_v5 = vsel %vm1391_vm3, %v6914_v55, %v6913_v0 }
  0x76   : > { %v6920_v6 = vrot.slane %v6821_v60, 2  ;;  %v12803_v7 = vld.sshfl [vmem:[%s14628_s20 + $0x70] sm:$0x1 pattern:$0x75316420]  ;;  %v1148_v8 = vrot.slane %v12802_v2, %v14648_v25  ;;  %v1366_v9 = vunpack.c.l.b16 %v1120_v63  ;;  %v6917_v11 = vsel %vm1394_vm4, %v6916_v59, %v6915_v5 }
  0x77   : > { %v12804_v12 = vld.sshfl [vmem:[%s14628_s20 + $0x71] sm:$0x1 pattern:$0x75316420]  ;;  %v1162_v13 = vrot.slane %v12803_v7, %v14648_v25  ;;  %v1367_v14 = vunpack.c.l.b16 %v1134_v3  ;;  %v6919_v15 = vsel %vm1397_vm5, %v6918_v1, %v6917_v11 }
  0x78   : > { %14262 = vmatpush3.bf16.msra.mxu0 %v14480_v34  ;;  %v12805_v16 = vld.sshfl [vmem:[%s14628_s20 + $0x72] sm:$0x1 pattern:$0x75316420]  ;;  %v1176_v17 = vrot.slane %v12804_v12, %v14648_v25  ;;  %v1368_v18 = vunpack.c.l.b16 %v1148_v8  ;;  %v1472_v19 = vrot.slane %v1366_v9, 7  ;;  %v6921_v20 = vsel %vm1400_vm6, %v6920_v6, %v6919_v15 }
  0x79   : > { %14271 = vmatprep.subr.bf16.mxu0 %v14482_v58  ;;  %v12806_v21 = vld.sshfl [vmem:[%s14628_s20 + $0x73] sm:$0x1 pattern:$0x75316420]  ;;  %v1190_v22 = vrot.slane %v12805_v16, %v14648_v25  ;;  %v1369_v23 = vunpack.c.l.b16 %v1162_v13  ;;  %v1474_v24 = vrot.slane %v1367_v14, 6  ;;  %v6952_v26 = vpack.c.b16 %v6921_v20, %v6907_v10 }
  0x7a   : > { %v12807_v27 = vld.sshfl [vmem:[%s14628_s20 + $0x7e] sm:$0x1 pattern:$0x75316420]  ;;  %v1204_v28 = vrot.slane %v12806_v21, %v14648_v25  ;;  %v1370_v29 = vunpack.c.l.b16 %v1176_v17  ;;  %v1473_v30 = vsel %vm1382_vm0, %v1472_v19, %v1365_v4  ;;  %v1476_v35 = vrot.slane %v1368_v18, 5 }
  0x7b   : > { %v12808_v31 = vld.sshfl [vmem:[%s14628_s20 + $0x7f] sm:$0x1 pattern:$0x75316420]  ;;  %v1218_v32 = vrot.slane %v12807_v27, %v14648_v25  ;;  %v1371_v33 = vunpack.c.l.b16 %v1190_v22  ;;  %v1475_v34 = vsel %vm1385_vm1, %v1474_v24, %v1473_v30  ;;  %14243 = vmatprep.mubr.bf16.mxu0 %v6952_v26  ;;  %v1478_v39 = vrot.slane %v1369_v23, 4 }
  0x7c   : > { %v12809_v36 = vld.sshfl [vmem:[%s14628_s20 + $0x80] sm:$0x1 pattern:$0x75316420]  ;;  %v1232_v37 = vrot.slane %v12808_v31, %v14648_v25  ;;  %v1372_v38 = vunpack.c.l.b16 %v1204_v28  ;;  %v1480_v40 = vrot.slane %v1370_v29, 3  ;;  %v1477_v44 = vsel %vm1388_vm2, %v1476_v35, %v1475_v34 }
  0x7d   : > { %v12810_v41 = vld.sshfl [vmem:[%s14628_s20 + $0x81] sm:$0x1 pattern:$0x75316420]  ;;  %v1246_v42 = vrot.slane %v12809_v36, %v14648_v25  ;;  %v1373_v43 = vunpack.c.l.b16 %v1218_v32  ;;  %v1482_v45 = vrot.slane %v1371_v33, 2  ;;  %v1479_v50 = vsel %vm1391_vm3, %v1478_v39, %v1477_v44 }
  0x7e   : > { %v12811_v46 = vld.sshfl [vmem:[%s14628_s20 + $0x82] sm:$0x1 pattern:$0x75316420]  ;;  %v1260_v47 = vrot.slane %v12810_v41, %v14648_v25  ;;  %v1374_v49 = vunpack.c.l.b16 %v1232_v37  ;;  %v1484_v51 = vrot.slane %v1372_v38, 1  ;;  %v1481_v48 = vsel %vm1394_vm4, %v1480_v40, %v1479_v50 }
  0x7f   : > { %v12812_v52 = vld.sshfl [vmem:[%s14628_s20 + $0x83] sm:$0x1 pattern:$0x75316420]  ;;  %v1274_v53 = vrot.slane %v12811_v46, %v14648_v25  ;;  %v1375_v54 = vunpack.c.l.b16 %v1246_v42  ;;  %v1483_v58 = vsel %vm1397_vm5, %v1482_v45, %v1481_v48 }
  0x80   : > { %v12813_v55 = vld.sshfl [vmem:[%s14628_s20 + $0x84] sm:$0x1 pattern:$0x75316420]  ;;  %v1288_v56 = vrot.slane %v12812_v52, %v14648_v25  ;;  %v1376_v57 = vunpack.c.l.b16 %v1260_v47  ;;  %v1486_v60 = vrot.slane %v1374_v49, 7  ;;  %v1485_v63 = vsel %vm1400_vm6, %v1484_v51, %v1483_v58 }
  0x81   : > { %v12814_v61 = vld.sshfl [vmem:[%s14628_s20 + $0x85] sm:$0x1 pattern:$0x75316420]  ;;  %v1302_v59 = vrot.slane %v12813_v55, %v14648_v25  ;;  %v1377_v62 = vunpack.c.l.b16 %v1274_v53  ;;  %v1488_v0 = vrot.slane %v1375_v54, 6 }
  0x82   : > { %v1316_v1 = vrot.slane %v12814_v61, %v14648_v25  ;;  %v1378_v2 = vunpack.c.l.b16 %v1288_v56  ;;  %v1487_v3 = vsel %vm1382_vm0, %v1486_v60, %v1373_v43  ;;  %v1490_v4 = vrot.slane %v1376_v57, 5  ;;  %v13343_v5 = vld.sshfl [vmem:[%s14628_s20 + $0x75] sm:$0x1 pattern:$0x75316420] }
  0x83   : > { %v1379_v6 = vunpack.c.l.b16 %v1302_v59  ;;  %v1489_v7 = vsel %vm1385_vm1, %v1488_v0, %v1487_v3  ;;  %v1492_v8 = vrot.slane %v1377_v62, 4  ;;  %v13344_v9 = vld.sshfl [vmem:[%s14628_s20 + $0x76] sm:$0x1 pattern:$0x75316420]  ;;  %v6563_v10 = vrot.slane %v13343_v5, %v14648_v25 }
  0x84   : > { %v1380_v11 = vunpack.c.l.b16 %v1316_v1  ;;  %v1491_v12 = vsel %vm1388_vm2, %v1490_v4, %v1489_v7  ;;  %v1494_v13 = vrot.slane %v1378_v2, 3  ;;  %v13345_v14 = vld.sshfl [vmem:[%s14628_s20 + $0x77] sm:$0x1 pattern:$0x75316420]  ;;  %v6577_v15 = vrot.slane %v13344_v9, %v14648_v25 }
  0x85   : > { %v1493_v16 = vsel %vm1391_vm3, %v1492_v8, %v1491_v12  ;;  %v1496_v17 = vrot.slane %v1379_v6, 2  ;;  %v13346_v18 = vld.sshfl [vmem:[%s14628_s20 + $0x78] sm:$0x1 pattern:$0x75316420]  ;;  %v6591_v19 = vrot.slane %v13345_v14, %v14648_v25  ;;  %v6822_v20 = vunpack.c.l.b16 %v6563_v10 }
  0x86   : > { %v1495_v21 = vsel %vm1394_vm4, %v1494_v13, %v1493_v16  ;;  %v1498_v22 = vrot.slane %v1380_v11, 1  ;;  %v13347_v23 = vld.sshfl [vmem:[%s14628_s20 + $0x79] sm:$0x1 pattern:$0x75316420]  ;;  %v6605_v24 = vrot.slane %v13346_v18, %v14648_v25  ;;  %v6823_v26 = vunpack.c.l.b16 %v6577_v15 }
  0x87   : > { %v1497_v27 = vsel %vm1397_vm5, %v1496_v17, %v1495_v21  ;;  %v13348_v28 = vld.sshfl [vmem:[%s14628_s20 + $0x7a] sm:$0x1 pattern:$0x75316420]  ;;  %v6619_v29 = vrot.slane %v13347_v23, %v14648_v25  ;;  %v6824_v30 = vunpack.c.l.b16 %v6591_v19  ;;  %v6922_v31 = vrot.slane %v6822_v20, 1 }
  0x88   : > { %v1499_v32 = vsel %vm1400_vm6, %v1498_v22, %v1497_v27  ;;  %v13349_v33 = vld.sshfl [vmem:[%s14628_s20 + $0x7b] sm:$0x1 pattern:$0x75316420]  ;;  %v6633_v34 = vrot.slane %v13348_v28, %v14648_v25  ;;  %v6825_v35 = vunpack.c.l.b16 %v6605_v24 }
  0x89   : > { %v1503_v36 = vpack.c.b16 %v1499_v32, %v1485_v63  ;;  %v13350_v37 = vld.sshfl [vmem:[%s14628_s20 + $0x7c] sm:$0x1 pattern:$0x75316420]  ;;  %v6647_v38 = vrot.slane %v13349_v33, %v14648_v25  ;;  %v6826_v39 = vunpack.c.l.b16 %v6619_v29  ;;  %v6923_v40 = vsel %vm1382_vm0, %v6823_v26, %v6922_v31 }
  0x8a   : > { %v13351_v41 = vld.sshfl [vmem:[%s14628_s20 + $0x87] sm:$0x1 pattern:$0x75316420]  ;;  %v6661_v42 = vrot.slane %v13350_v37, %v14648_v25  ;;  %v6827_v43 = vunpack.c.l.b16 %v6633_v34  ;;  %v6924_v44 = vrot.slane %v6824_v30, 7  ;;  %v6926_v45 = vrot.slane %v6825_v35, 6 }
  0x8b   : > { %14148 = vmatmul.mubr.bf16.gmra.mrb[4].mxu1 %v1503_v36  ;;  %v13352_v46 = vld.sshfl [vmem:[%s14628_s20 + $0x88] sm:$0x1 pattern:$0x75316420]  ;;  %v6675_v47 = vrot.slane %v13351_v41, %v14648_v25  ;;  %v6828_v49 = vunpack.c.l.b16 %v6647_v38  ;;  %v6928_v50 = vrot.slane %v6826_v39, 5 }
  0x8c   : > { %v13353_v51 = vld.sshfl [vmem:[%s14628_s20 + $0x89] sm:$0x1 pattern:$0x75316420]  ;;  %v6689_v52 = vrot.slane %v13352_v46, %v14648_v25  ;;  %v6829_v53 = vunpack.c.l.b16 %v6661_v42  ;;  %v6925_v54 = vsel %vm1385_vm1, %v6924_v44, %v6923_v40  ;;  %v6930_v48 = vrot.slane %v6827_v43, 4 }
  0x8d   : > { %v13354_v55 = vld.sshfl [vmem:[%s14628_s20 + $0x8a] sm:$0x1 pattern:$0x75316420]  ;;  %v6703_v56 = vrot.slane %v13353_v51, %v14648_v25  ;;  %v6830_v57 = vunpack.c.l.b16 %v6675_v47  ;;  %v6927_v58 = vsel %vm1388_vm2, %v6926_v45, %v6925_v54  ;;  %v6932_v60 = vrot.slane %v6828_v49, 3 }
  0x8e   : > { %v13355_v61 = vld.sshfl [vmem:[%s14628_s20 + $0x8b] sm:$0x1 pattern:$0x75316420]  ;;  %v6717_v59 = vrot.slane %v13354_v55, %v14648_v25  ;;  %v6831_v62 = vunpack.c.l.b16 %v6689_v52  ;;  %v6929_v63 = vsel %vm1391_vm3, %v6928_v50, %v6927_v58  ;;  %v6934_v0 = vrot.slane %v6829_v53, 2 }
  0x8f   : > { %v13356_v1 = vld.sshfl [vmem:[%s14628_s20 + $0x8c] sm:$0x1 pattern:$0x75316420]  ;;  %v6731_v2 = vrot.slane %v13355_v61, %v14648_v25  ;;  %v6832_v3 = vunpack.c.l.b16 %v6703_v56  ;;  %v6931_v4 = vsel %vm1394_vm4, %v6930_v48, %v6929_v63  ;;  %v6936_v5 = vrot.slane %v6830_v57, 1 }
  0x90   : > { %v13357_v6 = vld.sshfl [vmem:[%s14628_s20 + $0x8d] sm:$0x1 pattern:$0x75316420]  ;;  %v6745_v7 = vrot.slane %v13356_v1, %v14648_v25  ;;  %v6833_v8 = vunpack.c.l.b16 %v6717_v59  ;;  %v6933_v9 = vsel %vm1397_vm5, %v6932_v60, %v6931_v4 }
  0x91   : > { %v13358_v10 = vld.sshfl [vmem:[%s14628_s20 + $0x8e] sm:$0x1 pattern:$0x75316420]  ;;  %v6759_v11 = vrot.slane %v13357_v6, %v14648_v25  ;;  %v6834_v12 = vunpack.c.l.b16 %v6731_v2  ;;  %v6937_v13 = vsel %vm1382_vm0, %v6831_v62, %v6936_v5  ;;  %v6938_v16 = vrot.slane %v6832_v3, 7 }
  0x92   : > { %v6773_v14 = vrot.slane %v13358_v10, %v14648_v25  ;;  %v6835_v15 = vunpack.c.l.b16 %v6745_v7  ;;  %v6940_v17 = vrot.slane %v6833_v8, 6  ;;  %v12839_v18 = vld.sshfl [vmem:[%s14628_s20] sm:$0x1 pattern:$0x75316420]  ;;  %v6935_v20 = vsel %vm1400_vm6, %v6934_v0, %v6933_v9 }
  0x93   : > { %v6836_v19 = vunpack.c.l.b16 %v6759_v11  ;;  %v6942_v21 = vrot.slane %v6834_v12, 5  ;;  %v12840_v22 = vld.sshfl [vmem:[%s14628_s20 + $0x1] sm:$0x1 pattern:$0x75316420]  ;;  %v1803_v23 = vrot.slane %v12839_v18, %v14648_v25  ;;  %v6939_v26 = vsel %vm1385_vm1, %v6938_v16, %v6937_v13 }
  0x94   : > { %v6837_v24 = vunpack.c.l.b16 %v6773_v14  ;;  %v6944_v27 = vrot.slane %v6835_v15, 4  ;;  %v12841_v28 = vld.sshfl [vmem:[%s14628_s20 + $0x2] sm:$0x1 pattern:$0x75316420]  ;;  %v1817_v29 = vrot.slane %v12840_v22, %v14648_v25  ;;  %v6941_v30 = vsel %vm1388_vm2, %v6940_v17, %v6939_v26 }
  0x95   : > { %v6946_v31 = vrot.slane %v6836_v19, 3  ;;  %v12842_v32 = vld.sshfl [vmem:[%s14628_s20 + $0x3] sm:$0x1 pattern:$0x75316420]  ;;  %v1831_v33 = vrot.slane %v12841_v28, %v14648_v25  ;;  %v2686_v34 = vunpack.c.l.b16 %v1803_v23  ;;  %v6943_v35 = vsel %vm1391_vm3, %v6942_v21, %v6941_v30 }
  0x96   : > { %v6948_v36 = vrot.slane %v6837_v24, 2  ;;  %v12843_v37 = vld.sshfl [vmem:[%s14628_s20 + $0x4] sm:$0x1 pattern:$0x75316420]  ;;  %v1845_v38 = vrot.slane %v12842_v32, %v14648_v25  ;;  %v2687_v39 = vunpack.c.l.b16 %v1817_v29  ;;  %v6945_v40 = vsel %vm1394_vm4, %v6944_v27, %v6943_v35 }
  0x97   : > { %v12844_v41 = vld.sshfl [vmem:[%s14628_s20 + $0x5] sm:$0x1 pattern:$0x75316420]  ;;  %v1859_v42 = vrot.slane %v12843_v37, %v14648_v25  ;;  %v2688_v43 = vunpack.c.l.b16 %v1831_v33  ;;  %v2750_v44 = vrot.slane %v2686_v34, 1  ;;  %v6947_v45 = vsel %vm1397_vm5, %v6946_v31, %v6945_v40 }
  0x98   : > { %v12845_v46 = vld.sshfl [vmem:[%s14628_s20 + $0x6] sm:$0x1 pattern:$0x75316420]  ;;  %v1873_v47 = vrot.slane %v12844_v41, %v14648_v25  ;;  %v2689_v49 = vunpack.c.l.b16 %v1845_v38  ;;  %v6949_v50 = vsel %vm1400_vm6, %v6948_v36, %v6947_v45 }
  0x99   : > { %v12846_v51 = vld.sshfl [vmem:[%s14628_s20 + $0x7] sm:$0x1 pattern:$0x75316420]  ;;  %v1887_v52 = vrot.slane %v12845_v46, %v14648_v25  ;;  %v2690_v53 = vunpack.c.l.b16 %v1859_v42  ;;  %v2751_v54 = vsel %vm1382_vm0, %v2687_v39, %v2750_v44  ;;  %v6953_v48 = vpack.c.b16 %v6949_v50, %v6935_v20 }
  0x9a   : > { %v12847_v55 = vld.sshfl [vmem:[%s14628_s20 + $0x12] sm:$0x1 pattern:$0x75316420]  ;;  %v1901_v56 = vrot.slane %v12846_v51, %v14648_v25  ;;  %v2691_v57 = vunpack.c.l.b16 %v1873_v47  ;;  %v2752_v58 = vrot.slane %v2688_v43, 7  ;;  %v2754_v62 = vrot.slane %v2689_v49, 6 }
  0x9b   : > { %v12848_v60 = vld.sshfl [vmem:[%s14628_s20 + $0x13] sm:$0x1 pattern:$0x75316420]  ;;  %v1915_v61 = vrot.slane %v12847_v55, %v14648_v25  ;;  %v2692_v59 = vunpack.c.l.b16 %v1887_v52  ;;  %v2756_v63 = vrot.slane %v2690_v53, 5  ;;  %14244 = vmatmul.mubr.bf16.gmra.mrb[4].mxu0 %v6953_v48 }
  0x9c   : > { %v12849_v0 = vld.sshfl [vmem:[%s14628_s20 + $0x14] sm:$0x1 pattern:$0x75316420]  ;;  %v1929_v1 = vrot.slane %v12848_v60, %v14648_v25  ;;  %v2693_v2 = vunpack.c.l.b16 %v1901_v56  ;;  %v2753_v3 = vsel %vm1385_vm1, %v2752_v58, %v2751_v54  ;;  %v2758_v4 = vrot.slane %v2691_v57, 4 }
  0x9d   : > { %v12850_v5 = vld.sshfl [vmem:[%s14628_s20 + $0x15] sm:$0x1 pattern:$0x75316420]  ;;  %v1943_v6 = vrot.slane %v12849_v0, %v14648_v25  ;;  %v2694_v7 = vunpack.c.l.b16 %v1915_v61  ;;  %v2755_v8 = vsel %vm1388_vm2, %v2754_v62, %v2753_v3  ;;  %v2760_v13 = vrot.slane %v2692_v59, 3 }
  0x9e   : > { %v12851_v9 = vld.sshfl [vmem:[%s14628_s20 + $0x16] sm:$0x1 pattern:$0x75316420]  ;;  %v1957_v10 = vrot.slane %v12850_v5, %v14648_v25  ;;  %v2695_v11 = vunpack.c.l.b16 %v1929_v1  ;;  %v2757_v12 = vsel %vm1391_vm3, %v2756_v63, %v2755_v8  ;;  %v2762_v17 = vrot.slane %v2693_v2, 2 }
  0x9f   : > { %v12852_v14 = vld.sshfl [vmem:[%s14628_s20 + $0x17] sm:$0x1 pattern:$0x75316420]  ;;  %v1971_v15 = vrot.slane %v12851_v9, %v14648_v25  ;;  %v2696_v16 = vunpack.c.l.b16 %v1943_v6  ;;  %v2764_v18 = vrot.slane %v2694_v7, 1  ;;  %v2759_v22 = vsel %vm1394_vm4, %v2758_v4, %v2757_v12 }
  0xa0   : > { %v12853_v19 = vld.sshfl [vmem:[%s14628_s20 + $0x18] sm:$0x1 pattern:$0x75316420]  ;;  %v1985_v20 = vrot.slane %v12852_v14, %v14648_v25  ;;  %v2697_v21 = vunpack.c.l.b16 %v1957_v10  ;;  %v2761_v34 = vsel %vm1397_vm5, %v2760_v13, %v2759_v22 }
  0xa1   : > { %v12854_v23 = vld.sshfl [vmem:[%s14628_s20 + $0x19] sm:$0x1 pattern:$0x75316420]  ;;  %v1999_v24 = vrot.slane %v12853_v19, %v14648_v25  ;;  %v2698_v26 = vunpack.c.l.b16 %v1971_v15  ;;  %v2765_v27 = vsel %vm1382_vm0, %v2695_v11, %v2764_v18  ;;  %v2766_v30 = vrot.slane %v2696_v16, 7 }
  0xa2   : > { %v2013_v28 = vrot.slane %v12854_v23, %v14648_v25  ;;  %v2699_v29 = vunpack.c.l.b16 %v1985_v20  ;;  %v2768_v31 = vrot.slane %v2697_v21, 6  ;;  %v13447_v32 = vld.sshfl [vmem:[%s14628_s20 + $0xa] sm:$0x1 pattern:$0x75316420]  ;;  %v2763_v54 = vsel %vm1400_vm6, %v2762_v17, %v2761_v34 }
  0xa3   : > { %v2700_v33 = vunpack.c.l.b16 %v1999_v24  ;;  %v2770_v35 = vrot.slane %v2698_v26, 5  ;;  %v13448_v36 = vld.sshfl [vmem:[%s14628_s20 + $0xb] sm:$0x1 pattern:$0x75316420]  ;;  %v7254_v37 = vrot.slane %v13447_v32, %v14648_v25  ;;  %v2767_v39 = vsel %vm1385_vm1, %v2766_v30, %v2765_v27 }
  0xa4   : > { %v2701_v38 = vunpack.c.l.b16 %v2013_v28  ;;  %v2772_v40 = vrot.slane %v2699_v29, 4  ;;  %v13449_v41 = vld.sshfl [vmem:[%s14628_s20 + $0xc] sm:$0x1 pattern:$0x75316420]  ;;  %v7268_v42 = vrot.slane %v13448_v36, %v14648_v25  ;;  %v2769_v43 = vsel %vm1388_vm2, %v2768_v31, %v2767_v39 }
  0xa5   : > { %v2774_v44 = vrot.slane %v2700_v33, 3  ;;  %v13450_v45 = vld.sshfl [vmem:[%s14628_s20 + $0xd] sm:$0x1 pattern:$0x75316420]  ;;  %v7282_v46 = vrot.slane %v13449_v41, %v14648_v25  ;;  %v8137_v47 = vunpack.c.l.b16 %v7254_v37  ;;  %v2771_v49 = vsel %vm1391_vm3, %v2770_v35, %v2769_v43 }
  0xa6   : > { %v2776_v50 = vrot.slane %v2701_v38, 2  ;;  %v13451_v51 = vld.sshfl [vmem:[%s14628_s20 + $0xe] sm:$0x1 pattern:$0x75316420]  ;;  %v7296_v52 = vrot.slane %v13450_v45, %v14648_v25  ;;  %v8138_v53 = vunpack.c.l.b16 %v7268_v42  ;;  %v2773_v48 = vsel %vm1394_vm4, %v2772_v40, %v2771_v49 }
  0xa7   : > { %v13452_v55 = vld.sshfl [vmem:[%s14628_s20 + $0xf] sm:$0x1 pattern:$0x75316420]  ;;  %v7310_v56 = vrot.slane %v13451_v51, %v14648_v25  ;;  %v8139_v57 = vunpack.c.l.b16 %v7282_v46  ;;  %v2775_v58 = vsel %vm1397_vm5, %v2774_v44, %v2773_v48 }
  0xa8   : > { %v13453_v60 = vld.sshfl [vmem:[%s14628_s20 + $0x10] sm:$0x1 pattern:$0x75316420]  ;;  %v7324_v61 = vrot.slane %v13452_v55, %v14648_v25  ;;  %v8140_v59 = vunpack.c.l.b16 %v7296_v52  ;;  %v8201_v62 = vrot.slane %v8138_v53, 7  ;;  %v2777_v63 = vsel %vm1400_vm6, %v2776_v50, %v2775_v58 }
  0xa9   : > { %v13454_v0 = vld.sshfl [vmem:[%s14628_s20 + $0x11] sm:$0x1 pattern:$0x75316420]  ;;  %v7338_v1 = vrot.slane %v13453_v60, %v14648_v25  ;;  %v8141_v2 = vunpack.c.l.b16 %v7310_v56  ;;  %v8203_v3 = vrot.slane %v8139_v57, 6  ;;  %v2862_v4 = vpack.c.b16 %v2777_v63, %v2763_v54 }
  0xaa   : > { %v13455_v5 = vld.sshfl [vmem:[%s14628_s20 + $0x1c] sm:$0x1 pattern:$0x75316420]  ;;  %v7352_v6 = vrot.slane %v13454_v0, %v14648_v25  ;;  %v8142_v7 = vunpack.c.l.b16 %v7324_v61  ;;  %v8202_v8 = vsel %vm1382_vm0, %v8201_v62, %v8137_v47  ;;  %v8205_v13 = vrot.slane %v8140_v59, 5 }
  0xab   : > { %v13456_v9 = vld.sshfl [vmem:[%s14628_s20 + $0x1d] sm:$0x1 pattern:$0x75316420]  ;;  %v7366_v10 = vrot.slane %v13455_v5, %v14648_v25  ;;  %v8143_v11 = vunpack.c.l.b16 %v7338_v1  ;;  %v8204_v12 = vsel %vm1385_vm1, %v8203_v3, %v8202_v8  ;;  %14167 = vmatprep.mubr.bf16.mxu1 %v2862_v4  ;;  %v8207_v17 = vrot.slane %v8141_v2, 4 }
  0xac   : > { %v13457_v14 = vld.sshfl [vmem:[%s14628_s20 + $0x1e] sm:$0x1 pattern:$0x75316420]  ;;  %v7380_v15 = vrot.slane %v13456_v9, %v14648_v25  ;;  %v8144_v16 = vunpack.c.l.b16 %v7352_v6  ;;  %v8209_v18 = vrot.slane %v8142_v7, 3  ;;  %v8206_v22 = vsel %vm1388_vm2, %v8205_v13, %v8204_v12 }
  0xad   : > { %v13458_v19 = vld.sshfl [vmem:[%s14628_s20 + $0x1f] sm:$0x1 pattern:$0x75316420]  ;;  %v7394_v20 = vrot.slane %v13457_v14, %v14648_v25  ;;  %v8145_v21 = vunpack.c.l.b16 %v7366_v10  ;;  %v8211_v23 = vrot.slane %v8143_v11, 2  ;;  %v8208_v28 = vsel %vm1391_vm3, %v8207_v17, %v8206_v22 }
  0xae   : > { %v13459_v24 = vld.sshfl [vmem:[%s14628_s20 + $0x20] sm:$0x1 pattern:$0x75316420]  ;;  %v7408_v26 = vrot.slane %v13458_v19, %v14648_v25  ;;  %v8146_v27 = vunpack.c.l.b16 %v7380_v15  ;;  %v8213_v29 = vrot.slane %v8144_v16, 1  ;;  %v8210_v33 = vsel %vm1394_vm4, %v8209_v18, %v8208_v28 }
  0xaf   : > { %v13460_v30 = vld.sshfl [vmem:[%s14628_s20 + $0x21] sm:$0x1 pattern:$0x75316420]  ;;  %v7422_v31 = vrot.slane %v13459_v24, %v14648_v25  ;;  %v8147_v32 = vunpack.c.l.b16 %v7394_v20  ;;  %v8212_v37 = vsel %vm1397_vm5, %v8211_v23, %v8210_v33 }
  0xb0   : > { %v13461_v34 = vld.sshfl [vmem:[%s14628_s20 + $0x22] sm:$0x1 pattern:$0x75316420]  ;;  %v7436_v35 = vrot.slane %v13460_v30, %v14648_v25  ;;  %v8148_v36 = vunpack.c.l.b16 %v7408_v26  ;;  %v8215_v38 = vrot.slane %v8146_v27, 7  ;;  %v8214_v42 = vsel %vm1400_vm6, %v8213_v29, %v8212_v37 }
  0xb1   : > { %v13462_v39 = vld.sshfl [vmem:[%s14628_s20 + $0x23] sm:$0x1 pattern:$0x75316420]  ;;  %v7450_v40 = vrot.slane %v13461_v34, %v14648_v25  ;;  %v8149_v41 = vunpack.c.l.b16 %v7422_v31  ;;  %v8217_v43 = vrot.slane %v8147_v32, 6 }
  0xb2   : > { %v7464_v44 = vrot.slane %v13462_v39, %v14648_v25  ;;  %v8150_v45 = vunpack.c.l.b16 %v7436_v35  ;;  %v8216_v46 = vsel %vm1382_vm0, %v8215_v38, %v8145_v21  ;;  %v8219_v47 = vrot.slane %v8148_v36, 5  ;;  %v12855_v49 = vld.sshfl [vmem:[%s14628_s20 + $0x24] sm:$0x1 pattern:$0x75316420] }
  0xb3   : > { %v8151_v50 = vunpack.c.l.b16 %v7450_v40  ;;  %v8218_v51 = vsel %vm1385_vm1, %v8217_v43, %v8216_v46  ;;  %v8221_v52 = vrot.slane %v8149_v41, 4  ;;  %v12856_v53 = vld.sshfl [vmem:[%s14628_s20 + $0x25] sm:$0x1 pattern:$0x75316420]  ;;  %v2027_v54 = vrot.slane %v12855_v49, %v14648_v25 }
  0xb4   : > { %v8152_v48 = vunpack.c.l.b16 %v7464_v44  ;;  %v8220_v55 = vsel %vm1388_vm2, %v8219_v47, %v8218_v51  ;;  %v8223_v56 = vrot.slane %v8150_v45, 3  ;;  %v12857_v57 = vld.sshfl [vmem:[%s14628_s20 + $0x26] sm:$0x1 pattern:$0x75316420]  ;;  %v2041_v58 = vrot.slane %v12856_v53, %v14648_v25 }
  0xb5   : > { %v8222_v60 = vsel %vm1391_vm3, %v8221_v52, %v8220_v55  ;;  %v8225_v61 = vrot.slane %v8151_v50, 2  ;;  %v12858_v59 = vld.sshfl [vmem:[%s14628_s20 + $0x27] sm:$0x1 pattern:$0x75316420]  ;;  %v2055_v62 = vrot.slane %v12857_v57, %v14648_v25  ;;  %v2702_v63 = vunpack.c.l.b16 %v2027_v54 }
  0xb6   : > { %v8224_v0 = vsel %vm1394_vm4, %v8223_v56, %v8222_v60  ;;  %v8227_v1 = vrot.slane %v8152_v48, 1  ;;  %v12859_v2 = vld.sshfl [vmem:[%s14628_s20 + $0x28] sm:$0x1 pattern:$0x75316420]  ;;  %v2069_v3 = vrot.slane %v12858_v59, %v14648_v25  ;;  %v2703_v4 = vunpack.c.l.b16 %v2041_v58 }
  0xb7   : > { %v8226_v5 = vsel %vm1397_vm5, %v8225_v61, %v8224_v0  ;;  %v12860_v6 = vld.sshfl [vmem:[%s14628_s20 + $0x29] sm:$0x1 pattern:$0x75316420]  ;;  %v2083_v7 = vrot.slane %v12859_v2, %v14648_v25  ;;  %v2704_v8 = vunpack.c.l.b16 %v2055_v62  ;;  %v2778_v9 = vrot.slane %v2702_v63, 1 }
  0xb8   : > { %v8228_v10 = vsel %vm1400_vm6, %v8227_v1, %v8226_v5  ;;  %v12861_v11 = vld.sshfl [vmem:[%s14628_s20 + $0x2a] sm:$0x1 pattern:$0x75316420]  ;;  %v2097_v12 = vrot.slane %v12860_v6, %v14648_v25  ;;  %v2705_v13 = vunpack.c.l.b16 %v2069_v3 }
  0xb9   : > { %v8313_v14 = vpack.c.b16 %v8228_v10, %v8214_v42  ;;  %v12862_v15 = vld.sshfl [vmem:[%s14628_s20 + $0x2b] sm:$0x1 pattern:$0x75316420]  ;;  %v2111_v16 = vrot.slane %v12861_v11, %v14648_v25  ;;  %v2706_v17 = vunpack.c.l.b16 %v2083_v7  ;;  %v2779_v18 = vsel %vm1382_vm0, %v2703_v4, %v2778_v9 }
  0xba   : > { %v12863_v19 = vld.sshfl [vmem:[%s14628_s20 + $0x36] sm:$0x1 pattern:$0x75316420]  ;;  %v2125_v20 = vrot.slane %v12862_v15, %v14648_v25  ;;  %v2707_v21 = vunpack.c.l.b16 %v2097_v12  ;;  %v2780_v22 = vrot.slane %v2704_v8, 7  ;;  %v2782_v23 = vrot.slane %v2705_v13, 6 }
  0xbb   : > { %14263 = vmatprep.mubr.bf16.mxu0 %v8313_v14  ;;  %v12864_v24 = vld.sshfl [vmem:[%s14628_s20 + $0x37] sm:$0x1 pattern:$0x75316420]  ;;  %v2139_v26 = vrot.slane %v12863_v19, %v14648_v25  ;;  %v2708_v27 = vunpack.c.l.b16 %v2111_v16  ;;  %v2784_v28 = vrot.slane %v2706_v17, 5 }
  0xbc   : > { %v12865_v29 = vld.sshfl [vmem:[%s14628_s20 + $0x38] sm:$0x1 pattern:$0x75316420]  ;;  %v2153_v30 = vrot.slane %v12864_v24, %v14648_v25  ;;  %v2709_v31 = vunpack.c.l.b16 %v2125_v20  ;;  %v2781_v32 = vsel %vm1385_vm1, %v2780_v22, %v2779_v18  ;;  %v2786_v33 = vrot.slane %v2707_v21, 4 }
  0xbd   : > { %v12866_v34 = vld.sshfl [vmem:[%s14628_s20 + $0x39] sm:$0x1 pattern:$0x75316420]  ;;  %v2167_v35 = vrot.slane %v12865_v29, %v14648_v25  ;;  %v2710_v36 = vunpack.c.l.b16 %v2139_v26  ;;  %v2783_v37 = vsel %vm1388_vm2, %v2782_v23, %v2781_v32  ;;  %v2788_v42 = vrot.slane %v2708_v27, 3 }
  0xbe   : > { %v12867_v38 = vld.sshfl [vmem:[%s14628_s20 + $0x3a] sm:$0x1 pattern:$0x75316420]  ;;  %v2181_v39 = vrot.slane %v12866_v34, %v14648_v25  ;;  %v2711_v40 = vunpack.c.l.b16 %v2153_v30  ;;  %v2785_v41 = vsel %vm1391_vm3, %v2784_v28, %v2783_v37  ;;  %v2790_v46 = vrot.slane %v2709_v31, 2 }
  0xbf   : > { %v12868_v43 = vld.sshfl [vmem:[%s14628_s20 + $0x3b] sm:$0x1 pattern:$0x75316420]  ;;  %v2195_v44 = vrot.slane %v12867_v38, %v14648_v25  ;;  %v2712_v45 = vunpack.c.l.b16 %v2167_v35  ;;  %v2792_v47 = vrot.slane %v2710_v36, 1  ;;  %v2787_v52 = vsel %vm1394_vm4, %v2786_v33, %v2785_v41  ;;  %v14483_v33 = vld [vmem:[%s16748_s1 + $0x88] sm:$0xff]  }
  0xc0   : > { %v12869_v49 = vld.sshfl [vmem:[%s14628_s20 + $0x3c] sm:$0x1 pattern:$0x75316420]  ;;  %v2209_v50 = vrot.slane %v12868_v43, %v14648_v25  ;;  %v2713_v51 = vunpack.c.l.b16 %v2181_v39  ;;  %v2789_v62 = vsel %vm1397_vm5, %v2788_v42, %v2787_v52 }
  0xc1   : > { %v12870_v53 = vld.sshfl [vmem:[%s14628_s20 + $0x3d] sm:$0x1 pattern:$0x75316420]  ;;  %v2223_v54 = vrot.slane %v12869_v49, %v14648_v25  ;;  %v2714_v48 = vunpack.c.l.b16 %v2195_v44  ;;  %v2793_v55 = vsel %vm1382_vm0, %v2711_v40, %v2792_v47  ;;  %v2794_v58 = vrot.slane %v2712_v45, 7 }
  0xc2   : > { %v2237_v56 = vrot.slane %v12870_v53, %v14648_v25  ;;  %v2715_v57 = vunpack.c.l.b16 %v2209_v50  ;;  %v2796_v60 = vrot.slane %v2713_v51, 6  ;;  %v13463_v61 = vld.sshfl [vmem:[%s14628_s20 + $0x2e] sm:$0x1 pattern:$0x75316420]  ;;  %v2791_v17 = vsel %vm1400_vm6, %v2790_v46, %v2789_v62  ;;  %v14521_v50 = vld [vmem:[%s16748_s1 + $0x80] sm:$0xff]  }
  0xc3   : > { %v2716_v59 = vunpack.c.l.b16 %v2223_v54  ;;  %v2798_v63 = vrot.slane %v2714_v48, 5  ;;  %v13464_v0 = vld.sshfl [vmem:[%s14628_s20 + $0x2f] sm:$0x1 pattern:$0x75316420]  ;;  %v7478_v1 = vrot.slane %v13463_v61, %v14648_v25  ;;  %v2795_v3 = vsel %vm1385_vm1, %v2794_v58, %v2793_v55 }
  0xc4   : > { %v2717_v2 = vunpack.c.l.b16 %v2237_v56  ;;  %v2800_v4 = vrot.slane %v2715_v57, 4  ;;  %v13465_v5 = vld.sshfl [vmem:[%s14628_s20 + $0x30] sm:$0x1 pattern:$0x75316420]  ;;  %v7492_v6 = vrot.slane %v13464_v0, %v14648_v25  ;;  %v2797_v7 = vsel %vm1388_vm2, %v2796_v60, %v2795_v3 }
  0xc5   : > { %v2802_v8 = vrot.slane %v2716_v59, 3  ;;  %v13466_v9 = vld.sshfl [vmem:[%s14628_s20 + $0x31] sm:$0x1 pattern:$0x75316420]  ;;  %v7506_v10 = vrot.slane %v13465_v5, %v14648_v25  ;;  %v8153_v11 = vunpack.c.l.b16 %v7478_v1  ;;  %v2799_v12 = vsel %vm1391_vm3, %v2798_v63, %v2797_v7 }
  0xc6   : > { %v2804_v13 = vrot.slane %v2717_v2, 2  ;;  %v13467_v14 = vld.sshfl [vmem:[%s14628_s20 + $0x32] sm:$0x1 pattern:$0x75316420]  ;;  %v7520_v15 = vrot.slane %v13466_v9, %v14648_v25  ;;  %v8154_v16 = vunpack.c.l.b16 %v7492_v6  ;;  %v2801_v18 = vsel %vm1394_vm4, %v2800_v4, %v2799_v12 }
  0xc7   : > { %v13468_v19 = vld.sshfl [vmem:[%s14628_s20 + $0x33] sm:$0x1 pattern:$0x75316420]  ;;  %v7534_v20 = vrot.slane %v13467_v14, %v14648_v25  ;;  %v8155_v21 = vunpack.c.l.b16 %v7506_v10  ;;  %v2803_v22 = vsel %vm1397_vm5, %v2802_v8, %v2801_v18  ;;  %v14487_v14 = vld [vmem:[%s16748_s1 + $0x98] sm:$0xff]  }
  0xc8   : > { %v13469_v23 = vld.sshfl [vmem:[%s14628_s20 + $0x34] sm:$0x1 pattern:$0x75316420]  ;;  %v7548_v24 = vrot.slane %v13468_v19, %v14648_v25  ;;  %v8156_v26 = vunpack.c.l.b16 %v7520_v15  ;;  %v8229_v27 = vrot.slane %v8154_v16, 7  ;;  %v2805_v28 = vsel %vm1400_vm6, %v2804_v13, %v2803_v22 }
  0xc9   : > { %v13470_v29 = vld.sshfl [vmem:[%s14628_s20 + $0x35] sm:$0x1 pattern:$0x75316420]  ;;  %v7562_v30 = vrot.slane %v13469_v23, %v14648_v25  ;;  %v8157_v31 = vunpack.c.l.b16 %v7534_v20  ;;  %v8231_v32 = vrot.slane %v8155_v21, 6  ;;  %v2863_v34 = vpack.c.b16 %v2805_v28, %v2791_v17 }
  0xca   : > { %v13471_v35 = vld.sshfl [vmem:[%s14628_s20 + $0x40] sm:$0x1 pattern:$0x75316420]  ;;  %v7576_v36 = vrot.slane %v13470_v29, %v14648_v25  ;;  %v8158_v37 = vunpack.c.l.b16 %v7548_v24  ;;  %v8230_v38 = vsel %vm1382_vm0, %v8229_v27, %v8153_v11  ;;  %v8233_v43 = vrot.slane %v8156_v26, 5  ;;  %v14485_v60 = vld [vmem:[%s16748_s1 + $0x90] sm:$0xff]  }
  0xcb   : > { %v13472_v39 = vld.sshfl [vmem:[%s14628_s20 + $0x41] sm:$0x1 pattern:$0x75316420]  ;;  %v7590_v40 = vrot.slane %v13471_v35, %v14648_v25  ;;  %v8159_v41 = vunpack.c.l.b16 %v7562_v30  ;;  %v8232_v42 = vsel %vm1385_vm1, %v8231_v32, %v8230_v38  ;;  %14168 = vmatmul.mubr.bf16.vlgmr.msra.gmra.mrb[0].mxu1 %v2863_v34  ;;  %v8235_v47 = vrot.slane %v8157_v31, 4 }
  0xcc   : > { %v13473_v44 = vld.sshfl [vmem:[%s14628_s20 + $0x42] sm:$0x1 pattern:$0x75316420]  ;;  %v7604_v45 = vrot.slane %v13472_v39, %v14648_v25  ;;  %v8160_v46 = vunpack.c.l.b16 %v7576_v36  ;;  %v8237_v49 = vrot.slane %v8158_v37, 3  ;;  %14176 = vmatpush3.bf16.msra.mxu1 %v14521_v50  ;;  %v8234_v53 = vsel %vm1388_vm2, %v8233_v43, %v8232_v42 }
  0xcd   : > { %v13474_v51 = vld.sshfl [vmem:[%s14628_s20 + $0x43] sm:$0x1 pattern:$0x75316420]  ;;  %v7618_v52 = vrot.slane %v13473_v44, %v14648_v25  ;;  %v8239_v54 = vrot.slane %v8159_v41, 2  ;;  %v8161_v56 = vunpack.c.l.b16 %v7590_v40  ;;  %v8236_v58 = vsel %vm1391_vm3, %v8235_v47, %v8234_v53  ;;  %14177 = vmatprep.subr.bf16.mxu1 %v14483_v33  ;;  %v14484_v41 = vld [vmem:[%s16748_s1 + $0x188] sm:$0xff]  }
  0xce   : > { %v13475_v48 = vld.sshfl [vmem:[%s14628_s20 + $0x44] sm:$0x1 pattern:$0x75316420]  ;;  %v7632_v55 = vrot.slane %v13474_v51, %v14648_v25  ;;  %v8162_v57 = vunpack.c.l.b16 %v7604_v45  ;;  %v8238_v63 = vsel %vm1394_vm4, %v8237_v49, %v8236_v58  ;;  %v8241_v3 = vrot.slane %v8160_v46, 1  ;;  %v14491_v51 = vld [vmem:[%s16748_s1 + $0xa8] sm:$0xff]  }
  0xcf   : > { %v13476_v61 = vld.sshfl [vmem:[%s14628_s20 + $0x45] sm:$0x1 pattern:$0x75316420]  ;;  %v7646_v59 = vrot.slane %v13475_v48, %v14648_v25  ;;  %v8163_v62 = vunpack.c.l.b16 %v7618_v52  ;;  %v8240_v8 = vsel %vm1397_vm5, %v8239_v54, %v8238_v63 }
  0xd0   : > { %v13477_v0 = vld.sshfl [vmem:[%s14628_s20 + $0x46] sm:$0x1 pattern:$0x75316420]  ;;  %v7660_v1 = vrot.slane %v13476_v61, %v14648_v25  ;;  %v8164_v2 = vunpack.c.l.b16 %v7632_v55  ;;  %v8243_v4 = vrot.slane %v8162_v57, 7  ;;  %14178 = vmatpush3.bf16.msra.mxu1 %v14483_v33  ;;  %v8242_v24 = vsel %vm1400_vm6, %v8241_v3, %v8240_v8 }
  0xd1   : > { %v13478_v5 = vld.sshfl [vmem:[%s14628_s20 + $0x47] sm:$0x1 pattern:$0x75316420]  ;;  %v7674_v6 = vrot.slane %v13477_v0, %v14648_v25  ;;  %v8165_v7 = vunpack.c.l.b16 %v7646_v59  ;;  %v8245_v9 = vrot.slane %v8163_v62, 6  ;;  %14179 = vmatprep.subr.bf16.mxu1 %v14485_v60 }
  0xd2   : > { %v7688_v10 = vrot.slane %v13478_v5, %v14648_v25  ;;  %v8166_v11 = vunpack.c.l.b16 %v7660_v1  ;;  %v8244_v12 = vsel %vm1382_vm0, %v8243_v4, %v8161_v56  ;;  %v8247_v13 = vrot.slane %v8164_v2, 5  ;;  %v12871_v18 = vld.sshfl [vmem:[%s14628_s20 + $0x48] sm:$0x1 pattern:$0x75316420]  ;;  %v14489_v32 = vld [vmem:[%s16748_s1 + $0xa0] sm:$0xff]  }
  0xd3   : > { %v8167_v15 = vunpack.c.l.b16 %v7674_v6  ;;  %v8246_v16 = vsel %vm1385_vm1, %v8245_v9, %v8244_v12  ;;  %v8249_v17 = vrot.slane %v8165_v7, 4  ;;  %v12872_v22 = vld.sshfl [vmem:[%s14628_s20 + $0x49] sm:$0x1 pattern:$0x75316420]  ;;  %v2251_v23 = vrot.slane %v12871_v18, %v14648_v25  ;;  %v14522_v61 = vld [vmem:[%s16748_s1 + $0x180] sm:$0xff]  }
  0xd4   : > { %v8168_v19 = vunpack.c.l.b16 %v7688_v10  ;;  %v8248_v20 = vsel %vm1388_vm2, %v8247_v13, %v8246_v16  ;;  %v8251_v21 = vrot.slane %v8166_v11, 3  ;;  %14180 = vmatpush3.bf16.msra.mxu1 %v14485_v60  ;;  %v12873_v28 = vld.sshfl [vmem:[%s14628_s20 + $0x4a] sm:$0x1 pattern:$0x75316420]  ;;  %v2265_v29 = vrot.slane %v12872_v22, %v14648_v25  ;;  %v14486_v2 = vld [vmem:[%s16748_s1 + $0x190] sm:$0xff]  }
  0xd5   : > { %v8250_v26 = vsel %vm1391_vm3, %v8249_v17, %v8248_v20  ;;  %v8253_v27 = vrot.slane %v8167_v15, 2  ;;  %14181 = vmatprep.subr.bf16.mxu1 %v14487_v14  ;;  %v12874_v33 = vld.sshfl [vmem:[%s14628_s20 + $0x4b] sm:$0x1 pattern:$0x75316420]  ;;  %v2279_v34 = vrot.slane %v12873_v28, %v14648_v25  ;;  %v2718_v35 = vunpack.c.l.b16 %v2251_v23  ;;  %v14493_v13 = vld [vmem:[%s16748_s1 + $0xb0] sm:$0xff]  }
  0xd6   : > { %v8252_v30 = vsel %vm1394_vm4, %v8251_v21, %v8250_v26  ;;  %v8255_v31 = vrot.slane %v8168_v19, 1  ;;  %v12875_v37 = vld.sshfl [vmem:[%s14628_s20 + $0x4c] sm:$0x1 pattern:$0x75316420]  ;;  %v2293_v38 = vrot.slane %v12874_v33, %v14648_v25  ;;  %v2719_v39 = vunpack.c.l.b16 %v2265_v29  ;;  %v14488_v19 = vld [vmem:[%s16748_s1 + $0x198] sm:$0xff]  }
  0xd7   : > { %v8254_v36 = vsel %vm1397_vm5, %v8253_v27, %v8252_v30  ;;  %v12876_v42 = vld.sshfl [vmem:[%s14628_s20 + $0x4d] sm:$0x1 pattern:$0x75316420]  ;;  %v2307_v43 = vrot.slane %v12875_v37, %v14648_v25  ;;  %v2720_v44 = vunpack.c.l.b16 %v2279_v34  ;;  %v2806_v45 = vrot.slane %v2718_v35, 1  ;;  %v14495_v34 = vld [vmem:[%s16748_s1 + $0xb8] sm:$0xff]  }
  0xd8   : > { %v8256_v40 = vsel %vm1400_vm6, %v8255_v31, %v8254_v36  ;;  %14182 = vmatpush3.bf16.msra.mxu1 %v14487_v14  ;;  %v12877_v47 = vld.sshfl [vmem:[%s14628_s20 + $0x4e] sm:$0x1 pattern:$0x75316420]  ;;  %v2321_v49 = vrot.slane %v12876_v42, %v14648_v25  ;;  %v2721_v50 = vunpack.c.l.b16 %v2293_v38 }
  0xd9   : > { %v8314_v46 = vpack.c.b16 %v8256_v40, %v8242_v24  ;;  %14183 = vmatprep.subr.bf16.mxu1 %v14489_v32  ;;  %v12878_v52 = vld.sshfl [vmem:[%s14628_s20 + $0x4f] sm:$0x1 pattern:$0x75316420]  ;;  %v2335_v53 = vrot.slane %v12877_v47, %v14648_v25  ;;  %v2722_v54 = vunpack.c.l.b16 %v2307_v43  ;;  %v2807_v48 = vsel %vm1382_vm0, %v2719_v39, %v2806_v45  ;;  %v14490_v45 = vld [vmem:[%s16748_s1 + $0x1a0] sm:$0xff]  }
  0xda   : > { %v2808_v55 = vrot.slane %v2720_v44, 7  ;;  %v12879_v56 = vld.sshfl [vmem:[%s14628_s20 + $0x5a] sm:$0x1 pattern:$0x75316420]  ;;  %v2349_v57 = vrot.slane %v12878_v52, %v14648_v25  ;;  %v2723_v58 = vunpack.c.l.b16 %v2321_v49  ;;  %v2810_v60 = vrot.slane %v2721_v50, 6 }
  0xdb   : > { %14264 = vmatmul.mubr.bf16.vlgmr.msra.gmra.mrb[0].mxu0 %v8314_v46  ;;  %v12880_v59 = vld.sshfl [vmem:[%s14628_s20 + $0x5b] sm:$0x1 pattern:$0x75316420]  ;;  %v2363_v62 = vrot.slane %v12879_v56, %v14648_v25  ;;  %v2724_v63 = vunpack.c.l.b16 %v2335_v53  ;;  %v2812_v1 = vrot.slane %v2722_v54, 5  ;;  %v15356_v56 = vld [vmem:[%s16748_s1 + $0xc0] sm:$0xff]  }
  0xdc   : > { %14272 = vmatpush3.bf16.msra.mxu0 %v14522_v61  ;;  %v2809_v0 = vsel %vm1385_vm1, %v2808_v55, %v2807_v48  ;;  %14184 = vmatpush3.bf16.msra.mxu1 %v14489_v32  ;;  %v12881_v3 = vld.sshfl [vmem:[%s14628_s20 + $0x5c] sm:$0x1 pattern:$0x75316420]  ;;  %v2377_v4 = vrot.slane %v12880_v59, %v14648_v25  ;;  %v2725_v5 = vunpack.c.l.b16 %v2349_v57  ;;  %v2814_v7 = vrot.slane %v2723_v58, 4 }
  0xdd   : > { %14273 = vmatprep.subr.bf16.mxu0 %v14484_v41  ;;  %v2811_v6 = vsel %vm1388_vm2, %v2810_v60, %v2809_v0  ;;  %14185 = vmatprep.subr.bf16.mxu1 %v14491_v51  ;;  %v12882_v8 = vld.sshfl [vmem:[%s14628_s20 + $0x5d] sm:$0x1 pattern:$0x75316420]  ;;  %v2391_v9 = vrot.slane %v12881_v3, %v14648_v25  ;;  %v2726_v10 = vunpack.c.l.b16 %v2363_v62  ;;  %v2816_v12 = vrot.slane %v2724_v63, 3 }
  0xde   : > { %v2813_v11 = vsel %vm1391_vm3, %v2812_v1, %v2811_v6  ;;  %v12883_v14 = vld.sshfl [vmem:[%s14628_s20 + $0x5e] sm:$0x1 pattern:$0x75316420]  ;;  %v2405_v15 = vrot.slane %v12882_v8, %v14648_v25  ;;  %v2727_v16 = vunpack.c.l.b16 %v2377_v4  ;;  %v2818_v18 = vrot.slane %v2725_v5, 2 }
  0xdf   : > { %v2815_v17 = vsel %vm1394_vm4, %v2814_v7, %v2813_v11  ;;  %v12884_v20 = vld.sshfl [vmem:[%s14628_s20 + $0x5f] sm:$0x1 pattern:$0x75316420]  ;;  %v2419_v21 = vrot.slane %v12883_v14, %v14648_v25  ;;  %v2728_v22 = vunpack.c.l.b16 %v2391_v9  ;;  %v2820_v24 = vrot.slane %v2726_v10, 1 }
  0xe0   : > { %14274 = vmatpush3.bf16.msra.mxu0 %v14484_v41  ;;  %v2817_v23 = vsel %vm1397_vm5, %v2816_v12, %v2815_v17  ;;  %14186 = vmatpush3.bf16.msra.mxu1 %v14491_v51  ;;  %v12885_v26 = vld.sshfl [vmem:[%s14628_s20 + $0x60] sm:$0x1 pattern:$0x75316420]  ;;  %v2433_v27 = vrot.slane %v12884_v20, %v14648_v25  ;;  %v2729_v28 = vunpack.c.l.b16 %v2405_v15 }
  0xe1   : > { %14275 = vmatprep.subr.bf16.mxu0 %v14486_v2  ;;  %v12886_v29 = vld.sshfl [vmem:[%s14628_s20 + $0x61] sm:$0x1 pattern:$0x75316420]  ;;  %v2447_v30 = vrot.slane %v12885_v26, %v14648_v25  ;;  %v2730_v31 = vunpack.c.l.b16 %v2419_v21  ;;  %v2821_v32 = vsel %vm1382_vm0, %v2727_v16, %v2820_v24  ;;  %v2822_v33 = vrot.slane %v2728_v22, 7  ;;  %14187 = vmatprep.subr.bf16.mxu1 %v14493_v13 }
  0xe2   : > { %v2461_v35 = vrot.slane %v12886_v29, %v14648_v25  ;;  %v2731_v36 = vunpack.c.l.b16 %v2433_v27  ;;  %v2819_v37 = vsel %vm1400_vm6, %v2818_v18, %v2817_v23  ;;  %v2824_v38 = vrot.slane %v2729_v28, 6  ;;  %v13479_v39 = vld.sshfl [vmem:[%s14628_s20 + $0x52] sm:$0x1 pattern:$0x75316420] }
  0xe3   : > { %v2732_v40 = vunpack.c.l.b16 %v2447_v30  ;;  %v2823_v41 = vsel %vm1385_vm1, %v2822_v33, %v2821_v32  ;;  %v2826_v42 = vrot.slane %v2730_v31, 5  ;;  %v13480_v43 = vld.sshfl [vmem:[%s14628_s20 + $0x53] sm:$0x1 pattern:$0x75316420]  ;;  %v7702_v44 = vrot.slane %v13479_v39, %v14648_v25 }
  0xe4   : > { %14276 = vmatpush3.bf16.msra.mxu0 %v14486_v2  ;;  %v2733_v46 = vunpack.c.l.b16 %v2461_v35  ;;  %v2825_v47 = vsel %vm1388_vm2, %v2824_v38, %v2823_v41  ;;  %v2828_v49 = vrot.slane %v2731_v36, 4  ;;  %v13481_v50 = vld.sshfl [vmem:[%s14628_s20 + $0x54] sm:$0x1 pattern:$0x75316420]  ;;  %v7716_v51 = vrot.slane %v13480_v43, %v14648_v25  ;;  %14188 = vmatpush3.bf16.msra.mxu1 %v14493_v13  ;;  %v14492_v2 = vld [vmem:[%s16748_s1 + $0x1a8] sm:$0xff]  }
  0xe5   : > { %14277 = vmatprep.subr.bf16.mxu0 %v14488_v19  ;;  %v2827_v52 = vsel %vm1391_vm3, %v2826_v42, %v2825_v47  ;;  %v2830_v53 = vrot.slane %v2732_v40, 3  ;;  %v13482_v54 = vld.sshfl [vmem:[%s14628_s20 + $0x55] sm:$0x1 pattern:$0x75316420]  ;;  %v7730_v48 = vrot.slane %v13481_v50, %v14648_v25  ;;  %v8169_v55 = vunpack.c.l.b16 %v7702_v44  ;;  %14189 = vmatprep.subr.bf16.mxu1 %v14495_v34 }
  0xe6   : > { %v2829_v57 = vsel %vm1394_vm4, %v2828_v49, %v2827_v52  ;;  %v2832_v58 = vrot.slane %v2733_v46, 2  ;;  %v13483_v60 = vld.sshfl [vmem:[%s14628_s20 + $0x56] sm:$0x1 pattern:$0x75316420]  ;;  %v7744_v61 = vrot.slane %v13482_v54, %v14648_v25  ;;  %v8170_v59 = vunpack.c.l.b16 %v7716_v51  ;;  %v14496_v49 = vld [vmem:[%s16748_s1 + $0x1b8] sm:$0xff]  }
  0xe7   : > { %v2831_v62 = vsel %vm1397_vm5, %v2830_v53, %v2829_v57  ;;  %v13484_v63 = vld.sshfl [vmem:[%s14628_s20 + $0x57] sm:$0x1 pattern:$0x75316420]  ;;  %v7758_v0 = vrot.slane %v13483_v60, %v14648_v25  ;;  %v8171_v1 = vunpack.c.l.b16 %v7730_v48 }
  0xe8   : > { %14278 = vmatpush3.bf16.msra.mxu0 %v14488_v19  ;;  %v2833_v3 = vsel %vm1400_vm6, %v2832_v58, %v2831_v62  ;;  %v13485_v4 = vld.sshfl [vmem:[%s14628_s20 + $0x58] sm:$0x1 pattern:$0x75316420]  ;;  %v7772_v5 = vrot.slane %v13484_v63, %v14648_v25  ;;  %v8172_v6 = vunpack.c.l.b16 %v7744_v61  ;;  %v8257_v7 = vrot.slane %v8170_v59, 7  ;;  %14190 = vmatpush3.bf16.msra.mxu1 %v14495_v34  ;;  %v14494_v29 = vld [vmem:[%s16748_s1 + $0x1b0] sm:$0xff]  }
  0xe9   : > { %14279 = vmatprep.subr.bf16.mxu0 %v14490_v45  ;;  %v2864_v8 = vpack.c.b16 %v2833_v3, %v2819_v37  ;;  %v13486_v9 = vld.sshfl [vmem:[%s14628_s20 + $0x59] sm:$0x1 pattern:$0x75316420]  ;;  %v7786_v10 = vrot.slane %v13485_v4, %v14648_v25  ;;  %v8173_v11 = vunpack.c.l.b16 %v7758_v0  ;;  %v8259_v12 = vrot.slane %v8171_v1, 6  ;;  %14199 = vmatprep.subr.bf16.mxu1 %v15356_v56 }
  0xea   : > { %v13487_v13 = vld.sshfl [vmem:[%s14628_s20 + $0x64] sm:$0x1 pattern:$0x75316420]  ;;  %v7800_v14 = vrot.slane %v13486_v9, %v14648_v25  ;;  %v8174_v15 = vunpack.c.l.b16 %v7772_v5  ;;  %v8258_v16 = vsel %vm1382_vm0, %v8257_v7, %v8169_v55  ;;  %v8261_v17 = vrot.slane %v8172_v6, 5 }
  0xeb   : > { %14171 = vmatprep.mubr.bf16.mxu1 %v2864_v8  ;;  %v13488_v18 = vld.sshfl [vmem:[%s14628_s20 + $0x65] sm:$0x1 pattern:$0x75316420]  ;;  %v7814_v19 = vrot.slane %v13487_v13, %v14648_v25  ;;  %v8175_v20 = vunpack.c.l.b16 %v7786_v10  ;;  %v8260_v21 = vsel %vm1385_vm1, %v8259_v12, %v8258_v16  ;;  %v8263_v22 = vrot.slane %v8173_v11, 4 }
  0xec   : > { %14280 = vmatpush3.bf16.msra.mxu0 %v14490_v45  ;;  %v13489_v23 = vld.sshfl [vmem:[%s14628_s20 + $0x66] sm:$0x1 pattern:$0x75316420]  ;;  %v7828_v24 = vrot.slane %v13488_v18, %v14648_v25  ;;  %v8176_v26 = vunpack.c.l.b16 %v7800_v14  ;;  %v8262_v27 = vsel %vm1388_vm2, %v8261_v17, %v8260_v21  ;;  %v8265_v28 = vrot.slane %v8174_v15, 3 }
  0xed   : > { %14281 = vmatprep.subr.bf16.mxu0 %v14492_v2  ;;  %v13490_v30 = vld.sshfl [vmem:[%s14628_s20 + $0x67] sm:$0x1 pattern:$0x75316420]  ;;  %v7842_v31 = vrot.slane %v13489_v23, %v14648_v25  ;;  %v8177_v32 = vunpack.c.l.b16 %v7814_v19  ;;  %v8264_v33 = vsel %vm1391_vm3, %v8263_v22, %v8262_v27  ;;  %v8267_v34 = vrot.slane %v8175_v20, 2 }
  0xee   : > { %v13491_v35 = vld.sshfl [vmem:[%s14628_s20 + $0x68] sm:$0x1 pattern:$0x75316420]  ;;  %v7856_v36 = vrot.slane %v13490_v30, %v14648_v25  ;;  %v8178_v37 = vunpack.c.l.b16 %v7828_v24  ;;  %v8266_v38 = vsel %vm1394_vm4, %v8265_v28, %v8264_v33  ;;  %v8269_v39 = vrot.slane %v8176_v26, 1  ;;  %v15414_v6 = vld [vmem:[%s16748_s1 + $0x1c0] sm:$0xff]  }
  0xef   : > { %v13492_v40 = vld.sshfl [vmem:[%s14628_s20 + $0x69] sm:$0x1 pattern:$0x75316420]  ;;  %v7870_v41 = vrot.slane %v13491_v35, %v14648_v25  ;;  %v8179_v42 = vunpack.c.l.b16 %v7842_v31  ;;  %v8268_v43 = vsel %vm1397_vm5, %v8267_v34, %v8266_v38 }
  0xf0   : > { %14282 = vmatpush3.bf16.msra.mxu0 %v14492_v2  ;;  %v13493_v44 = vld.sshfl [vmem:[%s14628_s20 + $0x6a] sm:$0x1 pattern:$0x75316420]  ;;  %v7884_v45 = vrot.slane %v13492_v40, %v14648_v25  ;;  %v8180_v46 = vunpack.c.l.b16 %v7856_v36  ;;  %v8271_v47 = vrot.slane %v8178_v37, 7  ;;  %v8270_v53 = vsel %vm1400_vm6, %v8269_v39, %v8268_v43 }
  0xf1   : > { %14283 = vmatprep.subr.bf16.mxu0 %v14494_v29  ;;  %v13494_v50 = vld.sshfl [vmem:[%s14628_s20 + $0x6b] sm:$0x1 pattern:$0x75316420]  ;;  %v7898_v51 = vrot.slane %v13493_v44, %v14648_v25  ;;  %v8181_v52 = vunpack.c.l.b16 %v7870_v41  ;;  %v8273_v54 = vrot.slane %v8179_v42, 6 }
  0xf2   : > { %v7912_v48 = vrot.slane %v13494_v50, %v14648_v25  ;;  %v8182_v55 = vunpack.c.l.b16 %v7884_v45  ;;  %v8272_v57 = vsel %vm1382_vm0, %v8271_v47, %v8177_v32  ;;  %v8275_v58 = vrot.slane %v8180_v46, 5  ;;  %v12887_v60 = vld.sshfl [vmem:[%s14628_s20 + $0x6c] sm:$0x1 pattern:$0x75316420] }
  0xf3   : > { %v8183_v61 = vunpack.c.l.b16 %v7898_v51  ;;  %v8274_v59 = vsel %vm1385_vm1, %v8273_v54, %v8272_v57  ;;  %v8277_v62 = vrot.slane %v8181_v52, 4  ;;  %v12888_v63 = vld.sshfl [vmem:[%s14628_s20 + $0x6d] sm:$0x1 pattern:$0x75316420]  ;;  %v2475_v0 = vrot.slane %v12887_v60, %v14648_v25 }
  0xf4   : > { %14284 = vmatpush3.bf16.msra.mxu0 %v14494_v29  ;;  %v8184_v1 = vunpack.c.l.b16 %v7912_v48  ;;  %v8276_v2 = vsel %vm1388_vm2, %v8275_v58, %v8274_v59  ;;  %v8279_v3 = vrot.slane %v8182_v55, 3  ;;  %v12889_v4 = vld.sshfl [vmem:[%s14628_s20 + $0x6e] sm:$0x1 pattern:$0x75316420]  ;;  %v2489_v5 = vrot.slane %v12888_v63, %v14648_v25 }
  0xf5   : > { %14285 = vmatprep.subr.bf16.mxu0 %v14496_v49  ;;  %v8278_v7 = vsel %vm1391_vm3, %v8277_v62, %v8276_v2  ;;  %v8281_v8 = vrot.slane %v8183_v61, 2  ;;  %v12890_v9 = vld.sshfl [vmem:[%s14628_s20 + $0x6f] sm:$0x1 pattern:$0x75316420]  ;;  %v2503_v10 = vrot.slane %v12889_v4, %v14648_v25  ;;  %v2734_v11 = vunpack.c.l.b16 %v2475_v0 }
  0xf6   : > { %v8280_v12 = vsel %vm1394_vm4, %v8279_v3, %v8278_v7  ;;  %v8283_v13 = vrot.slane %v8184_v1, 1  ;;  %v12891_v14 = vld.sshfl [vmem:[%s14628_s20 + $0x70] sm:$0x1 pattern:$0x75316420]  ;;  %v2517_v15 = vrot.slane %v12890_v9, %v14648_v25  ;;  %v2735_v16 = vunpack.c.l.b16 %v2489_v5 }
  0xf7   : > { %v8282_v17 = vsel %vm1397_vm5, %v8281_v8, %v8280_v12  ;;  %v12892_v18 = vld.sshfl [vmem:[%s14628_s20 + $0x71] sm:$0x1 pattern:$0x75316420]  ;;  %v2531_v19 = vrot.slane %v12891_v14, %v14648_v25  ;;  %v2736_v20 = vunpack.c.l.b16 %v2503_v10  ;;  %v2834_v21 = vrot.slane %v2734_v11, 1 }
  0xf8   : > { %14286 = vmatpush3.bf16.msra.mxu0 %v14496_v49  ;;  %v8284_v22 = vsel %vm1400_vm6, %v8283_v13, %v8282_v17  ;;  %v12893_v23 = vld.sshfl [vmem:[%s14628_s20 + $0x72] sm:$0x1 pattern:$0x75316420]  ;;  %v2545_v24 = vrot.slane %v12892_v18, %v14648_v25  ;;  %v2737_v26 = vunpack.c.l.b16 %v2517_v15 }
  0xf9   : > { %14295 = vmatprep.subr.bf16.mxu0 %v15414_v6  ;;  %v8315_v27 = vpack.c.b16 %v8284_v22, %v8270_v53  ;;  %v12894_v28 = vld.sshfl [vmem:[%s14628_s20 + $0x73] sm:$0x1 pattern:$0x75316420]  ;;  %v2559_v29 = vrot.slane %v12893_v23, %v14648_v25  ;;  %v2738_v30 = vunpack.c.l.b16 %v2531_v19  ;;  %v2835_v31 = vsel %vm1382_vm0, %v2735_v16, %v2834_v21 }
  0xfa   : > { %v12895_v32 = vld.sshfl [vmem:[%s14628_s20 + $0x7e] sm:$0x1 pattern:$0x75316420]  ;;  %v2573_v33 = vrot.slane %v12894_v28, %v14648_v25  ;;  %v2739_v34 = vunpack.c.l.b16 %v2545_v24  ;;  %v2836_v35 = vrot.slane %v2736_v20, 7  ;;  %v2838_v36 = vrot.slane %v2737_v26, 6 }
  0xfb   : > { %14267 = vmatprep.mubr.bf16.mxu0 %v8315_v27  ;;  %v12896_v37 = vld.sshfl [vmem:[%s14628_s20 + $0x7f] sm:$0x1 pattern:$0x75316420]  ;;  %v2587_v38 = vrot.slane %v12895_v32, %v14648_v25  ;;  %v2740_v39 = vunpack.c.l.b16 %v2559_v29  ;;  %v2840_v40 = vrot.slane %v2738_v30, 5 }
  0xfc   : > { %v12897_v41 = vld.sshfl [vmem:[%s14628_s20 + $0x80] sm:$0x1 pattern:$0x75316420]  ;;  %v2601_v42 = vrot.slane %v12896_v37, %v14648_v25  ;;  %v2741_v43 = vunpack.c.l.b16 %v2573_v33  ;;  %v2837_v44 = vsel %vm1385_vm1, %v2836_v35, %v2835_v31  ;;  %v2842_v45 = vrot.slane %v2739_v34, 4 }
  0xfd   : > { %v12898_v46 = vld.sshfl [vmem:[%s14628_s20 + $0x81] sm:$0x1 pattern:$0x75316420]  ;;  %v2615_v47 = vrot.slane %v12897_v41, %v14648_v25  ;;  %v2742_v49 = vunpack.c.l.b16 %v2587_v38  ;;  %v2839_v50 = vsel %vm1388_vm2, %v2838_v36, %v2837_v44  ;;  %v2844_v48 = vrot.slane %v2740_v39, 3 }
  0xfe   : > { %v12899_v51 = vld.sshfl [vmem:[%s14628_s20 + $0x82] sm:$0x1 pattern:$0x75316420]  ;;  %v2629_v52 = vrot.slane %v12898_v46, %v14648_v25  ;;  %v2743_v53 = vunpack.c.l.b16 %v2601_v42  ;;  %v2841_v54 = vsel %vm1391_vm3, %v2840_v40, %v2839_v50  ;;  %v2846_v60 = vrot.slane %v2741_v43, 2 }
  0xff   : > { %v12900_v55 = vld.sshfl [vmem:[%s14628_s20 + $0x83] sm:$0x1 pattern:$0x75316420]  ;;  %v2643_v57 = vrot.slane %v12899_v51, %v14648_v25  ;;  %v2744_v58 = vunpack.c.l.b16 %v2615_v47  ;;  %v2848_v61 = vrot.slane %v2742_v49, 1  ;;  %v2843_v0 = vsel %vm1394_vm4, %v2842_v45, %v2841_v54 }
 0x100   : > { %v12901_v59 = vld.sshfl [vmem:[%s14628_s20 + $0x84] sm:$0x1 pattern:$0x75316420]  ;;  %v2657_v62 = vrot.slane %v12900_v55, %v14648_v25  ;;  %v2745_v63 = vunpack.c.l.b16 %v2629_v52  ;;  %v2845_v12 = vsel %vm1397_vm5, %v2844_v48, %v2843_v0 }
 0x101   : > { %v12902_v1 = vld.sshfl [vmem:[%s14628_s20 + $0x85] sm:$0x1 pattern:$0x75316420]  ;;  %v2671_v2 = vrot.slane %v12901_v59, %v14648_v25  ;;  %v2746_v3 = vunpack.c.l.b16 %v2643_v57  ;;  %v2849_v4 = vsel %vm1382_vm0, %v2743_v53, %v2848_v61  ;;  %v2850_v8 = vrot.slane %v2744_v58, 7 }
 0x102   : > { %v2685_v5 = vrot.slane %v12902_v1, %v14648_v25  ;;  %v2747_v7 = vunpack.c.l.b16 %v2657_v62  ;;  %v2852_v9 = vrot.slane %v2745_v63, 6  ;;  %v13495_v10 = vld.sshfl [vmem:[%s14628_s20 + $0x76] sm:$0x1 pattern:$0x75316420]  ;;  %v2847_v32 = vsel %vm1400_vm6, %v2846_v60, %v2845_v12 }
 0x103   : > { %v2748_v11 = vunpack.c.l.b16 %v2671_v2  ;;  %v2854_v13 = vrot.slane %v2746_v3, 5  ;;  %v13496_v14 = vld.sshfl [vmem:[%s14628_s20 + $0x77] sm:$0x1 pattern:$0x75316420]  ;;  %v7926_v15 = vrot.slane %v13495_v10, %v14648_v25  ;;  %v2851_v17 = vsel %vm1385_vm1, %v2850_v8, %v2849_v4 }
 0x104   : > { %v2749_v16 = vunpack.c.l.b16 %v2685_v5  ;;  %v2856_v18 = vrot.slane %v2747_v7, 4  ;;  %v13497_v19 = vld.sshfl [vmem:[%s14628_s20 + $0x78] sm:$0x1 pattern:$0x75316420]  ;;  %v7940_v20 = vrot.slane %v13496_v14, %v14648_v25  ;;  %v2853_v21 = vsel %vm1388_vm2, %v2852_v9, %v2851_v17 }
 0x105   : > { %v2858_v22 = vrot.slane %v2748_v11, 3  ;;  %v13498_v23 = vld.sshfl [vmem:[%s14628_s20 + $0x79] sm:$0x1 pattern:$0x75316420]  ;;  %v7954_v24 = vrot.slane %v13497_v19, %v14648_v25  ;;  %v8185_v26 = vunpack.c.l.b16 %v7926_v15  ;;  %v2855_v27 = vsel %vm1391_vm3, %v2854_v13, %v2853_v21 }
 0x106   : > { %v2860_v28 = vrot.slane %v2749_v16, 2  ;;  %v13499_v29 = vld.sshfl [vmem:[%s14628_s20 + $0x7a] sm:$0x1 pattern:$0x75316420]  ;;  %v7968_v30 = vrot.slane %v13498_v23, %v14648_v25  ;;  %v8186_v31 = vunpack.c.l.b16 %v7940_v20  ;;  %v2857_v33 = vsel %vm1394_vm4, %v2856_v18, %v2855_v27 }
 0x107   : > { %v13500_v34 = vld.sshfl [vmem:[%s14628_s20 + $0x7b] sm:$0x1 pattern:$0x75316420]  ;;  %v7982_v35 = vrot.slane %v13499_v29, %v14648_v25  ;;  %v8187_v36 = vunpack.c.l.b16 %v7954_v24  ;;  %v2859_v37 = vsel %vm1397_vm5, %v2858_v22, %v2857_v33 }
 0x108   : > { %v13501_v38 = vld.sshfl [vmem:[%s14628_s20 + $0x7c] sm:$0x1 pattern:$0x75316420]  ;;  %v7996_v39 = vrot.slane %v13500_v34, %v14648_v25  ;;  %v8188_v40 = vunpack.c.l.b16 %v7968_v30  ;;  %v8285_v41 = vrot.slane %v8186_v31, 7  ;;  %v2861_v42 = vsel %vm1400_vm6, %v2860_v28, %v2859_v37 }
 0x109   : > { %v13502_v43 = vld.sshfl [vmem:[%s14628_s20 + $0x7d] sm:$0x1 pattern:$0x75316420]  ;;  %v8010_v44 = vrot.slane %v13501_v38, %v14648_v25  ;;  %v8189_v45 = vunpack.c.l.b16 %v7982_v35  ;;  %v8287_v46 = vrot.slane %v8187_v36, 6  ;;  %v2865_v47 = vpack.c.b16 %v2861_v42, %v2847_v32 }
 0x10a   : > { %v13503_v49 = vld.sshfl [vmem:[%s14628_s20 + $0x88] sm:$0x1 pattern:$0x75316420]  ;;  %v8024_v50 = vrot.slane %v13502_v43, %v14648_v25  ;;  %v8190_v51 = vunpack.c.l.b16 %v7996_v39  ;;  %v8286_v52 = vsel %vm1382_vm0, %v8285_v41, %v8185_v26  ;;  %v8289_v57 = vrot.slane %v8188_v40, 5 }
 0x10b   : > { %v13504_v53 = vld.sshfl [vmem:[%s14628_s20 + $0x89] sm:$0x1 pattern:$0x75316420]  ;;  %v8038_v54 = vrot.slane %v13503_v49, %v14648_v25  ;;  %v8191_v48 = vunpack.c.l.b16 %v8010_v44  ;;  %v8288_v55 = vsel %vm1385_vm1, %v8287_v46, %v8286_v52  ;;  %14172 = vmatmul.mubr.bf16.gmra.mrb[4].mxu1 %v2865_v47  ;;  %v8291_v59 = vrot.slane %v8189_v45, 4 }
 0x10c   : > { %v13505_v58 = vld.sshfl [vmem:[%s14628_s20 + $0x8a] sm:$0x1 pattern:$0x75316420]  ;;  %v8052_v60 = vrot.slane %v13504_v53, %v14648_v25  ;;  %v8192_v61 = vunpack.c.l.b16 %v8024_v50  ;;  %v8293_v62 = vrot.slane %v8190_v51, 3  ;;  %v8290_v2 = vsel %vm1388_vm2, %v8289_v57, %v8288_v55 }
 0x10d   : > { %v13506_v63 = vld.sshfl [vmem:[%s14628_s20 + $0x8b] sm:$0x1 pattern:$0x75316420]  ;;  %v8066_v0 = vrot.slane %v13505_v58, %v14648_v25  ;;  %v8193_v1 = vunpack.c.l.b16 %v8038_v54  ;;  %v8295_v3 = vrot.slane %v8191_v48, 2  ;;  %v8292_v8 = vsel %vm1391_vm3, %v8291_v59, %v8290_v2 }
 0x10e   : > { %v13507_v4 = vld.sshfl [vmem:[%s14628_s20 + $0x8c] sm:$0x1 pattern:$0x75316420]  ;;  %v8080_v5 = vrot.slane %v13506_v63, %v14648_v25  ;;  %v8194_v7 = vunpack.c.l.b16 %v8052_v60  ;;  %v8297_v9 = vrot.slane %v8192_v61, 1  ;;  %v8294_v13 = vsel %vm1394_vm4, %v8293_v62, %v8292_v8 }
 0x10f   : > { %v13508_v10 = vld.sshfl [vmem:[%s14628_s20 + $0x8d] sm:$0x1 pattern:$0x75316420]  ;;  %v8094_v11 = vrot.slane %v13507_v4, %v14648_v25  ;;  %v8195_v12 = vunpack.c.l.b16 %v8066_v0  ;;  %v8296_v17 = vsel %vm1397_vm5, %v8295_v3, %v8294_v13 }
 0x110   : > { %v13509_v14 = vld.sshfl [vmem:[%s14628_s20 + $0x8e] sm:$0x1 pattern:$0x75316420]  ;;  %v8108_v15 = vrot.slane %v13508_v10, %v14648_v25  ;;  %v8196_v16 = vunpack.c.l.b16 %v8080_v5  ;;  %v8299_v18 = vrot.slane %v8194_v7, 7  ;;  %v8298_v22 = vsel %vm1400_vm6, %v8297_v9, %v8296_v17 }
 0x111   : > { %v13510_v19 = vld.sshfl [vmem:[%s14628_s20 + $0x8f] sm:$0x1 pattern:$0x75316420]  ;;  %v8122_v20 = vrot.slane %v13509_v14, %v14648_v25  ;;  %v8197_v21 = vunpack.c.l.b16 %v8094_v11  ;;  %v8301_v23 = vrot.slane %v8195_v12, 6 }
 0x112   : > { %v8136_v24 = vrot.slane %v13510_v19, %v14648_v25  ;;  %v8198_v26 = vunpack.c.l.b16 %v8108_v15  ;;  %v8300_v27 = vsel %vm1382_vm0, %v8299_v18, %v8193_v1  ;;  %v8303_v28 = vrot.slane %v8196_v16, 5  ;;  %v12991_v29 = vld.sshfl [vmem:[%s14628_s20 + $0x1] sm:$0x1 pattern:$0x75316420] }
 0x113   : > { %v8199_v30 = vunpack.c.l.b16 %v8122_v20  ;;  %v8302_v31 = vsel %vm1385_vm1, %v8301_v23, %v8300_v27  ;;  %v8305_v32 = vrot.slane %v8197_v21, 4  ;;  %v12992_v33 = vld.sshfl [vmem:[%s14628_s20 + $0x2] sm:$0x1 pattern:$0x75316420]  ;;  %v3166_v34 = vrot.slane %v12991_v29, %v14648_v25 }
 0x114   : > { %v8200_v35 = vunpack.c.l.b16 %v8136_v24  ;;  %v8304_v36 = vsel %vm1388_vm2, %v8303_v28, %v8302_v31  ;;  %v8307_v37 = vrot.slane %v8198_v26, 3  ;;  %v12993_v38 = vld.sshfl [vmem:[%s14628_s20 + $0x3] sm:$0x1 pattern:$0x75316420]  ;;  %v3180_v39 = vrot.slane %v12992_v33, %v14648_v25 }
 0x115   : > { %v8306_v40 = vsel %vm1391_vm3, %v8305_v32, %v8304_v36  ;;  %v8309_v41 = vrot.slane %v8199_v30, 2  ;;  %v12994_v42 = vld.sshfl [vmem:[%s14628_s20 + $0x4] sm:$0x1 pattern:$0x75316420]  ;;  %v3194_v43 = vrot.slane %v12993_v38, %v14648_v25  ;;  %v4049_v44 = vunpack.c.l.b16 %v3166_v34 }
 0x116   : > { %v8308_v45 = vsel %vm1394_vm4, %v8307_v37, %v8306_v40  ;;  %v8311_v46 = vrot.slane %v8200_v35, 1  ;;  %v12995_v47 = vld.sshfl [vmem:[%s14628_s20 + $0x5] sm:$0x1 pattern:$0x75316420]  ;;  %v3208_v49 = vrot.slane %v12994_v42, %v14648_v25  ;;  %v4050_v50 = vunpack.c.l.b16 %v3180_v39 }
 0x117   : > { %v8310_v51 = vsel %vm1397_vm5, %v8309_v41, %v8308_v45  ;;  %v12996_v52 = vld.sshfl [vmem:[%s14628_s20 + $0x6] sm:$0x1 pattern:$0x75316420]  ;;  %v3222_v53 = vrot.slane %v12995_v47, %v14648_v25  ;;  %v4051_v54 = vunpack.c.l.b16 %v3194_v43 }
 0x118   : > { %v8312_v48 = vsel %vm1400_vm6, %v8311_v46, %v8310_v51  ;;  %v12997_v55 = vld.sshfl [vmem:[%s14628_s20 + $0x7] sm:$0x1 pattern:$0x75316420]  ;;  %v3236_v57 = vrot.slane %v12996_v52, %v14648_v25  ;;  %v4052_v58 = vunpack.c.l.b16 %v3208_v49  ;;  %v4113_v60 = vrot.slane %v4050_v50, 7 }
 0x119   : > { %v8316_v61 = vpack.c.b16 %v8312_v48, %v8298_v22  ;;  %v12998_v59 = vld.sshfl [vmem:[%s14628_s20 + $0x8] sm:$0x1 pattern:$0x75316420]  ;;  %v3250_v62 = vrot.slane %v12997_v55, %v14648_v25  ;;  %v4053_v63 = vunpack.c.l.b16 %v3222_v53  ;;  %v4115_v0 = vrot.slane %v4051_v54, 6 }
 0x11a   : > { %v12999_v1 = vld.sshfl [vmem:[%s14628_s20 + $0x13] sm:$0x1 pattern:$0x75316420]  ;;  %v3264_v2 = vrot.slane %v12998_v59, %v14648_v25  ;;  %v4054_v3 = vunpack.c.l.b16 %v3236_v57  ;;  %v4114_v4 = vsel %vm1382_vm0, %v4113_v60, %v4049_v44  ;;  %v4117_v5 = vrot.slane %v4052_v58, 5 }
 0x11b   : > { %14268 = vmatmul.mubr.bf16.gmra.mrb[4].mxu0 %v8316_v61  ;;  %v13000_v7 = vld.sshfl [vmem:[%s14628_s20 + $0x14] sm:$0x1 pattern:$0x75316420]  ;;  %v3278_v8 = vrot.slane %v12999_v1, %v14648_v25  ;;  %v4055_v9 = vunpack.c.l.b16 %v3250_v62  ;;  %v4116_v10 = vsel %vm1385_vm1, %v4115_v0, %v4114_v4  ;;  %v4119_v11 = vrot.slane %v4053_v63, 4 }
 0x11c   : > { %v13001_v12 = vld.sshfl [vmem:[%s14628_s20 + $0x15] sm:$0x1 pattern:$0x75316420]  ;;  %v3292_v13 = vrot.slane %v13000_v7, %v14648_v25  ;;  %v4056_v14 = vunpack.c.l.b16 %v3264_v2  ;;  %v4118_v15 = vsel %vm1388_vm2, %v4117_v5, %v4116_v10  ;;  %v4121_v16 = vrot.slane %v4054_v3, 3 }
 0x11d   : > { %v13002_v17 = vld.sshfl [vmem:[%s14628_s20 + $0x16] sm:$0x1 pattern:$0x75316420]  ;;  %v3306_v18 = vrot.slane %v13001_v12, %v14648_v25  ;;  %v4057_v19 = vunpack.c.l.b16 %v3278_v8  ;;  %v4120_v20 = vsel %vm1391_vm3, %v4119_v11, %v4118_v15  ;;  %v4123_v21 = vrot.slane %v4055_v9, 2 }
 0x11e   : > { %v13003_v22 = vld.sshfl [vmem:[%s14628_s20 + $0x17] sm:$0x1 pattern:$0x75316420]  ;;  %v3320_v23 = vrot.slane %v13002_v17, %v14648_v25  ;;  %v4058_v24 = vunpack.c.l.b16 %v3292_v13  ;;  %v4122_v26 = vsel %vm1394_vm4, %v4121_v16, %v4120_v20  ;;  %v4125_v27 = vrot.slane %v4056_v14, 1 }
 0x11f   : > { %v13004_v28 = vld.sshfl [vmem:[%s14628_s20 + $0x18] sm:$0x1 pattern:$0x75316420]  ;;  %v3334_v29 = vrot.slane %v13003_v22, %v14648_v25  ;;  %v15540_v30 = vunpack.c.l.b16 %v3306_v18  ;;  %v4124_v31 = vsel %vm1397_vm5, %v4123_v21, %v4122_v26  ;;  %v9564_v32 = vrot.slane %v4057_v19, 7 }
 0x120   : > { %v13005_v33 = vld.sshfl [vmem:[%s14628_s20 + $0x19] sm:$0x1 pattern:$0x75316420]  ;;  %v3348_v34 = vrot.slane %v13004_v28, %v14648_v25  ;;  %v4060_v35 = vunpack.c.l.b16 %v3320_v23  ;;  %v4126_v36 = vsel %vm1400_vm6, %v4125_v27, %v4124_v31  ;;  %v4127_v37 = vrot.slane %v4058_v24, 7 }
 0x121   : > { %v13006_v38 = vld.sshfl [vmem:[%s14628_s20 + $0x1a] sm:$0x1 pattern:$0x75316420]  ;;  %v3362_v39 = vrot.slane %v13005_v33, %v14648_v25  ;;  %v4061_v40 = vunpack.c.l.b16 %v3334_v29  ;;  %v4129_v41 = vrot.slane %v15540_v30, 6  ;;  %v9566_v42 = vrot.slane %v4058_v24, 6 }
 0x122   : > { %v3376_v43 = vrot.slane %v13006_v38, %v14648_v25  ;;  %v4062_v44 = vunpack.c.l.b16 %v3348_v34  ;;  %v4128_v45 = vsel %vm1382_vm0, %v4127_v37, %v4057_v19  ;;  %v4131_v46 = vrot.slane %v4060_v35, 5  ;;  %v13599_v47 = vld.sshfl [vmem:[%s14628_s20 + $0x12] sm:$0x1 pattern:$0x75316420] }
 0x123   : > { %v15552_v49 = vunpack.c.l.b16 %v3362_v39  ;;  %v4130_v50 = vsel %vm1385_vm1, %v4129_v41, %v4128_v45  ;;  %v4133_v51 = vrot.slane %v4061_v40, 4  ;;  %v13607_v52 = vld.sshfl [vmem:[%s14628_s20 + $0x24] sm:$0x1 pattern:$0x75316420]  ;;  %v8617_v53 = vrot.slane %v13599_v47, %v14648_v25 }
 0x124   : > { %v4064_v54 = vunpack.c.l.b16 %v3376_v43  ;;  %v4132_v48 = vsel %vm1388_vm2, %v4131_v46, %v4130_v50  ;;  %v4135_v55 = vrot.slane %v4062_v44, 3  ;;  %v13608_v57 = vld.sshfl [vmem:[%s14628_s20 + $0x25] sm:$0x1 pattern:$0x75316420]  ;;  %v8729_v58 = vrot.slane %v13607_v52, %v14648_v25 }
 0x125   : > { %v4134_v60 = vsel %vm1391_vm3, %v4133_v51, %v4132_v48  ;;  %v4137_v61 = vrot.slane %v15552_v49, 2  ;;  %v13609_v59 = vld.sshfl [vmem:[%s14628_s20 + $0x26] sm:$0x1 pattern:$0x75316420]  ;;  %v8743_v62 = vrot.slane %v13608_v57, %v14648_v25  ;;  %v9500_v63 = vunpack.c.l.b16 %v8617_v53 }
 0x126   : > { %v4136_v0 = vsel %vm1394_vm4, %v4135_v55, %v4134_v60  ;;  %v4139_v1 = vrot.slane %v4064_v54, 1  ;;  %v13610_v2 = vld.sshfl [vmem:[%s14628_s20 + $0x27] sm:$0x1 pattern:$0x75316420]  ;;  %v8757_v3 = vrot.slane %v13609_v59, %v14648_v25  ;;  %v9508_v4 = vunpack.c.l.b16 %v8729_v58 }
 0x127   : > { %v4138_v5 = vsel %vm1397_vm5, %v4137_v61, %v4136_v0  ;;  %v13611_v7 = vld.sshfl [vmem:[%s14628_s20 + $0x28] sm:$0x1 pattern:$0x75316420]  ;;  %v8771_v8 = vrot.slane %v13610_v2, %v14648_v25  ;;  %v15570_v9 = vunpack.c.l.b16 %v8743_v62  ;;  %v9565_v10 = vsel %vm1382_vm0, %v9564_v32, %v9500_v63 }
 0x128   : > { %v4140_v11 = vsel %vm1400_vm6, %v4139_v1, %v4138_v5  ;;  %v13612_v12 = vld.sshfl [vmem:[%s14628_s20 + $0x29] sm:$0x1 pattern:$0x75316420]  ;;  %v8785_v13 = vrot.slane %v13611_v7, %v14648_v25  ;;  %v15576_v14 = vunpack.c.l.b16 %v8757_v3  ;;  %v9567_v15 = vsel %vm1385_vm1, %v9566_v42, %v9565_v10 }
 0x129   : > { %v4225_v16 = vpack.c.b16 %v4140_v11, %v4126_v36  ;;  %v13613_v17 = vld.sshfl [vmem:[%s14628_s20 + $0x2a] sm:$0x1 pattern:$0x75316420]  ;;  %v8799_v18 = vrot.slane %v13612_v12, %v14648_v25  ;;  %v15581_v19 = vunpack.c.l.b16 %v8771_v8  ;;  %v9568_v20 = vrot.slane %v15540_v30, 5 }
 0x12a   : > { %v13614_v21 = vld.sshfl [vmem:[%s14628_s20 + $0x2b] sm:$0x1 pattern:$0x75316420]  ;;  %v8813_v22 = vrot.slane %v13613_v17, %v14648_v25  ;;  %v15586_v23 = vunpack.c.l.b16 %v8785_v13  ;;  %v9570_v24 = vrot.slane %v4060_v35, 4  ;;  %v9572_v26 = vrot.slane %v4061_v40, 3 }
 0x12b   : > { %14191 = vmatprep.mubr.bf16.mxu1 %v4225_v16  ;;  %v8827_v27 = vrot.slane %v13614_v21, %v14648_v25  ;;  %v15589_v28 = vunpack.c.l.b16 %v8799_v18  ;;  %v9569_v29 = vsel %vm1388_vm2, %v9568_v20, %v9567_v15  ;;  %v9574_v31 = vrot.slane %v4062_v44, 2  ;;  %v13014_v32 = vld.sshfl [vmem:[%s14628_s20 + $0x2c] sm:$0x1 pattern:$0x75316420] }
 0x12c   : > { %v15593_v30 = vunpack.c.l.b16 %v8813_v22  ;;  %v9571_v33 = vsel %vm1391_vm3, %v9570_v24, %v9569_v29  ;;  %v9576_v34 = vrot.slane %v15552_v49, 1  ;;  %v9578_v35 = vrot.slane %v15570_v9, 7  ;;  %v13015_v36 = vld.sshfl [vmem:[%s14628_s20 + $0x37] sm:$0x1 pattern:$0x75316420] }
 0x12d   : > { %v15599_v37 = vunpack.c.l.b16 %v8827_v27  ;;  %v9573_v38 = vsel %vm1394_vm4, %v9572_v26, %v9571_v33  ;;  %v9580_v39 = vrot.slane %v15576_v14, 6  ;;  %v9582_v40 = vrot.slane %v15581_v19, 5  ;;  %v13016_v41 = vld.sshfl [vmem:[%s14628_s20 + $0x38] sm:$0x1 pattern:$0x75316420] }
 0x12e   : > { %v9575_v42 = vsel %vm1397_vm5, %v9574_v31, %v9573_v38  ;;  %v9579_v43 = vsel %vm1382_vm0, %v9578_v35, %v9508_v4  ;;  %v9584_v44 = vrot.slane %v15586_v23, 4  ;;  %v9586_v45 = vrot.slane %v15589_v28, 3  ;;  %v13017_v46 = vld.sshfl [vmem:[%s14628_s20 + $0x39] sm:$0x1 pattern:$0x75316420] }
 0x12f   : > { %v9577_v47 = vsel %vm1400_vm6, %v9576_v34, %v9575_v42  ;;  %v9581_v49 = vsel %vm1385_vm1, %v9580_v39, %v9579_v43  ;;  %v9588_v50 = vrot.slane %v15593_v30, 2  ;;  %v9590_v51 = vrot.slane %v15599_v37, 1  ;;  %v13018_v52 = vld.sshfl [vmem:[%s14628_s20 + $0x3a] sm:$0x1 pattern:$0x75316420] }
 0x130   : > { %v9583_v53 = vsel %vm1388_vm2, %v9582_v40, %v9581_v49  ;;  %v13019_v54 = vld.sshfl [vmem:[%s14628_s20 + $0x3b] sm:$0x1 pattern:$0x75316420]  ;;  %v3488_v48 = vrot.slane %v13014_v32, %v14648_v25  ;;  %v3502_v55 = vrot.slane %v13015_v36, %v14648_v25  ;;  %v3516_v57 = vrot.slane %v13016_v41, %v14648_v25 }
 0x131   : > { %v9585_v58 = vsel %vm1391_vm3, %v9584_v44, %v9583_v53  ;;  %v13020_v60 = vld.sshfl [vmem:[%s14628_s20 + $0x3c] sm:$0x1 pattern:$0x75316420]  ;;  %v3530_v61 = vrot.slane %v13017_v46, %v14648_v25  ;;  %v3544_v59 = vrot.slane %v13018_v52, %v14648_v25  ;;  %v3558_v62 = vrot.slane %v13019_v54, %v14648_v25 }
 0x132   : > { %v9587_v63 = vsel %vm1394_vm4, %v9586_v45, %v9585_v58  ;;  %v13021_v0 = vld.sshfl [vmem:[%s14628_s20 + $0x3d] sm:$0x1 pattern:$0x75316420]  ;;  %v3572_v1 = vrot.slane %v13020_v60, %v14648_v25  ;;  %v4072_v2 = vunpack.c.l.b16 %v3488_v48  ;;  %v15628_v3 = vunpack.c.l.b16 %v3502_v55 }
 0x133   : > { %v9589_v4 = vsel %vm1397_vm5, %v9588_v50, %v9587_v63  ;;  %v13022_v5 = vld.sshfl [vmem:[%s14628_s20 + $0x3e] sm:$0x1 pattern:$0x75316420]  ;;  %v3586_v7 = vrot.slane %v13021_v0, %v14648_v25  ;;  %v15633_v8 = vunpack.c.l.b16 %v3516_v57  ;;  %v15635_v10 = vunpack.c.l.b16 %v3530_v61 }
 0x134   : > { %v9591_v11 = vsel %vm1400_vm6, %v9590_v51, %v9589_v4  ;;  %v3600_v12 = vrot.slane %v13022_v5, %v14648_v25  ;;  %v15639_v13 = vunpack.c.l.b16 %v3544_v59  ;;  %v15641_v15 = vunpack.c.l.b16 %v3558_v62  ;;  %v13615_v21 = vld.sshfl [vmem:[%s14628_s20 + $0x36] sm:$0x1 pattern:$0x75316420] }
 0x135   : > { %v9676_v16 = vpack.c.b16 %v9591_v11, %v9577_v47  ;;  %v15643_v17 = vunpack.c.l.b16 %v3572_v1  ;;  %v15645_v18 = vunpack.c.l.b16 %v3586_v7  ;;  %v4141_v20 = vrot.slane %v15576_v14, 7  ;;  %v13623_v29 = vld.sshfl [vmem:[%s14628_s20 + $0x48] sm:$0x1 pattern:$0x75316420] }
 0x136   : > { %v4080_v22 = vunpack.c.l.b16 %v3600_v12  ;;  %v4143_v24 = vrot.slane %v15581_v19, 6  ;;  %v4145_v26 = vrot.slane %v15586_v23, 5  ;;  %v4147_v27 = vrot.slane %v15589_v28, 4 }
 0x137   : > { %14287 = vmatprep.mubr.bf16.mxu0 %v9676_v16  ;;  %v4142_v31 = vsel %vm1382_vm0, %v4141_v20, %v15570_v9  ;;  %v4149_v32 = vrot.slane %v15593_v30, 3  ;;  %v4151_v33 = vrot.slane %v15599_v37, 2  ;;  %v4153_v34 = vrot.slane %v4072_v2, 1  ;;  %v14499_v20 = vld [vmem:[%s16748_s1 + $0xc8] sm:$0xff]  }
 0x138   : > { %v4144_v14 = vsel %vm1385_vm1, %v4143_v24, %v4142_v31  ;;  %v4155_v19 = vrot.slane %v15633_v8, 7  ;;  %v4157_v23 = vrot.slane %v15635_v10, 6  ;;  %v4159_v28 = vrot.slane %v15639_v13, 5 }
 0x139   : > { %v4146_v35 = vsel %vm1388_vm2, %v4145_v26, %v4144_v14  ;;  %v4161_v36 = vrot.slane %v15641_v15, 4  ;;  %v4163_v9 = vrot.slane %v15643_v17, 3  ;;  %v4165_v30 = vrot.slane %v15645_v18, 2 }
 0x13a   : > { %v4148_v37 = vsel %vm1391_vm3, %v4147_v27, %v4146_v35  ;;  %v4156_v38 = vsel %vm1382_vm0, %v4155_v19, %v15628_v3  ;;  %v4167_v39 = vrot.slane %v4080_v22, 1  ;;  %v13624_v40 = vld.sshfl [vmem:[%s14628_s20 + $0x49] sm:$0x1 pattern:$0x75316420]  ;;  %v8841_v41 = vrot.slane %v13615_v21, %v14648_v25 }
 0x13b   : > { %v4150_v42 = vsel %vm1394_vm4, %v4149_v32, %v4148_v37  ;;  %v4158_v43 = vsel %vm1385_vm1, %v4157_v23, %v4156_v38  ;;  %v13625_v44 = vld.sshfl [vmem:[%s14628_s20 + $0x4a] sm:$0x1 pattern:$0x75316420]  ;;  %v8953_v45 = vrot.slane %v13623_v29, %v14648_v25  ;;  %v8967_v46 = vrot.slane %v13624_v40, %v14648_v25 }
 0x13c   : > { %v4152_v47 = vsel %vm1397_vm5, %v4151_v33, %v4150_v42  ;;  %v4160_v49 = vsel %vm1388_vm2, %v4159_v28, %v4158_v43  ;;  %v13626_v50 = vld.sshfl [vmem:[%s14628_s20 + $0x4b] sm:$0x1 pattern:$0x75316420]  ;;  %v8981_v51 = vrot.slane %v13625_v44, %v14648_v25  ;;  %v9516_v52 = vunpack.c.l.b16 %v8841_v41 }
 0x13d   : > { %v4154_v53 = vsel %vm1400_vm6, %v4153_v34, %v4152_v47  ;;  %v4162_v54 = vsel %vm1391_vm3, %v4161_v36, %v4160_v49  ;;  %v13627_v48 = vld.sshfl [vmem:[%s14628_s20 + $0x4c] sm:$0x1 pattern:$0x75316420]  ;;  %v8995_v55 = vrot.slane %v13626_v50, %v14648_v25  ;;  %v9524_v57 = vunpack.c.l.b16 %v8953_v45 }
 0x13e   : > { %v4164_v58 = vsel %vm1394_vm4, %v4163_v9, %v4162_v54  ;;  %v13628_v60 = vld.sshfl [vmem:[%s14628_s20 + $0x4d] sm:$0x1 pattern:$0x75316420]  ;;  %v9009_v61 = vrot.slane %v13627_v48, %v14648_v25  ;;  %v9525_v59 = vunpack.c.l.b16 %v8967_v46  ;;  %v9526_v62 = vunpack.c.l.b16 %v8981_v51 }
 0x13f   : > { %v4166_v63 = vsel %vm1397_vm5, %v4165_v30, %v4164_v58  ;;  %v13629_v0 = vld.sshfl [vmem:[%s14628_s20 + $0x4e] sm:$0x1 pattern:$0x75316420]  ;;  %v9023_v1 = vrot.slane %v13628_v60, %v14648_v25  ;;  %v9527_v2 = vunpack.c.l.b16 %v8995_v55  ;;  %v9592_v4 = vrot.slane %v15628_v3, 7 }
 0x140   : > { %v4168_v5 = vsel %vm1400_vm6, %v4167_v39, %v4166_v63  ;;  %v13630_v7 = vld.sshfl [vmem:[%s14628_s20 + $0x4f] sm:$0x1 pattern:$0x75316420]  ;;  %v9037_v11 = vrot.slane %v13629_v0, %v14648_v25  ;;  %v15693_v12 = vunpack.c.l.b16 %v9009_v61  ;;  %v9594_v16 = vrot.slane %v15633_v8, 6  ;;  %v14503_v39 = vld [vmem:[%s16748_s1 + $0xd8] sm:$0xff]  }
 0x141   : > { %v4226_v21 = vpack.c.b16 %v4168_v5, %v4154_v53  ;;  %v9051_v22 = vrot.slane %v13630_v7, %v14648_v25  ;;  %v15700_v24 = vunpack.c.l.b16 %v9023_v1  ;;  %v9593_v3 = vsel %vm1382_vm0, %v9592_v4, %v9516_v52  ;;  %v13030_v9 = vld.sshfl [vmem:[%s14628_s20 + $0x50] sm:$0x1 pattern:$0x75316420]  ;;  %v14500_v61 = vld [vmem:[%s16748_s1 + $0x1c8] sm:$0xff]  }
 0x142   : > { %v15703_v26 = vunpack.c.l.b16 %v9037_v11  ;;  %v9595_v27 = vsel %vm1385_vm1, %v9594_v16, %v9593_v3  ;;  %v9596_v29 = vrot.slane %v15635_v10, 5  ;;  %v9598_v31 = vrot.slane %v15639_v13, 4  ;;  %v13031_v40 = vld.sshfl [vmem:[%s14628_s20 + $0x5b] sm:$0x1 pattern:$0x75316420] }
 0x143   : > { %14192 = vmatmul.mubr.bf16.vlgmr.msra.gmra.mrb[0].mxu1 %v4226_v21  ;;  %v15708_v8 = vunpack.c.l.b16 %v9051_v22  ;;  %v9600_v32 = vrot.slane %v15641_v15, 3  ;;  %v9602_v33 = vrot.slane %v15643_v17, 2  ;;  %v9604_v34 = vrot.slane %v15645_v18, 1 }
 0x144   : > { %14200 = vmatpush3.bf16.msra.mxu1 %v15356_v56  ;;  %v9597_v14 = vsel %vm1388_vm2, %v9596_v29, %v9595_v27  ;;  %v9606_v19 = vrot.slane %v9525_v59, 7  ;;  %v9608_v23 = vrot.slane %v9526_v62, 6  ;;  %v9610_v10 = vrot.slane %v9527_v2, 5  ;;  %v14501_v56 = vld [vmem:[%s16748_s1 + $0xd0] sm:$0xff]  }
 0x145   : > { %v9599_v13 = vsel %vm1391_vm3, %v9598_v31, %v9597_v14  ;;  %v9612_v28 = vrot.slane %v15693_v12, 4  ;;  %v9614_v35 = vrot.slane %v15700_v24, 3  ;;  %v9616_v15 = vrot.slane %v15703_v26, 2  ;;  %14201 = vmatprep.subr.bf16.mxu1 %v14499_v20 }
 0x146   : > { %v9601_v17 = vsel %vm1394_vm4, %v9600_v32, %v9599_v13  ;;  %v9607_v18 = vsel %vm1382_vm0, %v9606_v19, %v9524_v57  ;;  %v9618_v36 = vrot.slane %v15708_v8, 1  ;;  %v4169_v30 = vrot.slane %v9526_v62, 7  ;;  %v13032_v45 = vld.sshfl [vmem:[%s14628_s20 + $0x5c] sm:$0x1 pattern:$0x75316420] }
 0x147   : > { %v9603_v37 = vsel %vm1397_vm5, %v9602_v33, %v9601_v17  ;;  %v9609_v38 = vsel %vm1385_vm1, %v9608_v23, %v9607_v18  ;;  %v3712_v41 = vrot.slane %v13030_v9, %v14648_v25  ;;  %v4171_v42 = vrot.slane %v9527_v2, 6  ;;  %v13033_v50 = vld.sshfl [vmem:[%s14628_s20 + $0x5d] sm:$0x1 pattern:$0x75316420]  ;;  %v14502_v32 = vld [vmem:[%s16748_s1 + $0x1d0] sm:$0xff]  }
 0x148   : > { %v9605_v43 = vsel %vm1400_vm6, %v9604_v34, %v9603_v37  ;;  %v9611_v44 = vsel %vm1388_vm2, %v9610_v10, %v9609_v38  ;;  %14202 = vmatpush3.bf16.msra.mxu1 %v14499_v20  ;;  %v3726_v46 = vrot.slane %v13031_v40, %v14648_v25  ;;  %v4170_v47 = vsel %vm1382_vm0, %v4169_v30, %v9525_v59  ;;  %v13034_v48 = vld.sshfl [vmem:[%s14628_s20 + $0x5e] sm:$0x1 pattern:$0x75316420]  ;;  %v14505_v59 = vld [vmem:[%s16748_s1 + $0xe0] sm:$0xff]  }
 0x149   : > { %v9613_v49 = vsel %vm1391_vm3, %v9612_v28, %v9611_v44  ;;  %14203 = vmatprep.subr.bf16.mxu1 %v14501_v56  ;;  %v3740_v51 = vrot.slane %v13032_v45, %v14648_v25  ;;  %v4088_v52 = vunpack.c.l.b16 %v3712_v41  ;;  %v4172_v53 = vsel %vm1385_vm1, %v4171_v42, %v4170_v47  ;;  %v13035_v62 = vld.sshfl [vmem:[%s14628_s20 + $0x5f] sm:$0x1 pattern:$0x75316420] }
 0x14a   : > { %v9615_v54 = vsel %vm1394_vm4, %v9614_v35, %v9613_v49  ;;  %v3754_v55 = vrot.slane %v13033_v50, %v14648_v25  ;;  %v15745_v57 = vunpack.c.l.b16 %v3726_v46  ;;  %v4173_v58 = vrot.slane %v15693_v12, 5  ;;  %v13036_v4 = vld.sshfl [vmem:[%s14628_s20 + $0x60] sm:$0x1 pattern:$0x75316420]  ;;  %v14507_v35 = vld [vmem:[%s16748_s1 + $0xe8] sm:$0xff]  }
 0x14b   : > { %v9617_v60 = vsel %vm1397_vm5, %v9616_v15, %v9615_v54  ;;  %v3768_v63 = vrot.slane %v13034_v48, %v14648_v25  ;;  %v15757_v0 = vunpack.c.l.b16 %v3740_v51  ;;  %v4175_v1 = vrot.slane %v15700_v24, 4  ;;  %v13037_v16 = vld.sshfl [vmem:[%s14628_s20 + $0x61] sm:$0x1 pattern:$0x75316420]  ;;  %v14509_v51 = vld [vmem:[%s16748_s1 + $0xf0] sm:$0xff]  }
 0x14c   : > { %v9619_v2 = vsel %vm1400_vm6, %v9618_v36, %v9617_v60  ;;  %14204 = vmatpush3.bf16.msra.mxu1 %v14501_v56  ;;  %v3782_v5 = vrot.slane %v13035_v62, %v14648_v25  ;;  %v15763_v7 = vunpack.c.l.b16 %v3754_v55  ;;  %v4174_v11 = vsel %vm1388_vm2, %v4173_v58, %v4172_v53  ;;  %v13038_v24 = vld.sshfl [vmem:[%s14628_s20 + $0x62] sm:$0x1 pattern:$0x75316420] }
 0x14d   : > { %v9677_v12 = vpack.c.b16 %v9619_v2, %v9605_v43  ;;  %14205 = vmatprep.subr.bf16.mxu1 %v14503_v39  ;;  %v3796_v20 = vrot.slane %v13036_v4, %v14648_v25  ;;  %v15768_v21 = vunpack.c.l.b16 %v3768_v63  ;;  %v4176_v22 = vsel %vm1391_vm3, %v4175_v1, %v4174_v11  ;;  %v13631_v23 = vld.sshfl [vmem:[%s14628_s20 + $0x5a] sm:$0x1 pattern:$0x75316420] }
 0x14e   : > { %v3810_v3 = vrot.slane %v13037_v16, %v14648_v25  ;;  %v15773_v27 = vunpack.c.l.b16 %v3782_v5  ;;  %v4177_v29 = vrot.slane %v15703_v26, 3  ;;  %v4179_v31 = vrot.slane %v15708_v8, 2  ;;  %v13639_v28 = vld.sshfl [vmem:[%s14628_s20 + $0x6c] sm:$0x1 pattern:$0x75316420] }
 0x14f   : > { %14288 = vmatmul.mubr.bf16.vlgmr.msra.gmra.mrb[0].mxu0 %v9677_v12  ;;  %v3824_v33 = vrot.slane %v13038_v24, %v14648_v25  ;;  %v15781_v34 = vunpack.c.l.b16 %v3796_v20  ;;  %v4181_v14 = vrot.slane %v4088_v52, 1  ;;  %v4183_v19 = vrot.slane %v15757_v0, 7  ;;  %v13640_v18 = vld.sshfl [vmem:[%s14628_s20 + $0x6d] sm:$0x1 pattern:$0x75316420] }
 0x150   : > { %14296 = vmatpush3.bf16.msra.mxu0 %v15414_v6  ;;  %14206 = vmatpush3.bf16.msra.mxu1 %v14503_v39  ;;  %v15786_v26 = vunpack.c.l.b16 %v3810_v3  ;;  %v4178_v8 = vsel %vm1394_vm4, %v4177_v29, %v4176_v22  ;;  %v4185_v10 = vrot.slane %v15763_v7, 6  ;;  %v4187_v13 = vrot.slane %v15768_v21, 5  ;;  %v13641_v38 = vld.sshfl [vmem:[%s14628_s20 + $0x6e] sm:$0x1 pattern:$0x75316420] }
 0x151   : > { %14297 = vmatprep.subr.bf16.mxu0 %v14500_v61  ;;  %14207 = vmatprep.subr.bf16.mxu1 %v14505_v59  ;;  %v4096_v15 = vunpack.c.l.b16 %v3824_v33  ;;  %v4180_v6 = vsel %vm1397_vm5, %v4179_v31, %v4178_v8  ;;  %v4184_v56 = vsel %vm1382_vm0, %v4183_v19, %v15745_v57  ;;  %v4189_v17 = vrot.slane %v15773_v27, 4  ;;  %v14504_v39 = vld [vmem:[%s16748_s1 + $0x1d8] sm:$0xff]   ;;  %v13642_v42 = vld.sshfl [vmem:[%s14628_s20 + $0x6f] sm:$0x1 pattern:$0x75316420] }
 0x152   : > { %v4182_v36 = vsel %vm1400_vm6, %v4181_v14, %v4180_v6  ;;  %v4186_v9 = vsel %vm1385_vm1, %v4185_v10, %v4184_v56  ;;  %v4191_v30 = vrot.slane %v15781_v34, 3  ;;  %v4193_v37 = vrot.slane %v15786_v26, 2  ;;  %v13643_v46 = vld.sshfl [vmem:[%s14628_s20 + $0x70] sm:$0x1 pattern:$0x75316420] }
 0x153   : > { %v4188_v40 = vsel %vm1388_vm2, %v4187_v13, %v4186_v9  ;;  %v4195_v41 = vrot.slane %v4096_v15, 1  ;;  %v9065_v43 = vrot.slane %v13631_v23, %v14648_v25  ;;  %v9177_v44 = vrot.slane %v13639_v28, %v14648_v25  ;;  %v13644_v53 = vld.sshfl [vmem:[%s14628_s20 + $0x71] sm:$0x1 pattern:$0x75316420]  ;;  %v14506_v5 = vld [vmem:[%s16748_s1 + $0x1e0] sm:$0xff]  }
 0x154   : > { %14298 = vmatpush3.bf16.msra.mxu0 %v14500_v61  ;;  %14208 = vmatpush3.bf16.msra.mxu1 %v14505_v59  ;;  %v4190_v45 = vsel %vm1391_vm3, %v4189_v17, %v4188_v40  ;;  %v9191_v47 = vrot.slane %v13640_v18, %v14648_v25  ;;  %v9205_v49 = vrot.slane %v13641_v38, %v14648_v25  ;;  %v9620_v50 = vrot.slane %v15745_v57, 7  ;;  %v13645_v60 = vld.sshfl [vmem:[%s14628_s20 + $0x72] sm:$0x1 pattern:$0x75316420]  ;;  %v14511_v22 = vld [vmem:[%s16748_s1 + $0xf8] sm:$0xff]  }
 0x155   : > { %14299 = vmatprep.subr.bf16.mxu0 %v14502_v32  ;;  %14209 = vmatprep.subr.bf16.mxu1 %v14507_v35  ;;  %v4192_v52 = vsel %vm1394_vm4, %v4191_v30, %v4190_v45  ;;  %v9219_v54 = vrot.slane %v13642_v42, %v14648_v25  ;;  %v9233_v48 = vrot.slane %v13643_v46, %v14648_v25  ;;  %v9532_v55 = vunpack.c.l.b16 %v9065_v43  ;;  %v13646_v63 = vld.sshfl [vmem:[%s14628_s20 + $0x73] sm:$0x1 pattern:$0x75316420]  ;;  %v14508_v10 = vld [vmem:[%s16748_s1 + $0x1e8] sm:$0xff]  }
 0x156   : > { %v4194_v58 = vsel %vm1397_vm5, %v4193_v37, %v4192_v52  ;;  %v9247_v61 = vrot.slane %v13644_v53, %v14648_v25  ;;  %v9540_v57 = vunpack.c.l.b16 %v9177_v44  ;;  %v15827_v59 = vunpack.c.l.b16 %v9191_v47  ;;  %v13047_v33 = vld.sshfl [vmem:[%s14628_s20 + $0x7f] sm:$0x1 pattern:$0x75316420]  ;;  %v14510_v44 = vld [vmem:[%s16748_s1 + $0x1f0] sm:$0xff]  }
 0x157   : > { %v4196_v62 = vsel %vm1400_vm6, %v4195_v41, %v4194_v58  ;;  %v9261_v1 = vrot.slane %v13645_v60, %v14648_v25  ;;  %v15832_v2 = vunpack.c.l.b16 %v9205_v49  ;;  %v15834_v4 = vunpack.c.l.b16 %v9219_v54  ;;  %v13048_v18 = vld.sshfl [vmem:[%s14628_s20 + $0x80] sm:$0x1 pattern:$0x75316420] }
 0x158   : > { %14300 = vmatpush3.bf16.msra.mxu0 %v14502_v32  ;;  %14210 = vmatpush3.bf16.msra.mxu1 %v14507_v35  ;;  %v4227_v11 = vpack.c.b16 %v4196_v62, %v4182_v36  ;;  %v9275_v12 = vrot.slane %v13646_v63, %v14648_v25  ;;  %v15840_v16 = vunpack.c.l.b16 %v9233_v48  ;;  %v15842_v20 = vunpack.c.l.b16 %v9247_v61  ;;  %v13046_v32 = vld.sshfl [vmem:[%s14628_s20 + $0x74] sm:$0x1 pattern:$0x75316420] }
 0x159   : > { %14301 = vmatprep.subr.bf16.mxu0 %v14504_v39  ;;  %v15847_v24 = vunpack.c.l.b16 %v9261_v1  ;;  %v9621_v3 = vsel %vm1382_vm0, %v9620_v50, %v9532_v55  ;;  %v9622_v29 = vrot.slane %v15757_v0, 6  ;;  %v9624_v31 = vrot.slane %v15763_v7, 5  ;;  %14211 = vmatprep.subr.bf16.mxu1 %v14509_v51  ;;  %v13049_v30 = vld.sshfl [vmem:[%s14628_s20 + $0x81] sm:$0x1 pattern:$0x75316420] }
 0x15a   : > { %14195 = vmatprep.mubr.bf16.mxu1 %v4227_v11  ;;  %v15854_v14 = vunpack.c.l.b16 %v9275_v12  ;;  %v9626_v19 = vrot.slane %v15768_v21, 4  ;;  %v9628_v23 = vrot.slane %v15773_v27, 3  ;;  %v9630_v8 = vrot.slane %v15781_v34, 2 }
 0x15b   : > { %v9623_v0 = vsel %vm1385_vm1, %v9622_v29, %v9621_v3  ;;  %v9632_v7 = vrot.slane %v15786_v26, 1  ;;  %v9634_v13 = vrot.slane %v15827_v59, 7  ;;  %v9636_v28 = vrot.slane %v15832_v2, 6  ;;  %v15873_v26 = vld [vmem:[%s16748_s1 + $0x200] sm:$0xff]  }
 0x15c   : > { %14302 = vmatpush3.bf16.msra.mxu0 %v14504_v39  ;;  %v9625_v21 = vsel %vm1388_vm2, %v9624_v31, %v9623_v0  ;;  %v9638_v27 = vrot.slane %v15834_v4, 5  ;;  %v9640_v34 = vrot.slane %v15840_v16, 4  ;;  %v9642_v35 = vrot.slane %v15842_v20, 3  ;;  %14212 = vmatpush3.bf16.msra.mxu1 %v14509_v51  ;;  %v14512_v31 = vld [vmem:[%s16748_s1 + $0x1f8] sm:$0xff]  }
 0x15d   : > { %14303 = vmatprep.subr.bf16.mxu0 %v14506_v5  ;;  %v9627_v15 = vsel %vm1391_vm3, %v9626_v19, %v9625_v21  ;;  %v9635_v6 = vsel %vm1382_vm0, %v9634_v13, %v9540_v57  ;;  %v9644_v56 = vrot.slane %v15847_v24, 2  ;;  %v9646_v17 = vrot.slane %v15854_v14, 1  ;;  %14213 = vmatprep.subr.bf16.mxu1 %v14511_v22  ;;  %v13050_v41 = vld.sshfl [vmem:[%s14628_s20 + $0x82] sm:$0x1 pattern:$0x75316420] }
 0x15e   : > { %v9629_v36 = vsel %vm1394_vm4, %v9628_v23, %v9627_v15  ;;  %v9637_v9 = vsel %vm1385_vm1, %v9636_v28, %v9635_v6  ;;  %v3936_v37 = vrot.slane %v13046_v32, %v14648_v25  ;;  %v3950_v38 = vrot.slane %v13047_v33, %v14648_v25  ;;  %v13051_v47 = vld.sshfl [vmem:[%s14628_s20 + $0x83] sm:$0x1 pattern:$0x75316420] }
 0x15f   : > { %v9631_v39 = vsel %vm1397_vm5, %v9630_v8, %v9629_v36  ;;  %v9639_v40 = vsel %vm1388_vm2, %v9638_v27, %v9637_v9  ;;  %v3964_v42 = vrot.slane %v13048_v18, %v14648_v25  ;;  %v3978_v43 = vrot.slane %v13049_v30, %v14648_v25  ;;  %v13052_v52 = vld.sshfl [vmem:[%s14628_s20 + $0x84] sm:$0x1 pattern:$0x75316420] }
 0x160   : > { %14304 = vmatpush3.bf16.msra.mxu0 %v14506_v5  ;;  %v9633_v45 = vsel %vm1400_vm6, %v9632_v7, %v9631_v39  ;;  %v9641_v46 = vsel %vm1391_vm3, %v9640_v34, %v9639_v40  ;;  %v3992_v49 = vrot.slane %v13050_v41, %v14648_v25  ;;  %v4104_v50 = vunpack.c.l.b16 %v3936_v37  ;;  %14214 = vmatpush3.bf16.msra.mxu1 %v14511_v22  ;;  %v13053_v58 = vld.sshfl [vmem:[%s14628_s20 + $0x85] sm:$0x1 pattern:$0x75316420] }
 0x161   : > { %14305 = vmatprep.subr.bf16.mxu0 %v14508_v10  ;;  %v9643_v51 = vsel %vm1394_vm4, %v9642_v35, %v9641_v46  ;;  %v4006_v53 = vrot.slane %v13051_v47, %v14648_v25  ;;  %v15900_v54 = vunpack.c.l.b16 %v3950_v38  ;;  %v15902_v48 = vunpack.c.l.b16 %v3964_v42  ;;  %14343 = vmatprep.subr.bf16.mxu1 %v15873_v26  ;;  %v13054_v63 = vld.sshfl [vmem:[%s14628_s20 + $0x86] sm:$0x1 pattern:$0x75316420] }
 0x162   : > { %v9645_v55 = vsel %vm1397_vm5, %v9644_v56, %v9643_v51  ;;  %v4020_v60 = vrot.slane %v13052_v52, %v14648_v25  ;;  %v15908_v61 = vunpack.c.l.b16 %v3978_v43  ;;  %v15910_v57 = vunpack.c.l.b16 %v3992_v49  ;;  %v13647_v23 = vld.sshfl [vmem:[%s14628_s20 + $0x7e] sm:$0x1 pattern:$0x75316420] }
 0x163   : > { %v9647_v62 = vsel %vm1400_vm6, %v9646_v17, %v9645_v55  ;;  %v4034_v1 = vrot.slane %v13053_v58, %v14648_v25  ;;  %v15915_v5 = vunpack.c.l.b16 %v4006_v53  ;;  %v4197_v11 = vrot.slane %v15832_v2, 7  ;;  %v13655_v8 = vld.sshfl [vmem:[%s14628_s20 + $0x90] sm:$0x1 pattern:$0x75316420] }
 0x164   : > { %14306 = vmatpush3.bf16.msra.mxu0 %v14508_v10  ;;  %v9678_v12 = vpack.c.b16 %v9647_v62, %v9633_v45  ;;  %v4048_v22 = vrot.slane %v13054_v63, %v14648_v25  ;;  %v15919_v3 = vunpack.c.l.b16 %v4020_v60  ;;  %v4199_v29 = vrot.slane %v15834_v4, 6  ;;  %v13656_v13 = vld.sshfl [vmem:[%s14628_s20 + $0x91] sm:$0x1 pattern:$0x75316420] }
 0x165   : > { %v15925_v32 = vunpack.c.l.b16 %v4034_v1  ;;  %v4198_v33 = vsel %vm1382_vm0, %v4197_v11, %v15827_v59  ;;  %v4201_v2 = vrot.slane %v15840_v16, 5  ;;  %v4203_v19 = vrot.slane %v15842_v20, 4  ;;  %14307 = vmatprep.subr.bf16.mxu0 %v14510_v44  ;;  %v13657_v56 = vld.sshfl [vmem:[%s14628_s20 + $0x92] sm:$0x1 pattern:$0x75316420] }
 0x166   : > { %14291 = vmatprep.mubr.bf16.mxu0 %v9678_v12  ;;  %v4112_v10 = vunpack.c.l.b16 %v4048_v22  ;;  %v4200_v4 = vsel %vm1385_vm1, %v4199_v29, %v4198_v33  ;;  %v4205_v0 = vrot.slane %v15847_v24, 3  ;;  %v4207_v7 = vrot.slane %v15854_v14, 2  ;;  %v13658_v36 = vld.sshfl [vmem:[%s14628_s20 + $0x93] sm:$0x1 pattern:$0x75316420] }
 0x167   : > { %v4202_v28 = vsel %vm1388_vm2, %v4201_v2, %v4200_v4  ;;  %v4209_v59 = vrot.slane %v4104_v50, 1  ;;  %v4211_v16 = vrot.slane %v15902_v48, 7  ;;  %v4213_v20 = vrot.slane %v15908_v61, 6 }
 0x168   : > { %v4204_v21 = vsel %vm1391_vm3, %v4203_v19, %v4202_v28  ;;  %v4215_v27 = vrot.slane %v15910_v57, 5  ;;  %v4217_v34 = vrot.slane %v15915_v5, 4  ;;  %v4219_v24 = vrot.slane %v15919_v3, 3  ;;  %14308 = vmatpush3.bf16.msra.mxu0 %v14510_v44 }
 0x169   : > { %v4206_v14 = vsel %vm1394_vm4, %v4205_v0, %v4204_v21  ;;  %v4212_v35 = vsel %vm1382_vm0, %v4211_v16, %v15900_v54  ;;  %v4221_v15 = vrot.slane %v15925_v32, 2  ;;  %v4223_v6 = vrot.slane %v4112_v10, 1  ;;  %14309 = vmatprep.subr.bf16.mxu0 %v14512_v31  ;;  %v13659_v39 = vld.sshfl [vmem:[%s14628_s20 + $0x94] sm:$0x1 pattern:$0x75316420] }
 0x16a   : > { %v4208_v17 = vsel %vm1397_vm5, %v4207_v7, %v4206_v14  ;;  %v4214_v18 = vsel %vm1385_vm1, %v4213_v20, %v4212_v35  ;;  %v9289_v9 = vrot.slane %v13647_v23, %v14648_v25  ;;  %v9401_v30 = vrot.slane %v13655_v8, %v14648_v25  ;;  %v13660_v43 = vld.sshfl [vmem:[%s14628_s20 + $0x95] sm:$0x1 pattern:$0x75316420] }
 0x16b   : > { %v4210_v37 = vsel %vm1400_vm6, %v4209_v59, %v4208_v17  ;;  %v4216_v38 = vsel %vm1388_vm2, %v4215_v27, %v4214_v18  ;;  %v9415_v40 = vrot.slane %v13656_v13, %v14648_v25  ;;  %v9429_v41 = vrot.slane %v13657_v56, %v14648_v25  ;;  %v13661_v49 = vld.sshfl [vmem:[%s14628_s20 + $0x96] sm:$0x1 pattern:$0x75316420] }
 0x16c   : > { %v4218_v42 = vsel %vm1391_vm3, %v4217_v34, %v4216_v38  ;;  %v9443_v44 = vrot.slane %v13658_v36, %v14648_v25  ;;  %v9457_v45 = vrot.slane %v13659_v39, %v14648_v25  ;;  %v9548_v46 = vunpack.c.l.b16 %v9289_v9  ;;  %14310 = vmatpush3.bf16.msra.mxu0 %v14512_v31  ;;  %v13662_v55 = vld.sshfl [vmem:[%s14628_s20 + $0x97] sm:$0x1 pattern:$0x75316420] }
 0x16d   : > { %v4220_v47 = vsel %vm1394_vm4, %v4219_v24, %v4218_v42  ;;  %v9471_v50 = vrot.slane %v13660_v43, %v14648_v25  ;;  %v9556_v51 = vunpack.c.l.b16 %v9401_v30  ;;  %v9557_v52 = vunpack.c.l.b16 %v9415_v40  ;;  %14319 = vmatprep.subr.bf16.mxu0 %v15873_v26  ;;  %v13143_v2 = vld.sshfl [vmem:[%s14628_s20 + $0x9] sm:$0x1 pattern:$0x75316420] }
 0x16e   : > { %v4222_v53 = vsel %vm1397_vm5, %v4221_v15, %v4220_v47  ;;  %v9485_v58 = vrot.slane %v13661_v49, %v14648_v25  ;;  %v9558_v60 = vunpack.c.l.b16 %v9429_v41  ;;  %v9559_v62 = vunpack.c.l.b16 %v9443_v44  ;;  %v13144_v4 = vld.sshfl [vmem:[%s14628_s20 + $0xa] sm:$0x1 pattern:$0x75316420] }
 0x16f   : > { %v4224_v63 = vsel %vm1400_vm6, %v4223_v6, %v4222_v53  ;;  %v9499_v1 = vrot.slane %v13662_v55, %v14648_v25  ;;  %v9560_v11 = vunpack.c.l.b16 %v9457_v45  ;;  %v9561_v12 = vunpack.c.l.b16 %v9471_v50  ;;  %v13145_v21 = vld.sshfl [vmem:[%s14628_s20 + $0xb] sm:$0x1 pattern:$0x75316420] }
 0x170   : > { %v4228_v22 = vpack.c.b16 %v4224_v63, %v4210_v37  ;;  %v9562_v29 = vunpack.c.l.b16 %v9485_v58  ;;  %v9648_v31 = vrot.slane %v15900_v54, 7  ;;  %v9650_v33 = vrot.slane %v15902_v48, 6  ;;  %v13146_v34 = vld.sshfl [vmem:[%s14628_s20 + $0xc] sm:$0x1 pattern:$0x75316420] }
 0x171   : > { %v9563_v19 = vunpack.c.l.b16 %v9499_v1  ;;  %v9652_v23 = vrot.slane %v15908_v61, 5  ;;  %v9654_v8 = vrot.slane %v15910_v57, 4  ;;  %v9656_v10 = vrot.slane %v15915_v5, 3 }
 0x172   : > { %14196 = vmatmul.mubr.bf16.gmra.mrb[4].mxu1 %v4228_v22  ;;  %v9649_v0 = vsel %vm1382_vm0, %v9648_v31, %v9548_v46  ;;  %v9658_v7 = vrot.slane %v15919_v3, 2  ;;  %v9660_v54 = vrot.slane %v15925_v32, 1  ;;  %v9662_v13 = vrot.slane %v9557_v52, 7 }
 0x173   : > { %v9651_v48 = vsel %vm1385_vm1, %v9650_v33, %v9649_v0  ;;  %v9664_v28 = vrot.slane %v9558_v60, 6  ;;  %v9666_v61 = vrot.slane %v9559_v62, 5  ;;  %v9668_v59 = vrot.slane %v9560_v11, 4 }
 0x174   : > { %v9653_v57 = vsel %vm1388_vm2, %v9652_v23, %v9651_v48  ;;  %v9663_v5 = vsel %vm1382_vm0, %v9662_v13, %v9556_v51  ;;  %v9670_v16 = vrot.slane %v9561_v12, 3  ;;  %v9672_v20 = vrot.slane %v9562_v29, 2  ;;  %v13147_v15 = vld.sshfl [vmem:[%s14628_s20 + $0xd] sm:$0x1 pattern:$0x75316420] }
 0x175   : > { %v9655_v27 = vsel %vm1391_vm3, %v9654_v8, %v9653_v57  ;;  %v9665_v3 = vsel %vm1385_vm1, %v9664_v28, %v9663_v5  ;;  %v9674_v32 = vrot.slane %v9563_v19, 1  ;;  %v4529_v24 = vrot.slane %v13143_v2, %v14648_v25  ;;  %v13148_v36 = vld.sshfl [vmem:[%s14628_s20 + $0xe] sm:$0x1 pattern:$0x75316420] }
 0x176   : > { %v9657_v14 = vsel %vm1394_vm4, %v9656_v10, %v9655_v27  ;;  %v9667_v35 = vsel %vm1388_vm2, %v9666_v61, %v9665_v3  ;;  %v4543_v6 = vrot.slane %v13144_v4, %v14648_v25  ;;  %v4557_v56 = vrot.slane %v13145_v21, %v14648_v25  ;;  %v13149_v39 = vld.sshfl [vmem:[%s14628_s20 + $0xf] sm:$0x1 pattern:$0x75316420] }
 0x177   : > { %v9659_v17 = vsel %vm1397_vm5, %v9658_v7, %v9657_v14  ;;  %v9669_v18 = vsel %vm1391_vm3, %v9668_v59, %v9667_v35  ;;  %v4571_v9 = vrot.slane %v13146_v34, %v14648_v25  ;;  %v4585_v30 = vrot.slane %v13147_v15, %v14648_v25  ;;  %v13150_v43 = vld.sshfl [vmem:[%s14628_s20 + $0x10] sm:$0x1 pattern:$0x75316420] }
 0x178   : > { %v9661_v37 = vsel %vm1400_vm6, %v9660_v54, %v9659_v17  ;;  %v9671_v38 = vsel %vm1394_vm4, %v9670_v16, %v9669_v18  ;;  %v4599_v40 = vrot.slane %v13148_v36, %v14648_v25  ;;  %v5412_v41 = vunpack.c.l.b16 %v4529_v24  ;;  %v13151_v49 = vld.sshfl [vmem:[%s14628_s20 + $0x1b] sm:$0x1 pattern:$0x75316420] }
 0x179   : > { %v9673_v42 = vsel %vm1397_vm5, %v9672_v20, %v9671_v38  ;;  %v4613_v44 = vrot.slane %v13149_v39, %v14648_v25  ;;  %v5413_v45 = vunpack.c.l.b16 %v4543_v6  ;;  %v5414_v46 = vunpack.c.l.b16 %v4557_v56  ;;  %v13152_v55 = vld.sshfl [vmem:[%s14628_s20 + $0x1c] sm:$0x1 pattern:$0x75316420] }
 0x17a   : > { %v9675_v47 = vsel %vm1400_vm6, %v9674_v32, %v9673_v42  ;;  %v4627_v50 = vrot.slane %v13150_v43, %v14648_v25  ;;  %v5415_v51 = vunpack.c.l.b16 %v4571_v9  ;;  %v5416_v52 = vunpack.c.l.b16 %v4585_v30  ;;  %v13153_v63 = vld.sshfl [vmem:[%s14628_s20 + $0x1d] sm:$0x1 pattern:$0x75316420] }
 0x17b   : > { %v9679_v53 = vpack.c.b16 %v9675_v47, %v9661_v37  ;;  %v4641_v58 = vrot.slane %v13151_v49, %v14648_v25  ;;  %v5417_v60 = vunpack.c.l.b16 %v4599_v40  ;;  %v5418_v62 = vunpack.c.l.b16 %v4613_v44  ;;  %v13154_v29 = vld.sshfl [vmem:[%s14628_s20 + $0x1e] sm:$0x1 pattern:$0x75316420] }
 0x17c   : > { %v4655_v1 = vrot.slane %v13152_v55, %v14648_v25  ;;  %v5419_v11 = vunpack.c.l.b16 %v4627_v50  ;;  %v5476_v12 = vrot.slane %v5413_v45, 7  ;;  %v5478_v22 = vrot.slane %v5414_v46, 6  ;;  %v13155_v23 = vld.sshfl [vmem:[%s14628_s20 + $0x1f] sm:$0x1 pattern:$0x75316420] }
 0x17d   : > { %14292 = vmatmul.mubr.bf16.gmra.mrb[4].mxu0 %v9679_v53  ;;  %v4669_v31 = vrot.slane %v13153_v63, %v14648_v25  ;;  %v5420_v33 = vunpack.c.l.b16 %v4641_v58  ;;  %v5480_v2 = vrot.slane %v5415_v51, 5  ;;  %v5482_v19 = vrot.slane %v5416_v52, 4  ;;  %v13156_v7 = vld.sshfl [vmem:[%s14628_s20 + $0x20] sm:$0x1 pattern:$0x75316420] }
 0x17e   : > { %v4683_v8 = vrot.slane %v13154_v29, %v14648_v25  ;;  %v5421_v10 = vunpack.c.l.b16 %v4655_v1  ;;  %v5477_v4 = vsel %vm1382_vm0, %v5476_v12, %v5412_v41  ;;  %v5484_v0 = vrot.slane %v5417_v60, 3  ;;  %v13157_v61 = vld.sshfl [vmem:[%s14628_s20 + $0x21] sm:$0x1 pattern:$0x75316420] }
 0x17f   : > { %v4697_v54 = vrot.slane %v13155_v23, %v14648_v25  ;;  %v5422_v13 = vunpack.c.l.b16 %v4669_v31  ;;  %v5479_v48 = vsel %vm1385_vm1, %v5478_v22, %v5477_v4  ;;  %v5486_v28 = vrot.slane %v5418_v62, 2  ;;  %v13158_v20 = vld.sshfl [vmem:[%s14628_s20 + $0x22] sm:$0x1 pattern:$0x75316420] }
 0x180   : > { %v4711_v59 = vrot.slane %v13156_v7, %v14648_v25  ;;  %v5423_v57 = vunpack.c.l.b16 %v4683_v8  ;;  %v5481_v5 = vsel %vm1388_vm2, %v5480_v2, %v5479_v48  ;;  %v5488_v16 = vrot.slane %v5419_v11, 1  ;;  %v13751_v15 = vld.sshfl [vmem:[%s14628_s20 + $0x12] sm:$0x1 pattern:$0x75316420] }
 0x181   : > { %v4725_v21 = vrot.slane %v13157_v61, %v14648_v25  ;;  %v5424_v27 = vunpack.c.l.b16 %v4697_v54  ;;  %v5483_v3 = vsel %vm1391_vm3, %v5482_v19, %v5481_v5  ;;  %v5490_v32 = vrot.slane %v5421_v10, 7  ;;  %v13752_v36 = vld.sshfl [vmem:[%s14628_s20 + $0x13] sm:$0x1 pattern:$0x75316420] }
 0x182   : > { %v4739_v34 = vrot.slane %v13158_v20, %v14648_v25  ;;  %v5425_v24 = vunpack.c.l.b16 %v4711_v59  ;;  %v5485_v14 = vsel %vm1394_vm4, %v5484_v0, %v5483_v3  ;;  %v5492_v35 = vrot.slane %v5422_v13, 6  ;;  %v13753_v39 = vld.sshfl [vmem:[%s14628_s20 + $0x14] sm:$0x1 pattern:$0x75316420] }
 0x183   : > { %v5426_v6 = vunpack.c.l.b16 %v4725_v21  ;;  %v5487_v56 = vsel %vm1397_vm5, %v5486_v28, %v5485_v14  ;;  %v5491_v17 = vsel %vm1382_vm0, %v5490_v32, %v5420_v33  ;;  %v5494_v18 = vrot.slane %v5423_v57, 5  ;;  %v13754_v43 = vld.sshfl [vmem:[%s14628_s20 + $0x15] sm:$0x1 pattern:$0x75316420] }
 0x184   : > { %v5427_v9 = vunpack.c.l.b16 %v4739_v34  ;;  %v5489_v30 = vsel %vm1400_vm6, %v5488_v16, %v5487_v56  ;;  %v5493_v37 = vsel %vm1385_vm1, %v5492_v35, %v5491_v17  ;;  %v5496_v38 = vrot.slane %v5424_v27, 4  ;;  %v13755_v47 = vld.sshfl [vmem:[%s14628_s20 + $0x16] sm:$0x1 pattern:$0x75316420] }
 0x185   : > { %v5495_v40 = vsel %vm1388_vm2, %v5494_v18, %v5493_v37  ;;  %v5498_v41 = vrot.slane %v5425_v24, 3  ;;  %v5500_v42 = vrot.slane %v5426_v6, 2  ;;  %v9979_v44 = vrot.slane %v13751_v15, %v14648_v25  ;;  %v13756_v52 = vld.sshfl [vmem:[%s14628_s20 + $0x17] sm:$0x1 pattern:$0x75316420] }
 0x186   : > { %v5497_v45 = vsel %vm1391_vm3, %v5496_v38, %v5495_v40  ;;  %v5502_v46 = vrot.slane %v5427_v9, 1  ;;  %v9993_v49 = vrot.slane %v13752_v36, %v14648_v25  ;;  %v10007_v50 = vrot.slane %v13753_v39, %v14648_v25  ;;  %v13757_v62 = vld.sshfl [vmem:[%s14628_s20 + $0x18] sm:$0x1 pattern:$0x75316420] }
 0x187   : > { %v5499_v51 = vsel %vm1394_vm4, %v5498_v41, %v5497_v45  ;;  %v10021_v53 = vrot.slane %v13754_v43, %v14648_v25  ;;  %v10035_v55 = vrot.slane %v13755_v47, %v14648_v25  ;;  %v10862_v58 = vunpack.c.l.b16 %v9979_v44  ;;  %v13758_v22 = vld.sshfl [vmem:[%s14628_s20 + $0x19] sm:$0x1 pattern:$0x75316420] }
 0x188   : > { %v5501_v60 = vsel %vm1397_vm5, %v5500_v42, %v5499_v51  ;;  %v10049_v63 = vrot.slane %v13756_v52, %v14648_v25  ;;  %v10863_v1 = vunpack.c.l.b16 %v9993_v49  ;;  %v10864_v11 = vunpack.c.l.b16 %v10007_v50  ;;  %v13759_v19 = vld.sshfl [vmem:[%s14628_s20 + $0x24] sm:$0x1 pattern:$0x75316420] }
 0x189   : > { %v5503_v12 = vsel %vm1400_vm6, %v5502_v46, %v5501_v60  ;;  %v10063_v29 = vrot.slane %v13757_v62, %v14648_v25  ;;  %v10865_v31 = vunpack.c.l.b16 %v10021_v53  ;;  %v10866_v33 = vunpack.c.l.b16 %v10035_v55  ;;  %v13760_v4 = vld.sshfl [vmem:[%s14628_s20 + $0x25] sm:$0x1 pattern:$0x75316420] }
 0x18a   : > { %v5588_v2 = vpack.c.b16 %v5503_v12, %v5489_v30  ;;  %v10077_v23 = vrot.slane %v13758_v22, %v14648_v25  ;;  %v10867_v8 = vunpack.c.l.b16 %v10049_v63  ;;  %v10926_v10 = vrot.slane %v10862_v58, 1  ;;  %v13761_v48 = vld.sshfl [vmem:[%s14628_s20 + $0x26] sm:$0x1 pattern:$0x75316420] }
 0x18b   : > { %v10091_v0 = vrot.slane %v13759_v19, %v14648_v25  ;;  %v10868_v7 = vunpack.c.l.b16 %v10063_v29  ;;  %v10928_v54 = vrot.slane %v10864_v11, 7  ;;  %v10930_v13 = vrot.slane %v10865_v31, 6  ;;  %v13762_v5 = vld.sshfl [vmem:[%s14628_s20 + $0x27] sm:$0x1 pattern:$0x75316420] }
 0x18c   : > { %14215 = vmatprep.mubr.bf16.mxu1 %v5588_v2  ;;  %v10105_v28 = vrot.slane %v13760_v4, %v14648_v25  ;;  %v10869_v61 = vunpack.c.l.b16 %v10077_v23  ;;  %v10927_v59 = vsel %vm1382_vm0, %v10863_v1, %v10926_v10  ;;  %v10932_v57 = vrot.slane %v10866_v33, 5  ;;  %v13763_v3 = vld.sshfl [vmem:[%s14628_s20 + $0x28] sm:$0x1 pattern:$0x75316420] }
 0x18d   : > { %v10119_v16 = vrot.slane %v13761_v48, %v14648_v25  ;;  %v10870_v20 = vunpack.c.l.b16 %v10091_v0  ;;  %v10929_v21 = vsel %vm1385_vm1, %v10928_v54, %v10927_v59  ;;  %v10934_v27 = vrot.slane %v10867_v8, 4  ;;  %v13764_v35 = vld.sshfl [vmem:[%s14628_s20 + $0x29] sm:$0x1 pattern:$0x75316420] }
 0x18e   : > { %v10133_v32 = vrot.slane %v13762_v5, %v14648_v25  ;;  %v10871_v34 = vunpack.c.l.b16 %v10105_v28  ;;  %v10931_v24 = vsel %vm1388_vm2, %v10930_v13, %v10929_v21  ;;  %v10936_v14 = vrot.slane %v10868_v7, 3  ;;  %v13765_v17 = vld.sshfl [vmem:[%s14628_s20 + $0x2a] sm:$0x1 pattern:$0x75316420] }
 0x18f   : > { %v10147_v15 = vrot.slane %v13763_v3, %v14648_v25  ;;  %v10872_v6 = vunpack.c.l.b16 %v10119_v16  ;;  %v10933_v56 = vsel %vm1391_vm3, %v10932_v57, %v10931_v24  ;;  %v10161_v18 = vrot.slane %v13764_v35, %v14648_v25  ;;  %v13766_v37 = vld.sshfl [vmem:[%s14628_s20 + $0x2b] sm:$0x1 pattern:$0x75316420] }
 0x190   : > { %v10873_v36 = vunpack.c.l.b16 %v10133_v32  ;;  %v10935_v9 = vsel %vm1394_vm4, %v10934_v27, %v10933_v56  ;;  %v10940_v30 = vrot.slane %v10870_v20, 1  ;;  %v10175_v38 = vrot.slane %v13765_v17, %v14648_v25  ;;  %v13159_v46 = vld.sshfl [vmem:[%s14628_s20 + $0x2d] sm:$0x1 pattern:$0x75316420] }
 0x191   : > { %v10874_v39 = vunpack.c.l.b16 %v10147_v15  ;;  %v10938_v40 = vrot.slane %v10869_v61, 2  ;;  %v10942_v41 = vrot.slane %v10872_v6, 7  ;;  %v10189_v42 = vrot.slane %v13766_v37, %v14648_v25  ;;  %v13160_v52 = vld.sshfl [vmem:[%s14628_s20 + $0x2e] sm:$0x1 pattern:$0x75316420] }
 0x192   : > { %v10875_v43 = vunpack.c.l.b16 %v10161_v18  ;;  %v10937_v44 = vsel %vm1397_vm5, %v10936_v14, %v10935_v9  ;;  %v10941_v45 = vsel %vm1382_vm0, %v10871_v34, %v10940_v30  ;;  %v10876_v47 = vunpack.c.l.b16 %v10175_v38  ;;  %v13161_v58 = vld.sshfl [vmem:[%s14628_s20 + $0x2f] sm:$0x1 pattern:$0x75316420] }
 0x193   : > { %v10943_v49 = vsel %vm1385_vm1, %v10942_v41, %v10941_v45  ;;  %v10944_v50 = vrot.slane %v10873_v36, 6  ;;  %v10946_v51 = vrot.slane %v10874_v39, 5  ;;  %v10877_v53 = vunpack.c.l.b16 %v10189_v42  ;;  %v13162_v12 = vld.sshfl [vmem:[%s14628_s20 + $0x30] sm:$0x1 pattern:$0x75316420] }
 0x194   : > { %v10948_v55 = vrot.slane %v10875_v43, 4  ;;  %v4753_v60 = vrot.slane %v13159_v46, %v14648_v25  ;;  %v4767_v62 = vrot.slane %v13160_v52, %v14648_v25  ;;  %v10939_v63 = vsel %vm1400_vm6, %v10938_v40, %v10937_v44  ;;  %v13163_v33 = vld.sshfl [vmem:[%s14628_s20 + $0x31] sm:$0x1 pattern:$0x75316420] }
 0x195   : > { %v10945_v1 = vsel %vm1388_vm2, %v10944_v50, %v10943_v49  ;;  %v10950_v11 = vrot.slane %v10876_v47, 3  ;;  %v4781_v22 = vrot.slane %v13161_v58, %v14648_v25  ;;  %v10952_v31 = vrot.slane %v10877_v53, 2  ;;  %v13164_v8 = vld.sshfl [vmem:[%s14628_s20 + $0x32] sm:$0x1 pattern:$0x75316420] }
 0x196   : > { %v10947_v29 = vsel %vm1391_vm3, %v10946_v51, %v10945_v1  ;;  %v4795_v2 = vrot.slane %v13162_v12, %v14648_v25  ;;  %v5428_v19 = vunpack.c.l.b16 %v4753_v60  ;;  %v4809_v10 = vrot.slane %v13163_v33, %v14648_v25  ;;  %v13165_v54 = vld.sshfl [vmem:[%s14628_s20 + $0x33] sm:$0x1 pattern:$0x75316420] }
 0x197   : > { %v10949_v23 = vsel %vm1394_vm4, %v10948_v55, %v10947_v29  ;;  %v5429_v4 = vunpack.c.l.b16 %v4767_v62  ;;  %v5430_v0 = vunpack.c.l.b16 %v4781_v22  ;;  %v4823_v13 = vrot.slane %v13164_v8, %v14648_v25  ;;  %v13166_v61 = vld.sshfl [vmem:[%s14628_s20 + $0x34] sm:$0x1 pattern:$0x75316420] }
 0x198   : > { %v10951_v7 = vsel %vm1397_vm5, %v10950_v11, %v10949_v23  ;;  %v5431_v48 = vunpack.c.l.b16 %v4795_v2  ;;  %v4837_v59 = vrot.slane %v13165_v54, %v14648_v25  ;;  %v5432_v57 = vunpack.c.l.b16 %v4809_v10  ;;  %v13167_v20 = vld.sshfl [vmem:[%s14628_s20 + $0x3f] sm:$0x1 pattern:$0x75316420] }
 0x199   : > { %v10953_v28 = vsel %vm1400_vm6, %v10952_v31, %v10951_v7  ;;  %v5504_v5 = vrot.slane %v5429_v4, 7  ;;  %v4851_v21 = vrot.slane %v13166_v61, %v14648_v25  ;;  %v5433_v27 = vunpack.c.l.b16 %v4823_v13  ;;  %v13168_v32 = vld.sshfl [vmem:[%s14628_s20 + $0x40] sm:$0x1 pattern:$0x75316420] }
 0x19a   : > { %v11038_v16 = vpack.c.b16 %v10953_v28, %v10939_v63  ;;  %v5506_v3 = vrot.slane %v5430_v0, 6  ;;  %v4865_v34 = vrot.slane %v13167_v20, %v14648_v25  ;;  %v5434_v24 = vunpack.c.l.b16 %v4837_v59  ;;  %v13169_v15 = vld.sshfl [vmem:[%s14628_s20 + $0x41] sm:$0x1 pattern:$0x75316420] }
 0x19b   : > { %v5505_v14 = vsel %vm1382_vm0, %v5504_v5, %v5428_v19  ;;  %v5508_v35 = vrot.slane %v5431_v48, 5  ;;  %v4879_v6 = vrot.slane %v13168_v32, %v14648_v25  ;;  %v5435_v56 = vunpack.c.l.b16 %v4851_v21  ;;  %v13170_v36 = vld.sshfl [vmem:[%s14628_s20 + $0x42] sm:$0x1 pattern:$0x75316420] }
 0x19c   : > { %14311 = vmatprep.mubr.bf16.mxu0 %v11038_v16  ;;  %v5507_v17 = vsel %vm1385_vm1, %v5506_v3, %v5505_v14  ;;  %v5510_v18 = vrot.slane %v5432_v57, 4  ;;  %v4893_v9 = vrot.slane %v13169_v15, %v14648_v25  ;;  %v5436_v30 = vunpack.c.l.b16 %v4865_v34  ;;  %v13171_v39 = vld.sshfl [vmem:[%s14628_s20 + $0x43] sm:$0x1 pattern:$0x75316420] }
 0x19d   : > { %v5509_v37 = vsel %vm1388_vm2, %v5508_v35, %v5507_v17  ;;  %v5512_v38 = vrot.slane %v5433_v27, 3  ;;  %v4907_v40 = vrot.slane %v13170_v36, %v14648_v25  ;;  %v5437_v41 = vunpack.c.l.b16 %v4879_v6  ;;  %v13172_v44 = vld.sshfl [vmem:[%s14628_s20 + $0x44] sm:$0x1 pattern:$0x75316420] }
 0x19e   : > { %v5511_v42 = vsel %vm1391_vm3, %v5510_v18, %v5509_v37  ;;  %v5514_v43 = vrot.slane %v5434_v24, 2  ;;  %v4921_v45 = vrot.slane %v13171_v39, %v14648_v25  ;;  %v5438_v46 = vunpack.c.l.b16 %v4893_v9  ;;  %v13173_v50 = vld.sshfl [vmem:[%s14628_s20 + $0x45] sm:$0x1 pattern:$0x75316420] }
 0x19f   : > { %v5513_v47 = vsel %vm1394_vm4, %v5512_v38, %v5511_v42  ;;  %v5516_v49 = vrot.slane %v5435_v56, 1  ;;  %v4935_v51 = vrot.slane %v13172_v44, %v14648_v25  ;;  %v5439_v52 = vunpack.c.l.b16 %v4907_v40  ;;  %v13174_v58 = vld.sshfl [vmem:[%s14628_s20 + $0x46] sm:$0x1 pattern:$0x75316420] }
 0x1a0   : > { %v5515_v53 = vsel %vm1397_vm5, %v5514_v43, %v5513_v47  ;;  %v5518_v55 = vrot.slane %v5437_v41, 7  ;;  %v4949_v60 = vrot.slane %v13173_v50, %v14648_v25  ;;  %v5440_v62 = vunpack.c.l.b16 %v4921_v45  ;;  %v13767_v31 = vld.sshfl [vmem:[%s14628_s20 + $0x36] sm:$0x1 pattern:$0x75316420] }
 0x1a1   : > { %v5517_v63 = vsel %vm1400_vm6, %v5516_v49, %v5515_v53  ;;  %v5520_v1 = vrot.slane %v5438_v46, 6  ;;  %v4963_v11 = vrot.slane %v13174_v58, %v14648_v25  ;;  %v5441_v12 = vunpack.c.l.b16 %v4935_v51  ;;  %v13768_v23 = vld.sshfl [vmem:[%s14628_s20 + $0x37] sm:$0x1 pattern:$0x75316420] }
 0x1a2   : > { %v5519_v22 = vsel %vm1382_vm0, %v5518_v55, %v5436_v30  ;;  %v5522_v29 = vrot.slane %v5439_v52, 5  ;;  %v5442_v33 = vunpack.c.l.b16 %v4949_v60  ;;  %v5524_v19 = vrot.slane %v5440_v62, 4  ;;  %v13769_v7 = vld.sshfl [vmem:[%s14628_s20 + $0x38] sm:$0x1 pattern:$0x75316420] }
 0x1a3   : > { %v5521_v2 = vsel %vm1385_vm1, %v5520_v1, %v5519_v22  ;;  %v10203_v8 = vrot.slane %v13767_v31, %v14648_v25  ;;  %v5443_v10 = vunpack.c.l.b16 %v4963_v11  ;;  %v5526_v0 = vrot.slane %v5441_v12, 3  ;;  %v13770_v28 = vld.sshfl [vmem:[%s14628_s20 + $0x39] sm:$0x1 pattern:$0x75316420]  ;;  %v16150_v30 = vld [vmem:[%s16748_s1 + $0x208] sm:$0xff]  }
 0x1a4   : > { %v5523_v4 = vsel %vm1388_vm2, %v5522_v29, %v5521_v2  ;;  %v10217_v54 = vrot.slane %v13768_v23, %v14648_v25  ;;  %v5528_v48 = vrot.slane %v5442_v33, 2  ;;  %v10231_v61 = vrot.slane %v13769_v7, %v14648_v25  ;;  %v13771_v16 = vld.sshfl [vmem:[%s14628_s20 + $0x3a] sm:$0x1 pattern:$0x75316420]  ;;  %v16167_v60 = vld [vmem:[%s16748_s1 + $0x210] sm:$0xff]  }
 0x1a5   : > { %v5525_v13 = vsel %vm1391_vm3, %v5524_v19, %v5523_v4  ;;  %v10878_v59 = vunpack.c.l.b16 %v10203_v8  ;;  %v5530_v5 = vrot.slane %v5443_v10, 1  ;;  %v10245_v20 = vrot.slane %v13770_v28, %v14648_v25  ;;  %v13772_v3 = vld.sshfl [vmem:[%s14628_s20 + $0x3b] sm:$0x1 pattern:$0x75316420] }
 0x1a6   : > { %v5527_v57 = vsel %vm1394_vm4, %v5526_v0, %v5525_v13  ;;  %v10879_v21 = vunpack.c.l.b16 %v10217_v54  ;;  %v10259_v32 = vrot.slane %v13771_v16, %v14648_v25  ;;  %v10880_v34 = vunpack.c.l.b16 %v10231_v61  ;;  %v13773_v35 = vld.sshfl [vmem:[%s14628_s20 + $0x3c] sm:$0x1 pattern:$0x75316420] }
 0x1a7   : > { %v5529_v27 = vsel %vm1397_vm5, %v5528_v48, %v5527_v57  ;;  %v10954_v24 = vrot.slane %v10878_v59, 1  ;;  %v10273_v15 = vrot.slane %v13772_v3, %v14648_v25  ;;  %v10881_v6 = vunpack.c.l.b16 %v10245_v20  ;;  %v13774_v17 = vld.sshfl [vmem:[%s14628_s20 + $0x3d] sm:$0x1 pattern:$0x75316420] }
 0x1a8   : > { %v5531_v14 = vsel %vm1400_vm6, %v5530_v5, %v5529_v27  ;;  %v10287_v18 = vrot.slane %v13773_v35, %v14648_v25  ;;  %v10882_v36 = vunpack.c.l.b16 %v10259_v32  ;;  %v13775_v37 = vld.sshfl [vmem:[%s14628_s20 + $0x48] sm:$0x1 pattern:$0x75316420]  ;;  %v10301_v38 = vrot.slane %v13774_v17, %v14648_v25  ;;  %v16185_v54 = vld [vmem:[%s16748_s1 + $0x218] sm:$0xff]   ;;  %v16203_v17 = vld [vmem:[%s16748_s1 + $0x220] sm:$0xff]  }
 0x1a9   : > { %v5589_v56 = vpack.c.b16 %v5531_v14, %v5517_v63  ;;  %v10955_v9 = vsel %vm1382_vm0, %v10879_v21, %v10954_v24  ;;  %v10883_v39 = vunpack.c.l.b16 %v10273_v15  ;;  %v10956_v40 = vrot.slane %v10880_v34, 7  ;;  %v13776_v42 = vld.sshfl [vmem:[%s14628_s20 + $0x49] sm:$0x1 pattern:$0x75316420] }
 0x1aa   : > { %v10958_v41 = vrot.slane %v10881_v6, 6  ;;  %v10315_v43 = vrot.slane %v13775_v37, %v14648_v25  ;;  %v10884_v44 = vunpack.c.l.b16 %v10287_v18  ;;  %v10960_v45 = vrot.slane %v10882_v36, 5  ;;  %v13777_v46 = vld.sshfl [vmem:[%s14628_s20 + $0x4a] sm:$0x1 pattern:$0x75316420] }
 0x1ab   : > { %14216 = vmatmul.mubr.bf16.vlgmr.msra.gmra.mrb[0].mxu1 %v5589_v56  ;;  %v10329_v47 = vrot.slane %v13776_v42, %v14648_v25  ;;  %v10957_v49 = vsel %vm1385_vm1, %v10956_v40, %v10955_v9  ;;  %v10962_v50 = vrot.slane %v10883_v39, 4  ;;  %v13778_v51 = vld.sshfl [vmem:[%s14628_s20 + $0x4b] sm:$0x1 pattern:$0x75316420]  ;;  %v10343_v52 = vrot.slane %v13777_v46, %v14648_v25 }
 0x1ac   : > { %14351 = vmatpush3.bf16.msra.mxu1 %v15873_v26  ;;  %v10885_v53 = vunpack.c.l.b16 %v10301_v38  ;;  %v10886_v55 = vunpack.c.l.b16 %v10315_v43  ;;  %v10959_v58 = vsel %vm1388_vm2, %v10958_v41, %v10957_v49  ;;  %v13779_v62 = vld.sshfl [vmem:[%s14628_s20 + $0x4c] sm:$0x1 pattern:$0x75316420]  ;;  %v10357_v63 = vrot.slane %v13778_v51, %v14648_v25 }
 0x1ad   : > { %14344 = vmatprep.subr.bf16.mxu1 %v16150_v30  ;;  %v10887_v26 = vunpack.c.l.b16 %v10329_v47  ;;  %v10961_v1 = vsel %vm1391_vm3, %v10960_v45, %v10959_v58  ;;  %v13780_v11 = vld.sshfl [vmem:[%s14628_s20 + $0x4d] sm:$0x1 pattern:$0x75316420]  ;;  %v10371_v12 = vrot.slane %v13779_v62, %v14648_v25  ;;  %v10888_v22 = vunpack.c.l.b16 %v10343_v52 }
 0x1ae   : > { %v10964_v29 = vrot.slane %v10884_v44, 3  ;;  %v10968_v31 = vrot.slane %v10886_v55, 1  ;;  %v13781_v33 = vld.sshfl [vmem:[%s14628_s20 + $0x4e] sm:$0x1 pattern:$0x75316420]  ;;  %v10385_v2 = vrot.slane %v13780_v11, %v14648_v25  ;;  %v10889_v19 = vunpack.c.l.b16 %v10357_v63 }
 0x1af   : > { %v10963_v23 = vsel %vm1394_vm4, %v10962_v50, %v10961_v1  ;;  %v13782_v8 = vld.sshfl [vmem:[%s14628_s20 + $0x4f] sm:$0x1 pattern:$0x75316420]  ;;  %v10399_v10 = vrot.slane %v13781_v33, %v14648_v25  ;;  %v10890_v4 = vunpack.c.l.b16 %v10371_v12  ;;  %v10966_v0 = vrot.slane %v10885_v53, 2 }
 0x1b0   : > { %14352 = vmatpush3.bf16.msra.mxu1 %v16150_v30  ;;  %v10969_v7 = vsel %vm1382_vm0, %v10887_v26, %v10968_v31  ;;  %v10413_v13 = vrot.slane %v13782_v8, %v14648_v25  ;;  %v10891_v48 = vunpack.c.l.b16 %v10385_v2  ;;  %v10970_v28 = vrot.slane %v10888_v22, 7  ;;  %v13175_v59 = vld.sshfl [vmem:[%s14628_s20 + $0x51] sm:$0x1 pattern:$0x75316420]  ;;  %v16223_v58 = vld [vmem:[%s16748_s1 + $0x228] sm:$0xff]  }
 0x1b1   : > { %14345 = vmatprep.subr.bf16.mxu1 %v16167_v60  ;;  %v10972_v61 = vrot.slane %v10889_v19, 6  ;;  %v10892_v57 = vunpack.c.l.b16 %v10399_v10  ;;  %v10965_v5 = vsel %vm1397_vm5, %v10964_v29, %v10963_v23  ;;  %v10974_v16 = vrot.slane %v10890_v4, 5  ;;  %v13176_v20 = vld.sshfl [vmem:[%s14628_s20 + $0x52] sm:$0x1 pattern:$0x75316420] }
 0x1b2   : > { %v4977_v21 = vrot.slane %v13175_v59, %v14648_v25  ;;  %v10893_v27 = vunpack.c.l.b16 %v10413_v13  ;;  %v10971_v3 = vsel %vm1385_vm1, %v10970_v28, %v10969_v7  ;;  %v10976_v32 = vrot.slane %v10891_v48, 4  ;;  %v13177_v34 = vld.sshfl [vmem:[%s14628_s20 + $0x53] sm:$0x1 pattern:$0x75316420]  ;;  %v14523_v4 = vld [vmem:[%s16748_s1 + $0x200] sm:$0xff]  }
 0x1b3   : > { %v4991_v24 = vrot.slane %v13176_v20, %v14648_v25  ;;  %v10973_v14 = vsel %vm1388_vm2, %v10972_v61, %v10971_v3  ;;  %v10978_v35 = vrot.slane %v10892_v57, 3  ;;  %v13178_v15 = vld.sshfl [vmem:[%s14628_s20 + $0x54] sm:$0x1 pattern:$0x75316420]  ;;  %v5005_v6 = vrot.slane %v13177_v34, %v14648_v25 }
 0x1b4   : > { %14353 = vmatpush3.bf16.msra.mxu1 %v16167_v60  ;;  %v5444_v56 = vunpack.c.l.b16 %v4977_v21  ;;  %v10975_v18 = vsel %vm1391_vm3, %v10974_v16, %v10973_v14  ;;  %v10980_v36 = vrot.slane %v10893_v27, 2  ;;  %v13179_v9 = vld.sshfl [vmem:[%s14628_s20 + $0x55] sm:$0x1 pattern:$0x75316420]  ;;  %v5019_v37 = vrot.slane %v13178_v15, %v14648_v25 }
 0x1b5   : > { %14346 = vmatprep.subr.bf16.mxu1 %v16185_v54  ;;  %v5445_v38 = vunpack.c.l.b16 %v4991_v24  ;;  %v10967_v39 = vsel %vm1400_vm6, %v10966_v0, %v10965_v5  ;;  %v10977_v40 = vsel %vm1394_vm4, %v10976_v32, %v10975_v18  ;;  %v13180_v41 = vld.sshfl [vmem:[%s14628_s20 + $0x56] sm:$0x1 pattern:$0x75316420]  ;;  %v5033_v42 = vrot.slane %v13179_v9, %v14648_v25 }
 0x1b6   : > { %v5446_v43 = vunpack.c.l.b16 %v5005_v6  ;;  %v10979_v44 = vsel %vm1397_vm5, %v10978_v35, %v10977_v40  ;;  %v13181_v45 = vld.sshfl [vmem:[%s14628_s20 + $0x57] sm:$0x1 pattern:$0x75316420]  ;;  %v5047_v46 = vrot.slane %v13180_v41, %v14648_v25  ;;  %v5447_v47 = vunpack.c.l.b16 %v5019_v37  ;;  %v16265_v37 = vld [vmem:[%s16748_s1 + $0x238] sm:$0xff]  }
 0x1b7   : > { %v5532_v49 = vrot.slane %v5445_v38, 7  ;;  %v10981_v50 = vsel %vm1400_vm6, %v10980_v36, %v10979_v44  ;;  %v13182_v51 = vld.sshfl [vmem:[%s14628_s20 + $0x58] sm:$0x1 pattern:$0x75316420]  ;;  %v5061_v52 = vrot.slane %v13181_v45, %v14648_v25  ;;  %v5448_v53 = vunpack.c.l.b16 %v5033_v42  ;;  %v16244_v61 = vld [vmem:[%s16748_s1 + $0x230] sm:$0xff]  }
 0x1b8   : > { %14354 = vmatpush3.bf16.msra.mxu1 %v16185_v54  ;;  %v5534_v55 = vrot.slane %v5446_v43, 6  ;;  %v11039_v62 = vpack.c.b16 %v10981_v50, %v10967_v39  ;;  %v13183_v63 = vld.sshfl [vmem:[%s14628_s20 + $0x63] sm:$0x1 pattern:$0x75316420]  ;;  %v5075_v26 = vrot.slane %v13182_v51, %v14648_v25  ;;  %v5449_v1 = vunpack.c.l.b16 %v5047_v46 }
 0x1b9   : > { %14347 = vmatprep.subr.bf16.mxu1 %v16203_v17  ;;  %v5533_v11 = vsel %vm1382_vm0, %v5532_v49, %v5444_v56  ;;  %v13184_v12 = vld.sshfl [vmem:[%s14628_s20 + $0x64] sm:$0x1 pattern:$0x75316420]  ;;  %v5089_v22 = vrot.slane %v13183_v63, %v14648_v25  ;;  %v5450_v29 = vunpack.c.l.b16 %v5061_v52  ;;  %v5536_v33 = vrot.slane %v5447_v47, 5 }
 0x1ba   : > { %v5535_v31 = vsel %vm1385_vm1, %v5534_v55, %v5533_v11  ;;  %14312 = vmatmul.mubr.bf16.vlgmr.msra.gmra.mrb[0].mxu0 %v11039_v62  ;;  %v13185_v2 = vld.sshfl [vmem:[%s14628_s20 + $0x65] sm:$0x1 pattern:$0x75316420]  ;;  %v5103_v19 = vrot.slane %v13184_v12, %v14648_v25  ;;  %v5451_v23 = vunpack.c.l.b16 %v5075_v26  ;;  %v5538_v8 = vrot.slane %v5448_v53, 4 }
 0x1bb   : > { %v5540_v10 = vrot.slane %v5449_v1, 3  ;;  %14320 = vmatpush3.bf16.msra.mxu0 %v14523_v4  ;;  %v13186_v0 = vld.sshfl [vmem:[%s14628_s20 + $0x66] sm:$0x1 pattern:$0x75316420]  ;;  %v5117_v7 = vrot.slane %v13185_v2, %v14648_v25  ;;  %v5452_v13 = vunpack.c.l.b16 %v5089_v22  ;;  %v5537_v48 = vsel %vm1388_vm2, %v5536_v33, %v5535_v31 }
 0x1bc   : > { %14355 = vmatpush3.bf16.msra.mxu1 %v16203_v17  ;;  %v5542_v28 = vrot.slane %v5450_v29, 2  ;;  %14321 = vmatprep.subr.bf16.mxu0 %v16150_v30  ;;  %v13187_v59 = vld.sshfl [vmem:[%s14628_s20 + $0x67] sm:$0x1 pattern:$0x75316420]  ;;  %v5131_v57 = vrot.slane %v13186_v0, %v14648_v25  ;;  %v5453_v5 = vunpack.c.l.b16 %v5103_v19  ;;  %v5539_v16 = vsel %vm1391_vm3, %v5538_v8, %v5537_v48 }
 0x1bd   : > { %14348 = vmatprep.subr.bf16.mxu1 %v16223_v58  ;;  %v5544_v20 = vrot.slane %v5451_v23, 1  ;;  %v13188_v21 = vld.sshfl [vmem:[%s14628_s20 + $0x68] sm:$0x1 pattern:$0x75316420]  ;;  %v5145_v27 = vrot.slane %v13187_v59, %v14648_v25  ;;  %v5454_v3 = vunpack.c.l.b16 %v5117_v7  ;;  %v5541_v32 = vsel %vm1394_vm4, %v5540_v10, %v5539_v16 }
 0x1be   : > { %v13189_v34 = vld.sshfl [vmem:[%s14628_s20 + $0x69] sm:$0x1 pattern:$0x75316420]  ;;  %v5159_v24 = vrot.slane %v13188_v21, %v14648_v25  ;;  %v5455_v14 = vunpack.c.l.b16 %v5131_v57  ;;  %v5543_v35 = vsel %vm1397_vm5, %v5542_v28, %v5541_v32  ;;  %v5546_v15 = vrot.slane %v5453_v5, 7 }
 0x1bf   : > { %14322 = vmatpush3.bf16.msra.mxu0 %v16150_v30  ;;  %v13190_v6 = vld.sshfl [vmem:[%s14628_s20 + $0x6a] sm:$0x1 pattern:$0x75316420]  ;;  %v5173_v56 = vrot.slane %v13189_v34, %v14648_v25  ;;  %v5456_v18 = vunpack.c.l.b16 %v5145_v27  ;;  %v5545_v36 = vsel %vm1400_vm6, %v5544_v20, %v5543_v35  ;;  %v5548_v9 = vrot.slane %v5454_v3, 6 }
 0x1c0   : > { %14356 = vmatpush3.bf16.msra.mxu1 %v16223_v58  ;;  %v5187_v38 = vrot.slane %v13190_v6, %v14648_v25  ;;  %v5457_v39 = vunpack.c.l.b16 %v5159_v24  ;;  %v5547_v30 = vsel %vm1382_vm0, %v5546_v15, %v5452_v13  ;;  %v5550_v40 = vrot.slane %v5455_v14, 5  ;;  %v13783_v41 = vld.sshfl [vmem:[%s14628_s20 + $0x5a] sm:$0x1 pattern:$0x75316420]  ;;  %14323 = vmatprep.subr.bf16.mxu0 %v16167_v60 }
 0x1c1   : > { %14349 = vmatprep.subr.bf16.mxu1 %v16244_v61  ;;  %v5458_v42 = vunpack.c.l.b16 %v5173_v56  ;;  %v5549_v43 = vsel %vm1385_vm1, %v5548_v9, %v5547_v30  ;;  %v5552_v44 = vrot.slane %v5456_v18, 4  ;;  %v13784_v45 = vld.sshfl [vmem:[%s14628_s20 + $0x5b] sm:$0x1 pattern:$0x75316420]  ;;  %v10427_v46 = vrot.slane %v13783_v41, %v14648_v25 }
 0x1c2   : > { %v5459_v47 = vunpack.c.l.b16 %v5187_v38  ;;  %v5551_v49 = vsel %vm1388_vm2, %v5550_v40, %v5549_v43  ;;  %v5554_v50 = vrot.slane %v5457_v39, 3  ;;  %v13785_v51 = vld.sshfl [vmem:[%s14628_s20 + $0x5c] sm:$0x1 pattern:$0x75316420]  ;;  %v10441_v52 = vrot.slane %v13784_v45, %v14648_v25 }
 0x1c3   : > { %v5553_v53 = vsel %vm1391_vm3, %v5552_v44, %v5551_v49  ;;  %v5556_v55 = vrot.slane %v5458_v42, 2  ;;  %v13786_v62 = vld.sshfl [vmem:[%s14628_s20 + $0x5d] sm:$0x1 pattern:$0x75316420]  ;;  %v10455_v63 = vrot.slane %v13785_v51, %v14648_v25  ;;  %v10894_v26 = vunpack.c.l.b16 %v10427_v46  ;;  %14324 = vmatpush3.bf16.msra.mxu0 %v16167_v60 }
 0x1c4   : > { %14357 = vmatpush3.bf16.msra.mxu1 %v16244_v61  ;;  %v5555_v1 = vsel %vm1394_vm4, %v5554_v50, %v5553_v53  ;;  %v5558_v11 = vrot.slane %v5459_v47, 1  ;;  %v13787_v12 = vld.sshfl [vmem:[%s14628_s20 + $0x5e] sm:$0x1 pattern:$0x75316420]  ;;  %v10469_v22 = vrot.slane %v13786_v62, %v14648_v25  ;;  %v10895_v29 = vunpack.c.l.b16 %v10441_v52  ;;  %14325 = vmatprep.subr.bf16.mxu0 %v16185_v54 }
 0x1c5   : > { %14350 = vmatprep.subr.bf16.mxu1 %v16265_v37  ;;  %v5557_v31 = vsel %vm1397_vm5, %v5556_v55, %v5555_v1  ;;  %v13788_v33 = vld.sshfl [vmem:[%s14628_s20 + $0x5f] sm:$0x1 pattern:$0x75316420]  ;;  %v10483_v2 = vrot.slane %v13787_v12, %v14648_v25  ;;  %v10896_v19 = vunpack.c.l.b16 %v10455_v63  ;;  %v10982_v60 = vrot.slane %v10894_v26, 1 }
 0x1c6   : > { %v5559_v23 = vsel %vm1400_vm6, %v5558_v11, %v5557_v31  ;;  %v13789_v8 = vld.sshfl [vmem:[%s14628_s20 + $0x60] sm:$0x1 pattern:$0x75316420]  ;;  %v10497_v10 = vrot.slane %v13788_v33, %v14648_v25  ;;  %v16293_v4 = vunpack.c.l.b16 %v10469_v22 }
 0x1c7   : > { %v5590_v0 = vpack.c.b16 %v5559_v23, %v5545_v36  ;;  %v13790_v7 = vld.sshfl [vmem:[%s14628_s20 + $0x61] sm:$0x1 pattern:$0x75316420]  ;;  %v10511_v13 = vrot.slane %v13789_v8, %v14648_v25  ;;  %v16298_v48 = vunpack.c.l.b16 %v10483_v2  ;;  %v10983_v28 = vsel %vm1382_vm0, %v10895_v29, %v10982_v60  ;;  %14326 = vmatpush3.bf16.msra.mxu0 %v16185_v54 }
 0x1c8   : > { %14358 = vmatpush3.bf16.msra.mxu1 %v16265_v37  ;;  %v13791_v59 = vld.sshfl [vmem:[%s14628_s20 + $0x6c] sm:$0x1 pattern:$0x75316420]  ;;  %v10525_v57 = vrot.slane %v13790_v7, %v14648_v25  ;;  %v16304_v5 = vunpack.c.l.b16 %v10497_v10  ;;  %v10984_v16 = vrot.slane %v10896_v19, 7  ;;  %v10986_v20 = vrot.slane %v16293_v4, 6  ;;  %14327 = vmatprep.subr.bf16.mxu0 %v16203_v17 }
 0x1c9   : > { %14219 = vmatprep.mubr.bf16.mxu1 %v5590_v0  ;;  %v13792_v21 = vld.sshfl [vmem:[%s14628_s20 + $0x6d] sm:$0x1 pattern:$0x75316420]  ;;  %v10539_v27 = vrot.slane %v13791_v59, %v14648_v25  ;;  %v16310_v3 = vunpack.c.l.b16 %v10511_v13  ;;  %v10988_v54 = vrot.slane %v16298_v48, 5 }
 0x1ca   : > { %v13793_v32 = vld.sshfl [vmem:[%s14628_s20 + $0x6e] sm:$0x1 pattern:$0x75316420]  ;;  %v10553_v34 = vrot.slane %v13792_v21, %v14648_v25  ;;  %v16315_v24 = vunpack.c.l.b16 %v10525_v57  ;;  %v10985_v14 = vsel %vm1385_vm1, %v10984_v16, %v10983_v28  ;;  %v10990_v35 = vrot.slane %v16304_v5, 4 }
 0x1cb   : > { %v13794_v15 = vld.sshfl [vmem:[%s14628_s20 + $0x6f] sm:$0x1 pattern:$0x75316420]  ;;  %v10567_v6 = vrot.slane %v13793_v32, %v14648_v25  ;;  %v10902_v56 = vunpack.c.l.b16 %v10539_v27  ;;  %v10987_v18 = vsel %vm1388_vm2, %v10986_v20, %v10985_v14  ;;  %v10992_v36 = vrot.slane %v16310_v3, 3  ;;  %14328 = vmatpush3.bf16.msra.mxu0 %v16203_v17 }
 0x1cc   : > { %v13795_v9 = vld.sshfl [vmem:[%s14628_s20 + $0x70] sm:$0x1 pattern:$0x75316420]  ;;  %v10581_v38 = vrot.slane %v13794_v15, %v14648_v25  ;;  %v16326_v39 = vunpack.c.l.b16 %v10553_v34  ;;  %v10989_v30 = vsel %vm1391_vm3, %v10988_v54, %v10987_v18  ;;  %v10994_v40 = vrot.slane %v16315_v24, 2  ;;  %14329 = vmatprep.subr.bf16.mxu0 %v16223_v58 }
 0x1cd   : > { %v13796_v41 = vld.sshfl [vmem:[%s14628_s20 + $0x71] sm:$0x1 pattern:$0x75316420]  ;;  %v10595_v42 = vrot.slane %v13795_v9, %v14648_v25  ;;  %v16335_v43 = vunpack.c.l.b16 %v10567_v6  ;;  %v10991_v17 = vsel %vm1394_vm4, %v10990_v35, %v10989_v30  ;;  %v10996_v44 = vrot.slane %v10902_v56, 1 }
 0x1ce   : > { %v13797_v45 = vld.sshfl [vmem:[%s14628_s20 + $0x72] sm:$0x1 pattern:$0x75316420]  ;;  %v10609_v46 = vrot.slane %v13796_v41, %v14648_v25  ;;  %v16342_v47 = vunpack.c.l.b16 %v10581_v38  ;;  %v10993_v49 = vsel %vm1397_vm5, %v10992_v36, %v10991_v17  ;;  %v12346_v50 = vsel %vm1382_vm0, %v10984_v16, %v10895_v29 }
 0x1cf   : > { %v13798_v51 = vld.sshfl [vmem:[%s14628_s20 + $0x73] sm:$0x1 pattern:$0x75316420]  ;;  %v10623_v52 = vrot.slane %v13797_v45, %v14648_v25  ;;  %v16350_v53 = vunpack.c.l.b16 %v10595_v42  ;;  %v10995_v55 = vsel %vm1400_vm6, %v10994_v40, %v10993_v49  ;;  %v10997_v62 = vsel %vm1382_vm0, %v16326_v39, %v10996_v44  ;;  %14330 = vmatpush3.bf16.msra.mxu0 %v16223_v58 }
 0x1d0   : > { %v10637_v63 = vrot.slane %v13798_v51, %v14648_v25  ;;  %v16359_v26 = vunpack.c.l.b16 %v10609_v46  ;;  %v10998_v1 = vrot.slane %v16335_v43, 7  ;;  %v11000_v11 = vrot.slane %v16342_v47, 6  ;;  %v13191_v12 = vld.sshfl [vmem:[%s14628_s20 + $0x75] sm:$0x1 pattern:$0x75316420]  ;;  %14331 = vmatprep.subr.bf16.mxu0 %v16244_v61 }
 0x1d1   : > { %v16365_v22 = vunpack.c.l.b16 %v10623_v52  ;;  %v11002_v29 = vrot.slane %v16350_v53, 5  ;;  %v13192_v31 = vld.sshfl [vmem:[%s14628_s20 + $0x76] sm:$0x1 pattern:$0x75316420]  ;;  %v5201_v58 = vrot.slane %v13191_v12, %v14648_v25  ;;  %v12348_v33 = vsel %vm1385_vm1, %v10986_v20, %v12346_v50 }
 0x1d2   : > { %v16371_v2 = vunpack.c.l.b16 %v10637_v63  ;;  %v10999_v19 = vsel %vm1385_vm1, %v10998_v1, %v10997_v62  ;;  %v11004_v60 = vrot.slane %v16359_v26, 4  ;;  %v13193_v23 = vld.sshfl [vmem:[%s14628_s20 + $0x77] sm:$0x1 pattern:$0x75316420]  ;;  %v5215_v8 = vrot.slane %v13192_v31, %v14648_v25 }
 0x1d3   : > { %v11001_v10 = vsel %vm1388_vm2, %v11000_v11, %v10999_v19  ;;  %v11006_v4 = vrot.slane %v16365_v22, 3  ;;  %v13194_v0 = vld.sshfl [vmem:[%s14628_s20 + $0x78] sm:$0x1 pattern:$0x75316420]  ;;  %v5229_v7 = vrot.slane %v13193_v23, %v14648_v25  ;;  %v5460_v13 = vunpack.c.l.b16 %v5201_v58  ;;  %14332 = vmatpush3.bf16.msra.mxu0 %v16244_v61 }
 0x1d4   : > { %v11003_v28 = vsel %vm1391_vm3, %v11002_v29, %v11001_v10  ;;  %v11008_v59 = vrot.slane %v16371_v2, 2  ;;  %v13195_v57 = vld.sshfl [vmem:[%s14628_s20 + $0x79] sm:$0x1 pattern:$0x75316420]  ;;  %v5243_v16 = vrot.slane %v13194_v0, %v14648_v25  ;;  %v5461_v20 = vunpack.c.l.b16 %v5215_v8  ;;  %14333 = vmatprep.subr.bf16.mxu0 %v16265_v37 }
 0x1d5   : > { %v11005_v21 = vsel %vm1394_vm4, %v11004_v60, %v11003_v28  ;;  %v13196_v27 = vld.sshfl [vmem:[%s14628_s20 + $0x7a] sm:$0x1 pattern:$0x75316420]  ;;  %v5257_v61 = vrot.slane %v13195_v57, %v14648_v25  ;;  %v5462_v32 = vunpack.c.l.b16 %v5229_v7  ;;  %v12350_v34 = vsel %vm1388_vm2, %v10988_v54, %v12348_v33 }
 0x1d6   : > { %v11007_v14 = vsel %vm1397_vm5, %v11006_v4, %v11005_v21  ;;  %v13197_v15 = vld.sshfl [vmem:[%s14628_s20 + $0x7b] sm:$0x1 pattern:$0x75316420]  ;;  %v5271_v6 = vrot.slane %v13196_v27, %v14648_v25  ;;  %v5463_v56 = vunpack.c.l.b16 %v5243_v16  ;;  %v5560_v18 = vrot.slane %v5461_v20, 7 }
 0x1d7   : > { %v11009_v9 = vsel %vm1400_vm6, %v11008_v59, %v11007_v14  ;;  %v13198_v38 = vld.sshfl [vmem:[%s14628_s20 + $0x7c] sm:$0x1 pattern:$0x75316420]  ;;  %v5285_v48 = vrot.slane %v13197_v15, %v14648_v25  ;;  %v5464_v30 = vunpack.c.l.b16 %v5257_v61  ;;  %v5562_v54 = vrot.slane %v5462_v32, 6  ;;  %14334 = vmatpush3.bf16.msra.mxu0 %v16265_v37 }
 0x1d8   : > { %v11040_v41 = vpack.c.b16 %v11009_v9, %v10995_v55  ;;  %v13199_v42 = vld.sshfl [vmem:[%s14628_s20 + $0x87] sm:$0x1 pattern:$0x75316420]  ;;  %v5299_v17 = vrot.slane %v13198_v38, %v14648_v25  ;;  %v5465_v44 = vunpack.c.l.b16 %v5271_v6  ;;  %v5561_v45 = vsel %vm1382_vm0, %v5560_v18, %v5460_v13 }
 0x1d9   : > { %v13200_v46 = vld.sshfl [vmem:[%s14628_s20 + $0x88] sm:$0x1 pattern:$0x75316420]  ;;  %v5313_v49 = vrot.slane %v13199_v42, %v14648_v25  ;;  %v5466_v50 = vunpack.c.l.b16 %v5285_v48  ;;  %v5563_v51 = vsel %vm1385_vm1, %v5562_v54, %v5561_v45  ;;  %v5564_v52 = vrot.slane %v5463_v56, 5 }
 0x1da   : > { %14315 = vmatprep.mubr.bf16.mxu0 %v11040_v41  ;;  %v13201_v62 = vld.sshfl [vmem:[%s14628_s20 + $0x89] sm:$0x1 pattern:$0x75316420]  ;;  %v5327_v37 = vrot.slane %v13200_v46, %v14648_v25  ;;  %v5467_v55 = vunpack.c.l.b16 %v5299_v17  ;;  %v5566_v63 = vrot.slane %v5464_v30, 4  ;;  %v5568_v12 = vrot.slane %v5465_v44, 3 }
 0x1db   : > { %v13202_v31 = vld.sshfl [vmem:[%s14628_s20 + $0x8a] sm:$0x1 pattern:$0x75316420]  ;;  %v5341_v58 = vrot.slane %v13201_v62, %v14648_v25  ;;  %v5468_v33 = vunpack.c.l.b16 %v5313_v49  ;;  %v5565_v19 = vsel %vm1388_vm2, %v5564_v52, %v5563_v51  ;;  %v5570_v23 = vrot.slane %v5466_v50, 2 }
 0x1dc   : > { %v13203_v8 = vld.sshfl [vmem:[%s14628_s20 + $0x8b] sm:$0x1 pattern:$0x75316420]  ;;  %v5355_v10 = vrot.slane %v13202_v31, %v14648_v25  ;;  %v5469_v0 = vunpack.c.l.b16 %v5327_v37  ;;  %v5567_v7 = vsel %vm1391_vm3, %v5566_v63, %v5565_v19  ;;  %v5572_v13 = vrot.slane %v5467_v55, 1 }
 0x1dd   : > { %v13204_v28 = vld.sshfl [vmem:[%s14628_s20 + $0x8c] sm:$0x1 pattern:$0x75316420]  ;;  %v5369_v57 = vrot.slane %v13203_v8, %v14648_v25  ;;  %v5470_v16 = vunpack.c.l.b16 %v5341_v58  ;;  %v5569_v20 = vsel %vm1394_vm4, %v5568_v12, %v5567_v7  ;;  %v12352_v21 = vsel %vm1391_vm3, %v10990_v35, %v12350_v34 }
 0x1de   : > { %v13205_v27 = vld.sshfl [vmem:[%s14628_s20 + $0x8d] sm:$0x1 pattern:$0x75316420]  ;;  %v5383_v61 = vrot.slane %v13204_v28, %v14648_v25  ;;  %v5471_v32 = vunpack.c.l.b16 %v5355_v10  ;;  %v5571_v14 = vsel %vm1397_vm5, %v5570_v23, %v5569_v20  ;;  %v5574_v15 = vrot.slane %v5469_v0, 7 }
 0x1df   : > { %v13206_v6 = vld.sshfl [vmem:[%s14628_s20 + $0x8e] sm:$0x1 pattern:$0x75316420]  ;;  %v5397_v56 = vrot.slane %v13205_v27, %v14648_v25  ;;  %v5472_v18 = vunpack.c.l.b16 %v5369_v57  ;;  %v5573_v9 = vsel %vm1400_vm6, %v5572_v13, %v5571_v14  ;;  %v5576_v38 = vrot.slane %v5470_v16, 6 }
 0x1e0   : > { %v5411_v5 = vrot.slane %v13206_v6, %v14648_v25  ;;  %v5473_v48 = vunpack.c.l.b16 %v5383_v61  ;;  %v5575_v35 = vsel %vm1382_vm0, %v5574_v15, %v5468_v33  ;;  %v5578_v34 = vrot.slane %v5471_v32, 5  ;;  %v13799_v30 = vld.sshfl [vmem:[%s14628_s20 + $0x7e] sm:$0x1 pattern:$0x75316420] }
 0x1e1   : > { %v5474_v54 = vunpack.c.l.b16 %v5397_v56  ;;  %v5577_v41 = vsel %vm1385_vm1, %v5576_v38, %v5575_v35  ;;  %v5580_v42 = vrot.slane %v5472_v18, 4  ;;  %v13800_v17 = vld.sshfl [vmem:[%s14628_s20 + $0x7f] sm:$0x1 pattern:$0x75316420]  ;;  %v10651_v44 = vrot.slane %v13799_v30, %v14648_v25 }
 0x1e2   : > { %v5475_v45 = vunpack.c.l.b16 %v5411_v5  ;;  %v5579_v46 = vsel %vm1388_vm2, %v5578_v34, %v5577_v41  ;;  %v5582_v49 = vrot.slane %v5473_v48, 3  ;;  %v13801_v50 = vld.sshfl [vmem:[%s14628_s20 + $0x80] sm:$0x1 pattern:$0x75316420]  ;;  %v10665_v51 = vrot.slane %v13800_v17, %v14648_v25 }
 0x1e3   : > { %v5581_v52 = vsel %vm1391_vm3, %v5580_v42, %v5579_v46  ;;  %v5584_v62 = vrot.slane %v5474_v54, 2  ;;  %v13802_v37 = vld.sshfl [vmem:[%s14628_s20 + $0x81] sm:$0x1 pattern:$0x75316420]  ;;  %v10679_v55 = vrot.slane %v13801_v50, %v14648_v25  ;;  %v10910_v63 = vunpack.c.l.b16 %v10651_v44 }
 0x1e4   : > { %v5583_v12 = vsel %vm1394_vm4, %v5582_v49, %v5581_v52  ;;  %v5586_v31 = vrot.slane %v5475_v45, 1  ;;  %v13803_v58 = vld.sshfl [vmem:[%s14628_s20 + $0x82] sm:$0x1 pattern:$0x75316420]  ;;  %v10693_v33 = vrot.slane %v13802_v37, %v14648_v25  ;;  %v16453_v19 = vunpack.c.l.b16 %v10665_v51 }
 0x1e5   : > { %v5585_v23 = vsel %vm1397_vm5, %v5584_v62, %v5583_v12  ;;  %v13804_v8 = vld.sshfl [vmem:[%s14628_s20 + $0x83] sm:$0x1 pattern:$0x75316420]  ;;  %v10707_v10 = vrot.slane %v13803_v58, %v14648_v25  ;;  %v16458_v0 = vunpack.c.l.b16 %v10679_v55  ;;  %v11010_v7 = vrot.slane %v10910_v63, 1 }
 0x1e6   : > { %v5587_v13 = vsel %vm1400_vm6, %v5586_v31, %v5585_v23  ;;  %v13805_v28 = vld.sshfl [vmem:[%s14628_s20 + $0x84] sm:$0x1 pattern:$0x75316420]  ;;  %v10721_v57 = vrot.slane %v13804_v8, %v14648_v25  ;;  %v16463_v16 = vunpack.c.l.b16 %v10693_v33  ;;  %v12354_v20 = vsel %vm1394_vm4, %v10992_v36, %v12352_v21 }
 0x1e7   : > { %v5591_v27 = vpack.c.b16 %v5587_v13, %v5573_v9  ;;  %v13806_v61 = vld.sshfl [vmem:[%s14628_s20 + $0x85] sm:$0x1 pattern:$0x75316420]  ;;  %v10735_v32 = vrot.slane %v13805_v28, %v14648_v25  ;;  %v16470_v14 = vunpack.c.l.b16 %v10707_v10  ;;  %v11011_v15 = vsel %vm1382_vm0, %v16453_v19, %v11010_v7 }
 0x1e8   : > { %v13807_v6 = vld.sshfl [vmem:[%s14628_s20 + $0x90] sm:$0x1 pattern:$0x75316420]  ;;  %v10749_v56 = vrot.slane %v13806_v61, %v14648_v25  ;;  %v16476_v18 = vunpack.c.l.b16 %v10721_v57  ;;  %v11012_v3 = vrot.slane %v16458_v0, 7  ;;  %v11014_v36 = vrot.slane %v16463_v16, 6 }
 0x1e9   : > { %14220 = vmatmul.mubr.bf16.gmra.mrb[4].mxu1 %v5591_v27  ;;  %v13808_v21 = vld.sshfl [vmem:[%s14628_s20 + $0x91] sm:$0x1 pattern:$0x75316420]  ;;  %v10763_v9 = vrot.slane %v13807_v6, %v14648_v25  ;;  %v16482_v38 = vunpack.c.l.b16 %v10735_v32  ;;  %v11016_v5 = vrot.slane %v16470_v14, 5  ;;  %v16488_v48 = vsel %vm1397_vm5, %v10994_v40, %v12354_v20 }
 0x1ea   : > { %v13809_v35 = vld.sshfl [vmem:[%s14628_s20 + $0x92] sm:$0x1 pattern:$0x75316420]  ;;  %v10777_v34 = vrot.slane %v13808_v21, %v14648_v25  ;;  %v16492_v30 = vunpack.c.l.b16 %v10749_v56  ;;  %v11013_v54 = vsel %vm1385_vm1, %v11012_v3, %v11011_v15  ;;  %v11018_v41 = vrot.slane %v16476_v18, 4 }
 0x1eb   : > { %v13810_v42 = vld.sshfl [vmem:[%s14628_s20 + $0x93] sm:$0x1 pattern:$0x75316420]  ;;  %v10791_v17 = vrot.slane %v13809_v35, %v14648_v25  ;;  %v10918_v24 = vunpack.c.l.b16 %v10763_v9  ;;  %v11015_v40 = vsel %vm1388_vm2, %v11014_v36, %v11013_v54  ;;  %v11020_v44 = vrot.slane %v16482_v38, 3 }
 0x1ec   : > { %v13811_v45 = vld.sshfl [vmem:[%s14628_s20 + $0x94] sm:$0x1 pattern:$0x75316420]  ;;  %v10805_v46 = vrot.slane %v13810_v42, %v14648_v25  ;;  %v16506_v49 = vunpack.c.l.b16 %v10777_v34  ;;  %v11017_v50 = vsel %vm1391_vm3, %v11016_v5, %v11015_v40  ;;  %v11022_v51 = vrot.slane %v16492_v30, 2 }
 0x1ed   : > { %v13812_v52 = vld.sshfl [vmem:[%s14628_s20 + $0x95] sm:$0x1 pattern:$0x75316420]  ;;  %v10819_v62 = vrot.slane %v13811_v45, %v14648_v25  ;;  %v16514_v37 = vunpack.c.l.b16 %v10791_v17  ;;  %v11019_v55 = vsel %vm1394_vm4, %v11018_v41, %v11017_v50  ;;  %v11024_v63 = vrot.slane %v10918_v24, 1 }
 0x1ee   : > { %v13813_v12 = vld.sshfl [vmem:[%s14628_s20 + $0x96] sm:$0x1 pattern:$0x75316420]  ;;  %v10833_v31 = vrot.slane %v13812_v52, %v14648_v25  ;;  %v16521_v58 = vunpack.c.l.b16 %v10805_v46  ;;  %v11021_v33 = vsel %vm1397_vm5, %v11020_v44, %v11019_v55  ;;  %v12360_v23 = vsel %vm1382_vm0, %v10998_v1, %v16326_v39 }
 0x1ef   : > { %v13814_v8 = vld.sshfl [vmem:[%s14628_s20 + $0x97] sm:$0x1 pattern:$0x75316420]  ;;  %v10847_v10 = vrot.slane %v13813_v12, %v14648_v25  ;;  %v16532_v7 = vunpack.c.l.b16 %v10819_v62  ;;  %v11023_v13 = vsel %vm1400_vm6, %v11022_v51, %v11021_v33  ;;  %v11025_v28 = vsel %vm1382_vm0, %v16506_v49, %v11024_v63 }
 0x1f0   : > { %v10861_v57 = vrot.slane %v13814_v8, %v14648_v25  ;;  %v16540_v20 = vunpack.c.l.b16 %v10833_v31  ;;  %v11026_v39 = vrot.slane %v16514_v37, 7  ;;  %v11028_v43 = vrot.slane %v16521_v58, 6  ;;  %v13903_v1 = vld.sshfl [vmem:[%s14628_s20 + $0x13] sm:$0x1 pattern:$0x75316420] }
 0x1f1   : > { %v16545_v27 = vunpack.c.l.b16 %v10847_v10  ;;  %v11030_v61 = vrot.slane %v16532_v7, 5  ;;  %v13904_v32 = vld.sshfl [vmem:[%s14628_s20 + $0x14] sm:$0x1 pattern:$0x75316420]  ;;  %v11342_v15 = vrot.slane %v13903_v1, %v14648_v25  ;;  %v12362_v6 = vsel %vm1385_vm1, %v11000_v11, %v12360_v23 }
 0x1f2   : > { %v16553_v56 = vunpack.c.l.b16 %v10861_v57  ;;  %v11027_v21 = vsel %vm1385_vm1, %v11026_v39, %v11025_v28  ;;  %v11032_v9 = vrot.slane %v16540_v20, 4  ;;  %v13905_v35 = vld.sshfl [vmem:[%s14628_s20 + $0x15] sm:$0x1 pattern:$0x75316420]  ;;  %v11356_v34 = vrot.slane %v13904_v32, %v14648_v25 }
 0x1f3   : > { %v11029_v54 = vsel %vm1388_vm2, %v11028_v43, %v11027_v21  ;;  %v11034_v47 = vrot.slane %v16545_v27, 3  ;;  %v13906_v11 = vld.sshfl [vmem:[%s14628_s20 + $0x16] sm:$0x1 pattern:$0x75316420]  ;;  %v11370_v42 = vrot.slane %v13905_v35, %v14648_v25  ;;  %v12225_v17 = vunpack.c.l.b16 %v11342_v15 }
 0x1f4   : > { %v11031_v24 = vsel %vm1391_vm3, %v11030_v61, %v11029_v54  ;;  %v11036_v40 = vrot.slane %v16553_v56, 2  ;;  %v13907_v45 = vld.sshfl [vmem:[%s14628_s20 + $0x17] sm:$0x1 pattern:$0x75316420]  ;;  %v11384_v46 = vrot.slane %v13906_v11, %v14648_v25  ;;  %v12226_v50 = vunpack.c.l.b16 %v11356_v34 }
 0x1f5   : > { %v11033_v52 = vsel %vm1394_vm4, %v11032_v9, %v11031_v24  ;;  %v13908_v62 = vld.sshfl [vmem:[%s14628_s20 + $0x18] sm:$0x1 pattern:$0x75316420]  ;;  %v11398_v55 = vrot.slane %v13907_v45, %v14648_v25  ;;  %v12227_v63 = vunpack.c.l.b16 %v11370_v42  ;;  %v12364_v12 = vsel %vm1388_vm2, %v11002_v29, %v12362_v6 }
 0x1f6   : > { %v11035_v31 = vsel %vm1397_vm5, %v11034_v47, %v11033_v52  ;;  %v13909_v33 = vld.sshfl [vmem:[%s14628_s20 + $0x19] sm:$0x1 pattern:$0x75316420]  ;;  %v11412_v23 = vrot.slane %v13908_v62, %v14648_v25  ;;  %v12228_v8 = vunpack.c.l.b16 %v11384_v46  ;;  %v12289_v10 = vrot.slane %v12226_v50, 7 }
 0x1f7   : > { %v11037_v28 = vsel %vm1400_vm6, %v11036_v40, %v11035_v31  ;;  %v13910_v57 = vld.sshfl [vmem:[%s14628_s20 + $0x1a] sm:$0x1 pattern:$0x75316420]  ;;  %v11426_v53 = vrot.slane %v13909_v33, %v14648_v25  ;;  %v12229_v1 = vunpack.c.l.b16 %v11398_v55  ;;  %v12291_v29 = vrot.slane %v12227_v63, 6 }
 0x1f8   : > { %v11041_v32 = vpack.c.b16 %v11037_v28, %v11023_v13  ;;  %v13911_v15 = vld.sshfl [vmem:[%s14628_s20 + $0x25] sm:$0x1 pattern:$0x75316420]  ;;  %v11440_v6 = vrot.slane %v13910_v57, %v14648_v25  ;;  %v12230_v21 = vunpack.c.l.b16 %v11412_v23  ;;  %v12290_v35 = vsel %vm1382_vm0, %v12289_v10, %v12225_v17 }
 0x1f9   : > { %v13912_v34 = vld.sshfl [vmem:[%s14628_s20 + $0x26] sm:$0x1 pattern:$0x75316420]  ;;  %v11454_v54 = vrot.slane %v13911_v15, %v14648_v25  ;;  %v12231_v11 = vunpack.c.l.b16 %v11426_v53  ;;  %v12292_v42 = vsel %vm1385_vm1, %v12291_v29, %v12290_v35  ;;  %v12293_v24 = vrot.slane %v12228_v8, 5 }
 0x1fa   : > { %14316 = vmatmul.mubr.bf16.gmra.mrb[4].mxu0 %v11041_v32  ;;  %v13913_v45 = vld.sshfl [vmem:[%s14628_s20 + $0x27] sm:$0x1 pattern:$0x75316420]  ;;  %v11468_v13 = vrot.slane %v13912_v34, %v14648_v25  ;;  %v12232_v46 = vunpack.c.l.b16 %v11440_v6  ;;  %v12295_v50 = vrot.slane %v12229_v1, 4  ;;  %v12297_v52 = vrot.slane %v12230_v21, 3 }
 0x1fb   : > { %v13914_v62 = vld.sshfl [vmem:[%s14628_s20 + $0x28] sm:$0x1 pattern:$0x75316420]  ;;  %v11482_v17 = vrot.slane %v13913_v45, %v14648_v25  ;;  %v12233_v55 = vunpack.c.l.b16 %v11454_v54  ;;  %v12294_v63 = vsel %vm1388_vm2, %v12293_v24, %v12292_v42  ;;  %v12299_v31 = vrot.slane %v12231_v11, 2 }
 0x1fc   : > { %v13915_v33 = vld.sshfl [vmem:[%s14628_s20 + $0x29] sm:$0x1 pattern:$0x75316420]  ;;  %v11496_v23 = vrot.slane %v13914_v62, %v14648_v25  ;;  %v12234_v8 = vunpack.c.l.b16 %v11468_v13  ;;  %v12296_v10 = vsel %vm1391_vm3, %v12295_v50, %v12294_v63  ;;  %v12301_v28 = vrot.slane %v12232_v46, 1 }
 0x1fd   : > { %v13916_v57 = vld.sshfl [vmem:[%s14628_s20 + $0x2a] sm:$0x1 pattern:$0x75316420]  ;;  %v11510_v53 = vrot.slane %v13915_v33, %v14648_v25  ;;  %v12235_v1 = vunpack.c.l.b16 %v11482_v17  ;;  %v12298_v29 = vsel %vm1394_vm4, %v12297_v52, %v12296_v10  ;;  %v12366_v32 = vsel %vm1391_vm3, %v11004_v60, %v12364_v12 }
 0x1fe   : > { %v13917_v15 = vld.sshfl [vmem:[%s14628_s20 + $0x2b] sm:$0x1 pattern:$0x75316420]  ;;  %v11524_v6 = vrot.slane %v13916_v57, %v14648_v25  ;;  %v12236_v21 = vunpack.c.l.b16 %v11496_v23  ;;  %v12300_v35 = vsel %vm1397_vm5, %v12299_v31, %v12298_v29  ;;  %v12303_v34 = vrot.slane %v12234_v8, 7 }
 0x1ff   : > { %v13918_v54 = vld.sshfl [vmem:[%s14628_s20 + $0x2c] sm:$0x1 pattern:$0x75316420]  ;;  %v11538_v11 = vrot.slane %v13917_v15, %v14648_v25  ;;  %v12237_v42 = vunpack.c.l.b16 %v11510_v53  ;;  %v12302_v24 = vsel %vm1400_vm6, %v12301_v28, %v12300_v35  ;;  %v12305_v45 = vrot.slane %v12235_v1, 6 }
 0x200   : > { %v11552_v26 = vrot.slane %v13918_v54, %v14648_v25  ;;  %v12238_v13 = vunpack.c.l.b16 %v11524_v6  ;;  %v12304_v60 = vsel %vm1382_vm0, %v12303_v34, %v12233_v55  ;;  %v12307_v12 = vrot.slane %v12236_v21, 5  ;;  %v13942_v46 = vld.sshfl [vmem:[%s14628_s20 + $0x62] sm:$0x1 pattern:$0x75316420] }
 0x201   : > { %v12239_v50 = vunpack.c.l.b16 %v11538_v11  ;;  %v12306_v52 = vsel %vm1385_vm1, %v12305_v45, %v12304_v60  ;;  %v12309_v62 = vrot.slane %v12237_v42, 4  ;;  %v13950_v17 = vld.sshfl [vmem:[%s14628_s20 + $0x74] sm:$0x1 pattern:$0x75316420]  ;;  %v11888_v63 = vrot.slane %v13942_v46, %v14648_v25 }
 0x202   : > { %v12240_v31 = vunpack.c.l.b16 %v11552_v26  ;;  %v12308_v33 = vsel %vm1388_vm2, %v12307_v12, %v12306_v52  ;;  %v12311_v23 = vrot.slane %v12238_v13, 3  ;;  %v12000_v8 = vrot.slane %v13950_v17, %v14648_v25  ;;  %v13919_v10 = vld.sshfl [vmem:[%s14628_s20 + $0x37] sm:$0x1 pattern:$0x75316420] }
 0x203   : > { %v12310_v55 = vsel %vm1391_vm3, %v12309_v62, %v12308_v33  ;;  %v12313_v28 = vrot.slane %v12239_v50, 2  ;;  %v12264_v57 = vunpack.c.l.b16 %v11888_v63  ;;  %v12368_v53 = vsel %vm1394_vm4, %v11006_v4, %v12366_v32  ;;  %v13920_v1 = vld.sshfl [vmem:[%s14628_s20 + $0x38] sm:$0x1 pattern:$0x75316420] }
 0x204   : > { %v12312_v29 = vsel %vm1394_vm4, %v12311_v23, %v12310_v55  ;;  %v12315_v15 = vrot.slane %v12240_v31, 1  ;;  %v12272_v6 = vunpack.c.l.b16 %v12000_v8  ;;  %v12370_v21 = vsel %vm1397_vm5, %v11008_v59, %v12368_v53  ;;  %v13921_v35 = vld.sshfl [vmem:[%s14628_s20 + $0x39] sm:$0x1 pattern:$0x75316420] }
 0x205   : > { %v12314_v34 = vsel %vm1397_vm5, %v12313_v28, %v12312_v29  ;;  %v12357_v54 = vrot.slane %v12264_v57, 1  ;;  %v13922_v11 = vld.sshfl [vmem:[%s14628_s20 + $0x3a] sm:$0x1 pattern:$0x75316420]  ;;  %v11566_v22 = vrot.slane %v13919_v10, %v14648_v25  ;;  %v11580_v4 = vrot.slane %v13920_v1, %v14648_v25 }
 0x206   : > { %v12316_v32 = vsel %vm1400_vm6, %v12315_v15, %v12314_v34  ;;  %v12371_v42 = vrot.slane %v12272_v6, 1  ;;  %v13923_v45 = vld.sshfl [vmem:[%s14628_s20 + $0x3b] sm:$0x1 pattern:$0x75316420]  ;;  %v11594_v26 = vrot.slane %v13921_v35, %v14648_v25  ;;  %v11608_v2 = vrot.slane %v13922_v11, %v14648_v25 }
 0x207   : > { %v12401_v59 = vpack.c.b16 %v12316_v32, %v12302_v24  ;;  %v12358_v13 = vsel %vm1400_vm6, %v12357_v54, %v16488_v48  ;;  %v13924_v60 = vld.sshfl [vmem:[%s14628_s20 + $0x3c] sm:$0x1 pattern:$0x75316420]  ;;  %v11622_v12 = vrot.slane %v13923_v45, %v14648_v25  ;;  %v12241_v46 = vunpack.c.l.b16 %v11566_v22 }
 0x208   : > { %v12372_v50 = vsel %vm1400_vm6, %v12371_v42, %v12370_v21  ;;  %v13925_v52 = vld.sshfl [vmem:[%s14628_s20 + $0x3d] sm:$0x1 pattern:$0x75316420]  ;;  %v11636_v62 = vrot.slane %v13924_v60, %v14648_v25  ;;  %v12242_v17 = vunpack.c.l.b16 %v11580_v4  ;;  %v12243_v63 = vunpack.c.l.b16 %v11594_v26 }
 0x209   : > { %14335 = vmatprep.mubr.bf16.mxu0 %v12401_v59  ;;  %v12403_v31 = vpack.c.b16 %v12372_v50, %v12358_v13  ;;  %v13926_v24 = vld.sshfl [vmem:[%s14628_s20 + $0x3e] sm:$0x1 pattern:$0x75316420]  ;;  %v11650_v33 = vrot.slane %v13925_v52, %v14648_v25  ;;  %v12244_v23 = vunpack.c.l.b16 %v11608_v2  ;;  %v12245_v48 = vunpack.c.l.b16 %v11622_v12 }
 0x20a   : > { %v13927_v8 = vld.sshfl [vmem:[%s14628_s20 + $0x49] sm:$0x1 pattern:$0x75316420]  ;;  %v11664_v10 = vrot.slane %v13926_v24, %v14648_v25  ;;  %v12246_v55 = vunpack.c.l.b16 %v11636_v62  ;;  %v12317_v28 = vrot.slane %v12242_v17, 7  ;;  %v12319_v57 = vrot.slane %v12243_v63, 6 }
 0x20b   : > { %14339 = vmatprep.mubr.bf16.mxu1 %v12403_v31  ;;  %v13928_v53 = vld.sshfl [vmem:[%s14628_s20 + $0x4a] sm:$0x1 pattern:$0x75316420]  ;;  %v11678_v1 = vrot.slane %v13927_v8, %v14648_v25  ;;  %v12247_v29 = vunpack.c.l.b16 %v11650_v33  ;;  %v12321_v15 = vrot.slane %v12244_v23, 5  ;;  %v12323_v6 = vrot.slane %v12245_v48, 4 }
 0x20c   : > { %v13929_v21 = vld.sshfl [vmem:[%s14628_s20 + $0x4b] sm:$0x1 pattern:$0x75316420]  ;;  %v11692_v35 = vrot.slane %v13928_v53, %v14648_v25  ;;  %v12248_v34 = vunpack.c.l.b16 %v11664_v10  ;;  %v12318_v54 = vsel %vm1382_vm0, %v12317_v28, %v12241_v46  ;;  %v12325_v11 = vrot.slane %v12246_v55, 3 }
 0x20d   : > { %v13930_v22 = vld.sshfl [vmem:[%s14628_s20 + $0x4c] sm:$0x1 pattern:$0x75316420]  ;;  %v11706_v4 = vrot.slane %v13929_v21, %v14648_v25  ;;  %v12249_v32 = vunpack.c.l.b16 %v11678_v1  ;;  %v12320_v42 = vsel %vm1385_vm1, %v12319_v57, %v12318_v54  ;;  %v12327_v13 = vrot.slane %v12247_v29, 2 }
 0x20e   : > { %v13931_v45 = vld.sshfl [vmem:[%s14628_s20 + $0x4d] sm:$0x1 pattern:$0x75316420]  ;;  %v11720_v26 = vrot.slane %v13930_v22, %v14648_v25  ;;  %v12250_v2 = vunpack.c.l.b16 %v11692_v35  ;;  %v12322_v59 = vsel %vm1388_vm2, %v12321_v15, %v12320_v42  ;;  %v12329_v52 = vrot.slane %v12248_v34, 1 }
 0x20f   : > { %v13932_v60 = vld.sshfl [vmem:[%s14628_s20 + $0x4e] sm:$0x1 pattern:$0x75316420]  ;;  %v11734_v12 = vrot.slane %v13931_v45, %v14648_v25  ;;  %v12251_v46 = vunpack.c.l.b16 %v11706_v4  ;;  %v12324_v50 = vsel %vm1391_vm3, %v12323_v6, %v12322_v59  ;;  %v12374_v10 = vsel %vm1382_vm0, %v11012_v3, %v16453_v19 }
 0x210   : > { %v13933_v62 = vld.sshfl [vmem:[%s14628_s20 + $0x4f] sm:$0x1 pattern:$0x75316420]  ;;  %v11748_v17 = vrot.slane %v13932_v60, %v14648_v25  ;;  %v12252_v63 = vunpack.c.l.b16 %v11720_v26  ;;  %v12326_v31 = vsel %vm1394_vm4, %v12325_v11, %v12324_v50  ;;  %v12331_v24 = vrot.slane %v12250_v2, 7 }
 0x211   : > { %v13934_v33 = vld.sshfl [vmem:[%s14628_s20 + $0x50] sm:$0x1 pattern:$0x75316420]  ;;  %v11762_v23 = vrot.slane %v13933_v62, %v14648_v25  ;;  %v12253_v48 = vunpack.c.l.b16 %v11734_v12  ;;  %v12333_v8 = vrot.slane %v12251_v46, 6  ;;  %v12328_v57 = vsel %vm1397_vm5, %v12327_v13, %v12326_v31 }
 0x212   : > { %v11776_v55 = vrot.slane %v13934_v33, %v14648_v25  ;;  %v12254_v28 = vunpack.c.l.b16 %v11748_v17  ;;  %v12332_v53 = vsel %vm1382_vm0, %v12331_v24, %v12249_v32  ;;  %v13958_v1 = vld.sshfl [vmem:[%s14628_s20 + $0x86] sm:$0x1 pattern:$0x75316420]  ;;  %v12335_v6 = vrot.slane %v12252_v63, 5 }
 0x213   : > { %v12255_v29 = vunpack.c.l.b16 %v11762_v23  ;;  %v12334_v15 = vsel %vm1385_vm1, %v12333_v8, %v12332_v53  ;;  %v12337_v21 = vrot.slane %v12253_v48, 4  ;;  %v13966_v35 = vld.sshfl [vmem:[%s14628_s20 + $0x98] sm:$0x1 pattern:$0x75316420]  ;;  %v12112_v0 = vrot.slane %v13958_v1, %v14648_v25 }
 0x214   : > { %v12256_v34 = vunpack.c.l.b16 %v11776_v55  ;;  %v12339_v54 = vrot.slane %v12254_v28, 3  ;;  %v12224_v19 = vrot.slane %v13966_v35, %v14648_v25  ;;  %v12336_v3 = vsel %vm1388_vm2, %v12335_v6, %v12334_v15  ;;  %v13975_v24 = vld [vmem:[%s16749_s2] ss:$0 sm:$0xff] }
 0x215   : > { %v12341_v11 = vrot.slane %v12255_v29, 2  ;;  %v12376_v22 = vsel %vm1385_vm1, %v11014_v36, %v12374_v10  ;;  %v12388_v4 = vsel %vm1382_vm0, %v11026_v39, %v16506_v49  ;;  %v12338_v32 = vsel %vm1391_vm3, %v12337_v21, %v12336_v3  ;;  %v13976_v48 = vld [vmem:[%s16750_s3] ss:$0 sm:$0xff] }
 0x216   : > { %v12343_v42 = vrot.slane %v12256_v34, 1  ;;  %v12280_v45 = vunpack.c.l.b16 %v12112_v0  ;;  %v12288_v26 = vunpack.c.l.b16 %v12224_v19  ;;  %v12330_v2 = vsel %vm1400_vm6, %v12329_v52, %v12328_v57 }
 0x217   : > { %v12340_v25 = vsel %vm1394_vm4, %v12339_v54, %v12338_v32  ;;  %v12378_v16 = vsel %vm1388_vm2, %v11016_v5, %v12376_v22  ;;  %v12390_v36 = vsel %vm1385_vm1, %v11028_v43, %v12388_v4 }
 0x218   : > { %v12342_v37 = vsel %vm1397_vm5, %v12341_v11, %v12340_v25  ;;  %v12380_v49 = vsel %vm1391_vm3, %v11018_v41, %v12378_v16  ;;  %v12385_v39 = vrot.slane %v12280_v45, 1  ;;  %v12392_v59 = vsel %vm1388_vm2, %v11030_v61, %v12390_v36 }
 0x219   : > { %v12344_v13 = vsel %vm1400_vm6, %v12343_v42, %v12342_v37  ;;  %v12382_v14 = vsel %vm1394_vm4, %v11020_v44, %v12380_v49  ;;  %v12394_v5 = vsel %vm1391_vm3, %v11032_v9, %v12392_v59  ;;  %v12399_v58 = vrot.slane %v12288_v26, 1 }
 0x21a   : > { %v12402_v43 = vpack.c.b16 %v12344_v13, %v12330_v2  ;;  %v12384_v18 = vsel %vm1397_vm5, %v11022_v51, %v12382_v14  ;;  %v12396_v41 = vsel %vm1394_vm4, %v11034_v47, %v12394_v5 }
 0x21b   : > { %v12386_v7 = vsel %vm1400_vm6, %v12385_v39, %v12384_v18  ;;  %v12398_v38 = vsel %vm1397_vm5, %v11036_v40, %v12396_v41 }
 0x21c   : > { %14336 = vmatmul.mubr.bf16.vlgmr.msra.gmra.mrb[0].mxu0 %v12402_v43  ;;  %v12400_v44 = vsel %vm1400_vm6, %v12399_v58, %v12398_v38 }
 0x21d   : > { %v12404_v20 = vpack.c.b16 %v12400_v44, %v12386_v7 }
 0x21f   : > { %14340 = vmatmul.mubr.bf16.vlgmr.msra.gmra.mrb[8].mxu1 %v12404_v20 }
 0x27e   : > { %v14217_v61 = vpop.f32.mrb[0].mxu1 }
 0x27f   : > { %v5678_v9 = vpop.f32.mrb[1].mxu1 }
 0x280   : > { %v14218_v30 = vpop.f32.mrb[2].mxu1 }
 0x281   : > { %v5681_v60 = vpop.f32.mrb[3].mxu1 }
 0x2bc   : > { %v14221_v51 = vpop.f32.mrb[4].mxu1 }
 0x2bd   : > { %v5694_v12 = vpop.f32.mrb[5].mxu1 }
 0x2be   : > { %v14222_v27 = vpop.f32.mrb[6].mxu1 }
 0x2bf   : > { %v5697_v46 = vpop.f32.mrb[7].mxu1 }
 0x2cd   : > { %v14317_v47 = vpop.f32.mrb[4].mxu0 }
 0x2ce   : > { %v14363_v50 = vadd.f32 %v14317_v47, %v14221_v51  ;;  %v11144_v52 = vpop.f32.mrb[5].mxu0 }
 0x2cf   : > { %v14365_v62 = vadd.f32 %v11144_v52, %v5694_v12  ;;  %v14318_v56 = vpop.f32.mrb[6].mxu0 }
 0x2d0   : > { %v14367_v17 = vadd.f32 %v14318_v56, %v14222_v27  ;;  %v11147_v40 = vpop.f32.mrb[7].mxu0 }
 0x2d1   : > { %v14369_v63 = vadd.f32 %v11147_v40, %v5697_v46 }
 0x2ef   : > { %v14337_v31 = vpop.f32.mrb[0].mxu0 }
 0x2f0   : > { %v14359_v33 = vadd.f32 %v14337_v31, %v14217_v61  ;;  %v12491_v23 = vpop.f32.mrb[1].mxu0 }
 0x2f1   : > { %v14360_v8 = vadd.f32 %v12491_v23, %v5678_v9  ;;  %v14338_v10 = vpop.f32.mrb[2].mxu0 }
 0x2f2   : > { %v12555_v55 = vmul.f32 %v14359_v33, %v13975_v24  ;;  %v14341_v28 = vpop.f32.mrb[8].mxu1  ;;  %v14361_v57 = vadd.f32 %v14338_v10, %v14218_v30  ;;  %v12494_v53 = vpop.f32.mrb[3].mxu0 }
 0x2f3   : > { %v14364_v1 = vadd.f32 %v14363_v50, %v14341_v28  ;;  %v12553_v29 = vmul.f32 %v14360_v8, %v13975_v24  ;;  %v12507_v15 = vpop.f32.mrb[9].mxu1  ;;  %v14362_v6 = vadd.f32 %v12494_v53, %v5681_v60 }
 0x2f4   : > { %v12570_v21 = vadd.f32 %v13976_v48, %v12555_v55  ;;  %v14366_v35 = vadd.f32 %v14365_v62, %v12507_v15  ;;  %v12556_v34 = vmul.f32 %v14361_v57, %v13975_v24  ;;  %v14342_v54 = vpop.f32.mrb[10].mxu1 }
 0x2f5   : > { %v12559_v0 = vmul.f32 %v14364_v1, %v13975_v24  ;;  %v12568_v19 = vadd.f32 %v13976_v48, %v12553_v29  ;;  %v14368_v3 = vadd.f32 %v14367_v17, %v14342_v54  ;;  %v12554_v11 = vmul.f32 %v14362_v6, %v13975_v24  ;;  %v12510_v22 = vpop.f32.mrb[11].mxu1 }
 0x2f6   : > { %v12557_v4 = vmul.f32 %v14366_v35, %v13975_v24  ;;  %v12571_v32 = vadd.f32 %v13976_v48, %v12556_v34  ;;  %v14370_v42 = vadd.f32 %v14369_v63, %v12510_v22  ;;  %v12578_v25 = vmax.f32 %v12570_v21, 0.0 }
 0x2f7   : > { %v12574_v45 = vadd.f32 %v13976_v48, %v12559_v0  ;;  %v12560_v26 = vmul.f32 %v14368_v3, %v13975_v24  ;;  %v12569_v2 = vadd.f32 %v13976_v48, %v12554_v11  ;;  %v12576_v49 = vmax.f32 %v12568_v19, 0.0 }
 0x2f8   : > { %v12572_v16 = vadd.f32 %v13976_v48, %v12557_v4  ;;  %v12579_v36 = vmax.f32 %v12571_v32, 0.0  ;;  %v12558_v37 = vmul.f32 %v14370_v42, %v13975_v24 }
 0x2f9   : > { %v12575_v39 = vadd.f32 %v13976_v48, %v12560_v26  ;;  %v12577_v59 = vmax.f32 %v12569_v2, 0.0  ;;  %v12582_v5 = vmax.f32 %v12574_v45, 0.0 }
 0x2fa   : > { %v14004_v13 = vpack.c.bf16 %v12579_v36, %v12578_v25  ;;  %v12573_v14 = vadd.f32 %v13976_v48, %v12558_v37  ;;  %v12580_v18 = vmax.f32 %v12572_v16, 0.0 }
 0x2fb   : > { %v12583_v58 = vmax.f32 %v12575_v39, 0.0  ;;  %v13999_v43 = vpack.c.bf16 %v12577_v59, %v12576_v49 }
 0x2fc   : > { %14016 = vst [vmem:[%s259_s5 + $0x8] sm:$0xff] %v14004_v13   ;;  %v12581_v41 = vmax.f32 %v12573_v14, 0.0 }
 0x2fd   : > { %v14014_v7 = vpack.c.bf16 %v12583_v58, %v12582_v5  ;;  %14000 = vst [vmem:[%s259_s5] sm:$0xff] %v13999_v43  }
 0x2fe   : > { %v14009_v38 = vpack.c.bf16 %v12581_v41, %v12580_v18 }
 0x2ff   : > { %14018 = vst [vmem:[%s259_s5 + $0x18] sm:$0xff] %v14014_v7  }
 0x300   : > { %14017 = vst [vmem:[%s259_s5 + $0x10] sm:$0xff] %v14009_v38  }
 0x301 PF: > { %s14_s17 = sadd.s32 1, %s14546_s17   ;;  %s16752_s15 = smov %s14542_s16 }
 0x302   : > { %p11_p5 = scmp.ge.s32.totalorder %s14_s17, 4   ;;  %s16753_s16 = smov %s16755_s18 }
 0x304   :  { %13 = sbr.rel (!%p11_p5) target bundleno = 2 (0x2), region = 88 }

</bundles_post_ra>
